<compile_context>
chip_gen: v7x
topology: tpu7x:2x2x1
jax: 0.10.0
libtpu: 0.0.40
codegen_flags: <defaults>
</compile_context>

<pallas_src>
import functools

import jax
import jax.numpy as jnp
from jax import lax
from jax.experimental import pallas as pl
from jax.experimental.pallas import tpu as pltpu

BN_EPS = 1e-4  # matches nn.BatchNorm2d(filters, eps=0.0001)


# ----------------------------------------------------------------------------
# Fused Pallas kernel: one whole DnCNN block (depth convs + residual subtract)
# ----------------------------------------------------------------------------
def _make_block_kernel(H, W, Cimg, Cfeat, depth):
    HW = H * W

    def kernel(x_ref, w_ref, s_ref, o_ref, pad_ref):
        # x_ref  : (1, H, W, Cimg)          f32   one input image
        # w_ref  : (depth, 9*Cfeat, Cfeat)  bf16  scale-folded, channel-padded
        # s_ref  : (depth, Cfeat)           f32   folded BN shift (0 for last)
        # o_ref  : (1, H, W, Cimg)          f32   residual output x - dncnn(x)
        # pad_ref: (H+2, W+2, Cfeat)        f32   zero-padded activation scratch
        x = x_ref[0]                                  # (H, W, Cimg) f32
        shifts = s_ref[...]                           # (depth, Cfeat) f32

        # Zero once; the 1-pixel border stays zero for every layer, only the
        # interior is rewritten.  Extra channels [Cimg:) stay zero for layer 0
        # (the layer-0 weight rows for those channels are zero anyway).
        pad_ref[...] = jnp.zeros_like(pad_ref)
        pad_ref[1:H + 1, 1:W + 1, :Cimg] = x

        act = None
        for li in range(depth):                       # static unroll over layers
            if li > 0:
                pad_ref[1:H + 1, 1:W + 1, :] = act.reshape(H, W, Cfeat)

            # dx-shifted windows: do the (unaligned) sublane slice once per dx,
            # then the dy shift is a cheap leading-dim slice.
            xs = [pad_ref[:, dx:dx + W, :] for dx in range(3)]  # (H+2, W, Cfeat)

            # im2col: (HW, 9*Cfeat), column order (dy, dx, cin) to match the
            # HWIO weight flattening done at parameter-prep time.
            cols = []
            for dy in range(3):
                for dx in range(3):
                    cols.append(xs[dx][dy:dy + H].reshape(HW, Cfeat))
            col = jnp.concatenate(cols, axis=1)        # (HW, 9*Cfeat) f32

            # Single MXU matmul: bf16 operands, f32 accumulation.
            y = jnp.dot(col.astype(jnp.bfloat16), w_ref[li],
                        preferred_element_type=jnp.float32)      # (HW, Cfeat)

            if li < depth - 1:
                act = jnp.maximum(y + shifts[li:li + 1, :], 0.0)  # BN shift+ReLU
            else:
                act = y                                # last layer: no BN/ReLU

        h3 = act[:, :Cimg].reshape(H, W, Cimg)         # drop channel padding
        o_ref[...] = (x - h3).reshape(1, H, W, Cimg)   # residual

    return kernel


def dncnn_block_forward(x_nhwc, w_all, s_all):
    """x_nhwc: (B,H,W,Cimg) f32; w_all: (depth,9*Cfeat,Cfeat) bf16; s_all: (depth,Cfeat) f32."""
    B, H, W, Cimg = x_nhwc.shape
    depth, K, Cfeat = w_all.shape
    kernel = _make_block_kernel(H, W, Cimg, Cfeat, depth)

    return pl.pallas_call(
        kernel,
        out_shape=jax.ShapeDtypeStruct((B, H, W, Cimg), jnp.float32),
        grid_spec=pltpu.PrefetchScalarGridSpec(
            num_scalar_prefetch=0,
            grid=(B,),
            in_specs=[
                pl.BlockSpec((1, H, W, Cimg), lambda b: (b, 0, 0, 0)),
                pl.BlockSpec((depth, K, Cfeat), lambda b: (0, 0, 0)),
                pl.BlockSpec((depth, Cfeat), lambda b: (0, 0)),
            ],
            out_specs=pl.BlockSpec((1, H, W, Cimg), lambda b: (b, 0, 0, 0)),
            scratch_shapes=[pltpu.VMEM((H + 2, W + 2, Cfeat), jnp.float32)],
        ),
        compiler_params=pltpu.CompilerParams(
            dimension_semantics=("parallel",)),   # 2 images -> both v7x TCs
    )(x_nhwc, w_all, s_all)


# ----------------------------------------------------------------------------
# Parameter construction & packing (deterministic, in-script)
# ----------------------------------------------------------------------------
def init_dncnn_multiblock_params(key, num_blocks, depth, image_channels, filters):
    """Raw per-layer params: list (per block) of (w_hwio, gamma, beta)."""
    params = []
    for _ in range(num_blocks):
        layers = []
        chans = [image_channels] + [filters] * (depth - 1) + [image_channels]
        for li in range(depth):
            cin, cout = chans[li], chans[li + 1]
            key, kw, kg, kb = jax.random.split(key, 4)
            w = jax.random.normal(kw, (3, 3, cin, cout), jnp.float32) * \
                jnp.sqrt(2.0 / (9 * cin))
            gamma = 1.0 + 0.1 * jax.random.normal(kg, (cout,), jnp.float32)
            beta = 0.1 * jax.random.normal(kb, (cout,), jnp.float32)
            layers.append((w, gamma, beta))   # gamma/beta unused for last layer
        params.append(layers)
    return params


def _fold_bn(w, gamma, beta, has_bn):
    """Eval-mode BatchNorm fold (running_mean=0, running_var=1, eps=BN_EPS)."""
    cout = w.shape[-1]
    if has_bn:
        scale = gamma / jnp.sqrt(1.0 + BN_EPS)
        shift = beta
    else:
        scale = jnp.ones((cout,), jnp.float32)
        shift = jnp.zeros((cout,), jnp.float32)
    return w * scale, shift        # scale folded into conv weights


def pack_block_params(layer_params, cfeat, use_bnorm):
    """Stack a block's layers into one (depth, 9*cfeat, cfeat) bf16 weight and
    one (depth, cfeat) f32 shift tensor (channel-padded, BN-scale folded)."""
    depth = len(layer_params)
    w_list, s_list = [], []
    for li, (w, gamma, beta) in enumerate(layer_params):
        has_bn = use_bnorm and (li < depth - 1)
        w_eff, shift = _fold_bn(w, gamma, beta, has_bn)
        cin, cout = w.shape[2], w.shape[3]
        wp = jnp.zeros((3, 3, cfeat, cfeat), jnp.float32)
        wp = wp.at[:, :, :cin, :cout].set(w_eff)
        sp = jnp.zeros((cfeat,), jnp.float32).at[:cout].set(shift)
        w_list.append(wp.reshape(9 * cfeat, cfeat))   # (dy, dx, cin) flattened
        s_list.append(sp)
    return jnp.stack(w_list).astype(jnp.bfloat16), jnp.stack(s_list)


# ----------------------------------------------------------------------------
# Forward pass (DnCNNBlock residual structure + multi-block chaining)
# ----------------------------------------------------------------------------
@functools.partial(jax.jit, static_argnames=("filters", "use_bnorm"))
def dncnn_multiblock_forward(x_nchw, params, filters=32, use_bnorm=True):
    # PyTorch-style NCHW in/out; NHWC internally (channels on lanes).
    image_channels = x_nchw.shape[1]
    cfeat = max(filters, image_channels)
    x = jnp.transpose(x_nchw, (0, 2, 3, 1)).astype(jnp.float32)
    for layer_params in params:
        w_all, s_all = pack_block_params(layer_params, cfeat, use_bnorm)
        x = dncnn_block_forward(x, w_all, s_all)     # x <- x - dncnn(x)
    return jnp.transpose(x, (0, 3, 1, 2))


# ----------------------------------------------------------------------------
# Pure-JAX reference (XLA conv) with the same numerics contract as the kernel:
# bf16 matmul operands (activations + scale-folded weights), f32 accumulation,
# f32 shift / ReLU / residual.
# ----------------------------------------------------------------------------
def _ref_forward(x_nchw, params, use_bnorm=True):
    x = jnp.transpose(x_nchw, (0, 2, 3, 1)).astype(jnp.float32)
    for layer_params in params:
        depth = len(layer_params)
        h = x
        for li, (w, gamma, beta) in enumerate(layer_params):
            has_bn = use_bnorm and (li < depth - 1)
            w_eff, shift = _fold_bn(w, gamma, beta, has_bn)
            y = lax.conv_general_dilated(
                h.astype(jnp.bfloat16), w_eff.astype(jnp.bfloat16),
                window_strides=(1, 1), padding="SAME",
                dimension_numbers=("NHWC", "HWIO", "NHWC"),
                preferred_element_type=jnp.float32)
            y = y + shift
            if li < depth - 1:
                y = jnp.maximum(y, 0.0)
            h = y
        x = x - h
    return jnp.transpose(x, (0, 3, 1, 2))


# ----------------------------------------------------------------------------
if __name__ == "__main__":
    # Config consistent with DnCNNMultiBlock(block=2, depth=4,
    # image_channels=4, filters=32, use_bnorm=True).
    NUM_BLOCKS, DEPTH, IMAGE_CHANNELS, FILTERS = 2, 4, 4, 32
    B, H, W = 2, 16, 16

    key = jax.random.PRNGKey(0)
    key, kx = jax.random.split(key)
    x = jax.random.normal(kx, (B, IMAGE_CHANNELS, H, W), jnp.float32)  # NCHW

    params = init_dncnn_multiblock_params(
        key, NUM_BLOCKS, DEPTH, IMAGE_CHANNELS, FILTERS)

    out = dncnn_multiblock_forward(x, params, filters=FILTERS, use_bnorm=True)
    out = jax.block_until_ready(out)

    ref = jax.block_until_ready(_ref_forward(x, params, use_bnorm=True))
    assert out.shape == (B, IMAGE_CHANNELS, H, W)
    max_err = float(jnp.max(jnp.abs(out - ref)))
    assert jnp.allclose(out, ref, rtol=1e-3, atol=1e-3), max_err

    print("KERNEL_OK")
</pallas_src>

<mosaic_0001>
module attributes {stable_mosaic.version = 11 : i64} {
  func.func @kernel(%arg0: i32, %arg1: memref<1x16x16x4xf32, #tpu.memory_space<vmem>>, %arg2: memref<4x288x32xbf16, #tpu.memory_space<vmem>>, %arg3: memref<4x32xf32, #tpu.memory_space<vmem>>, %arg4: memref<1x16x16x4xf32, #tpu.memory_space<vmem>>, %arg5: memref<18x18x32xf32, #tpu.memory_space<vmem>>) attributes {dimension_semantics = [#tpu.dimension_semantics<parallel>], iteration_bounds = array<i64: 2>, scalar_prefetch = 0 : i64, scratch_operands = 1 : i64, tpu.core_type = #tpu.core_type<tc>, window_params = [{transform_indices = @transform_0, window_bounds = array<i64: 1, 16, 16, 4>}, {pipeline_mode = #tpu.pipeline_mode<synchronous>, transform_indices = @transform_1, window_bounds = array<i64: 4, 288, 32>}, {pipeline_mode = #tpu.pipeline_mode<synchronous>, transform_indices = @transform_2, window_bounds = array<i64: 4, 32>}, {transform_indices = @transform_3, window_bounds = array<i64: 1, 16, 16, 4>}]} {
    %c0 = arith.constant 0 : index
    %c0_0 = arith.constant 0 : index
    %c0_1 = arith.constant 0 : index
    %c0_2 = arith.constant 0 : index
    %0 = vector.load %arg1[%c0, %c0_0, %c0_1, %c0_2] : memref<1x16x16x4xf32, #tpu.memory_space<vmem>>, vector<1x16x16x4xf32>
    %1 = vector.shape_cast %0 : vector<1x16x16x4xf32> to vector<16x16x4xf32>
    %c0_3 = arith.constant 0 : index
    %c0_4 = arith.constant 0 : index
    %2 = vector.load %arg3[%c0_3, %c0_4] : memref<4x32xf32, #tpu.memory_space<vmem>>, vector<4x32xf32>
    %cst = arith.constant 0.000000e+00 : f32
    %3 = vector.broadcast %cst : f32 to vector<18x18x32xf32>
    %c0_5 = arith.constant 0 : index
    %c0_6 = arith.constant 0 : index
    %c0_7 = arith.constant 0 : index
    %4 = vector.load %arg5[%c0_5, %c0_6, %c0_7] : memref<18x18x32xf32, #tpu.memory_space<vmem>>, vector<18x18x32xf32>
    tpu.vector_store %arg5[%c0_5, %c0_6, %c0_7], %3 {strides = array<i32>} : memref<18x18x32xf32, #tpu.memory_space<vmem>>, vector<18x18x32xf32>,
    %c1 = arith.constant 1 : index
    %c1_8 = arith.constant 1 : index
    %c0_9 = arith.constant 0 : index
    %5 = vector.load %arg5[%c1, %c1_8, %c0_9] : memref<18x18x32xf32, #tpu.memory_space<vmem>>, vector<16x16x4xf32>
    tpu.vector_store %arg5[%c1, %c1_8, %c0_9], %1 {strides = array<i32>} : memref<18x18x32xf32, #tpu.memory_space<vmem>>, vector<16x16x4xf32>,
    %c0_10 = arith.constant 0 : index
    %c0_11 = arith.constant 0 : index
    %c0_12 = arith.constant 0 : index
    %6 = vector.load %arg5[%c0_10, %c0_11, %c0_12] : memref<18x18x32xf32, #tpu.memory_space<vmem>>, vector<18x16x32xf32>
    %c0_13 = arith.constant 0 : index
    %c1_14 = arith.constant 1 : index
    %c0_15 = arith.constant 0 : index
    %7 = vector.load %arg5[%c0_13, %c1_14, %c0_15] : memref<18x18x32xf32, #tpu.memory_space<vmem>>, vector<18x16x32xf32>
    %c0_16 = arith.constant 0 : index
    %c2 = arith.constant 2 : index
    %c0_17 = arith.constant 0 : index
    %8 = vector.load %arg5[%c0_16, %c2, %c0_17] : memref<18x18x32xf32, #tpu.memory_space<vmem>>, vector<18x16x32xf32>
    %9 = vector.extract_strided_slice %6 {offsets = [0, 0, 0], sizes = [16, 16, 32], strides = [1, 1, 1]} : vector<18x16x32xf32> to vector<16x16x32xf32>
    %10 = vector.shape_cast %9 : vector<16x16x32xf32> to vector<256x32xf32>
    %11 = vector.extract_strided_slice %7 {offsets = [0, 0, 0], sizes = [16, 16, 32], strides = [1, 1, 1]} : vector<18x16x32xf32> to vector<16x16x32xf32>
    %12 = vector.shape_cast %11 : vector<16x16x32xf32> to vector<256x32xf32>
    %13 = vector.extract_strided_slice %8 {offsets = [0, 0, 0], sizes = [16, 16, 32], strides = [1, 1, 1]} : vector<18x16x32xf32> to vector<16x16x32xf32>
    %14 = vector.shape_cast %13 : vector<16x16x32xf32> to vector<256x32xf32>
    %15 = vector.extract_strided_slice %6 {offsets = [1, 0, 0], sizes = [16, 16, 32], strides = [1, 1, 1]} : vector<18x16x32xf32> to vector<16x16x32xf32>
    %16 = vector.shape_cast %15 : vector<16x16x32xf32> to vector<256x32xf32>
    %17 = vector.extract_strided_slice %7 {offsets = [1, 0, 0], sizes = [16, 16, 32], strides = [1, 1, 1]} : vector<18x16x32xf32> to vector<16x16x32xf32>
    %18 = vector.shape_cast %17 : vector<16x16x32xf32> to vector<256x32xf32>
    %19 = vector.extract_strided_slice %8 {offsets = [1, 0, 0], sizes = [16, 16, 32], strides = [1, 1, 1]} : vector<18x16x32xf32> to vector<16x16x32xf32>
    %20 = vector.shape_cast %19 : vector<16x16x32xf32> to vector<256x32xf32>
    %21 = vector.extract_strided_slice %6 {offsets = [2, 0, 0], sizes = [16, 16, 32], strides = [1, 1, 1]} : vector<18x16x32xf32> to vector<16x16x32xf32>
    %22 = vector.shape_cast %21 : vector<16x16x32xf32> to vector<256x32xf32>
    %23 = vector.extract_strided_slice %7 {offsets = [2, 0, 0], sizes = [16, 16, 32], strides = [1, 1, 1]} : vector<18x16x32xf32> to vector<16x16x32xf32>
    %24 = vector.shape_cast %23 : vector<16x16x32xf32> to vector<256x32xf32>
    %25 = vector.extract_strided_slice %8 {offsets = [2, 0, 0], sizes = [16, 16, 32], strides = [1, 1, 1]} : vector<18x16x32xf32> to vector<16x16x32xf32>
    %26 = vector.shape_cast %25 : vector<16x16x32xf32> to vector<256x32xf32>
    %27 = tpu.concatenate %10, %12, %14, %16, %18, %20, %22, %24, %26 in 1 : vector<256x32xf32>, vector<256x32xf32>, vector<256x32xf32>, vector<256x32xf32>, vector<256x32xf32>, vector<256x32xf32>, vector<256x32xf32>, vector<256x32xf32>, vector<256x32xf32> -> vector<256x288xf32>
    %28 = arith.truncf %27 : vector<256x288xf32> to vector<256x288xbf16>
    %c0_18 = arith.constant 0 : index
    %c0_19 = arith.constant 0 : index
    %c0_20 = arith.constant 0 : index
    %29 = vector.load %arg2[%c0_18, %c0_19, %c0_20] : memref<4x288x32xbf16, #tpu.memory_space<vmem>>, vector<1x288x32xbf16>
    %30 = vector.shape_cast %29 : vector<1x288x32xbf16> to vector<288x32xbf16>
    %cst_21 = arith.constant dense<0.000000e+00> : vector<256x32xf32>
    %31 = tpu.matmul %28, %30, %cst_21 {dimension_numbers = #tpu.dot_dimension_numbers<[1], [0], [0], [1], [0, 0, 1, 1], [], []>} : vector<256x288xbf16>, vector<288x32xbf16>, vector<256x32xf32> -> vector<256x32xf32>
    %32 = vector.extract_strided_slice %2 {offsets = [0, 0], sizes = [1, 32], strides = [1, 1]} : vector<4x32xf32> to vector<1x32xf32>
    %33 = vector.broadcast %32 : vector<1x32xf32> to vector<256x32xf32>
    %34 = arith.addf %31, %33 : vector<256x32xf32>
    %cst_22 = arith.constant 0.000000e+00 : f32
    %35 = vector.broadcast %cst_22 : f32 to vector<256x32xf32>
    %36 = arith.maximumf %34, %35 : vector<256x32xf32>
    %37 = vector.shape_cast %36 : vector<256x32xf32> to vector<16x16x32xf32>
    %c1_23 = arith.constant 1 : index
    %c1_24 = arith.constant 1 : index
    %c0_25 = arith.constant 0 : index
    %38 = vector.load %arg5[%c1_23, %c1_24, %c0_25] : memref<18x18x32xf32, #tpu.memory_space<vmem>>, vector<16x16x32xf32>
    tpu.vector_store %arg5[%c1_23, %c1_24, %c0_25], %37 {strides = array<i32>} : memref<18x18x32xf32, #tpu.memory_space<vmem>>, vector<16x16x32xf32>,
    %c0_26 = arith.constant 0 : index
    %c0_27 = arith.constant 0 : index
    %c0_28 = arith.constant 0 : index
    %39 = vector.load %arg5[%c0_26, %c0_27, %c0_28] : memref<18x18x32xf32, #tpu.memory_space<vmem>>, vector<18x16x32xf32>
    %c0_29 = arith.constant 0 : index
    %c1_30 = arith.constant 1 : index
    %c0_31 = arith.constant 0 : index
    %40 = vector.load %arg5[%c0_29, %c1_30, %c0_31] : memref<18x18x32xf32, #tpu.memory_space<vmem>>, vector<18x16x32xf32>
    %c0_32 = arith.constant 0 : index
    %c2_33 = arith.constant 2 : index
    %c0_34 = arith.constant 0 : index
    %41 = vector.load %arg5[%c0_32, %c2_33, %c0_34] : memref<18x18x32xf32, #tpu.memory_space<vmem>>, vector<18x16x32xf32>
    %42 = vector.extract_strided_slice %39 {offsets = [0, 0, 0], sizes = [16, 16, 32], strides = [1, 1, 1]} : vector<18x16x32xf32> to vector<16x16x32xf32>
    %43 = vector.shape_cast %42 : vector<16x16x32xf32> to vector<256x32xf32>
    %44 = vector.extract_strided_slice %40 {offsets = [0, 0, 0], sizes = [16, 16, 32], strides = [1, 1, 1]} : vector<18x16x32xf32> to vector<16x16x32xf32>
    %45 = vector.shape_cast %44 : vector<16x16x32xf32> to vector<256x32xf32>
    %46 = vector.extract_strided_slice %41 {offsets = [0, 0, 0], sizes = [16, 16, 32], strides = [1, 1, 1]} : vector<18x16x32xf32> to vector<16x16x32xf32>
    %47 = vector.shape_cast %46 : vector<16x16x32xf32> to vector<256x32xf32>
    %48 = vector.extract_strided_slice %39 {offsets = [1, 0, 0], sizes = [16, 16, 32], strides = [1, 1, 1]} : vector<18x16x32xf32> to vector<16x16x32xf32>
    %49 = vector.shape_cast %48 : vector<16x16x32xf32> to vector<256x32xf32>
    %50 = vector.extract_strided_slice %40 {offsets = [1, 0, 0], sizes = [16, 16, 32], strides = [1, 1, 1]} : vector<18x16x32xf32> to vector<16x16x32xf32>
    %51 = vector.shape_cast %50 : vector<16x16x32xf32> to vector<256x32xf32>
    %52 = vector.extract_strided_slice %41 {offsets = [1, 0, 0], sizes = [16, 16, 32], strides = [1, 1, 1]} : vector<18x16x32xf32> to vector<16x16x32xf32>
    %53 = vector.shape_cast %52 : vector<16x16x32xf32> to vector<256x32xf32>
    %54 = vector.extract_strided_slice %39 {offsets = [2, 0, 0], sizes = [16, 16, 32], strides = [1, 1, 1]} : vector<18x16x32xf32> to vector<16x16x32xf32>
    %55 = vector.shape_cast %54 : vector<16x16x32xf32> to vector<256x32xf32>
    %56 = vector.extract_strided_slice %40 {offsets = [2, 0, 0], sizes = [16, 16, 32], strides = [1, 1, 1]} : vector<18x16x32xf32> to vector<16x16x32xf32>
    %57 = vector.shape_cast %56 : vector<16x16x32xf32> to vector<256x32xf32>
    %58 = vector.extract_strided_slice %41 {offsets = [2, 0, 0], sizes = [16, 16, 32], strides = [1, 1, 1]} : vector<18x16x32xf32> to vector<16x16x32xf32>
    %59 = vector.shape_cast %58 : vector<16x16x32xf32> to vector<256x32xf32>
    %60 = tpu.concatenate %43, %45, %47, %49, %51, %53, %55, %57, %59 in 1 : vector<256x32xf32>, vector<256x32xf32>, vector<256x32xf32>, vector<256x32xf32>, vector<256x32xf32>, vector<256x32xf32>, vector<256x32xf32>, vector<256x32xf32>, vector<256x32xf32> -> vector<256x288xf32>
    %61 = arith.truncf %60 : vector<256x288xf32> to vector<256x288xbf16>
    %c1_35 = arith.constant 1 : index
    %c0_36 = arith.constant 0 : index
    %c0_37 = arith.constant 0 : index
    %62 = vector.load %arg2[%c1_35, %c0_36, %c0_37] : memref<4x288x32xbf16, #tpu.memory_space<vmem>>, vector<1x288x32xbf16>
    %63 = vector.shape_cast %62 : vector<1x288x32xbf16> to vector<288x32xbf16>
    %cst_38 = arith.constant dense<0.000000e+00> : vector<256x32xf32>
    %64 = tpu.matmul %61, %63, %cst_38 {dimension_numbers = #tpu.dot_dimension_numbers<[1], [0], [0], [1], [0, 0, 1, 1], [], []>} : vector<256x288xbf16>, vector<288x32xbf16>, vector<256x32xf32> -> vector<256x32xf32>
    %65 = vector.extract_strided_slice %2 {offsets = [1, 0], sizes = [1, 32], strides = [1, 1]} : vector<4x32xf32> to vector<1x32xf32>
    %66 = vector.broadcast %65 : vector<1x32xf32> to vector<256x32xf32>
    %67 = arith.addf %64, %66 : vector<256x32xf32>
    %cst_39 = arith.constant 0.000000e+00 : f32
    %68 = vector.broadcast %cst_39 : f32 to vector<256x32xf32>
    %69 = arith.maximumf %67, %68 : vector<256x32xf32>
    %70 = vector.shape_cast %69 : vector<256x32xf32> to vector<16x16x32xf32>
    %c1_40 = arith.constant 1 : index
    %c1_41 = arith.constant 1 : index
    %c0_42 = arith.constant 0 : index
    %71 = vector.load %arg5[%c1_40, %c1_41, %c0_42] : memref<18x18x32xf32, #tpu.memory_space<vmem>>, vector<16x16x32xf32>
    tpu.vector_store %arg5[%c1_40, %c1_41, %c0_42], %70 {strides = array<i32>} : memref<18x18x32xf32, #tpu.memory_space<vmem>>, vector<16x16x32xf32>,
    %c0_43 = arith.constant 0 : index
    %c0_44 = arith.constant 0 : index
    %c0_45 = arith.constant 0 : index
    %72 = vector.load %arg5[%c0_43, %c0_44, %c0_45] : memref<18x18x32xf32, #tpu.memory_space<vmem>>, vector<18x16x32xf32>
    %c0_46 = arith.constant 0 : index
    %c1_47 = arith.constant 1 : index
    %c0_48 = arith.constant 0 : index
    %73 = vector.load %arg5[%c0_46, %c1_47, %c0_48] : memref<18x18x32xf32, #tpu.memory_space<vmem>>, vector<18x16x32xf32>
    %c0_49 = arith.constant 0 : index
    %c2_50 = arith.constant 2 : index
    %c0_51 = arith.constant 0 : index
    %74 = vector.load %arg5[%c0_49, %c2_50, %c0_51] : memref<18x18x32xf32, #tpu.memory_space<vmem>>, vector<18x16x32xf32>
    %75 = vector.extract_strided_slice %72 {offsets = [0, 0, 0], sizes = [16, 16, 32], strides = [1, 1, 1]} : vector<18x16x32xf32> to vector<16x16x32xf32>
    %76 = vector.shape_cast %75 : vector<16x16x32xf32> to vector<256x32xf32>
    %77 = vector.extract_strided_slice %73 {offsets = [0, 0, 0], sizes = [16, 16, 32], strides = [1, 1, 1]} : vector<18x16x32xf32> to vector<16x16x32xf32>
    %78 = vector.shape_cast %77 : vector<16x16x32xf32> to vector<256x32xf32>
    %79 = vector.extract_strided_slice %74 {offsets = [0, 0, 0], sizes = [16, 16, 32], strides = [1, 1, 1]} : vector<18x16x32xf32> to vector<16x16x32xf32>
    %80 = vector.shape_cast %79 : vector<16x16x32xf32> to vector<256x32xf32>
    %81 = vector.extract_strided_slice %72 {offsets = [1, 0, 0], sizes = [16, 16, 32], strides = [1, 1, 1]} : vector<18x16x32xf32> to vector<16x16x32xf32>
    %82 = vector.shape_cast %81 : vector<16x16x32xf32> to vector<256x32xf32>
    %83 = vector.extract_strided_slice %73 {offsets = [1, 0, 0], sizes = [16, 16, 32], strides = [1, 1, 1]} : vector<18x16x32xf32> to vector<16x16x32xf32>
    %84 = vector.shape_cast %83 : vector<16x16x32xf32> to vector<256x32xf32>
    %85 = vector.extract_strided_slice %74 {offsets = [1, 0, 0], sizes = [16, 16, 32], strides = [1, 1, 1]} : vector<18x16x32xf32> to vector<16x16x32xf32>
    %86 = vector.shape_cast %85 : vector<16x16x32xf32> to vector<256x32xf32>
    %87 = vector.extract_strided_slice %72 {offsets = [2, 0, 0], sizes = [16, 16, 32], strides = [1, 1, 1]} : vector<18x16x32xf32> to vector<16x16x32xf32>
    %88 = vector.shape_cast %87 : vector<16x16x32xf32> to vector<256x32xf32>
    %89 = vector.extract_strided_slice %73 {offsets = [2, 0, 0], sizes = [16, 16, 32], strides = [1, 1, 1]} : vector<18x16x32xf32> to vector<16x16x32xf32>
    %90 = vector.shape_cast %89 : vector<16x16x32xf32> to vector<256x32xf32>
    %91 = vector.extract_strided_slice %74 {offsets = [2, 0, 0], sizes = [16, 16, 32], strides = [1, 1, 1]} : vector<18x16x32xf32> to vector<16x16x32xf32>
    %92 = vector.shape_cast %91 : vector<16x16x32xf32> to vector<256x32xf32>
    %93 = tpu.concatenate %76, %78, %80, %82, %84, %86, %88, %90, %92 in 1 : vector<256x32xf32>, vector<256x32xf32>, vector<256x32xf32>, vector<256x32xf32>, vector<256x32xf32>, vector<256x32xf32>, vector<256x32xf32>, vector<256x32xf32>, vector<256x32xf32> -> vector<256x288xf32>
    %94 = arith.truncf %93 : vector<256x288xf32> to vector<256x288xbf16>
    %c2_52 = arith.constant 2 : index
    %c0_53 = arith.constant 0 : index
    %c0_54 = arith.constant 0 : index
    %95 = vector.load %arg2[%c2_52, %c0_53, %c0_54] : memref<4x288x32xbf16, #tpu.memory_space<vmem>>, vector<1x288x32xbf16>
    %96 = vector.shape_cast %95 : vector<1x288x32xbf16> to vector<288x32xbf16>
    %cst_55 = arith.constant dense<0.000000e+00> : vector<256x32xf32>
    %97 = tpu.matmul %94, %96, %cst_55 {dimension_numbers = #tpu.dot_dimension_numbers<[1], [0], [0], [1], [0, 0, 1, 1], [], []>} : vector<256x288xbf16>, vector<288x32xbf16>, vector<256x32xf32> -> vector<256x32xf32>
    %98 = vector.extract_strided_slice %2 {offsets = [2, 0], sizes = [1, 32], strides = [1, 1]} : vector<4x32xf32> to vector<1x32xf32>
    %99 = vector.broadcast %98 : vector<1x32xf32> to vector<256x32xf32>
    %100 = arith.addf %97, %99 : vector<256x32xf32>
    %cst_56 = arith.constant 0.000000e+00 : f32
    %101 = vector.broadcast %cst_56 : f32 to vector<256x32xf32>
    %102 = arith.maximumf %100, %101 : vector<256x32xf32>
    %103 = vector.shape_cast %102 : vector<256x32xf32> to vector<16x16x32xf32>
    %c1_57 = arith.constant 1 : index
    %c1_58 = arith.constant 1 : index
    %c0_59 = arith.constant 0 : index
    %104 = vector.load %arg5[%c1_57, %c1_58, %c0_59] : memref<18x18x32xf32, #tpu.memory_space<vmem>>, vector<16x16x32xf32>
    tpu.vector_store %arg5[%c1_57, %c1_58, %c0_59], %103 {strides = array<i32>} : memref<18x18x32xf32, #tpu.memory_space<vmem>>, vector<16x16x32xf32>,
    %c0_60 = arith.constant 0 : index
    %c0_61 = arith.constant 0 : index
    %c0_62 = arith.constant 0 : index
    %105 = vector.load %arg5[%c0_60, %c0_61, %c0_62] : memref<18x18x32xf32, #tpu.memory_space<vmem>>, vector<18x16x32xf32>
    %c0_63 = arith.constant 0 : index
    %c1_64 = arith.constant 1 : index
    %c0_65 = arith.constant 0 : index
    %106 = vector.load %arg5[%c0_63, %c1_64, %c0_65] : memref<18x18x32xf32, #tpu.memory_space<vmem>>, vector<18x16x32xf32>
    %c0_66 = arith.constant 0 : index
    %c2_67 = arith.constant 2 : index
    %c0_68 = arith.constant 0 : index
    %107 = vector.load %arg5[%c0_66, %c2_67, %c0_68] : memref<18x18x32xf32, #tpu.memory_space<vmem>>, vector<18x16x32xf32>
    %108 = vector.extract_strided_slice %105 {offsets = [0, 0, 0], sizes = [16, 16, 32], strides = [1, 1, 1]} : vector<18x16x32xf32> to vector<16x16x32xf32>
    %109 = vector.shape_cast %108 : vector<16x16x32xf32> to vector<256x32xf32>
    %110 = vector.extract_strided_slice %106 {offsets = [0, 0, 0], sizes = [16, 16, 32], strides = [1, 1, 1]} : vector<18x16x32xf32> to vector<16x16x32xf32>
    %111 = vector.shape_cast %110 : vector<16x16x32xf32> to vector<256x32xf32>
    %112 = vector.extract_strided_slice %107 {offsets = [0, 0, 0], sizes = [16, 16, 32], strides = [1, 1, 1]} : vector<18x16x32xf32> to vector<16x16x32xf32>
    %113 = vector.shape_cast %112 : vector<16x16x32xf32> to vector<256x32xf32>
    %114 = vector.extract_strided_slice %105 {offsets = [1, 0, 0], sizes = [16, 16, 32], strides = [1, 1, 1]} : vector<18x16x32xf32> to vector<16x16x32xf32>
    %115 = vector.shape_cast %114 : vector<16x16x32xf32> to vector<256x32xf32>
    %116 = vector.extract_strided_slice %106 {offsets = [1, 0, 0], sizes = [16, 16, 32], strides = [1, 1, 1]} : vector<18x16x32xf32> to vector<16x16x32xf32>
    %117 = vector.shape_cast %116 : vector<16x16x32xf32> to vector<256x32xf32>
    %118 = vector.extract_strided_slice %107 {offsets = [1, 0, 0], sizes = [16, 16, 32], strides = [1, 1, 1]} : vector<18x16x32xf32> to vector<16x16x32xf32>
    %119 = vector.shape_cast %118 : vector<16x16x32xf32> to vector<256x32xf32>
    %120 = vector.extract_strided_slice %105 {offsets = [2, 0, 0], sizes = [16, 16, 32], strides = [1, 1, 1]} : vector<18x16x32xf32> to vector<16x16x32xf32>
    %121 = vector.shape_cast %120 : vector<16x16x32xf32> to vector<256x32xf32>
    %122 = vector.extract_strided_slice %106 {offsets = [2, 0, 0], sizes = [16, 16, 32], strides = [1, 1, 1]} : vector<18x16x32xf32> to vector<16x16x32xf32>
    %123 = vector.shape_cast %122 : vector<16x16x32xf32> to vector<256x32xf32>
    %124 = vector.extract_strided_slice %107 {offsets = [2, 0, 0], sizes = [16, 16, 32], strides = [1, 1, 1]} : vector<18x16x32xf32> to vector<16x16x32xf32>
    %125 = vector.shape_cast %124 : vector<16x16x32xf32> to vector<256x32xf32>
    %126 = tpu.concatenate %109, %111, %113, %115, %117, %119, %121, %123, %125 in 1 : vector<256x32xf32>, vector<256x32xf32>, vector<256x32xf32>, vector<256x32xf32>, vector<256x32xf32>, vector<256x32xf32>, vector<256x32xf32>, vector<256x32xf32>, vector<256x32xf32> -> vector<256x288xf32>
    %127 = arith.truncf %126 : vector<256x288xf32> to vector<256x288xbf16>
    %c3 = arith.constant 3 : index
    %c0_69 = arith.constant 0 : index
    %c0_70 = arith.constant 0 : index
    %128 = vector.load %arg2[%c3, %c0_69, %c0_70] : memref<4x288x32xbf16, #tpu.memory_space<vmem>>, vector<1x288x32xbf16>
    %129 = vector.shape_cast %128 : vector<1x288x32xbf16> to vector<288x32xbf16>
    %cst_71 = arith.constant dense<0.000000e+00> : vector<256x32xf32>
    %130 = tpu.matmul %127, %129, %cst_71 {dimension_numbers = #tpu.dot_dimension_numbers<[1], [0], [0], [1], [0, 0, 1, 1], [], []>} : vector<256x288xbf16>, vector<288x32xbf16>, vector<256x32xf32> -> vector<256x32xf32>
    %131 = vector.extract_strided_slice %130 {offsets = [0, 0], sizes = [256, 4], strides = [1, 1]} : vector<256x32xf32> to vector<256x4xf32>
    %132 = vector.shape_cast %131 : vector<256x4xf32> to vector<16x16x4xf32>
    %133 = arith.subf %1, %132 : vector<16x16x4xf32>
    %134 = vector.shape_cast %133 : vector<16x16x4xf32> to vector<1x16x16x4xf32>
    %c0_72 = arith.constant 0 : index
    %c0_73 = arith.constant 0 : index
    %c0_74 = arith.constant 0 : index
    %c0_75 = arith.constant 0 : index
    %135 = vector.load %arg4[%c0_72, %c0_73, %c0_74, %c0_75] : memref<1x16x16x4xf32, #tpu.memory_space<vmem>>, vector<1x16x16x4xf32>
    tpu.vector_store %arg4[%c0_72, %c0_73, %c0_74, %c0_75], %134 {strides = array<i32>} : memref<1x16x16x4xf32, #tpu.memory_space<vmem>>, vector<1x16x16x4xf32>,
    return
  }
  func.func @transform_0(%arg0: i32) -> (i32, i32, i32, i32) {
    %c0_i32 = arith.constant 0 : i32
    %c0_i32_0 = arith.constant 0 : i32
    %c0_i32_1 = arith.constant 0 : i32
    %c0_i32_2 = arith.constant 0 : i32
    return %arg0, %c0_i32, %c0_i32_0, %c0_i32_1 : i32, i32, i32, i32
  }
  func.func @transform_1(%arg0: i32) -> (i32, i32, i32) {
    %c0_i32 = arith.constant 0 : i32
    %c0_i32_0 = arith.constant 0 : i32
    %c0_i32_1 = arith.constant 0 : i32
    %c0_i32_2 = arith.constant 0 : i32
    return %c0_i32, %c0_i32_0, %c0_i32_1 : i32, i32, i32
  }
  func.func @transform_2(%arg0: i32) -> (i32, i32) {
    %c0_i32 = arith.constant 0 : i32
    %c0_i32_0 = arith.constant 0 : i32
    %c0_i32_1 = arith.constant 0 : i32
    return %c0_i32, %c0_i32_0 : i32, i32
  }
  func.func @transform_3(%arg0: i32) -> (i32, i32, i32, i32) {
    %c0_i32 = arith.constant 0 : i32
    %c0_i32_0 = arith.constant 0 : i32
    %c0_i32_1 = arith.constant 0 : i32
    %c0_i32_2 = arith.constant 0 : i32
    return %arg0, %c0_i32, %c0_i32_0, %c0_i32_1 : i32, i32, i32, i32
  }
}

</mosaic_0001>

<bundles_post_ra>
// kernel: dncnn_multiblock_forward.2
= control target key start
LH: loop header
LB: loop body
LE: loop exit
PB: predicated region body
PF: predicated region fallthrough
CT: control target
= control target key end

     0   :  { %s9908_s12 = smov 0   ;;  %s14011_s0 = inlined_call_operand.vmem [shape: f32[2,16,16,4], index: 0, kind: input, shape index: {}]   ;;  %s14012_s1 = inlined_call_operand.vmem [shape: bf16[4,288,32], index: 1, kind: input, shape index: {}]   ;;  %s14013_s2 = inlined_call_operand.vmem [shape: f32[4,32], index: 2, kind: input, shape index: {}]   ;;  %s14014_s3 = inlined_call_operand.vmem [shape: f32[2,16,16,4], index: 3, kind: output, shape index: {}]  }
   0x1 LB: > { %s6791_s13 = sadd.s32 4294967295, %s9882_s12   ;;  %p6795_p0 = scmp.ge.s32.totalorder %s9882_s12, 1  ;;  %s9882_s12 = sphi %s9908_s12, %s13_s12  }
   0x2   : > { %p137_p1 = scmp.lt.s32.totalorder %s9882_s12, 3 }
   0x4   : > { %p138_p2 = pnand %p6795_p0, %p137_p1 }
   0x6   : > { %141 = sbr.rel (%p138_p2) target bundleno = 1911 (0x777), region = 32 }
   0xd   : > { %vm205_vm0 = vcmask 261120   ;;  %vm208_vm1 = vcmask 254976   ;;  %p9918_p3 = scmp.lt.s32.totalorder %s6791_s13, 1  ;;  %v9884_v0 = vmov 0.0   ;;  %vm262_vm2 = vcmask 31744   ;;  %s9885_s19 = smov 32  }
   0xe   : > { %206 = vst.msk [vmem:[#allocation2] sm:$0xff] %vm205_vm0, %v9884_v0  ;;  %207 = vst.msk [vmem:[#allocation2 + $0x8] sm:$0xff] %vm205_vm0, %v9884_v0  ;;  %s9886_s20 = smov 64   ;;  %s9887_s21 = smov 96   ;;  %vm1115_vm3 = vcmask 523264   ;;  %vm1148_vm4 = vcmask 785408  }
   0xf   : > { %209 = vst.msk [vmem:[#allocation2 + $0x10] sm:$0x3] %vm208_vm1, %v9884_v0  ;;  %212 = vst.msk [vmem:[#allocation2 + $0x28] sm:$0x3] %vm208_vm1, %v9884_v0  ;;  %s14324_s13 = smov (!%p9918_p3, %s6791_s13), 1 }
  0x10   : > { %210 = vst.msk [vmem:[#allocation2 + $0x18] sm:$0xff] %vm205_vm0, %v9884_v0  ;;  %211 = vst.msk [vmem:[#allocation2 + $0x20] sm:$0xff] %vm205_vm0, %v9884_v0  ;;  %s7046_s15 = sshll.u32 %s14324_s13, 8 }
  0x11   : > { %213 = vst.msk [vmem:[#allocation2 + $0x30] sm:$0xff] %vm205_vm0, %v9884_v0  ;;  %214 = vst.msk [vmem:[#allocation2 + $0x38] sm:$0xff] %vm205_vm0, %v9884_v0  ;;  %s9988_s18 = scalar_lea.vmem %s14011_s0, %s7046_s15 }
  0x12   : > { %215 = vst.msk [vmem:[#allocation2 + $0x40] sm:$0x3] %vm208_vm1, %v9884_v0  ;;  %218 = vst.msk [vmem:[#allocation2 + $0x58] sm:$0x3] %vm208_vm1, %v9884_v0  ;;  %v9991_v1 = vld [vmem:[%s9988_s18 + $0x10] sm:$0xff]  ;;  %v9994_v2 = vld [vmem:[%s9988_s18 + $0x18] sm:$0xff] }
  0x13   : > { %216 = vst.msk [vmem:[#allocation2 + $0x48] sm:$0xff] %vm205_vm0, %v9884_v0  ;;  %217 = vst.msk [vmem:[#allocation2 + $0x50] sm:$0xff] %vm205_vm0, %v9884_v0  ;;  %v9997_v3 = vld [vmem:[%s9988_s18] sm:$0xff]  ;;  %v10004_v4 = vld [vmem:[%s9988_s18 + $0x8] sm:$0xff] }
  0x14   : > { %219 = vst.msk [vmem:[#allocation2 + $0x60] sm:$0xff] %vm205_vm0, %v9884_v0  ;;  %220 = vst.msk [vmem:[#allocation2 + $0x68] sm:$0xff] %vm205_vm0, %v9884_v0  ;;  %v10009_v5 = vld [vmem:[%s9988_s18 + $0x20] sm:$0xff]  ;;  %v10012_v6 = vld [vmem:[%s9988_s18 + $0x28] sm:$0xff] }
  0x15   : > { %221 = vst.msk [vmem:[#allocation2 + $0x70] sm:$0x3] %vm208_vm1, %v9884_v0  ;;  %224 = vst.msk [vmem:[#allocation2 + $0x88] sm:$0x3] %vm208_vm1, %v9884_v0  ;;  %v331_v7 = vld [vmem:[#allocation2 + $0x1] sm:$0xff]  ;;  %v10021_v9 = vld [vmem:[%s9988_s18 + $0x30] sm:$0xff] }
  0x16   : > { %222 = vst.msk [vmem:[#allocation2 + $0x78] sm:$0xff] %vm205_vm0, %v9884_v0  ;;  %223 = vst.msk [vmem:[#allocation2 + $0x80] sm:$0xff] %vm205_vm0, %v9884_v0  ;;  %v332_v8 = vld [vmem:[#allocation2 + $0x9] sm:$0xff]  ;;  %v10024_v11 = vld [vmem:[%s9988_s18 + $0x38] sm:$0xff] }
  0x17   : > { %225 = vst.msk [vmem:[#allocation2 + $0x90] sm:$0xff] %vm205_vm0, %v9884_v0  ;;  %226 = vst.msk [vmem:[#allocation2 + $0x98] sm:$0xff] %vm205_vm0, %v9884_v0  ;;  %v7728_v10 = vpack.i.bf16 %v332_v8, %v331_v7  ;;  %v10029_v12 = vld [vmem:[%s9988_s18 + $0x40] sm:$0xff]  ;;  %v10032_v13 = vld [vmem:[%s9988_s18 + $0x48] sm:$0xff] }
  0x18   : > { %227 = vst.msk [vmem:[#allocation2 + $0xa0] sm:$0x3] %vm208_vm1, %v9884_v0  ;;  %230 = vst.msk [vmem:[#allocation2 + $0xb8] sm:$0x3] %vm208_vm1, %v9884_v0  ;;  %v10041_v14 = vld [vmem:[%s9988_s18 + $0x50] sm:$0xff]  ;;  %v10044_v15 = vld [vmem:[%s9988_s18 + $0x58] sm:$0xff] }
  0x19   : > { %228 = vst.msk [vmem:[#allocation2 + $0xa8] sm:$0xff] %vm205_vm0, %v9884_v0  ;;  %229 = vst.msk [vmem:[#allocation2 + $0xb0] sm:$0xff] %vm205_vm0, %v9884_v0  ;;  %v10047_v16 = vld [vmem:[%s9988_s18 + $0x60] sm:$0xff]  ;;  %7729 = vrot.lane.b32.xlu0 %v7728_v10, %s9885_s19  ;;  %v10055_v17 = vld [vmem:[%s9988_s18 + $0x68] sm:$0xff] }
  0x1a   : > { %231 = vst.msk [vmem:[#allocation2 + $0xc0] sm:$0xff] %vm205_vm0, %v9884_v0  ;;  %232 = vst.msk [vmem:[#allocation2 + $0xc8] sm:$0xff] %vm205_vm0, %v9884_v0  ;;  %v10060_v18 = vld [vmem:[%s9988_s18 + $0x70] sm:$0xff]  ;;  %v10063_v19 = vld [vmem:[%s9988_s18 + $0x78] sm:$0xff] }
  0x1b   : > { %233 = vst.msk [vmem:[#allocation2 + $0xd0] sm:$0x3] %vm208_vm1, %v9884_v0  ;;  %236 = vst.msk [vmem:[#allocation2 + $0xe8] sm:$0x3] %vm208_vm1, %v9884_v0  ;;  %v10072_v20 = vld [vmem:[%s9988_s18 + $0x80] sm:$0xff]  ;;  %v10075_v21 = vld [vmem:[%s9988_s18 + $0x88] sm:$0xff] }
  0x1c   : > { %234 = vst.msk [vmem:[#allocation2 + $0xd8] sm:$0xff] %vm205_vm0, %v9884_v0  ;;  %235 = vst.msk [vmem:[#allocation2 + $0xe0] sm:$0xff] %vm205_vm0, %v9884_v0  ;;  %v10078_v22 = vld [vmem:[%s9988_s18 + $0x90] sm:$0xff]  ;;  %v10085_v23 = vld [vmem:[%s9988_s18 + $0x98] sm:$0xff] }
  0x1d   : > { %237 = vst.msk [vmem:[#allocation2 + $0xf0] sm:$0xff] %vm205_vm0, %v9884_v0  ;;  %238 = vst.msk [vmem:[#allocation2 + $0xf8] sm:$0xff] %vm205_vm0, %v9884_v0  ;;  %v10090_v24 = vld [vmem:[%s9988_s18 + $0xa0] sm:$0xff]  ;;  %v10093_v25 = vld [vmem:[%s9988_s18 + $0xa8] sm:$0xff] }
  0x1e   : > { %239 = vst.msk [vmem:[#allocation2 + $0x100] sm:$0x3] %vm208_vm1, %v9884_v0  ;;  %242 = vst.msk [vmem:[#allocation2 + $0x118] sm:$0x3] %vm208_vm1, %v9884_v0  ;;  %v10104_v35 = vld [vmem:[%s9988_s18 + $0xb0] sm:$0xff]  ;;  %v10107_v36 = vld [vmem:[%s9988_s18 + $0xb8] sm:$0xff] }
  0x1f   : > { %240 = vst.msk [vmem:[#allocation2 + $0x108] sm:$0xff] %vm205_vm0, %v9884_v0  ;;  %241 = vst.msk [vmem:[#allocation2 + $0x110] sm:$0xff] %vm205_vm0, %v9884_v0  ;;  %v10129_v50 = vld [vmem:[%s9988_s18 + $0xc0] sm:$0xff]  ;;  %v10132_v51 = vld [vmem:[%s9988_s18 + $0xc8] sm:$0xff] }
  0x20   : > { %243 = vst.msk [vmem:[#allocation2 + $0x120] sm:$0xff] %vm205_vm0, %v9884_v0  ;;  %244 = vst.msk [vmem:[#allocation2 + $0x128] sm:$0xff] %vm205_vm0, %v9884_v0  ;;  %v10135_v52 = vld [vmem:[%s9988_s18 + $0xd0] sm:$0xff]  ;;  %v10142_v53 = vld [vmem:[%s9988_s18 + $0xd8] sm:$0xff] }
  0x21   : > { %245 = vst.msk [vmem:[#allocation2 + $0x130] sm:$0x3] %vm208_vm1, %v9884_v0  ;;  %248 = vst.msk [vmem:[#allocation2 + $0x148] sm:$0x3] %vm208_vm1, %v9884_v0  ;;  %v10147_v54 = vld [vmem:[%s9988_s18 + $0xe0] sm:$0xff]  ;;  %v10150_v55 = vld [vmem:[%s9988_s18 + $0xe8] sm:$0xff] }
  0x22   : > { %246 = vst.msk [vmem:[#allocation2 + $0x138] sm:$0xff] %vm205_vm0, %v9884_v0  ;;  %247 = vst.msk [vmem:[#allocation2 + $0x140] sm:$0xff] %vm205_vm0, %v9884_v0 }
  0x23   : > { %249 = vst.msk [vmem:[#allocation2 + $0x150] sm:$0xff] %vm205_vm0, %v9884_v0  ;;  %250 = vst.msk [vmem:[#allocation2 + $0x158] sm:$0xff] %vm205_vm0, %v9884_v0 }
  0x24   : > { %251 = vst.msk [vmem:[#allocation2 + $0x160] sm:$0x3] %vm208_vm1, %v9884_v0  ;;  %254 = vst.msk [vmem:[#allocation2 + $0x178] sm:$0x3] %vm208_vm1, %v9884_v0 }
  0x25   : > { %252 = vst.msk [vmem:[#allocation2 + $0x168] sm:$0xff] %vm205_vm0, %v9884_v0  ;;  %253 = vst.msk [vmem:[#allocation2 + $0x170] sm:$0xff] %vm205_vm0, %v9884_v0 }
  0x26   : > { %255 = vst.msk [vmem:[#allocation2 + $0x180] sm:$0xff] %vm205_vm0, %v9884_v0  ;;  %256 = vst.msk [vmem:[#allocation2 + $0x188] sm:$0xff] %vm205_vm0, %v9884_v0 }
  0x27   : > { %257 = vst.msk [vmem:[#allocation2 + $0x190] sm:$0x3] %vm208_vm1, %v9884_v0  ;;  %260 = vst.msk [vmem:[#allocation2 + $0x1a8] sm:$0x3] %vm208_vm1, %v9884_v0 }
  0x28   : > { %258 = vst.msk [vmem:[#allocation2 + $0x198] sm:$0xff] %vm205_vm0, %v9884_v0  ;;  %259 = vst.msk [vmem:[#allocation2 + $0x1a0] sm:$0xff] %vm205_vm0, %v9884_v0 }
  0x29   : > { %14116 = vst [vmem:[#allocation3_spill] sm:$0xff] %v9991_v1  ;;  %14117 = vst [vmem:[#allocation4_spill] sm:$0xff] %v9994_v2 }
  0x2a   : > { %14118 = vst [vmem:[#allocation5_spill] sm:$0xff] %v9997_v3  ;;  %265 = vst.msk [vmem:[#allocation2 + $0x31] sm:$0xff] %vm262_vm2, %v9991_v1 }
  0x2b   : > { %266 = vst.msk [vmem:[#allocation2 + $0x39] sm:$0xff] %vm262_vm2, %v9994_v2  ;;  %14119 = vst [vmem:[#allocation6_spill] sm:$0xff] %v10004_v4 }
  0x2c   : > { %263 = vst.msk [vmem:[#allocation2 + $0x19] sm:$0xff] %vm262_vm2, %v9997_v3  ;;  %14120 = vst [vmem:[#allocation7_spill] sm:$0xff] %v10009_v5 }
  0x2d   : > { %14121 = vst [vmem:[#allocation8_spill] sm:$0xff] %v10012_v6  ;;  %264 = vst.msk [vmem:[#allocation2 + $0x21] sm:$0xff] %vm262_vm2, %v10004_v4 }
  0x2e   : > { %267 = vst.msk [vmem:[#allocation2 + $0x49] sm:$0xff] %vm262_vm2, %v10009_v5  ;;  %268 = vst.msk [vmem:[#allocation2 + $0x51] sm:$0xff] %vm262_vm2, %v10012_v6 }
  0x2f   : > { %14122 = vst [vmem:[#allocation9_spill] sm:$0xff] %v10021_v9  ;;  %14123 = vst [vmem:[#allocation10_spill] sm:$0xff] %v10024_v11 }
  0x30   : > { %269 = vst.msk [vmem:[#allocation2 + $0x61] sm:$0xff] %vm262_vm2, %v10021_v9  ;;  %14124 = vst [vmem:[#allocation11_spill] sm:$0xff] %v10029_v12 }
  0x31   : > { %14125 = vst [vmem:[#allocation12_spill] sm:$0xff] %v10032_v13  ;;  %270 = vst.msk [vmem:[#allocation2 + $0x69] sm:$0xff] %vm262_vm2, %v10024_v11  ;;  %v335_v26 = vld [vmem:[#allocation2 + $0x31] sm:$0xff] }
  0x32   : > { %271 = vst.msk [vmem:[#allocation2 + $0x79] sm:$0xff] %vm262_vm2, %v10029_v12  ;;  %272 = vst.msk [vmem:[#allocation2 + $0x81] sm:$0xff] %vm262_vm2, %v10032_v13  ;;  %v336_v27 = vld [vmem:[#allocation2 + $0x39] sm:$0xff]  ;;  %v10347_v6 = vld [vmem:[#allocation2 + $0x30] sm:$0xff] }
  0x33   : > { %14126 = vst [vmem:[#allocation13_spill] sm:$0xff] %v10041_v14  ;;  %14127 = vst [vmem:[#allocation14_spill] sm:$0xff] %v10044_v15  ;;  %v333_v28 = vld [vmem:[#allocation2 + $0x19] sm:$0xff]  ;;  %v10101_v29 = vpack.i.bf16 %v336_v27, %v335_v26 }
  0x34   : > { %14128 = vst [vmem:[#allocation15_spill] sm:$0xff] %v10047_v16  ;;  %273 = vst.msk [vmem:[#allocation2 + $0x91] sm:$0xff] %vm262_vm2, %v10041_v14  ;;  %v334_v30 = vld [vmem:[#allocation2 + $0x21] sm:$0xff]  ;;  %v10337_v12 = vld [vmem:[#allocation2 + $0x18] sm:$0xff] }
  0x35   : > { %274 = vst.msk [vmem:[#allocation2 + $0x99] sm:$0xff] %vm262_vm2, %v10044_v15  ;;  %14129 = vst [vmem:[#allocation16_spill] sm:$0xff] %v10055_v17  ;;  %v337_v31 = vld [vmem:[#allocation2 + $0x49] sm:$0xff]  ;;  %v338_v32 = vld [vmem:[#allocation2 + $0x51] sm:$0xff]  ;;  %v7733_v33 = vpack.i.bf16 %v334_v30, %v333_v28  ;;  %7739 = vrot.lane.b32.xlu1 %v10101_v29, %s9885_s19 }
  0x36   : > { %275 = vst.msk [vmem:[#allocation2 + $0xa9] sm:$0xff] %vm262_vm2, %v10047_v16  ;;  %14130 = vst [vmem:[#allocation17_spill] sm:$0xff] %v10060_v18  ;;  %v10111_v37 = vpack.i.bf16 %v338_v32, %v337_v31  ;;  %v10339_v11 = vld [vmem:[#allocation2 + $0x20] sm:$0xff]  ;;  %v10349_v5 = vld [vmem:[#allocation2 + $0x38] sm:$0xff] }
  0x37   : > { %14131 = vst [vmem:[#allocation18_spill] sm:$0xff] %v10063_v19  ;;  %276 = vst.msk [vmem:[#allocation2 + $0xb1] sm:$0xff] %vm262_vm2, %v10055_v17  ;;  %v339_v34 = vld [vmem:[#allocation2 + $0x61] sm:$0xff]  ;;  %7734 = vrot.lane.b32.xlu0 %v7733_v33, %s9885_s19  ;;  %v10359_v4 = vld [vmem:[#allocation2 + $0x50] sm:$0xff]  ;;  %v7888_v3 = vpack.i.bf16 %v10339_v11, %v10337_v12 }
  0x38   : > { %277 = vst.msk [vmem:[#allocation2 + $0xc1] sm:$0xff] %vm262_vm2, %v10060_v18  ;;  %278 = vst.msk [vmem:[#allocation2 + $0xc9] sm:$0xff] %vm262_vm2, %v10063_v19  ;;  %v340_v38 = vld [vmem:[#allocation2 + $0x69] sm:$0xff] }
  0x39   : > { %14132 = vst [vmem:[#allocation19_spill] sm:$0xff] %v10072_v20  ;;  %14133 = vst [vmem:[#allocation20_spill] sm:$0xff] %v10075_v21  ;;  %v10118_v39 = vpack.i.bf16 %v340_v38, %v339_v34  ;;  %v341_v40 = vld [vmem:[#allocation2 + $0x79] sm:$0xff]  ;;  %v342_v41 = vld [vmem:[#allocation2 + $0x81] sm:$0xff]  ;;  %7744 = vrot.lane.b32.xlu1 %v10111_v37, %s9885_s19 }
  0x3a   : > { %14134 = vst [vmem:[#allocation21_spill] sm:$0xff] %v10078_v22  ;;  %279 = vst.msk [vmem:[#allocation2 + $0xd9] sm:$0xff] %vm262_vm2, %v10072_v20  ;;  %v10122_v45 = vpack.i.bf16 %v342_v41, %v341_v40  ;;  %v367_v41 = vld [vmem:[#allocation2 + $0x2] sm:$0xff] }
  0x3b   : > { %280 = vst.msk [vmem:[#allocation2 + $0xe1] sm:$0xff] %vm262_vm2, %v10075_v21  ;;  %14135 = vst [vmem:[#allocation22_spill] sm:$0xff] %v10085_v23  ;;  %v343_v42 = vld [vmem:[#allocation2 + $0x91] sm:$0xff]  ;;  %7749 = vrot.lane.b32.xlu0 %v10118_v39, %s9885_s19  ;;  %v10357_v1 = vld [vmem:[#allocation2 + $0x48] sm:$0xff] }
  0x3c   : > { %281 = vst.msk [vmem:[#allocation2 + $0xf1] sm:$0xff] %vm262_vm2, %v10078_v22  ;;  %14136 = vst [vmem:[#allocation23_spill] sm:$0xff] %v10090_v24  ;;  %v344_v43 = vld [vmem:[#allocation2 + $0x99] sm:$0xff] }
  0x3d   : > { %14137 = vst [vmem:[#allocation24_spill] sm:$0xff] %v10093_v25  ;;  %282 = vst.msk [vmem:[#allocation2 + $0xf9] sm:$0xff] %vm262_vm2, %v10085_v23  ;;  %v345_v44 = vld [vmem:[#allocation2 + $0xa9] sm:$0xff]  ;;  %v10126_v49 = vpack.i.bf16 %v344_v43, %v343_v42  ;;  %7754 = vrot.lane.b32.xlu1 %v10122_v45, %s9885_s19 }
  0x3e   : > { %283 = vst.msk [vmem:[#allocation2 + $0x109] sm:$0xff] %vm262_vm2, %v10090_v24  ;;  %284 = vst.msk [vmem:[#allocation2 + $0x111] sm:$0xff] %vm262_vm2, %v10093_v25  ;;  %v346_v46 = vld [vmem:[#allocation2 + $0xb1] sm:$0xff] }
  0x3f   : > { %14138 = vst [vmem:[#allocation25_spill] sm:$0xff] %v10104_v35  ;;  %14139 = vst [vmem:[#allocation26_spill] sm:$0xff] %v10107_v36  ;;  %v347_v47 = vld [vmem:[#allocation2 + $0xc1] sm:$0xff]  ;;  %v348_v48 = vld [vmem:[#allocation2 + $0xc9] sm:$0xff]  ;;  %v10160_v56 = vpack.i.bf16 %v346_v46, %v345_v44  ;;  %7759 = vrot.lane.b32.xlu0 %v10126_v49, %s9885_s19 }
  0x40   : > { %285 = vst.msk [vmem:[#allocation2 + $0x121] sm:$0xff] %vm262_vm2, %v10104_v35  ;;  %286 = vst.msk [vmem:[#allocation2 + $0x129] sm:$0xff] %vm262_vm2, %v10107_v36  ;;  %v10164_v57 = vpack.i.bf16 %v348_v48, %v347_v47  ;;  %v368_v42 = vld [vmem:[#allocation2 + $0xa] sm:$0xff]  ;;  %v369_v46 = vld [vmem:[#allocation2 + $0x1a] sm:$0xff] }
  0x41   : > { %14140 = vst [vmem:[#allocation27_spill] sm:$0xff] %v10129_v50  ;;  %14141 = vst [vmem:[#allocation28_spill] sm:$0xff] %v10132_v51  ;;  %v349_v58 = vld [vmem:[#allocation2 + $0xd9] sm:$0xff]  ;;  %7764 = vrot.lane.b32.xlu1 %v10160_v56, %s9885_s19  ;;  %v7808_v44 = vpack.i.bf16 %v368_v42, %v367_v41  ;;  %v370_v47 = vld [vmem:[#allocation2 + $0x22] sm:$0xff] }
  0x42   : > { %14142 = vst [vmem:[#allocation29_spill] sm:$0xff] %v10135_v52  ;;  %287 = vst.msk [vmem:[#allocation2 + $0x139] sm:$0xff] %vm262_vm2, %v10129_v50  ;;  %v350_v59 = vld [vmem:[#allocation2 + $0xe1] sm:$0xff]  ;;  %v10196_v48 = vld [vmem:[#allocation2 + $0x32] sm:$0xff] }
  0x43   : > { %288 = vst.msk [vmem:[#allocation2 + $0x141] sm:$0xff] %vm262_vm2, %v10132_v51  ;;  %14143 = vst [vmem:[#allocation30_spill] sm:$0xff] %v10142_v53  ;;  %v351_v60 = vld [vmem:[#allocation2 + $0xf1] sm:$0xff]  ;;  %v10168_v62 = vpack.i.bf16 %v350_v59, %v349_v58  ;;  %7769 = vrot.lane.b32.xlu0 %v10164_v57, %s9885_s19  ;;  %v10198_v58 = vld [vmem:[#allocation2 + $0x3a] sm:$0xff]  ;;  %v10202_v59 = vpack.i.bf16 %v370_v47, %v369_v46 }
  0x44   : > { %289 = vst.msk [vmem:[#allocation2 + $0x151] sm:$0xff] %vm262_vm2, %v10135_v52  ;;  %14144 = vst [vmem:[#allocation31_spill] sm:$0xff] %v10147_v54  ;;  %v352_v61 = vld [vmem:[#allocation2 + $0xf9] sm:$0xff]  ;;  %v10247_v42 = vld [vmem:[#allocation2 + $0xaa] sm:$0xff] }
  0x45   : > { %14145 = vst [vmem:[#allocation32_spill] sm:$0xff] %v10150_v55  ;;  %290 = vst.msk [vmem:[#allocation2 + $0x159] sm:$0xff] %vm262_vm2, %v10142_v53  ;;  %v10172_v63 = vpack.i.bf16 %v352_v61, %v351_v60  ;;  %v353_v0 = vld [vmem:[#allocation2 + $0x109] sm:$0xff]  ;;  %v354_v7 = vld [vmem:[#allocation2 + $0x111] sm:$0xff]  ;;  %7774 = vrot.lane.b32.xlu1 %v10168_v62, %s9885_s19  ;;  %v10207_v60 = vpack.i.bf16 %v10198_v58, %v10196_v48 }
  0x46   : > { %291 = vst.msk [vmem:[#allocation2 + $0x169] sm:$0xff] %vm262_vm2, %v10147_v54  ;;  %292 = vst.msk [vmem:[#allocation2 + $0x171] sm:$0xff] %vm262_vm2, %v10150_v55  ;;  %v10176_v26 = vpack.i.bf16 %v354_v7, %v353_v0  ;;  %v10209_v61 = vld [vmem:[#allocation2 + $0x4a] sm:$0xff]  ;;  %v10211_v0 = vld [vmem:[#allocation2 + $0x52] sm:$0xff] }
  0x47   : > { %v355_v8 = vld [vmem:[#allocation2 + $0x121] sm:$0xff]  ;;  %v356_v10 = vld [vmem:[#allocation2 + $0x129] sm:$0xff]  ;;  %7779 = vrot.lane.b32.xlu0 %v10172_v63, %s9885_s19  ;;  %v10277_v52 = vld [vmem:[#allocation2 + $0xf2] sm:$0xff]  ;;  %14162 = vst [vmem:[#allocation49_spill] sm:$0xff] %v10337_v12 }
  0x48   : > { %v10180_v27 = vpack.i.bf16 %v356_v10, %v355_v8  ;;  %v10213_v7 = vld [vmem:[#allocation2 + $0x62] sm:$0xff]  ;;  %v10215_v8 = vld [vmem:[#allocation2 + $0x6a] sm:$0xff]  ;;  %v10267_v55 = vld [vmem:[#allocation2 + $0xda] sm:$0xff]  ;;  %14150 = vst [vmem:[#allocation37_spill] sm:$0xff] %v10277_v52 }
  0x49   : > { %v357_v28 = vld [vmem:[#allocation2 + $0x139] sm:$0xff]  ;;  %7784 = vrot.lane.b32.xlu1 %v10176_v26, %s9885_s19  ;;  %v10218_v10 = vld [vmem:[%s9988_s18 + $0xf0] sm:$0xff]  ;;  %v10245_v41 = vpack.i.bf16 %v10215_v8, %v10213_v7  ;;  %v10269_v54 = vld [vmem:[#allocation2 + $0xe2] sm:$0xff]  ;;  %14163 = vst [vmem:[#allocation50_spill] sm:$0xff] %v10339_v11 }
  0x4a   : > { %v358_v30 = vld [vmem:[#allocation2 + $0x141] sm:$0xff]  ;;  %14148 = vst [vmem:[#allocation35_spill] sm:$0xff] %v10218_v10  ;;  %293 = vst.msk [vmem:[#allocation2 + $0x181] sm:$0xff] %vm262_vm2, %v10218_v10  ;;  %v10265_v10 = vld [vmem:[#allocation2 + $0xca] sm:$0xff]  ;;  %v10295_v25 = vpack.i.bf16 %v10269_v54, %v10267_v55 }
  0x4b   : > { %v359_v31 = vld [vmem:[#allocation2 + $0x151] sm:$0xff]  ;;  %v10184_v33 = vpack.i.bf16 %v358_v30, %v357_v28  ;;  %7789 = vrot.lane.b32.xlu0 %v10180_v27, %s9885_s19  ;;  %v10223_v30 = vld [vmem:[#allocation2 + $0x7a] sm:$0xff]  ;;  %v10297_v24 = vld [vmem:[#allocation2 + $0x122] sm:$0xff]  ;;  %14165 = vst [vmem:[#allocation52_spill] sm:$0xff] %v10347_v6 }
  0x4c   : > { %v360_v32 = vld [vmem:[#allocation2 + $0x159] sm:$0xff]  ;;  %v10287_v36 = vld [vmem:[#allocation2 + $0x10a] sm:$0xff]  ;;  %14154 = vst [vmem:[#allocation41_spill] sm:$0xff] %v10297_v24  ;;  %v10309_v20 = vld [vmem:[#allocation2 + $0x142] sm:$0xff] }
  0x4d   : > { %v10188_v34 = vpack.i.bf16 %v360_v32, %v359_v31  ;;  %v361_v38 = vld [vmem:[#allocation2 + $0x169] sm:$0xff]  ;;  %v362_v40 = vld [vmem:[#allocation2 + $0x171] sm:$0xff]  ;;  %7794 = vrot.lane.b32.xlu1 %v10184_v33, %s9885_s19  ;;  %v10235_v32 = vpack.i.bf16 %v10211_v0, %v10209_v61  ;;  %v10279_v51 = vld [vmem:[#allocation2 + $0xfa] sm:$0xff]  ;;  %14152 = vst [vmem:[#allocation39_spill] sm:$0xff] %v10287_v36 }
  0x4e   : > { %v10192_v43 = vpack.i.bf16 %v362_v40, %v361_v38  ;;  %v10221_v28 = vld [vmem:[%s9988_s18 + $0xf8] sm:$0xff]  ;;  %v10225_v31 = vld [vmem:[#allocation2 + $0x82] sm:$0xff]  ;;  %14151 = vst [vmem:[#allocation38_spill] sm:$0xff] %v10279_v51  ;;  %v10299_v23 = vld [vmem:[#allocation2 + $0x12a] sm:$0xff]  ;;  %v10305_v22 = vpack.i.bf16 %v10279_v51, %v10277_v52 }
  0x4f   : > { %14146 = vst [vmem:[#allocation33_spill] sm:$0xff] %v10188_v34  ;;  %7799 = vrot.lane.b32.xlu0 %v10188_v34, %s9885_s19  ;;  %14149 = vst [vmem:[#allocation36_spill] sm:$0xff] %v10221_v28  ;;  %v10237_v38 = vld [vmem:[#allocation2 + $0x92] sm:$0xff]  ;;  %v10239_v40 = vld [vmem:[#allocation2 + $0x9a] sm:$0xff]  ;;  %v10255_v46 = vpack.i.bf16 %v10225_v31, %v10223_v30  ;;  %v10323_v17 = vpack.i.bf16 %v10299_v23, %v10297_v24 }
  0x50   : > { %14147 = vst [vmem:[#allocation34_spill] sm:$0xff] %v10192_v43  ;;  %294 = vst.msk [vmem:[#allocation2 + $0x189] sm:$0xff] %vm262_vm2, %v10221_v28  ;;  %v10261_v47 = vpack.i.bf16 %v10239_v40, %v10237_v38  ;;  %v10263_v28 = vld [vmem:[#allocation2 + $0xc2] sm:$0xff]  ;;  %v10289_v35 = vld [vmem:[#allocation2 + $0x112] sm:$0xff] }
  0x51   : > { %7804 = vrot.lane.b32.xlu1 %v10192_v43, %s9885_s19  ;;  %v10285_v50 = vpack.i.bf16 %v10265_v10, %v10263_v28  ;;  %14153 = vst [vmem:[#allocation40_spill] sm:$0xff] %v10289_v35  ;;  %14155 = vst [vmem:[#allocation42_spill] sm:$0xff] %v10299_v23  ;;  %v10307_v21 = vld [vmem:[#allocation2 + $0x13a] sm:$0xff]  ;;  %v10315_v19 = vpack.i.bf16 %v10289_v35, %v10287_v36  ;;  %v10317_v18 = vld [vmem:[#allocation2 + $0x152] sm:$0xff] }
  0x52   : > { %14156 = vst [vmem:[#allocation43_spill] sm:$0xff] %v10307_v21  ;;  %14157 = vst [vmem:[#allocation44_spill] sm:$0xff] %v10309_v20  ;;  %v10325_v16 = vld [vmem:[#allocation2 + $0x15a] sm:$0xff]  ;;  %v10327_v15 = vld [vmem:[#allocation2 + $0x16a] sm:$0xff]  ;;  %v10335_v13 = vpack.i.bf16 %v10309_v20, %v10307_v21  ;;  %v10378_v21 = vpack.i.bf16 %v10359_v4, %v10357_v1 }
  0x53   : > { %7809 = vrot.lane.b32.xlu0 %v7808_v44, %s9886_s20  ;;  %v10249_v44 = vld [vmem:[#allocation2 + $0xb2] sm:$0xff]  ;;  %14158 = vst [vmem:[#allocation45_spill] sm:$0xff] %v10317_v18  ;;  %14159 = vst [vmem:[#allocation46_spill] sm:$0xff] %v10325_v16  ;;  %v10345_v9 = vpack.i.bf16 %v10325_v16, %v10317_v18  ;;  %v10365_v16 = vld [vmem:[#allocation2 + $0x60] sm:$0xff] }
  0x54   : > { %v10275_v53 = vpack.i.bf16 %v10249_v44, %v10247_v42  ;;  %14160 = vst [vmem:[#allocation47_spill] sm:$0xff] %v10327_v15  ;;  %v10329_v14 = vld [vmem:[#allocation2 + $0x172] sm:$0xff]  ;;  %14166 = vst [vmem:[#allocation53_spill] sm:$0xff] %v10349_v5  ;;  %v10367_v18 = vld [vmem:[#allocation2 + $0x68] sm:$0xff] }
  0x55   : > { %7814 = vrot.lane.b32.xlu1 %v10202_v59, %s9886_s20  ;;  %14161 = vst [vmem:[#allocation48_spill] sm:$0xff] %v10329_v14  ;;  %14164 = vst [vmem:[#allocation51_spill] sm:$0xff] %v10345_v9  ;;  %v10355_v2 = vpack.i.bf16 %v10329_v14, %v10327_v15  ;;  %v10373_v14 = vpack.i.bf16 %v10349_v5, %v10347_v6  ;;  %v305_v15 = vld [vmem:[#allocation2 + $0x78] sm:$0xff]  ;;  %v306_v20 = vld [vmem:[#allocation2 + $0x80] sm:$0xff]  ;;  %v10384_v23 = vpack.i.bf16 %v10367_v18, %v10365_v16 }
  0x56   : > { %14168 = vst [vmem:[#allocation55_spill] sm:$0xff] %v10357_v1  ;;  %14169 = vst [vmem:[#allocation56_spill] sm:$0xff] %v10359_v4  ;;  %v307_v11 = vld [vmem:[#allocation2 + $0x90] sm:$0xff]  ;;  %v308_v12 = vld [vmem:[#allocation2 + $0x98] sm:$0xff]  ;;  %v10388_v24 = vpack.i.bf16 %v306_v20, %v305_v15 }
  0x57   : > { %7819 = vrot.lane.b32.xlu0 %v10207_v60, %s9886_s20  ;;  %14167 = vst [vmem:[#allocation54_spill] sm:$0xff] %v10355_v2  ;;  %14170 = vst [vmem:[#allocation57_spill] sm:$0xff] %v10365_v16  ;;  %v309_v5 = vld [vmem:[#allocation2 + $0xa8] sm:$0xff]  ;;  %v310_v6 = vld [vmem:[#allocation2 + $0xb0] sm:$0xff]  ;;  %v10392_v1 = vpack.i.bf16 %v308_v12, %v307_v11 }
  0x58   : > { %14171 = vst [vmem:[#allocation58_spill] sm:$0xff] %v10367_v18  ;;  %v313_v4 = vld [vmem:[#allocation2 + $0xd8] sm:$0xff]  ;;  %v314_v43 = vld [vmem:[#allocation2 + $0xe0] sm:$0xff]  ;;  %v10402_v15 = vpack.i.bf16 %v310_v6, %v309_v5  ;;  %v315_v20 = vld [vmem:[#allocation2 + $0xf0] sm:$0xff] }
  0x59   : > { %7824 = vrot.lane.b32.xlu1 %v10235_v32, %s9886_s20  ;;  %v9648_v16 = vld [vmem:[%s14012_s1 + $0x40] sm:$0xff]   ;;  %v317_v12 = vld [vmem:[#allocation2 + $0x108] sm:$0xff]  ;;  %v318_v34 = vld [vmem:[#allocation2 + $0x110] sm:$0xff]  ;;  %v10416_v6 = vpack.i.bf16 %v314_v43, %v313_v4 }
  0x5a   : > { %v9649_v18 = vld [vmem:[%s14012_s1] sm:$0xff]   ;;  %7048 = vmatprep.subr.bf16.mxu0 %v9648_v16  ;;  %v9650_v35 = vld [vmem:[%s14012_s1 + $0x48] sm:$0xff]   ;;  %v9652_v36 = vld [vmem:[%s14012_s1 + $0x50] sm:$0xff]   ;;  %v10430_v4 = vpack.i.bf16 %v318_v34, %v317_v12 }
  0x5b   : > { %7829 = vrot.lane.b32.xlu0 %v10245_v41, %s9886_s20  ;;  %7049 = vmatpush3.bf16.msra.mxu0 %v9649_v18  ;;  %v9651_v5 = vld [vmem:[%s14012_s1 + $0x8] sm:$0xff]   ;;  %v319_v16 = vld [vmem:[#allocation2 + $0x120] sm:$0xff]  ;;  %v9653_v51 = vld [vmem:[%s14012_s1 + $0x10] sm:$0xff]  }
  0x5c   : > { %7050 = vmatprep.subr.bf16.mxu0 %v9650_v35  ;;  %v320_v18 = vld [vmem:[#allocation2 + $0x128] sm:$0xff]  ;;  %v322_v35 = vld [vmem:[#allocation2 + $0x140] sm:$0xff]  ;;  %v9654_v43 = vld [vmem:[%s14012_s1 + $0x58] sm:$0xff]  }
  0x5d   : > { %7834 = vrot.lane.b32.xlu1 %v10255_v46, %s9886_s20  ;;  %v325_v12 = vld [vmem:[#allocation2 + $0x168] sm:$0xff] }
  0x5e   : > { %v328_v52 = vld [vmem:[#allocation2 + $0x188] sm:$0xff] }
  0x5f   : > { %7839 = vrot.lane.b32.xlu0 %v10261_v47, %s9886_s20  ;;  %7051 = vmatpush3.bf16.msra.mxu0 %v9651_v5  ;;  %v326_v5 = vld [vmem:[#allocation2 + $0x170] sm:$0xff] }
  0x60   : > { %7052 = vmatprep.subr.bf16.mxu0 %v9652_v36  ;;  %v323_v36 = vld [vmem:[#allocation2 + $0x150] sm:$0xff] }
  0x61   : > { %7844 = vrot.lane.b32.xlu1 %v10275_v53, %s9886_s20 }
  0x63   : > { %7849 = vrot.lane.b32.xlu0 %v10285_v50, %s9886_s20  ;;  %7053 = vmatpush3.bf16.msra.mxu0 %v9653_v51  ;;  %v324_v51 = vld [vmem:[#allocation2 + $0x158] sm:$0xff] }
  0x64   : > { %7054 = vmatprep.subr.bf16.mxu0 %v9654_v43  ;;  %v9657_v43 = vld [vmem:[%s14012_s1 + $0x20] sm:$0xff]  }
  0x65   : > { %7854 = vrot.lane.b32.xlu1 %v10295_v25, %s9886_s20 }
  0x67   : > { %7859 = vrot.lane.b32.xlu0 %v10305_v22, %s9886_s20 }
  0x69   : > { %7864 = vrot.lane.b32.xlu1 %v10315_v19, %s9886_s20 }
  0x6b   : > { %7869 = vrot.lane.b32.xlu0 %v10323_v17, %s9886_s20 }
  0x6d   : > { %7874 = vrot.lane.b32.xlu1 %v10335_v13, %s9886_s20 }
  0x6f   : > { %7879 = vrot.lane.b32.xlu0 %v10345_v9, %s9886_s20  ;;  %v316_v9 = vld [vmem:[#allocation2 + $0xf8] sm:$0xff] }
  0x71   : > { %7884 = vrot.lane.b32.xlu1 %v10355_v2, %s9886_s20  ;;  %v312_v2 = vld [vmem:[#allocation2 + $0xc8] sm:$0xff] }
  0x73   : > { %7889 = vrot.lane.b32.xlu0 %v7888_v3, %s9887_s21  ;;  %v311_v3 = vld [vmem:[#allocation2 + $0xc0] sm:$0xff] }
  0x74   : > { %v10406_v11 = vpack.i.bf16 %v312_v2, %v311_v3  ;;  %v10420_v2 = vpack.i.bf16 %v316_v9, %v315_v20  ;;  %v321_v3 = vld [vmem:[#allocation2 + $0x138] sm:$0xff]  ;;  %v10434_v9 = vpack.i.bf16 %v320_v18, %v319_v16  ;;  %v10448_v16 = vpack.i.bf16 %v324_v51, %v323_v36  ;;  %v9656_v18 = vld [vmem:[%s14012_s1 + $0x60] sm:$0xff]   ;;  %v9658_v36 = vld [vmem:[%s14012_s1 + $0x68] sm:$0xff]  }
  0x75   : > { %7894 = vrot.lane.b32.xlu1 %v10373_v14, %s9887_s21  ;;  %v9655_v20 = vld [vmem:[%s14012_s1 + $0x18] sm:$0xff]   ;;  %v10444_v34 = vpack.i.bf16 %v322_v35, %v321_v3  ;;  %v10455_v3 = vpack.i.bf16 %v326_v5, %v325_v12  ;;  %v327_v35 = vld [vmem:[#allocation2 + $0x180] sm:$0xff]  ;;  %v9659_v51 = vld [vmem:[%s14012_s1 + $0x28] sm:$0xff]  }
  0x76   : > { %7055 = vmatpush3.bf16.msra.mxu0 %v9655_v20  ;;  %v10462_v20 = vpack.i.bf16 %v328_v52, %v327_v35  ;;  %v9660_v52 = vld [vmem:[%s14012_s1 + $0x70] sm:$0xff]   ;;  %v9662_v5 = vld [vmem:[%s14012_s1 + $0x80] sm:$0xff]   ;;  %v9665_v35 = vld [vmem:[%s14012_s1 + $0x88] sm:$0xff]  }
  0x77   : > { %7899 = vrot.lane.b32.xlu0 %v10378_v21, %s9887_s21  ;;  %7056 = vmatprep.subr.bf16.mxu0 %v9656_v18  ;;  %v9661_v12 = vld [vmem:[%s14012_s1 + $0x30] sm:$0xff]   ;;  %v9663_v18 = vld [vmem:[%s14012_s1 + $0x78] sm:$0xff]  }
  0x78   : > { %7568 = vmatprep.subr.bf16.mxu1 %v9662_v5 }
  0x79   : > { %7904 = vrot.lane.b32.xlu1 %v10384_v23, %s9887_s21  ;;  %7569 = vmatpush3.bf16.msra.mxu1 %v9662_v5  ;;  %v330_v5 = vld [vmem:[#allocation2 + $0x1a0] sm:$0xff] }
  0x7a   : > { %7057 = vmatpush3.bf16.msra.mxu0 %v9657_v43  ;;  %7570 = vmatprep.subr.bf16.mxu1 %v9665_v35  ;;  %v1282_v43 = vpack.c.bf16 %v10211_v0, %v10209_v61 }
  0x7b   : > { %7909 = vrot.lane.b32.xlu0 %v10388_v24, %s9887_s21  ;;  %7058 = vmatprep.subr.bf16.mxu0 %v9658_v36  ;;  %v399_v36 = vld [vmem:[#allocation2 + $0x182] sm:$0xff] }
  0x7d   : > { %7914 = vrot.lane.b32.xlu1 %v10392_v1, %s9887_s21  ;;  %7571 = vmatpush3.bf16.msra.mxu1 %v9665_v35  ;;  %v365_v35 = vld [vmem:[#allocation2 + $0x199] sm:$0xff] }
  0x7e   : > { %7059 = vmatpush3.bf16.msra.mxu0 %v9659_v51  ;;  %v400_v51 = vld [vmem:[#allocation2 + $0x18a] sm:$0xff] }
  0x7f   : > { %7919 = vrot.lane.b32.xlu0 %v10402_v15, %s9887_s21  ;;  %7060 = vmatprep.subr.bf16.mxu0 %v9660_v52 }
  0x81   : > { %7924 = vrot.lane.b32.xlu1 %v10406_v11, %s9887_s21 }
  0x82   : > { %7061 = vmatpush3.bf16.msra.mxu0 %v9661_v12  ;;  %v329_v12 = vld [vmem:[#allocation2 + $0x198] sm:$0xff] }
  0x83   : > { %7929 = vrot.lane.b32.xlu0 %v10416_v6, %s9887_s21  ;;  %7062 = vmatprep.subr.bf16.mxu0 %v9663_v18  ;;  %v8193_v18 = vpack.i.bf16 %v400_v51, %v399_v36 }
  0x85   : > { %7934 = vrot.lane.b32.xlu1 %v10420_v2, %s9887_s21 }
  0x87   : > { %7939 = vrot.lane.b32.xlu0 %v10430_v4, %s9887_s21 }
  0x89   : > { %7944 = vrot.lane.b32.xlu1 %v10434_v9, %s9887_s21 }
  0x8b   : > { %7949 = vrot.lane.b32.xlu0 %v10444_v34, %s9887_s21 }
  0x8d   : > { %7954 = vrot.lane.b32.xlu1 %v10448_v16, %s9887_s21 }
  0x8f   : > { %7959 = vrot.lane.b32.xlu0 %v10455_v3, %s9887_s21 }
  0x91   : > { %7964 = vrot.lane.b32.xlu1 %v10462_v20, %s9887_s21 }
  0x93   : > { %7969 = vrot.lane.b32.xlu0 %v10202_v59, %s9885_s19  ;;  %v9664_v59 = vld [vmem:[%s14012_s1 + $0x38] sm:$0xff]  }
  0x94   : > { %7063 = vmatpush3.bf16.msra.mxu0 %v9664_v59  ;;  %v8198_v59 = vpack.i.bf16 %v330_v5, %v329_v12 }
  0x95   : > { %7974 = vrot.lane.b32.xlu1 %v10207_v60, %s9885_s19  ;;  %v1279_v60 = vpack.c.bf16 %v10198_v58, %v10196_v48  ;;  %v10516_v48 = vpop.permute.xlu0 %7729 }
  0x97   : > { %7979 = vrot.lane.b32.xlu0 %v10235_v32, %s9885_s19  ;;  %7572 = vmatprep.mubr.msk.bf16.mxu1 %vm205_vm0, %v1279_v60  ;;  %v366_v60 = vld [vmem:[#allocation2 + $0x1a1] sm:$0xff] }
  0x98   : > { %7573 = vmatmul.mubr.msk.bf16.vlgmr.msra.gmra.mrb[0].mxu1 %vm205_vm0, %v1282_v43  ;;  %v14188_v43 = vld [vmem:[#allocation41_spill] sm:$0xff] }
  0x99   : > { %7984 = vrot.lane.b32.xlu1 %v10245_v41, %s9885_s19  ;;  %v14178_v41 = vld [vmem:[#allocation39_spill] sm:$0xff] }
  0x9b   : > { %7989 = vrot.lane.b32.xlu0 %v10255_v46, %s9885_s19 }
  0x9d   : > { %7994 = vrot.lane.b32.xlu1 %v10261_v47, %s9885_s19 }
  0x9f   : > { %7999 = vrot.lane.b32.xlu0 %v10373_v14, %s9886_s20 }
  0xa1   : > { %8004 = vrot.lane.b32.xlu1 %v10101_v29, %s9887_s21  ;;  %v1288_v29 = vpack.c.bf16 %v10225_v31, %v10223_v30 }
  0xa3   : > { %8009 = vrot.lane.b32.xlu0 %v10378_v21, %s9886_s20  ;;  %v1285_v21 = vpack.c.bf16 %v10215_v8, %v10213_v7  ;;  %v1291_v7 = vpack.c.bf16 %v10239_v40, %v10237_v38 }
  0xa5   : > { %8014 = vrot.lane.b32.xlu1 %v10111_v37, %s9887_s21  ;;  %7576 = vmatprep.mubr.msk.bf16.mxu1 %vm205_vm0, %v1285_v21  ;;  %v14189_v21 = vld [vmem:[#allocation42_spill] sm:$0xff] }
  0xa6   : > { %7577 = vmatmul.mubr.msk.bf16.gmra.mrb[4].mxu1 %vm205_vm0, %v1288_v29  ;;  %v1309_v29 = vpack.c.bf16 %v14189_v21, %v14188_v43 }
  0xa7   : > { %8019 = vrot.lane.b32.xlu0 %v10384_v23, %s9886_s20  ;;  %v10522_v58 = vpop.permute.xlu1 %7739  ;;  %7580 = vmatprep.mubr.msk.bf16.mxu1 %vm205_vm0, %v1291_v7  ;;  %v14190_v7 = vld [vmem:[#allocation43_spill] sm:$0xff] }
  0xa9   : > { %v10524_v61 = vpop.permute.xlu0 %7734  ;;  %8024 = vrot.lane.b32.xlu1 %v10118_v39, %s9887_s21 }
  0xab   : > { %8029 = vrot.lane.b32.xlu0 %v10388_v24, %s9886_s20  ;;  %v10530_v14 = vpop.permute.xlu1 %7744 }
  0xad   : > { %v10536_v37 = vpop.permute.xlu0 %7749  ;;  %8034 = vrot.lane.b32.xlu1 %v10122_v45, %s9887_s21 }
  0xaf   : > { %8039 = vrot.lane.b32.xlu0 %v10392_v1, %s9886_s20  ;;  %v10544_v23 = vpop.permute.xlu1 %7754 }
  0xb1   : > { %v10546_v24 = vpop.permute.xlu0 %7759  ;;  %8044 = vrot.lane.b32.xlu1 %v10126_v49, %s9887_s21 }
  0xb3   : > { %8049 = vrot.lane.b32.xlu0 %v10402_v15, %s9886_s20  ;;  %v10552_v39 = vpop.permute.xlu1 %7764  ;;  %v14184_v15 = vld [vmem:[#allocation51_spill] sm:$0xff] }
  0xb5   : > { %v10554_v45 = vpop.permute.xlu0 %7769  ;;  %8054 = vrot.lane.b32.xlu1 %v10160_v56, %s9887_s21  ;;  %v1294_v56 = vpack.c.bf16 %v10249_v44, %v10247_v42  ;;  %v14179_v42 = vld [vmem:[#allocation40_spill] sm:$0xff] }
  0xb6   : > { %v1306_v44 = vpack.c.bf16 %v14179_v42, %v14178_v41 }
  0xb7   : > { %8059 = vrot.lane.b32.xlu0 %v10275_v53, %s9885_s19  ;;  %v10560_v1 = vpop.permute.xlu1 %7774  ;;  %7581 = vmatmul.mubr.msk.bf16.gmra.mrb[8].mxu1 %vm205_vm0, %v1294_v56  ;;  %v14191_v56 = vld [vmem:[#allocation44_spill] sm:$0xff] }
  0xb9   : > { %v10562_v0 = vpop.permute.xlu0 %7779  ;;  %8064 = vrot.lane.b32.xlu1 %v10406_v11, %s9886_s20 }
  0xbb   : > { %8069 = vrot.lane.b32.xlu0 %v10164_v57, %s9887_s21  ;;  %v10568_v49 = vpop.permute.xlu1 %7784 }
  0xbd   : > { %v10574_v8 = vpop.permute.xlu0 %7789  ;;  %8074 = vrot.lane.b32.xlu1 %v10285_v50, %s9885_s19 }
  0xbe   : > { %14172 = vst [vmem:[#allocation59_spill] sm:$0xff] %v10574_v8 }
  0xbf   : > { %8079 = vrot.lane.b32.xlu0 %v10416_v6, %s9886_s20  ;;  %v10582_v53 = vpop.permute.xlu1 %7794  ;;  %v363_v6 = vld [vmem:[#allocation2 + $0x181] sm:$0xff] }
  0xc0   : > { %14173 = vst [vmem:[#allocation60_spill] sm:$0xff] %v10582_v53 }
  0xc1   : > { %v10584_v57 = vpop.permute.xlu0 %7799  ;;  %8084 = vrot.lane.b32.xlu1 %v10168_v62, %s9887_s21  ;;  %v1300_v62 = vpack.c.bf16 %v10269_v54, %v10267_v55 }
  0xc2   : > { %14174 = vst [vmem:[#allocation61_spill] sm:$0xff] %v10584_v57 }
  0xc3   : > { %8089 = vrot.lane.b32.xlu0 %v10295_v25, %s9885_s19  ;;  %v10590_v30 = vpop.permute.xlu1 %7804  ;;  %v1297_v25 = vpack.c.bf16 %v10265_v10, %v10263_v28  ;;  %v14177_v10 = vld [vmem:[#allocation38_spill] sm:$0xff] }
  0xc4   : > { %14175 = vst [vmem:[#allocation62_spill] sm:$0xff] %v10590_v30 }
  0xc5   : > { %v10592_v50 = vpop.permute.xlu0 %7809  ;;  %8094 = vrot.lane.b32.xlu1 %v10420_v2, %s9886_s20  ;;  %7584 = vmatprep.mubr.msk.bf16.mxu1 %vm205_vm0, %v1297_v25  ;;  %v364_v2 = vld [vmem:[#allocation2 + $0x189] sm:$0xff]  ;;  %v1312_v25 = vpack.c.bf16 %v14191_v56, %v14190_v7  ;;  %v401_v7 = vld [vmem:[#allocation2 + $0x19a] sm:$0xff] }
  0xc6   : > { %7585 = vmatmul.mubr.msk.bf16.gmra.mrb[12].mxu1 %vm205_vm0, %v1300_v62  ;;  %v402_v56 = vld [vmem:[#allocation2 + $0x1a2] sm:$0xff] }
  0xc7   : > { %8099 = vrot.lane.b32.xlu0 %v10172_v63, %s9887_s21  ;;  %v10598_v31 = vpop.permute.xlu1 %7814 }
  0xc8   : > { %v7817_v57 = vunpack.i.h.bf16 %v10598_v31 }
  0xc9   : > { %v10600_v32 = vpop.permute.xlu0 %7819  ;;  %8104 = vrot.lane.b32.xlu1 %v10305_v22, %s9885_s19 }
  0xcb   : > { %8109 = vrot.lane.b32.xlu0 %v10430_v4, %s9886_s20  ;;  %v10610_v38 = vpop.permute.xlu1 %7824 }
  0xcd   : > { %v10612_v40 = vpop.permute.xlu0 %7829  ;;  %8114 = vrot.lane.b32.xlu1 %v10176_v26, %s9887_s21 }
  0xcf   : > { %8119 = vrot.lane.b32.xlu0 %v10315_v19, %s9885_s19  ;;  %v10620_v22 = vpop.permute.xlu1 %7834 }
  0xd1   : > { %v10622_v63 = vpop.permute.xlu0 %7839  ;;  %8124 = vrot.lane.b32.xlu1 %v10434_v9, %s9886_s20  ;;  %v14186_v9 = vld [vmem:[#allocation34_spill] sm:$0xff] }
  0xd3   : > { %8129 = vrot.lane.b32.xlu0 %v10180_v27, %s9887_s21  ;;  %v10628_v54 = vpop.permute.xlu1 %7844  ;;  %v14176_v27 = vld [vmem:[#allocation37_spill] sm:$0xff] }
  0xd4   : > { %v1303_v28 = vpack.c.bf16 %v14177_v10, %v14176_v27 }
  0xd5   : > { %v10630_v55 = vpop.permute.xlu0 %7849  ;;  %8134 = vrot.lane.b32.xlu1 %v10323_v17, %s9885_s19 }
  0xd6   : > { %7588 = vmatprep.mubr.msk.bf16.mxu1 %vm205_vm0, %v1303_v28 }
  0xd7   : > { %8139 = vrot.lane.b32.xlu0 %v10444_v34, %s9886_s20  ;;  %v10636_v19 = vpop.permute.xlu1 %7854  ;;  %7589 = vmatmul.mubr.msk.bf16.gmra.mrb[16].mxu1 %vm205_vm0, %v1306_v44  ;;  %v14187_v34 = vld [vmem:[#allocation54_spill] sm:$0xff] }
  0xd8   : > { %7592 = vmatprep.mubr.msk.bf16.mxu1 %vm205_vm0, %v1309_v29  ;;  %v1321_v29 = vpack.c.bf16 %v400_v51, %v399_v36  ;;  %v7811_v36 = vunpack.i.l.bf16 %v10592_v50 }
  0xd9   : > { %v10638_v26 = vpop.permute.xlu0 %7859  ;;  %8144 = vrot.lane.b32.xlu1 %v10184_v33, %s9887_s21  ;;  %v14181_v33 = vld [vmem:[#allocation33_spill] sm:$0xff] }
  0xdb   : > { %8149 = vrot.lane.b32.xlu0 %v10335_v13, %s9885_s19  ;;  %v10648_v17 = vpop.permute.xlu1 %7864 }
  0xdd   : > { %v10650_v46 = vpop.permute.xlu0 %7869  ;;  %8154 = vrot.lane.b32.xlu1 %v10448_v16, %s9886_s20  ;;  %v8188_v16 = vpack.i.bf16 %v364_v2, %v363_v6  ;;  %v14193_v6 = vld [vmem:[#allocation46_spill] sm:$0xff] }
  0xde   : > { %14180 = vst [vmem:[#allocation37_spill] sm:$0xff] %v10650_v46 }
  0xdf   : > { %8159 = vrot.lane.b32.xlu0 %v14181_v33, %s9887_s21  ;;  %v10658_v13 = vpop.permute.xlu1 %7874  ;;  %7593 = vmatmul.mubr.msk.bf16.gmra.mrb[20].mxu1 %vm205_vm0, %v1312_v25 }
  0xe0   : > { %14182 = vst [vmem:[#allocation38_spill] sm:$0xff] %v10658_v13 }
  0xe1   : > { %v10660_v47 = vpop.permute.xlu0 %7879  ;;  %8164 = vrot.lane.b32.xlu1 %v14184_v15, %s9885_s19  ;;  %v14192_v15 = vld [vmem:[#allocation45_spill] sm:$0xff] }
  0xe2   : > { %14183 = vst [vmem:[#allocation39_spill] sm:$0xff] %v10660_v47  ;;  %v1315_v2 = vpack.c.bf16 %v14193_v6, %v14192_v15  ;;  %v7732_v15 = vunpack.i.h.bf16 %v10516_v48  ;;  %v7731_v6 = vunpack.i.l.bf16 %v10516_v48 }
  0xe3   : > { %8169 = vrot.lane.b32.xlu0 %v10455_v3, %s9886_s20  ;;  %v10666_v11 = vpop.permute.xlu1 %7884 }
  0xe4   : > { %14185 = vst [vmem:[#allocation40_spill] sm:$0xff] %v10666_v11  ;;  %7596 = vmatprep.mubr.msk.bf16.mxu1 %vm205_vm0, %v1315_v2 }
  0xe5   : > { %v10668_v4 = vpop.permute.xlu0 %7889  ;;  %8174 = vrot.lane.b32.xlu1 %v14186_v9, %s9887_s21  ;;  %v14194_v9 = vld [vmem:[#allocation47_spill] sm:$0xff] }
  0xe6   : > { %v7892_v51 = vunpack.i.h.bf16 %v10668_v4 }
  0xe7   : > { %8179 = vrot.lane.b32.xlu0 %v14187_v34, %s9885_s19  ;;  %v10674_v52 = vpop.permute.xlu1 %7894  ;;  %v14195_v34 = vld [vmem:[#allocation48_spill] sm:$0xff] }
  0xe9   : > { %v10676_v3 = vpop.permute.xlu0 %7899  ;;  %8184 = vrot.lane.b32.xlu1 %v10462_v20, %s9886_s20  ;;  %v8203_v20 = vpack.i.bf16 %v366_v60, %v365_v35 }
  0xeb   : > { %8189 = vrot.lane.b32.xlu0 %v8188_v16, %s9887_s21  ;;  %v10685_v62 = vpop.permute.xlu1 %7904  ;;  %v1318_v16 = vpack.c.bf16 %v14195_v34, %v14194_v9  ;;  %v296_v9 = vld [vmem:[#allocation2 + $0x8] sm:$0xff]  ;;  %v295_v34 = vld [vmem:[#allocation2] sm:$0xff] }
  0xec   : > { %v1084_v11 = vsel %vm205_vm0, %v296_v9, %v7732_v15  ;;  %v9720_v15 = vld [vmem:[#allocation2 + $0x19] sm:$0xff]  ;;  %v9721_v9 = vld [vmem:[#allocation2 + $0x21] sm:$0xff] }
  0xed   : > { %v10687_v27 = vpop.permute.xlu0 %7909  ;;  %8194 = vrot.lane.b32.xlu1 %v8193_v18, %s9885_s19  ;;  %7597 = vmatmul.mubr.msk.bf16.gmra.mrb[24].mxu1 %vm205_vm0, %v1318_v16  ;;  %v7812_v16 = vunpack.i.h.bf16 %v10592_v50 }
  0xee   : > { %7600 = vmatprep.mubr.msk.bf16.mxu1 %vm205_vm0, %v1321_v29  ;;  %v1083_v29 = vsel %vm205_vm0, %v295_v34, %v7731_v6 }
  0xef   : > { %8199 = vrot.lane.b32.xlu0 %v8198_v59, %s9886_s20  ;;  %v10693_v10 = vpop.permute.xlu1 %7914 }
  0xf1   : > { %v10695_v28 = vpop.permute.xlu0 %7919  ;;  %8204 = vrot.lane.b32.xlu1 %v8203_v20, %s9887_s21  ;;  %v1324_v20 = vpack.c.bf16 %v402_v56, %v401_v7  ;;  %v7891_v7 = vunpack.i.l.bf16 %v10668_v4  ;;  %v7816_v4 = vunpack.i.l.bf16 %v10598_v31 }
  0xf3   : > { %v10698_v41 = vpop.permute.xlu1 %7924 }
  0xf5   : > { %v10700_v42 = vpop.permute.xlu0 %7929  ;;  %7601 = vmatmul.mubr.msk.bf16.gmra.mrb[28].mxu1 %vm205_vm0, %v1324_v20  ;;  %v7737_v20 = vunpack.i.h.bf16 %v10524_v61 }
  0xf7   : > { %v10702_v44 = vpop.permute.xlu1 %7934 }
  0xf9   : > { %v10704_v33 = vpop.permute.xlu0 %7939 }
  0xfb   : > { %v10710_v12 = vpop.permute.xlu1 %7944 }
  0xfc   : > { %14196 = vst [vmem:[#allocation33_spill] sm:$0xff] %v10710_v12 }
  0xfd   : > { %v10712_v5 = vpop.permute.xlu0 %7949 }
  0xfe   : > { %14197 = vst [vmem:[#allocation51_spill] sm:$0xff] %v10712_v5 }
  0xff   : > { %v10716_v18 = vpop.permute.xlu1 %7954 }
 0x100   : > { %14198 = vst [vmem:[#allocation34_spill] sm:$0xff] %v10716_v18  ;;  %v1117_v18 = vsel %vm1115_vm3, %v1084_v11, %v7812_v16 }
 0x101   : > { %v10718_v59 = vpop.permute.xlu0 %7959 }
 0x102   : > { %14199 = vst [vmem:[#allocation54_spill] sm:$0xff] %v10718_v59  ;;  %v7736_v59 = vunpack.i.l.bf16 %v10524_v61  ;;  %v1150_v61 = vsel %vm1148_vm4, %v1117_v18, %v7892_v51 }
 0x103   : > { %v10720_v35 = vpop.permute.xlu1 %7964 }
 0x104   : > { %14200 = vst [vmem:[#allocation41_spill] sm:$0xff] %v10720_v35 }
 0x105   : > { %v7970_v60 = vpop.permute.xlu0 %7969 }
 0x106   : > { %v7972_v56 = vunpack.i.h.bf16 %v7970_v60  ;;  %v7971_v35 = vunpack.i.l.bf16 %v7970_v60  ;;  %v1116_v60 = vsel %vm1115_vm3, %v1083_v29, %v7811_v36 }
 0x107   : > { %v10722_v43 = vpop.permute.xlu1 %7974  ;;  %v1149_v53 = vsel %vm1148_vm4, %v1116_v60, %v7891_v7 }
 0x108   : > { %v1181_v6 = vsel %vm205_vm0, %v9720_v15, %v7971_v35  ;;  %v1182_v34 = vsel %vm205_vm0, %v9721_v9, %v7972_v56  ;;  %v7976_v5 = vunpack.i.l.bf16 %v10722_v43  ;;  %v7897_v15 = vunpack.i.h.bf16 %v10674_v52 }
 0x109   : > { %v10724_v21 = vpop.permute.xlu0 %7979  ;;  %v7896_v56 = vunpack.i.l.bf16 %v10674_v52  ;;  %v1277_v9 = vpack.c.bf16 %v1150_v61, %v1149_v53  ;;  %v14202_v53 = vld [vmem:[#allocation50_spill] sm:$0xff] }
 0x10a   : > { %v7982_v51 = vunpack.i.h.bf16 %v10724_v21  ;;  %v1086_v61 = vsel %vm205_vm0, %v14202_v53, %v7737_v20 }
 0x10b   : > { %v10726_v25 = vpop.permute.xlu1 %7984 }
 0x10d   : > { %v10730_v2 = vpop.permute.xlu0 %7989 }
 0x10f   : > { %v10738_v48 = vpop.permute.xlu1 %7994 }
 0x111   : > { %v8000_v30 = vpop.permute.xlu0 %7999 }
 0x112   : > { %v8002_v50 = vunpack.i.h.bf16 %v8000_v30  ;;  %v8001_v47 = vunpack.i.l.bf16 %v8000_v30  ;;  %v7977_v30 = vunpack.i.h.bf16 %v10722_v43  ;;  %v7981_v43 = vunpack.i.l.bf16 %v10724_v21  ;;  %v14201_v21 = vld [vmem:[#allocation49_spill] sm:$0xff] }
 0x113   : > { %v8005_v13 = vpop.permute.xlu1 %8004 }
 0x114   : > { %v8007_v31 = vunpack.i.h.bf16 %v8005_v13  ;;  %v8006_v46 = vunpack.i.l.bf16 %v8005_v13  ;;  %v1213_v16 = vsel %vm1115_vm3, %v1181_v6, %v8001_v47  ;;  %v1214_v35 = vsel %vm1115_vm3, %v1182_v34, %v8002_v50  ;;  %v9723_v6 = vld [vmem:[#allocation2 + $0x31] sm:$0xff] }
 0x115   : > { %v8010_v36 = vpop.permute.xlu0 %8009  ;;  %v1183_v50 = vsel %vm205_vm0, %v9723_v6, %v7976_v5 }
 0x116   : > { %v8012_v29 = vunpack.i.h.bf16 %v8010_v36  ;;  %v8011_v11 = vunpack.i.l.bf16 %v8010_v36  ;;  %v1245_v7 = vsel %vm1148_vm4, %v1213_v16, %v8006_v46  ;;  %v1246_v18 = vsel %vm1148_vm4, %v1214_v35, %v8007_v31  ;;  %v9722_v36 = vld [vmem:[#allocation2 + $0x39] sm:$0xff] }
 0x117   : > { %v8015_v13 = vpop.permute.xlu1 %8014  ;;  %v1278_v60 = vpack.c.bf16 %v1246_v18, %v1245_v7  ;;  %v1184_v47 = vsel %vm205_vm0, %v9722_v36, %v7977_v30  ;;  %v1085_v35 = vsel %vm205_vm0, %v14201_v21, %v7736_v59  ;;  %v9725_v36 = vld [vmem:[#allocation2 + $0x49] sm:$0xff]  ;;  %v7901_v21 = vunpack.i.l.bf16 %v10676_v3 }
 0x118   : > { %v8017_v34 = vunpack.i.h.bf16 %v8015_v13  ;;  %v8016_v8 = vunpack.i.l.bf16 %v8015_v13  ;;  %v1215_v31 = vsel %vm1115_vm3, %v1183_v50, %v8011_v11  ;;  %v1216_v16 = vsel %vm1115_vm3, %v1184_v47, %v8012_v29  ;;  %v9724_v11 = vld [vmem:[#allocation2 + $0x51] sm:$0xff] }
 0x119   : > { %v8020_v52 = vpop.permute.xlu0 %8019  ;;  %1553 = vmatprep.mubr.bf16.mxu0 %v1278_v60  ;;  %v1118_v13 = vsel %vm1115_vm3, %v1085_v35, %v7816_v4  ;;  %v1119_v60 = vsel %vm1115_vm3, %v1086_v61, %v7817_v57  ;;  %v1186_v29 = vsel %vm205_vm0, %v9724_v11, %v7982_v51  ;;  %v1185_v59 = vsel %vm205_vm0, %v9725_v36, %v7981_v43 }
 0x11a   : > { %v8022_v12 = vunpack.i.h.bf16 %v8020_v52  ;;  %v8021_v46 = vunpack.i.l.bf16 %v8020_v52  ;;  %1554 = vmatmul.mubr.bf16.vlgmr.msra.gmra.mrb[0].mxu0 %v1277_v9  ;;  %v1247_v30 = vsel %vm1148_vm4, %v1215_v31, %v8016_v8  ;;  %v1248_v5 = vsel %vm1148_vm4, %v1216_v16, %v8017_v34 }
 0x11b   : > { %v8025_v7 = vpop.permute.xlu1 %8024  ;;  %v1281_v18 = vpack.c.bf16 %v1248_v5, %v1247_v30  ;;  %v1151_v20 = vsel %vm1148_vm4, %v1118_v13, %v7896_v56  ;;  %v1152_v8 = vsel %vm1148_vm4, %v1119_v60, %v7897_v15  ;;  %v7742_v51 = vunpack.i.h.bf16 %v10522_v58  ;;  %v9726_v13 = vld [vmem:[#allocation2 + $0x69] sm:$0xff] }
 0x11c   : > { %v8027_v47 = vunpack.i.h.bf16 %v8025_v7  ;;  %v8026_v6 = vunpack.i.l.bf16 %v8025_v7  ;;  %v1217_v9 = vsel %vm1115_vm3, %v1185_v59, %v8021_v46  ;;  %v1218_v50 = vsel %vm1115_vm3, %v1186_v29, %v8022_v12 }
 0x11d   : > { %1561 = vmatprep.mubr.bf16.mxu0 %v1281_v18  ;;  %v8030_v4 = vpop.permute.xlu0 %8029  ;;  %v7741_v43 = vunpack.i.l.bf16 %v10522_v58  ;;  %v7822_v52 = vunpack.i.h.bf16 %v10600_v32  ;;  %v7821_v31 = vunpack.i.l.bf16 %v10600_v32  ;;  %v7902_v15 = vunpack.i.h.bf16 %v10676_v3  ;;  %v14203_v58 = vld [vmem:[#allocation52_spill] sm:$0xff]  ;;  %v14204_v32 = vld [vmem:[#allocation53_spill] sm:$0xff] }
 0x11e   : > { %v1249_v57 = vsel %vm1148_vm4, %v1217_v9, %v8026_v6  ;;  %v1250_v34 = vsel %vm1148_vm4, %v1218_v50, %v8027_v47  ;;  %v7987_v46 = vunpack.i.h.bf16 %v10726_v25  ;;  %v7986_v12 = vunpack.i.l.bf16 %v10726_v25  ;;  %v9727_v25 = vld [vmem:[#allocation2 + $0x61] sm:$0xff] }
 0x11f   : > { %v8035_v56 = vpop.permute.xlu1 %8034  ;;  %v1280_v16 = vpack.c.bf16 %v1152_v8, %v1151_v20  ;;  %v8032_v35 = vunpack.i.h.bf16 %v8030_v4  ;;  %v8031_v53 = vunpack.i.l.bf16 %v8030_v4  ;;  %v1284_v61 = vpack.c.bf16 %v1250_v34, %v1249_v57 }
 0x120   : > { %v8037_v30 = vunpack.i.h.bf16 %v8035_v56  ;;  %v8036_v5 = vunpack.i.l.bf16 %v8035_v56  ;;  %v1087_v7 = vsel %vm205_vm0, %v14203_v58, %v7741_v43  ;;  %v1088_v18 = vsel %vm205_vm0, %v14204_v32, %v7742_v51  ;;  %v9728_v58 = vld [vmem:[#allocation2 + $0x81] sm:$0xff] }
 0x121   : > { %v1188_v60 = vsel %vm205_vm0, %v9726_v13, %v7987_v46  ;;  %v1187_v11 = vsel %vm205_vm0, %v9727_v25, %v7986_v12  ;;  %v1120_v3 = vsel %vm1115_vm3, %v1087_v7, %v7821_v31  ;;  %v1121_v29 = vsel %vm1115_vm3, %v1088_v18, %v7822_v52  ;;  %v8040_v36 = vpop.permute.xlu0 %8039  ;;  %v9729_v7 = vld [vmem:[#allocation2 + $0x79] sm:$0xff] }
 0x122   : > { %1562 = vmatmul.mubr.bf16.gmra.mrb[4].mxu0 %v1280_v16  ;;  %v1153_v59 = vsel %vm1148_vm4, %v1120_v3, %v7901_v21  ;;  %v1154_v47 = vsel %vm1148_vm4, %v1121_v29, %v7902_v15  ;;  %v1219_v6 = vsel %vm1115_vm3, %v1187_v11, %v8031_v53  ;;  %v1220_v20 = vsel %vm1115_vm3, %v1188_v60, %v8032_v35 }
 0x123   : > { %1569 = vmatprep.mubr.bf16.mxu0 %v1284_v61  ;;  %v1251_v8 = vsel %vm1148_vm4, %v1219_v6, %v8036_v5  ;;  %v1252_v9 = vsel %vm1148_vm4, %v1220_v20, %v8037_v30  ;;  %v7747_v50 = vunpack.i.h.bf16 %v10530_v14  ;;  %v7746_v4 = vunpack.i.l.bf16 %v10530_v14  ;;  %v8045_v51 = vpop.permute.xlu1 %8044  ;;  %v14205_v14 = vld [vmem:[#allocation56_spill] sm:$0xff] }
 0x124   : > { %v7827_v57 = vunpack.i.h.bf16 %v10610_v38  ;;  %v7826_v34 = vunpack.i.l.bf16 %v10610_v38  ;;  %v7907_v43 = vunpack.i.h.bf16 %v10685_v62  ;;  %v7992_v52 = vunpack.i.h.bf16 %v10730_v2  ;;  %v14206_v38 = vld [vmem:[#allocation55_spill] sm:$0xff] }
 0x125   : > { %v7991_v31 = vunpack.i.l.bf16 %v10730_v2  ;;  %v1283_v56 = vpack.c.bf16 %v1154_v47, %v1153_v59  ;;  %v7906_v15 = vunpack.i.l.bf16 %v10685_v62  ;;  %v8042_v46 = vunpack.i.h.bf16 %v8040_v36  ;;  %v8050_v2 = vpop.permute.xlu0 %8049  ;;  %v14207_v59 = vld [vmem:[#allocation58_spill] sm:$0xff] }
 0x126   : > { %v8041_v12 = vunpack.i.l.bf16 %v8040_v36  ;;  %v1287_v16 = vpack.c.bf16 %v1252_v9, %v1251_v8  ;;  %v8047_v21 = vunpack.i.h.bf16 %v8045_v51  ;;  %v8046_v35 = vunpack.i.l.bf16 %v8045_v51  ;;  %v14208_v51 = vld [vmem:[#allocation57_spill] sm:$0xff] }
 0x127   : > { %v1090_v53 = vsel %vm205_vm0, %v14205_v14, %v7747_v50  ;;  %v1089_v61 = vsel %vm205_vm0, %v14206_v38, %v7746_v4  ;;  %v7752_v30 = vunpack.i.h.bf16 %v10536_v37  ;;  %v7751_v5 = vunpack.i.l.bf16 %v10536_v37  ;;  %v8055_v60 = vpop.permute.xlu1 %8054  ;;  %v9731_v14 = vld [vmem:[#allocation2 + $0x91] sm:$0xff] }
 0x128   : > { %v1190_v62 = vsel %vm205_vm0, %v9728_v58, %v7992_v52  ;;  %v1189_v32 = vsel %vm205_vm0, %v9729_v7, %v7991_v31  ;;  %v1122_v18 = vsel %vm1115_vm3, %v1089_v61, %v7826_v34  ;;  %v1123_v13 = vsel %vm1115_vm3, %v1090_v53, %v7827_v57 }
 0x129   : > { %v1155_v25 = vsel %vm1148_vm4, %v1122_v18, %v7906_v15  ;;  %v1156_v11 = vsel %vm1148_vm4, %v1123_v13, %v7907_v43  ;;  %v1221_v3 = vsel %vm1115_vm3, %v1189_v32, %v8041_v12  ;;  %v1222_v37 = vsel %vm1115_vm3, %v1190_v62, %v8042_v46  ;;  %v8060_v9 = vpop.permute.xlu0 %8059  ;;  %v9732_v18 = vld [vmem:[#allocation2 + $0xb1] sm:$0xff] }
 0x12a   : > { %1570 = vmatmul.mubr.bf16.gmra.mrb[8].mxu0 %v1283_v56  ;;  %v1253_v29 = vsel %vm1148_vm4, %v1221_v3, %v8046_v35  ;;  %v1254_v36 = vsel %vm1148_vm4, %v1222_v37, %v8047_v21  ;;  %v1092_v47 = vsel %vm205_vm0, %v14207_v59, %v7752_v30  ;;  %v7832_v6 = vunpack.i.h.bf16 %v10612_v40  ;;  %v9730_v35 = vld [vmem:[#allocation2 + $0x99] sm:$0xff] }
 0x12b   : > { %1577 = vmatprep.mubr.bf16.mxu0 %v1287_v16  ;;  %v7831_v20 = vunpack.i.l.bf16 %v10612_v40  ;;  %v7912_v8 = vunpack.i.h.bf16 %v10687_v27  ;;  %v7911_v50 = vunpack.i.l.bf16 %v10687_v27  ;;  %v7997_v4 = vunpack.i.h.bf16 %v10738_v48  ;;  %v8065_v15 = vpop.permute.xlu1 %8064 }
 0x12c   : > { %v7996_v57 = vunpack.i.l.bf16 %v10738_v48  ;;  %v1286_v34 = vpack.c.bf16 %v1156_v11, %v1155_v25  ;;  %v1091_v43 = vsel %vm205_vm0, %v14208_v51, %v7751_v5  ;;  %v8052_v52 = vunpack.i.h.bf16 %v8050_v2  ;;  %v9734_v51 = vld [vmem:[#allocation2 + $0x80] sm:$0xff] }
 0x12d   : > { %v8051_v31 = vunpack.i.l.bf16 %v8050_v2  ;;  %v1290_v56 = vpack.c.bf16 %v1254_v36, %v1253_v29  ;;  %v8057_v46 = vunpack.i.h.bf16 %v8055_v60  ;;  %v8056_v12 = vunpack.i.l.bf16 %v8055_v60  ;;  %v8070_v62 = vpop.permute.xlu0 %8069  ;;  %v9733_v60 = vld [vmem:[#allocation2 + $0xa9] sm:$0xff] }
 0x12e   : > { %v8062_v40 = vunpack.i.h.bf16 %v8060_v9  ;;  %v8061_v16 = vunpack.i.l.bf16 %v8060_v9  ;;  %v1124_v27 = vsel %vm1115_vm3, %v1091_v43, %v7831_v20  ;;  %v1125_v21 = vsel %vm1115_vm3, %v1092_v47, %v7832_v6  ;;  %v9735_v43 = vld [vmem:[#allocation2 + $0x78] sm:$0xff] }
 0x12f   : > { %v1192_v48 = vsel %vm205_vm0, %v9730_v35, %v7997_v4  ;;  %v1191_v53 = vsel %vm205_vm0, %v9731_v14, %v7996_v57  ;;  %v1157_v38 = vsel %vm1148_vm4, %v1124_v27, %v7911_v50  ;;  %v1158_v61 = vsel %vm1148_vm4, %v1125_v21, %v7912_v8  ;;  %v8075_v36 = vpop.permute.xlu1 %8074  ;;  %v9736_v21 = vld [vmem:[#allocation2 + $0xc9] sm:$0xff] }
 0x130   : > { %v1223_v30 = vsel %vm1115_vm3, %v1191_v53, %v8051_v31  ;;  %v1224_v5 = vsel %vm1115_vm3, %v1192_v48, %v8052_v52  ;;  %v8067_v2 = vunpack.i.h.bf16 %v8065_v15  ;;  %v8066_v58 = vunpack.i.l.bf16 %v8065_v15  ;;  %v9737_v48 = vld [vmem:[#allocation2 + $0xc1] sm:$0xff] }
 0x131   : > { %v1255_v7 = vsel %vm1148_vm4, %v1223_v30, %v8056_v12  ;;  %v1256_v32 = vsel %vm1148_vm4, %v1224_v5, %v8057_v46  ;;  %v1194_v13 = vsel %vm205_vm0, %v9732_v18, %v8062_v40  ;;  %v1193_v25 = vsel %vm205_vm0, %v9733_v60, %v8061_v16  ;;  %v8080_v57 = vpop.permute.xlu0 %8079 }
 0x132   : > { %1578 = vmatmul.mubr.bf16.gmra.mrb[12].mxu0 %v1286_v34  ;;  %v7757_v11 = vunpack.i.h.bf16 %v10544_v23  ;;  %v7756_v3 = vunpack.i.l.bf16 %v10544_v23  ;;  %v7837_v37 = vunpack.i.h.bf16 %v10620_v22  ;;  %v7836_v29 = vunpack.i.l.bf16 %v10620_v22 }
 0x133   : > { %1585 = vmatprep.mubr.bf16.mxu0 %v1290_v56  ;;  %v7917_v59 = vunpack.i.h.bf16 %v10693_v10  ;;  %v1289_v47 = vpack.c.bf16 %v1158_v61, %v1157_v38  ;;  %v8072_v6 = vunpack.i.h.bf16 %v8070_v62  ;;  %v8071_v20 = vunpack.i.l.bf16 %v8070_v62  ;;  %v8085_v27 = vpop.permute.xlu1 %8084 }
 0x134   : > { %v7916_v8 = vunpack.i.l.bf16 %v10693_v10  ;;  %v1293_v9 = vpack.c.bf16 %v1256_v32, %v1255_v7  ;;  %v1225_v50 = vsel %vm1115_vm3, %v1193_v25, %v8066_v58  ;;  %v1226_v4 = vsel %vm1115_vm3, %v1194_v13, %v8067_v2 }
 0x135   : > { %v8077_v23 = vunpack.i.h.bf16 %v8075_v36  ;;  %v8076_v34 = vunpack.i.l.bf16 %v8075_v36  ;;  %v1094_v22 = vsel %vm205_vm0, %v9734_v51, %v7757_v11  ;;  %v1093_v52 = vsel %vm205_vm0, %v9735_v43, %v7756_v3  ;;  %v8090_v5 = vpop.permute.xlu0 %8089  ;;  %v9738_v3 = vld [vmem:[#allocation2 + $0x98] sm:$0xff] }
 0x136   : > { %v1126_v31 = vsel %vm1115_vm3, %v1093_v52, %v7836_v29  ;;  %v1127_v10 = vsel %vm1115_vm3, %v1094_v22, %v7837_v37  ;;  %v1257_v56 = vsel %vm1148_vm4, %v1225_v50, %v8071_v20  ;;  %v1258_v15 = vsel %vm1148_vm4, %v1226_v4, %v8072_v6  ;;  %v9739_v29 = vld [vmem:[#allocation2 + $0x90] sm:$0xff]  ;;  %v9740_v4 = vld [vmem:[#allocation2 + $0xe1] sm:$0xff] }
 0x137   : > { %v1159_v46 = vsel %vm1148_vm4, %v1126_v31, %v7916_v8  ;;  %v1160_v12 = vsel %vm1148_vm4, %v1127_v10, %v7917_v59  ;;  %v8082_v40 = vunpack.i.h.bf16 %v8080_v57  ;;  %v8081_v16 = vunpack.i.l.bf16 %v8080_v57  ;;  %v8095_v25 = vpop.permute.xlu1 %8094 }
 0x138   : > { %v1196_v35 = vsel %vm205_vm0, %v9736_v21, %v8077_v23  ;;  %v1195_v14 = vsel %vm205_vm0, %v9737_v48, %v8076_v34  ;;  %v7762_v53 = vunpack.i.h.bf16 %v10546_v24  ;;  %v7761_v38 = vunpack.i.l.bf16 %v10546_v24  ;;  %v9741_v23 = vld [vmem:[#allocation2 + $0xd9] sm:$0xff]  ;;  %v9742_v48 = vld [vmem:[#allocation2 + $0xb0] sm:$0xff] }
 0x139   : > { %v7842_v61 = vunpack.i.h.bf16 %v10622_v63  ;;  %v1296_v30 = vpack.c.bf16 %v1258_v15, %v1257_v56  ;;  %v7841_v2 = vunpack.i.l.bf16 %v10622_v63  ;;  %v1292_v58 = vpack.c.bf16 %v1160_v12, %v1159_v46  ;;  %v8100_v50 = vpop.permute.xlu0 %8099 }
 0x13a   : > { %1586 = vmatmul.mubr.bf16.gmra.mrb[16].mxu0 %v1289_v47  ;;  %v8087_v62 = vunpack.i.h.bf16 %v8085_v27  ;;  %v8086_v7 = vunpack.i.l.bf16 %v8085_v27  ;;  %v7922_v32 = vunpack.i.h.bf16 %v10695_v28  ;;  %v7921_v18 = vunpack.i.l.bf16 %v10695_v28 }
 0x13b   : > { %1593 = vmatprep.mubr.bf16.mxu0 %v1293_v9  ;;  %v1227_v13 = vsel %vm1115_vm3, %v1195_v14, %v8081_v16  ;;  %v1228_v60 = vsel %vm1115_vm3, %v1196_v35, %v8082_v40  ;;  %v8092_v24 = vunpack.i.h.bf16 %v8090_v5  ;;  %v8091_v11 = vunpack.i.l.bf16 %v8090_v5  ;;  %v8105_v31 = vpop.permute.xlu1 %8104 }
 0x13c   : > { %v1096_v37 = vsel %vm205_vm0, %v9738_v3, %v7762_v53  ;;  %v1095_v63 = vsel %vm205_vm0, %v9739_v29, %v7761_v38  ;;  %v1259_v28 = vsel %vm1148_vm4, %v1227_v13, %v8086_v7  ;;  %v1260_v47 = vsel %vm1148_vm4, %v1228_v60, %v8087_v62  ;;  %v9743_v53 = vld [vmem:[#allocation2 + $0xa8] sm:$0xff]  ;;  %v9745_v13 = vld [vmem:[#allocation2 + $0xf1] sm:$0xff] }
 0x13d   : > { %v1128_v36 = vsel %vm1115_vm3, %v1095_v63, %v7841_v2  ;;  %v1129_v59 = vsel %vm1115_vm3, %v1096_v37, %v7842_v61  ;;  %v8097_v8 = vunpack.i.h.bf16 %v8095_v25  ;;  %v8096_v9 = vunpack.i.l.bf16 %v8095_v25  ;;  %v8110_v21 = vpop.permute.xlu0 %8109 }
 0x13e   : > { %v1161_v6 = vsel %vm1148_vm4, %v1128_v36, %v7921_v18  ;;  %v1162_v20 = vsel %vm1148_vm4, %v1129_v59, %v7922_v32  ;;  %v1198_v57 = vsel %vm205_vm0, %v9740_v4, %v8092_v24  ;;  %v1197_v34 = vsel %vm205_vm0, %v9741_v23, %v8091_v11  ;;  %v9744_v32 = vld [vmem:[#allocation2 + $0xf9] sm:$0xff] }
 0x13f   : > { %v7767_v51 = vunpack.i.h.bf16 %v10552_v39  ;;  %v7766_v22 = vunpack.i.l.bf16 %v10552_v39  ;;  %v7847_v43 = vunpack.i.h.bf16 %v10628_v54  ;;  %v1299_v52 = vpack.c.bf16 %v1260_v47, %v1259_v28  ;;  %v8115_v7 = vpop.permute.xlu1 %8114 }
 0x140   : > { %v7846_v10 = vunpack.i.l.bf16 %v10628_v54  ;;  %v1295_v56 = vpack.c.bf16 %v1162_v20, %v1161_v6  ;;  %v8102_v15 = vunpack.i.h.bf16 %v8100_v50  ;;  %v8101_v46 = vunpack.i.l.bf16 %v8100_v50  ;;  %v9746_v50 = vld [vmem:[#allocation2 + $0xc8] sm:$0xff] }
 0x141   : > { %v7927_v12 = vunpack.i.h.bf16 %v10698_v41  ;;  %v7926_v40 = vunpack.i.l.bf16 %v10698_v41  ;;  %v1229_v16 = vsel %vm1115_vm3, %v1197_v34, %v8096_v9  ;;  %v1230_v27 = vsel %vm1115_vm3, %v1198_v57, %v8097_v8  ;;  %v8120_v37 = vpop.permute.xlu0 %8119  ;;  %v9747_v57 = vld [vmem:[#allocation2 + $0xc0] sm:$0xff] }
 0x142   : > { %1594 = vmatmul.mubr.bf16.gmra.mrb[20].mxu0 %v1292_v58  ;;  %v8107_v39 = vunpack.i.h.bf16 %v8105_v31  ;;  %v8106_v35 = vunpack.i.l.bf16 %v8105_v31  ;;  %v1098_v14 = vsel %vm205_vm0, %v9742_v48, %v7767_v51  ;;  %v1097_v54 = vsel %vm205_vm0, %v9743_v53, %v7766_v22 }
 0x143   : > { %1601 = vmatprep.mubr.bf16.mxu0 %v1296_v30  ;;  %v1130_v38 = vsel %vm1115_vm3, %v1097_v54, %v7846_v10  ;;  %v1131_v61 = vsel %vm1115_vm3, %v1098_v14, %v7847_v43  ;;  %v1261_v41 = vsel %vm1148_vm4, %v1229_v16, %v8101_v46  ;;  %v1262_v30 = vsel %vm1148_vm4, %v1230_v27, %v8102_v15  ;;  %v8125_v8 = vpop.permute.xlu1 %8124  ;;  %v9749_v46 = vld [vmem:[#allocation2 + $0x109] sm:$0xff] }
 0x144   : > { %v1163_v5 = vsel %vm1148_vm4, %v1130_v38, %v7926_v40  ;;  %v1164_v2 = vsel %vm1148_vm4, %v1131_v61, %v7927_v12  ;;  %v8112_v58 = vunpack.i.h.bf16 %v8110_v21  ;;  %v8111_v62 = vunpack.i.l.bf16 %v8110_v21 }
 0x145   : > { %v1200_v18 = vsel %vm205_vm0, %v9744_v32, %v8107_v39  ;;  %v1199_v60 = vsel %vm205_vm0, %v9745_v13, %v8106_v35  ;;  %v7772_v25 = vunpack.i.h.bf16 %v10554_v45  ;;  %v7771_v24 = vunpack.i.l.bf16 %v10554_v45  ;;  %v8130_v10 = vpop.permute.xlu0 %8129 }
 0x146   : > { %v7852_v11 = vunpack.i.h.bf16 %v10630_v55  ;;  %v1302_v3 = vpack.c.bf16 %v1262_v30, %v1261_v41  ;;  %v7851_v29 = vunpack.i.l.bf16 %v10630_v55  ;;  %v1298_v63 = vpack.c.bf16 %v1164_v2, %v1163_v5  ;;  %v9750_v2 = vld [vmem:[#allocation2 + $0xe0] sm:$0xff] }
 0x147   : > { %v8117_v36 = vunpack.i.h.bf16 %v8115_v7  ;;  %v8116_v59 = vunpack.i.l.bf16 %v8115_v7  ;;  %v7932_v28 = vunpack.i.h.bf16 %v10700_v42  ;;  %v7931_v47 = vunpack.i.l.bf16 %v10700_v42  ;;  %v8135_v39 = vpop.permute.xlu1 %8134 }
 0x148   : > { %v1231_v6 = vsel %vm1115_vm3, %v1199_v60, %v8111_v62  ;;  %v1232_v20 = vsel %vm1115_vm3, %v1200_v18, %v8112_v58  ;;  %v8122_v45 = vunpack.i.h.bf16 %v8120_v37  ;;  %v8121_v9 = vunpack.i.l.bf16 %v8120_v37  ;;  %v9751_v62 = vld [vmem:[#allocation2 + $0xd8] sm:$0xff] }
 0x149   : > { %v1100_v4 = vsel %vm205_vm0, %v9746_v50, %v7772_v25  ;;  %v1099_v55 = vsel %vm205_vm0, %v9747_v57, %v7771_v24  ;;  %v1263_v42 = vsel %vm1148_vm4, %v1231_v6, %v8116_v59  ;;  %v1264_v51 = vsel %vm1148_vm4, %v1232_v20, %v8117_v36  ;;  %v8140_v30 = vpop.permute.xlu0 %8139 }
 0x14a   : > { %1602 = vmatmul.mubr.bf16.gmra.mrb[24].mxu0 %v1295_v56  ;;  %v1132_v23 = vsel %vm1115_vm3, %v1099_v55, %v7851_v29  ;;  %v1133_v34 = vsel %vm1115_vm3, %v1100_v4, %v7852_v11  ;;  %v8126_v31 = vunpack.i.l.bf16 %v8125_v8  ;;  %v9748_v56 = vld [vmem:[#allocation2 + $0x111] sm:$0xff]  ;;  %v1201_v12 = vsel %vm205_vm0, %v9749_v46, %v8121_v9  ;;  %v9753_v29 = vld [vmem:[#allocation2 + $0x121] sm:$0xff] }
 0x14b   : > { %1609 = vmatprep.mubr.bf16.mxu0 %v1299_v52  ;;  %v1165_v22 = vsel %vm1148_vm4, %v1132_v23, %v7931_v47  ;;  %v1166_v43 = vsel %vm1148_vm4, %v1133_v34, %v7932_v28  ;;  %v8127_v52 = vunpack.i.h.bf16 %v8125_v8  ;;  %v1202_v15 = vsel %vm205_vm0, %v9748_v56, %v8122_v45  ;;  %v8145_v11 = vpop.permute.xlu1 %8144 }
 0x14c   : > { %v7777_v40 = vunpack.i.h.bf16 %v10560_v1  ;;  %v7776_v16 = vunpack.i.l.bf16 %v10560_v1  ;;  %v7857_v27 = vunpack.i.h.bf16 %v10636_v19  ;;  %v1305_v21 = vpack.c.bf16 %v1264_v51, %v1263_v42  ;;  %v9754_v42 = vld [vmem:[#allocation2 + $0xf8] sm:$0xff] }
 0x14d   : > { %v7856_v35 = vunpack.i.l.bf16 %v10636_v19  ;;  %v1301_v48 = vpack.c.bf16 %v1166_v43, %v1165_v22  ;;  %v8132_v14 = vunpack.i.h.bf16 %v8130_v10  ;;  %v8131_v53 = vunpack.i.l.bf16 %v8130_v10  ;;  %v8150_v6 = vpop.permute.xlu0 %8149  ;;  %v9755_v22 = vld [vmem:[#allocation2 + $0xf0] sm:$0xff] }
 0x14e   : > { %v7937_v54 = vunpack.i.h.bf16 %v10702_v44  ;;  %v7936_v38 = vunpack.i.l.bf16 %v10702_v44  ;;  %v1233_v61 = vsel %vm1115_vm3, %v1201_v12, %v8126_v31  ;;  %v1234_v41 = vsel %vm1115_vm3, %v1202_v15, %v8127_v52 }
 0x14f   : > { %v8137_v1 = vunpack.i.h.bf16 %v8135_v39  ;;  %v8136_v5 = vunpack.i.l.bf16 %v8135_v39  ;;  %v1102_v58 = vsel %vm205_vm0, %v9750_v2, %v7777_v40  ;;  %v1101_v19 = vsel %vm205_vm0, %v9751_v62, %v7776_v16  ;;  %v8155_v23 = vpop.permute.xlu1 %8154  ;;  %v9756_v40 = vld [vmem:[#allocation2 + $0x141] sm:$0xff] }
 0x150   : > { %v1134_v7 = vsel %vm1115_vm3, %v1101_v19, %v7856_v35  ;;  %v1135_v32 = vsel %vm1115_vm3, %v1102_v58, %v7857_v27  ;;  %v1265_v44 = vsel %vm1148_vm4, %v1233_v61, %v8131_v53  ;;  %v1266_v18 = vsel %vm1148_vm4, %v1234_v41, %v8132_v14  ;;  %v9757_v27 = vld [vmem:[#allocation2 + $0x139] sm:$0xff] }
 0x151   : > { %v1167_v13 = vsel %vm1148_vm4, %v1134_v7, %v7936_v38  ;;  %v1168_v60 = vsel %vm1148_vm4, %v1135_v32, %v7937_v54  ;;  %v8142_v25 = vunpack.i.h.bf16 %v8140_v30  ;;  %v8141_v24 = vunpack.i.l.bf16 %v8140_v30  ;;  %v8160_v12 = vpop.permute.xlu0 %8159  ;;  %v14209_v30 = vld [vmem:[#allocation33_spill] sm:$0xff]  ;;  %v9758_v7 = vld [vmem:[#allocation2 + $0x110] sm:$0xff] }
 0x152   : > { %1610 = vmatmul.mubr.bf16.gmra.mrb[28].mxu0 %v1298_v63  ;;  %v1203_v63 = vsel %vm205_vm0, %v9753_v29, %v8136_v5  ;;  %v7782_v36 = vunpack.i.h.bf16 %v10562_v0  ;;  %v7781_v59 = vunpack.i.l.bf16 %v10562_v0  ;;  %v7862_v28 = vunpack.i.h.bf16 %v10638_v26 }
 0x153   : > { %1617 = vmatprep.mubr.bf16.mxu0 %v1302_v3  ;;  %v9752_v3 = vld [vmem:[#allocation2 + $0x129] sm:$0xff]  ;;  %v1308_v47 = vpack.c.bf16 %v1266_v18, %v1265_v44  ;;  %v7861_v20 = vunpack.i.l.bf16 %v10638_v26  ;;  %v1304_v8 = vpack.c.bf16 %v1168_v60, %v1167_v13  ;;  %v8147_v45 = vunpack.i.h.bf16 %v8145_v11  ;;  %v8165_v53 = vpop.permute.xlu1 %8164 }
 0x154   : > { %v1204_v37 = vsel %vm205_vm0, %v9752_v3, %v8137_v1  ;;  %v8146_v9 = vunpack.i.l.bf16 %v8145_v11  ;;  %v7942_v50 = vunpack.i.h.bf16 %v10704_v33  ;;  %v7941_v4 = vunpack.i.l.bf16 %v10704_v33  ;;  %v9759_v44 = vld [vmem:[#allocation2 + $0x108] sm:$0xff] }
 0x155   : > { %v1235_v57 = vsel %vm1115_vm3, %v1203_v63, %v8141_v24  ;;  %v1236_v55 = vsel %vm1115_vm3, %v1204_v37, %v8142_v25  ;;  %v8152_v0 = vunpack.i.h.bf16 %v8150_v6  ;;  %v8151_v34 = vunpack.i.l.bf16 %v8150_v6  ;;  %v8170_v62 = vpop.permute.xlu0 %8169  ;;  %v9760_v63 = vld [vmem:[#allocation2 + $0x159] sm:$0xff] }
 0x156   : > { %v1104_v51 = vsel %vm205_vm0, %v9754_v42, %v7782_v36  ;;  %v1103_v26 = vsel %vm205_vm0, %v9755_v22, %v7781_v59  ;;  %v1267_v33 = vsel %vm1148_vm4, %v1235_v57, %v8146_v9  ;;  %v1268_v31 = vsel %vm1148_vm4, %v1236_v55, %v8147_v45  ;;  %v9761_v59 = vld [vmem:[#allocation2 + $0x151] sm:$0xff] }
 0x157   : > { %v1136_v43 = vsel %vm1115_vm3, %v1103_v26, %v7861_v20  ;;  %v1137_v52 = vsel %vm1115_vm3, %v1104_v51, %v7862_v28  ;;  %v8157_v15 = vunpack.i.h.bf16 %v8155_v23  ;;  %v8156_v46 = vunpack.i.l.bf16 %v8155_v23  ;;  %v8175_v29 = vpop.permute.xlu1 %8174  ;;  %v14212_v42 = vld [vmem:[#allocation51_spill] sm:$0xff] }
 0x158   : > { %v1169_v10 = vsel %vm1148_vm4, %v1136_v43, %v7941_v4  ;;  %v1170_v56 = vsel %vm1148_vm4, %v1137_v52, %v7942_v50  ;;  %v1206_v16 = vsel %vm205_vm0, %v9756_v40, %v8152_v0  ;;  %v7787_v39 = vunpack.i.h.bf16 %v10568_v49 }
 0x159   : > { %v7786_v35 = vunpack.i.l.bf16 %v10568_v49  ;;  %v1311_v14 = vpack.c.bf16 %v1268_v31, %v1267_v33  ;;  %v7866_v54 = vunpack.i.l.bf16 %v10648_v17  ;;  %v1307_v38 = vpack.c.bf16 %v1170_v56, %v1169_v10  ;;  %v8180_v50 = vpop.permute.xlu0 %8179 }
 0x15a   : > { %1618 = vmatmul.mubr.bf16.gmra.mrb[32].mxu0 %v1301_v48  ;;  %v7867_v48 = vunpack.i.h.bf16 %v10648_v17  ;;  %v8162_v61 = vunpack.i.h.bf16 %v8160_v12  ;;  %v8161_v41 = vunpack.i.l.bf16 %v8160_v12  ;;  %v7947_v1 = vunpack.i.h.bf16 %v14209_v30  ;;  %v9763_v12 = vld [vmem:[#allocation2 + $0x120] sm:$0xff] }
 0x15b   : > { %1625 = vmatprep.mubr.bf16.mxu0 %v1305_v21  ;;  %v1205_v21 = vsel %vm205_vm0, %v9757_v27, %v8151_v34  ;;  %v7946_v5 = vunpack.i.l.bf16 %v14209_v30  ;;  %v1238_v58 = vsel %vm1115_vm3, %v1206_v16, %v8157_v15  ;;  %v8167_v49 = vunpack.i.h.bf16 %v8165_v53  ;;  %v8185_v52 = vpop.permute.xlu1 %8184  ;;  %v9762_v15 = vld [vmem:[#allocation2 + $0x128] sm:$0xff] }
 0x15c   : > { %v1237_v2 = vsel %vm1115_vm3, %v1205_v21, %v8156_v46  ;;  %v8166_v19 = vunpack.i.l.bf16 %v8165_v53  ;;  %v1106_v32 = vsel %vm205_vm0, %v9758_v7, %v7787_v39  ;;  %v1105_v17 = vsel %vm205_vm0, %v9759_v44, %v7786_v35 }
 0x15d   : > { %v1138_v18 = vsel %vm1115_vm3, %v1105_v17, %v7866_v54  ;;  %v1139_v13 = vsel %vm1115_vm3, %v1106_v32, %v7867_v48  ;;  %v1269_v60 = vsel %vm1148_vm4, %v1237_v2, %v8161_v41  ;;  %v1270_v25 = vsel %vm1148_vm4, %v1238_v58, %v8162_v61  ;;  %v8190_v54 = vpop.permute.xlu0 %8189  ;;  %v9765_v41 = vld [vmem:[#allocation2 + $0x169] sm:$0xff] }
 0x15e   : > { %v1171_v24 = vsel %vm1148_vm4, %v1138_v18, %v7946_v5  ;;  %v1172_v11 = vsel %vm1148_vm4, %v1139_v13, %v7947_v1  ;;  %v8172_v3 = vunpack.i.h.bf16 %v8170_v62  ;;  %v8171_v37 = vunpack.i.l.bf16 %v8170_v62  ;;  %v14213_v1 = vld [vmem:[#allocation60_spill] sm:$0xff]  ;;  %v14214_v58 = vld [vmem:[#allocation38_spill] sm:$0xff] }
 0x15f   : > { %v1208_v36 = vsel %vm205_vm0, %v9760_v63, %v8167_v49  ;;  %v1207_v28 = vsel %vm205_vm0, %v9761_v59, %v8166_v19  ;;  %v1314_v9 = vpack.c.bf16 %v1270_v25, %v1269_v60  ;;  %v1310_v55 = vpack.c.bf16 %v1172_v11, %v1171_v24  ;;  %v8195_v19 = vpop.permute.xlu1 %8194  ;;  %v14215_v18 = vld [vmem:[#allocation34_spill] sm:$0xff]  ;;  %v9766_v59 = vld [vmem:[#allocation2 + $0x140] sm:$0xff] }
 0x160   : > { %v8177_v23 = vunpack.i.h.bf16 %v8175_v29  ;;  %v8176_v0 = vunpack.i.l.bf16 %v8175_v29  ;;  %v7952_v51 = vunpack.i.h.bf16 %v14212_v42  ;;  %v7951_v22 = vunpack.i.l.bf16 %v14212_v42  ;;  %v1943_v11 = vld [vmem:[#allocation2 + $0x1] sm:$0xff] }
 0x161   : > { %v1239_v26 = vsel %vm1115_vm3, %v1207_v28, %v8171_v37  ;;  %v1240_v43 = vsel %vm1115_vm3, %v1208_v36, %v8172_v3  ;;  %v8182_v31 = vunpack.i.h.bf16 %v8180_v50  ;;  %v8181_v10 = vunpack.i.l.bf16 %v8180_v50  ;;  %v1944_v3 = vld [vmem:[#allocation2 + $0x9] sm:$0xff]  ;;  %v8200_v63 = vpop.permute.xlu0 %8199 }
 0x162   : > { %1626 = vmatmul.mubr.bf16.gmra.mrb[36].mxu0 %v1304_v8  ;;  %v14211_v8 = vld [vmem:[#allocation37_spill] sm:$0xff]  ;;  %v1271_v21 = vsel %vm1148_vm4, %v1239_v26, %v8176_v0  ;;  %v1272_v39 = vsel %vm1148_vm4, %v1240_v43, %v8177_v23  ;;  %v8186_v53 = vunpack.i.l.bf16 %v8185_v52  ;;  %v7797_v5 = vunpack.i.h.bf16 %v14213_v1 }
 0x163   : > { %1633 = vmatprep.mubr.bf16.mxu0 %v1308_v47  ;;  %v14210_v47 = vld [vmem:[#allocation59_spill] sm:$0xff]  ;;  %v7872_v45 = vunpack.i.h.bf16 %v14211_v8  ;;  %v7871_v57 = vunpack.i.l.bf16 %v14211_v8  ;;  %v1209_v30 = vsel %vm205_vm0, %v9765_v41, %v8181_v10  ;;  %v7796_v2 = vunpack.i.l.bf16 %v14213_v1  ;;  %v8205_v0 = vpop.permute.xlu1 %8204  ;;  %v1979_v42 = vld [vmem:[#allocation2 + $0x2] sm:$0xff] }
 0x164   : > { %v7792_v6 = vunpack.i.h.bf16 %v14210_v47  ;;  %v7791_v20 = vunpack.i.l.bf16 %v14210_v47  ;;  %v7877_v62 = vunpack.i.h.bf16 %v14214_v58  ;;  %v1317_v49 = vpack.c.bf16 %v1272_v39, %v1271_v21  ;;  %v9767_v47 = vld [vmem:[#allocation2 + $0x138] sm:$0xff]  ;;  %v9769_v43 = vld [vmem:[#allocation2 + $0x181] sm:$0xff] }
 0x165   : > { %v7876_v7 = vunpack.i.l.bf16 %v14214_v58  ;;  %v8192_v44 = vunpack.i.h.bf16 %v8190_v54  ;;  %v8191_v17 = vunpack.i.l.bf16 %v8190_v54  ;;  %v7957_v13 = vunpack.i.h.bf16 %v14215_v18  ;;  %v14216_v10 = vld [vmem:[#allocation61_spill] sm:$0xff] }
 0x166   : > { %v1108_v46 = vsel %vm205_vm0, %v9762_v15, %v7792_v6  ;;  %v1107_v40 = vsel %vm205_vm0, %v9763_v12, %v7791_v20  ;;  %v7956_v60 = vunpack.i.l.bf16 %v14215_v18  ;;  %v1241_v25 = vsel %vm1115_vm3, %v1209_v30, %v8186_v53  ;;  %v14217_v12 = vld [vmem:[#allocation39_spill] sm:$0xff]  ;;  %v9770_v30 = vld [vmem:[#allocation2 + $0x158] sm:$0xff]  ;;  %v14219_v18 = vld [vmem:[#allocation62_spill] sm:$0xff] }
 0x167   : > { %v1140_v16 = vsel %vm1115_vm3, %v1107_v40, %v7871_v57  ;;  %v1141_v27 = vsel %vm1115_vm3, %v1108_v46, %v7872_v45  ;;  %v8197_v37 = vunpack.i.h.bf16 %v8195_v19  ;;  %v8196_v29 = vunpack.i.l.bf16 %v8195_v19 }
 0x168   : > { %v1173_v35 = vsel %vm1148_vm4, %v1140_v16, %v7951_v22  ;;  %v1174_v48 = vsel %vm1148_vm4, %v1141_v27, %v7952_v51  ;;  %v8208_v36 = vpack.i.bf16 %v1944_v3, %v1943_v11  ;;  %v1110_v28 = vsel %vm205_vm0, %v9766_v59, %v7797_v5  ;;  %v1980_v51 = vld [vmem:[#allocation2 + $0xa] sm:$0xff] }
 0x169   : > { %v1313_v32 = vpack.c.bf16 %v1174_v48, %v1173_v35  ;;  %v1109_v6 = vsel %vm205_vm0, %v9767_v47, %v7796_v2  ;;  %v1143_v8 = vsel %vm1115_vm3, %v1110_v28, %v7877_v62  ;;  %v1273_v45 = vsel %vm1148_vm4, %v1241_v25, %v8191_v17  ;;  %v9768_v22 = vld [vmem:[#allocation2 + $0x189] sm:$0xff] }
 0x16a   : > { %1634 = vmatmul.mubr.bf16.gmra.mrb[40].mxu0 %v1307_v38  ;;  %v9764_v38 = vld [vmem:[#allocation2 + $0x171] sm:$0xff]  ;;  %v1142_v20 = vsel %vm1115_vm3, %v1109_v6, %v7876_v7  ;;  %8209 = vrot.lane.b32.xlu0 %v8208_v36, %s9885_s19  ;;  %v1176_v57 = vsel %vm1148_vm4, %v1143_v8, %v7957_v13  ;;  %v8201_v23 = vunpack.i.l.bf16 %v8200_v63  ;;  %v1212_v26 = vsel %vm205_vm0, %v9768_v22, %v8197_v37  ;;  %v14218_v48 = vld [vmem:[#allocation54_spill] sm:$0xff] }
 0x16b   : > { %1641 = vmatprep.mubr.bf16.mxu0 %v1311_v14  ;;  %v10979_v4 = vpop.f32.mrb[0].mxu1  ;;  %v8187_v14 = vunpack.i.h.bf16 %v8185_v52  ;;  %v1210_v61 = vsel %vm205_vm0, %v9764_v38, %v8182_v31  ;;  %v1175_v50 = vsel %vm1148_vm4, %v1142_v20, %v7956_v60  ;;  %v1211_v52 = vsel %vm205_vm0, %v9769_v43, %v8196_v29  ;;  %v9771_v5 = vld [vmem:[#allocation2 + $0x150] sm:$0xff]  ;;  %v14221_v29 = vld [vmem:[#allocation41_spill] sm:$0xff]  ;;  %v9773_v6 = vld [vmem:[#allocation2 + $0x168] sm:$0xff] }
 0x16c   : > { %v10982_v34 = vpop.f32.mrb[1].mxu1  ;;  %v8213_v31 = vpack.i.bf16 %v1980_v51, %v1979_v42  ;;  %v7802_v15 = vunpack.i.h.bf16 %v14216_v10  ;;  %v7801_v46 = vunpack.i.l.bf16 %v14216_v10  ;;  %v7882_v40 = vunpack.i.h.bf16 %v14217_v12  ;;  %v9666_v59 = vld [vmem:[%s14012_s1 + $0x110] sm:$0xff]  }
 0x16d   : > { %v10988_v33 = vpop.f32.mrb[2].mxu1  ;;  %v1242_v24 = vsel %vm1115_vm3, %v1210_v61, %v8187_v14  ;;  %v7881_v27 = vunpack.i.l.bf16 %v14217_v12  ;;  %v1316_v21 = vpack.c.bf16 %v1176_v57, %v1175_v50  ;;  %v8207_v39 = vunpack.i.h.bf16 %v8205_v0  ;;  %v9772_v28 = vld [vmem:[#allocation2 + $0x170] sm:$0xff]  ;;  %7604 = vmatprep.subr.bf16.mxu0 %v9666_v59  ;;  %v9667_v57 = vld [vmem:[%s14012_s1 + $0x118] sm:$0xff]  }
 0x16e   : > { %v10990_v56 = vpop.f32.mrb[3].mxu1  ;;  %v8206_v35 = vunpack.i.l.bf16 %v8205_v0  ;;  %8214 = vrot.lane.b32.xlu0 %v8213_v31, %s9886_s20  ;;  %v7962_v14 = vunpack.i.h.bf16 %v14218_v48  ;;  %v7961_v53 = vunpack.i.l.bf16 %v14218_v48  ;;  %v1243_v54 = vsel %vm1115_vm3, %v1211_v52, %v8201_v23  ;;  %7605 = vmatpush3.bf16.msra.mxu0 %v9666_v59 }
 0x16f   : > { %v1112_v1 = vsel %vm205_vm0, %v9770_v30, %v7802_v15  ;;  %v1111_v2 = vsel %vm205_vm0, %v9771_v5, %v7801_v46  ;;  %v7807_v13 = vunpack.i.h.bf16 %v14219_v18  ;;  %v7806_v60 = vunpack.i.l.bf16 %v14219_v18  ;;  %7606 = vmatprep.subr.bf16.mxu0 %v9667_v57  ;;  %v9671_v30 = vld [vmem:[%s14012_s1 + $0x98] sm:$0xff]  }
 0x170   : > { %v1144_v58 = vsel %vm1115_vm3, %v1111_v2, %v7881_v27  ;;  %v1145_v62 = vsel %vm1115_vm3, %v1112_v1, %v7882_v40  ;;  %v7966_v36 = vunpack.i.l.bf16 %v14221_v29  ;;  %v9672_v1 = vld [vmem:[%s14012_s1 + $0xe0] sm:$0xff]  }
 0x171   : > { %v1114_v47 = vsel %vm205_vm0, %v9772_v28, %v7807_v13  ;;  %v1113_v20 = vsel %vm205_vm0, %v9773_v6, %v7806_v60 }
 0x172   : > { %1642 = vmatmul.mubr.bf16.gmra.mrb[44].mxu0 %v1310_v55  ;;  %v8202_v55 = vunpack.i.h.bf16 %v8200_v63  ;;  %v7967_v63 = vunpack.i.h.bf16 %v14221_v29  ;;  %v9674_v29 = vld [vmem:[%s14012_s1 + $0xe8] sm:$0xff]  }
 0x173   : > { %1649 = vmatprep.mubr.bf16.mxu0 %v1314_v9  ;;  %v1274_v9 = vsel %vm1148_vm4, %v1242_v24, %v8192_v44  ;;  %v1178_v44 = vsel %vm1148_vm4, %v1145_v62, %v7962_v14  ;;  %v14220_v24 = vld [vmem:[#allocation40_spill] sm:$0xff]  ;;  %7607 = vmatpush3.bf16.msra.mxu0 %v9667_v57 }
 0x174   : > { %v1320_v16 = vpack.c.bf16 %v1274_v9, %v1273_v45  ;;  %v1244_v38 = vsel %vm1115_vm3, %v1212_v26, %v8202_v55  ;;  %v7887_v11 = vunpack.i.h.bf16 %v14220_v24  ;;  %v7886_v3 = vunpack.i.l.bf16 %v14220_v24 }
 0x175   : > { %v1276_v19 = vsel %vm1148_vm4, %v1244_v38, %v8207_v39  ;;  %v9670_v38 = vld [vmem:[%s14012_s1 + $0xd8] sm:$0xff]  }
 0x176   : > { %v1146_v8 = vsel %vm1115_vm3, %v1113_v20, %v7886_v3  ;;  %v1147_v45 = vsel %vm1115_vm3, %v1114_v47, %v7887_v11  ;;  %v9677_v47 = vld [vmem:[%s14012_s1 + $0xb0] sm:$0xff]  }
 0x177   : > { %v1179_v9 = vsel %vm1148_vm4, %v1146_v8, %v7966_v36  ;;  %v1180_v50 = vsel %vm1148_vm4, %v1147_v45, %v7967_v63  ;;  %v9675_v63 = vld [vmem:[%s14012_s1 + $0xa8] sm:$0xff]   ;;  %v9676_v36 = vld [vmem:[%s14012_s1 + $0xf0] sm:$0xff]  }
 0x178   : > { %v1322_v55 = vpack.c.bf16 %v1180_v50, %v1179_v9 }
 0x179   : > { %v11030_v61 = vpop.f32.mrb[4].mxu1 }
 0x17a   : > { %1650 = vmatmul.mubr.bf16.gmra.mrb[48].mxu0 %v1313_v32  ;;  %v11032_v41 = vpop.f32.mrb[5].mxu1  ;;  %v1177_v32 = vsel %vm1148_vm4, %v1144_v58, %v7961_v53  ;;  %v9673_v58 = vld [vmem:[%s14012_s1 + $0xa0] sm:$0xff]  }
 0x17b   : > { %1657 = vmatprep.mubr.bf16.mxu0 %v1317_v49  ;;  %v1275_v49 = vsel %vm1148_vm4, %v1243_v54, %v8206_v35  ;;  %v11040_v7 = vpop.f32.mrb[6].mxu1  ;;  %v1319_v37 = vpack.c.bf16 %v1178_v44, %v1177_v32  ;;  %v9669_v35 = vld [vmem:[%s14012_s1 + $0x90] sm:$0xff]   ;;  %v1361_v54 = vlaneseq  ;;  %v204_v44 = vld [vmem:[%s14013_s2] sm:$0xf] }
 0x17c   : > { %v11044_v17 = vpop.f32.mrb[7].mxu1  ;;  %v1323_v25 = vpack.c.bf16 %v1276_v19, %v1275_v49 }
 0x17d   : > { %v11126_v62 = vshrl.u32 %v1361_v54, 7 }
 0x17f   : > { %14222 = vst [vmem:[#allocation42_spill] sm:$0xff] %v11126_v62  ;;  %v1363_v32 = vsub.s32 0, %v11126_v62 }
 0x181   : > { %v11136_v13 = vrot.slane %v204_v44, %v1363_v32 }
 0x182   : > { %1658 = vmatmul.mubr.bf16.gmra.mrb[52].mxu0 %v1316_v21  ;;  %v9668_v21 = vld [vmem:[%s14012_s1 + $0xd0] sm:$0xff]  }
 0x183   : > { %1665 = vmatprep.mubr.bf16.mxu0 %v1320_v16  ;;  %7178 = vmatprep.subr.bf16.mxu1 %v9668_v21 }
 0x184   : > { %7179 = vmatpush3.bf16.msra.mxu1 %v9669_v35  ;;  %v9678_v35 = vld [vmem:[%s14012_s1 + $0xf8] sm:$0xff]  }
 0x185   : > { %7180 = vmatprep.subr.bf16.mxu1 %v9670_v38 }
 0x188   : > { %7181 = vmatpush3.bf16.msra.mxu1 %v9671_v30 }
 0x189   : > { %7182 = vmatprep.subr.bf16.mxu1 %v9672_v1 }
 0x18a   : > { %1666 = vmatmul.mubr.bf16.gmra.mrb[56].mxu0 %v1319_v37  ;;  %v11064_v23 = vpop.f32.mrb[8].mxu1 }
 0x18b   : > { %1673 = vmatprep.mubr.bf16.mxu0 %v1323_v25  ;;  %v11066_v0 = vpop.f32.mrb[9].mxu1 }
 0x18c   : > { %v11068_v42 = vpop.f32.mrb[10].mxu1  ;;  %7183 = vmatpush3.bf16.msra.mxu1 %v9673_v58 }
 0x18d   : > { %v11070_v51 = vpop.f32.mrb[11].mxu1  ;;  %7184 = vmatprep.subr.bf16.mxu1 %v9674_v29 }
 0x190   : > { %7185 = vmatpush3.bf16.msra.mxu1 %v9675_v63 }
 0x191   : > { %7186 = vmatprep.subr.bf16.mxu1 %v9676_v36  ;;  %v9680_v36 = vld [vmem:[%s14012_s1 + $0x100] sm:$0xff]  }
 0x192   : > { %1674 = vmatmul.mubr.bf16.gmra.mrb[60].mxu0 %v1322_v55 }
 0x194   : > { %7187 = vmatpush3.bf16.msra.mxu1 %v9677_v47 }
 0x195   : > { %7188 = vmatprep.subr.bf16.mxu1 %v9678_v35 }
 0x199   : > { %v11072_v22 = vpop.f32.mrb[12].mxu1 }
 0x19a   : > { %v11074_v26 = vpop.f32.mrb[13].mxu1 }
 0x19b   : > { %v11076_v43 = vpop.f32.mrb[14].mxu1 }
 0x19c   : > { %v11078_v52 = vpop.f32.mrb[15].mxu1 }
 0x1aa   : > { %v11080_v31 = vpop.f32.mrb[16].mxu1 }
 0x1ab   : > { %v11082_v10 = vpop.f32.mrb[17].mxu1 }
 0x1ac   : > { %v11084_v15 = vpop.f32.mrb[18].mxu1 }
 0x1ad   : > { %v11086_v46 = vpop.f32.mrb[19].mxu1 }
 0x1b2   : > { %v11088_v12 = vpop.f32.mrb[20].mxu1 }
 0x1b3   : > { %v11090_v40 = vpop.f32.mrb[21].mxu1 }
 0x1b4   : > { %v11092_v16 = vpop.f32.mrb[22].mxu1 }
 0x1b5   : > { %v11094_v27 = vpop.f32.mrb[23].mxu1 }
 0x1c0   : > { %v11099_v39 = vpop.f32.mrb[24].mxu1 }
 0x1c1   : > { %v11104_v48 = vpop.f32.mrb[25].mxu1 }
 0x1c2   : > { %v11106_v14 = vpop.f32.mrb[26].mxu1 }
 0x1c3   : > { %v11108_v53 = vpop.f32.mrb[27].mxu1 }
 0x1c8   : > { %v11119_v5 = vpop.f32.mrb[28].mxu1 }
 0x1c9   : > { %v11121_v2 = vpop.f32.mrb[29].mxu1 }
 0x1ca   : > { %v11128_v49 = vpop.f32.mrb[30].mxu1 }
 0x1cb   : > { %v11130_v19 = vpop.f32.mrb[31].mxu1 }
 0x1ed   : > { %v7064_v18 = vpop.f32.mrb[0].mxu0 }
 0x1ee   : > { %v7065_v60 = vpop.f32.mrb[1].mxu0 }
 0x1ef   : > { %v7066_v25 = vadd.f32 %v7065_v60, %v7064_v18  ;;  %v7067_v24 = vpop.f32.mrb[2].mxu0 }
 0x1f0   : > { %v7068_v11 = vpop.f32.mrb[3].mxu0 }
 0x1f1   : > { %v1556_v3 = vadd.f32 %v7066_v25, %v11136_v13  ;;  %v7069_v37 = vadd.f32 %v7068_v11, %v7067_v24 }
 0x1f3   : > { %v1717_v59 = vadd.f32 %v10982_v34, %v1556_v3  ;;  %v1559_v28 = vadd.f32 %v7069_v37, %v11136_v13 }
 0x1f5   : > { %v1843_v6 = vmax.f32 %v1717_v59, 0.0  ;;  %v1720_v20 = vadd.f32 %v10990_v56, %v1559_v28  ;;  %v7070_v8 = vpop.f32.mrb[4].mxu0  ;;  %v9679_v56 = vld [vmem:[%s14012_s1 + $0xb8] sm:$0xff]   ;;  %v9681_v59 = vld [vmem:[%s14012_s1 + $0xc0] sm:$0xff]  }
 0x1f6   : > { %v7071_v45 = vpop.f32.mrb[5].mxu0  ;;  %7189 = vmatpush3.bf16.msra.mxu1 %v9679_v56 }
 0x1f7   : > { %1875 = vst.msk [vmem:[#allocation2 + $0x19] sm:$0xff] %vm205_vm0, %v1843_v6  ;;  %v1844_v9 = vmax.f32 %v1720_v20, 0.0  ;;  %v7072_v50 = vadd.f32 %v7071_v45, %v7070_v8  ;;  %v7073_v57 = vpop.f32.mrb[6].mxu0  ;;  %7190 = vmatprep.subr.bf16.mxu1 %v9680_v36 }
 0x1f8   : > { %v7074_v34 = vpop.f32.mrb[7].mxu0 }
 0x1f9   : > { %1876 = vst.msk [vmem:[#allocation2 + $0x21] sm:$0xff] %vm205_vm0, %v1844_v9  ;;  %v1564_v55 = vadd.f32 %v7072_v50, %v11136_v13  ;;  %v7075_v21 = vadd.f32 %v7074_v34, %v7073_v57 }
 0x1fa   : > { %7191 = vmatpush3.bf16.msra.mxu1 %v9681_v59 }
 0x1fb   : > { %v1725_v54 = vadd.f32 %v10979_v4, %v1564_v55  ;;  %v1567_v38 = vadd.f32 %v7075_v21, %v11136_v13 }
 0x1fd   : > { %v1845_v30 = vmax.f32 %v1725_v54, 0.0  ;;  %v1728_v1 = vadd.f32 %v10988_v33, %v1567_v38  ;;  %v7076_v58 = vpop.f32.mrb[8].mxu0 }
 0x1fe   : > { %v7077_v32 = vpop.f32.mrb[9].mxu0  ;;  %v11167_v25 = vld [vmem:[#allocation2 + $0x19] sm:$0xff] }
 0x1ff   : > { %1877 = vst.msk [vmem:[#allocation2 + $0x31] sm:$0xff] %vm205_vm0, %v1845_v30  ;;  %v1846_v44 = vmax.f32 %v1728_v1, 0.0  ;;  %v7078_v18 = vadd.f32 %v7077_v32, %v7076_v58  ;;  %v7079_v60 = vpop.f32.mrb[10].mxu0  ;;  %v11171_v4 = vld [vmem:[#allocation2 + $0x18] sm:$0xff]  ;;  %v9682_v32 = vld [vmem:[%s14012_s1 + $0x108] sm:$0xff]  }
 0x200   : > { %v7080_v24 = vpop.f32.mrb[11].mxu0  ;;  %v11169_v11 = vld [vmem:[#allocation2 + $0x21] sm:$0xff]  ;;  %7192 = vmatprep.subr.bf16.mxu1 %v9682_v32 }
 0x201   : > { %v11173_v3 = vld [vmem:[#allocation2 + $0x20] sm:$0xff]  ;;  %1878 = vst.msk [vmem:[#allocation2 + $0x39] sm:$0xff] %vm205_vm0, %v1846_v44  ;;  %v7081_v37 = vadd.f32 %v7080_v24, %v7079_v60  ;;  %v1572_v33 = vadd.f32 %v7078_v18, %v11136_v13  ;;  %v8218_v29 = vpack.i.bf16 %v11169_v11, %v11167_v25  ;;  %v9683_v44 = vld [vmem:[%s14012_s1 + $0xc8] sm:$0xff]  }
 0x202   : > { %v8228_v63 = vpack.i.bf16 %v11173_v3, %v11171_v4  ;;  %v1981_v28 = vld [vmem:[#allocation2 + $0x1a] sm:$0xff]  ;;  %v1982_v47 = vld [vmem:[#allocation2 + $0x22] sm:$0xff]  ;;  %7193 = vmatpush3.bf16.msra.mxu1 %v9683_v44 }
 0x203   : > { %v1733_v6 = vadd.f32 %v11032_v41, %v1572_v33  ;;  %8219 = vrot.lane.b32.xlu1 %v8218_v29, %s9885_s19  ;;  %v1575_v20 = vadd.f32 %v7081_v37, %v11136_v13  ;;  %v8223_v50 = vpack.i.bf16 %v1982_v47, %v1981_v28 }
 0x204   : > { %8229 = vrot.lane.b32.xlu0 %v8228_v63, %s9887_s21 }
 0x205   : > { %v1847_v8 = vmax.f32 %v1733_v6, 0.0  ;;  %v1736_v45 = vadd.f32 %v11044_v17, %v1575_v20  ;;  %v7082_v9 = vpop.f32.mrb[12].mxu0 }
 0x206   : > { %v7083_v57 = vpop.f32.mrb[13].mxu0  ;;  %v11194_v21 = vld [vmem:[#allocation2 + $0x31] sm:$0xff] }
 0x207   : > { %1879 = vst.msk [vmem:[#allocation2 + $0x49] sm:$0xff] %vm205_vm0, %v1847_v8  ;;  %v1848_v34 = vmax.f32 %v1736_v45, 0.0  ;;  %v7084_v55 = vadd.f32 %v7083_v57, %v7082_v9  ;;  %8224 = vrot.lane.b32.xlu1 %v8223_v50, %s9886_s20  ;;  %v7085_v41 = vpop.f32.mrb[14].mxu0  ;;  %v11219_v8 = vld [vmem:[#allocation2 + $0x30] sm:$0xff] }
 0x208   : > { %v7086_v35 = vpop.f32.mrb[15].mxu0  ;;  %v1983_v56 = vld [vmem:[#allocation2 + $0x32] sm:$0xff]  ;;  %v1984_v54 = vld [vmem:[#allocation2 + $0x3a] sm:$0xff] }
 0x209   : > { %v11196_v38 = vld [vmem:[#allocation2 + $0x39] sm:$0xff]  ;;  %1880 = vst.msk [vmem:[#allocation2 + $0x51] sm:$0xff] %vm205_vm0, %v1848_v34  ;;  %v1580_v17 = vadd.f32 %v7084_v55, %v11136_v13  ;;  %v7087_v30 = vadd.f32 %v7086_v35, %v7085_v41  ;;  %v2889_v1 = vpack.c.bf16 %v1984_v54, %v1983_v56  ;;  %v8243_v63 = vpack.i.bf16 %v1984_v54, %v1983_v56 }
 0x20a   : > { %v8238_v58 = vpack.i.bf16 %v11196_v38, %v11194_v21  ;;  %v11214_v36 = vld [vmem:[#allocation2 + $0x38] sm:$0xff] }
 0x20b   : > { %v1741_v18 = vadd.f32 %v11030_v61, %v1580_v17  ;;  %v1583_v60 = vadd.f32 %v7087_v30, %v11136_v13  ;;  %8234 = vrot.lane.b32.xlu1 %v8223_v50, %s9885_s19  ;;  %7608 = vmatprep.mubr.msk.bf16.mxu0 %vm205_vm0, %v2889_v1  ;;  %v8263_v50 = vpack.i.bf16 %v11214_v36, %v11219_v8 }
 0x20c   : > { %8239 = vrot.lane.b32.xlu0 %v8238_v58, %s9885_s19 }
 0x20d   : > { %v1849_v24 = vmax.f32 %v1741_v18, 0.0  ;;  %v1744_v37 = vadd.f32 %v11040_v7, %v1583_v60  ;;  %v7088_v33 = vpop.f32.mrb[16].mxu0 }
 0x20e   : > { %v7089_v29 = vpop.f32.mrb[17].mxu0  ;;  %v11232_v41 = vld [vmem:[#allocation2 + $0x49] sm:$0xff] }
 0x20f   : > { %1881 = vst.msk [vmem:[#allocation2 + $0x61] sm:$0xff] %vm205_vm0, %v1849_v24  ;;  %v1850_v61 = vmax.f32 %v1744_v37, 0.0  ;;  %v7090_v59 = vadd.f32 %v7089_v29, %v7088_v33  ;;  %v7091_v28 = vpop.f32.mrb[18].mxu0  ;;  %8254 = vrot.lane.b32.xlu1 %v8238_v58, %s9887_s21 }
 0x210   : > { %8244 = vrot.lane.b32.xlu0 %v8243_v63, %s9886_s20  ;;  %v7092_v47 = vpop.f32.mrb[19].mxu0  ;;  %v1985_v6 = vld [vmem:[#allocation2 + $0x4a] sm:$0xff]  ;;  %v1986_v20 = vld [vmem:[#allocation2 + $0x52] sm:$0xff] }
 0x211   : > { %1882 = vst.msk [vmem:[#allocation2 + $0x69] sm:$0xff] %vm205_vm0, %v1850_v61  ;;  %v7093_v7 = vadd.f32 %v7092_v47, %v7091_v28  ;;  %v1588_v45 = vadd.f32 %v7090_v59, %v11136_v13  ;;  %v2892_v9 = vpack.c.bf16 %v1986_v20, %v1985_v6  ;;  %v11225_v57 = vld [vmem:[#allocation2 + $0x51] sm:$0xff]  ;;  %v8273_v37 = vpack.i.bf16 %v1986_v20, %v1985_v6 }
 0x212   : > { %v8268_v17 = vpack.i.bf16 %v11225_v57, %v11232_v41  ;;  %v11242_v33 = vld [vmem:[#allocation2 + $0x50] sm:$0xff] }
 0x213   : > { %v1749_v34 = vadd.f32 %v11066_v0, %v1588_v45  ;;  %7609 = vmatmul.mubr.msk.bf16.vlgmr.msra.gmra.mrb[64].mxu0 %vm205_vm0, %v2892_v9  ;;  %8264 = vrot.lane.b32.xlu1 %v8263_v50, %s9887_s21  ;;  %v1591_v55 = vadd.f32 %v7093_v7, %v11136_v13 }
 0x214   : > { %8249 = vrot.lane.b32.xlu0 %v8263_v50, %s9886_s20 }
 0x215   : > { %v1851_v35 = vmax.f32 %v1749_v34, 0.0  ;;  %v1752_v56 = vadd.f32 %v11070_v51, %v1591_v55  ;;  %v7094_v54 = vpop.f32.mrb[20].mxu0 }
 0x216   : > { %v7095_v30 = vpop.f32.mrb[21].mxu0 }
 0x217   : > { %1883 = vst.msk [vmem:[#allocation2 + $0x79] sm:$0xff] %vm205_vm0, %v1851_v35  ;;  %v1852_v0 = vmax.f32 %v1752_v56, 0.0  ;;  %v7096_v1 = vadd.f32 %v7095_v30, %v7094_v54  ;;  %v7097_v58 = vpop.f32.mrb[22].mxu0  ;;  %8269 = vrot.lane.b32.xlu1 %v8268_v17, %s9885_s19  ;;  %v11261_v54 = vld [vmem:[#allocation2 + $0x61] sm:$0xff] }
 0x218   : > { %8259 = vrot.lane.b32.xlu0 %v8243_v63, %s9885_s19  ;;  %v7098_v32 = vpop.f32.mrb[23].mxu0  ;;  %v1987_v44 = vld [vmem:[#allocation2 + $0x62] sm:$0xff]  ;;  %v1988_v18 = vld [vmem:[#allocation2 + $0x6a] sm:$0xff] }
 0x219   : > { %1884 = vst.msk [vmem:[#allocation2 + $0x81] sm:$0xff] %vm205_vm0, %v1852_v0  ;;  %v1596_v51 = vadd.f32 %v7096_v1, %v11136_v13  ;;  %v7099_v60 = vadd.f32 %v7098_v32, %v7097_v58  ;;  %v2895_v24 = vpack.c.bf16 %v1988_v18, %v1987_v44  ;;  %v11249_v63 = vld [vmem:[#allocation2 + $0x48] sm:$0xff]  ;;  %v1915_v58 = vld [vmem:[#allocation2 + $0x60] sm:$0xff] }
 0x21a   : > { %v8278_v6 = vpack.i.bf16 %v11242_v33, %v11249_v63  ;;  %v11256_v9 = vld [vmem:[#allocation2 + $0x69] sm:$0xff] }
 0x21b   : > { %v1757_v29 = vadd.f32 %v11064_v23, %v1596_v51  ;;  %v1599_v61 = vadd.f32 %v7099_v60, %v11136_v13  ;;  %7612 = vmatprep.mubr.msk.bf16.mxu0 %vm205_vm0, %v2895_v24  ;;  %8274 = vrot.lane.b32.xlu1 %v8273_v37, %s9886_s20  ;;  %v1916_v30 = vld [vmem:[#allocation2 + $0x68] sm:$0xff] }
 0x21c   : > { %8284 = vrot.lane.b32.xlu0 %v8268_v17, %s9887_s21  ;;  %v8298_v17 = vpack.i.bf16 %v11256_v9, %v11261_v54  ;;  %v8308_v24 = vpack.i.bf16 %v1916_v30, %v1915_v58 }
 0x21d   : > { %v1853_v59 = vmax.f32 %v1757_v29, 0.0  ;;  %v1760_v28 = vadd.f32 %v11068_v42, %v1599_v61  ;;  %v7100_v47 = vpop.f32.mrb[24].mxu0  ;;  %v8303_v29 = vpack.i.bf16 %v1988_v18, %v1987_v44 }
 0x21e   : > { %v7101_v20 = vpop.f32.mrb[25].mxu0 }
 0x21f   : > { %1885 = vst.msk [vmem:[#allocation2 + $0x91] sm:$0xff] %vm205_vm0, %v1853_v59  ;;  %v1854_v23 = vmax.f32 %v1760_v28, 0.0  ;;  %v7102_v7 = vadd.f32 %v7101_v20, %v7100_v47  ;;  %v7103_v45 = vpop.f32.mrb[26].mxu0  ;;  %8279 = vrot.lane.b32.xlu1 %v8278_v6, %s9886_s20 }
 0x220   : > { %8289 = vrot.lane.b32.xlu0 %v8273_v37, %s9885_s19  ;;  %v7104_v50 = vpop.f32.mrb[27].mxu0  ;;  %v1989_v34 = vld [vmem:[#allocation2 + $0x7a] sm:$0xff]  ;;  %v1990_v55 = vld [vmem:[#allocation2 + $0x82] sm:$0xff] }
 0x221   : > { %1886 = vst.msk [vmem:[#allocation2 + $0x99] sm:$0xff] %vm205_vm0, %v1854_v23  ;;  %v7105_v42 = vadd.f32 %v7104_v50, %v7103_v45  ;;  %v1604_v35 = vadd.f32 %v7102_v7, %v11136_v13  ;;  %v2898_v56 = vpack.c.bf16 %v1990_v55, %v1989_v34  ;;  %v1954_v18 = vld [vmem:[#allocation2 + $0x81] sm:$0xff]  ;;  %v1953_v45 = vld [vmem:[#allocation2 + $0x79] sm:$0xff] }
 0x223   : > { %v1765_v0 = vadd.f32 %v11074_v26, %v1604_v35  ;;  %7613 = vmatmul.mubr.msk.bf16.gmra.mrb[68].mxu0 %vm205_vm0, %v2898_v56  ;;  %8294 = vrot.lane.b32.xlu1 %v8278_v6, %s9887_s21  ;;  %v1607_v1 = vadd.f32 %v7105_v42, %v11136_v13  ;;  %v8328_v56 = vpack.i.bf16 %v1954_v18, %v1953_v45 }
 0x224   : > { %8299 = vrot.lane.b32.xlu0 %v8298_v17, %s9885_s19 }
 0x225   : > { %v1855_v32 = vmax.f32 %v1765_v0, 0.0  ;;  %v1768_v51 = vadd.f32 %v11078_v52, %v1607_v1  ;;  %v7106_v60 = vpop.f32.mrb[28].mxu0 }
 0x226   : > { %v7107_v37 = vpop.f32.mrb[29].mxu0 }
 0x227   : > { %1887 = vst.msk [vmem:[#allocation2 + $0xa9] sm:$0xff] %vm205_vm0, %v1855_v32  ;;  %v1856_v61 = vmax.f32 %v1768_v51, 0.0  ;;  %v7108_v26 = vadd.f32 %v7107_v37, %v7106_v60  ;;  %v7109_v59 = vpop.f32.mrb[30].mxu0  ;;  %8309 = vrot.lane.b32.xlu1 %v8308_v24, %s9886_s20  ;;  %v1918_v37 = vld [vmem:[#allocation2 + $0x80] sm:$0xff] }
 0x228   : > { %8304 = vrot.lane.b32.xlu0 %v8303_v29, %s9886_s20  ;;  %v7110_v28 = vpop.f32.mrb[31].mxu0  ;;  %v11274_v47 = vld [vmem:[#allocation2 + $0x92] sm:$0xff]  ;;  %v11276_v6 = vld [vmem:[#allocation2 + $0x9a] sm:$0xff] }
 0x229   : > { %1888 = vst.msk [vmem:[#allocation2 + $0xb1] sm:$0xff] %vm205_vm0, %v1856_v61  ;;  %v1612_v52 = vadd.f32 %v7108_v26, %v11136_v13  ;;  %v7111_v20 = vadd.f32 %v7110_v28, %v7109_v59  ;;  %v2901_v44 = vpack.c.bf16 %v11276_v6, %v11274_v47  ;;  %v1917_v26 = vld [vmem:[#allocation2 + $0x78] sm:$0xff] }
 0x22a   : > { %v1956_v18 = vld [vmem:[#allocation2 + $0x99] sm:$0xff] }
 0x22b   : > { %v1773_v23 = vadd.f32 %v11072_v22, %v1612_v52  ;;  %v1615_v7 = vadd.f32 %v7111_v20, %v11136_v13  ;;  %7616 = vmatprep.mubr.msk.bf16.mxu0 %vm205_vm0, %v2901_v44  ;;  %8324 = vrot.lane.b32.xlu1 %v8308_v24, %s9887_s21  ;;  %v8333_v24 = vpack.i.bf16 %v1990_v55, %v1989_v34 }
 0x22c   : > { %8314 = vrot.lane.b32.xlu0 %v8298_v17, %s9887_s21  ;;  %v8338_v20 = vpack.i.bf16 %v1918_v37, %v1917_v26  ;;  %v8363_v37 = vpack.i.bf16 %v11276_v6, %v11274_v47 }
 0x22d   : > { %v1857_v50 = vmax.f32 %v1773_v23, 0.0  ;;  %v1776_v42 = vadd.f32 %v11076_v43, %v1615_v7  ;;  %v7112_v35 = vpop.f32.mrb[32].mxu0 }
 0x22e   : > { %v7113_v30 = vpop.f32.mrb[33].mxu0 }
 0x22f   : > { %1889 = vst.msk [vmem:[#allocation2 + $0xc1] sm:$0xff] %vm205_vm0, %v1857_v50  ;;  %v1858_v0 = vmax.f32 %v1776_v42, 0.0  ;;  %v7114_v1 = vadd.f32 %v7113_v30, %v7112_v35  ;;  %v7115_v22 = vpop.f32.mrb[34].mxu0  ;;  %8329 = vrot.lane.b32.xlu1 %v8328_v56, %s9885_s19  ;;  %v11316_v35 = vld [vmem:[#allocation2 + $0x91] sm:$0xff] }
 0x230   : > { %8319 = vrot.lane.b32.xlu0 %v8303_v29, %s9885_s19  ;;  %v7116_v58 = vpop.f32.mrb[35].mxu0  ;;  %v11291_v32 = vld [vmem:[#allocation2 + $0xaa] sm:$0xff]  ;;  %v11293_v17 = vld [vmem:[#allocation2 + $0xb2] sm:$0xff] }
 0x231   : > { %1890 = vst.msk [vmem:[#allocation2 + $0xc9] sm:$0xff] %vm205_vm0, %v1858_v0  ;;  %v7117_v43 = vadd.f32 %v7116_v58, %v7115_v22  ;;  %v1620_v51 = vadd.f32 %v7114_v1, %v11136_v13  ;;  %v2904_v60 = vpack.c.bf16 %v11293_v17, %v11291_v32  ;;  %v1920_v30 = vld [vmem:[#allocation2 + $0x98] sm:$0xff]  ;;  %v1919_v22 = vld [vmem:[#allocation2 + $0x90] sm:$0xff] }
 0x232   : > { %v11338_v6 = vld [vmem:[#allocation2 + $0xb1] sm:$0xff] }
 0x233   : > { %v1781_v61 = vadd.f32 %v11082_v10, %v1620_v51  ;;  %7617 = vmatmul.mubr.msk.bf16.gmra.mrb[72].mxu0 %vm205_vm0, %v2904_v60  ;;  %8334 = vrot.lane.b32.xlu1 %v8333_v24, %s9886_s20  ;;  %v1623_v29 = vadd.f32 %v7117_v43, %v11136_v13  ;;  %v8368_v60 = vpack.i.bf16 %v1920_v30, %v1919_v22 }
 0x234   : > { %8344 = vrot.lane.b32.xlu0 %v8328_v56, %s9887_s21  ;;  %v8358_v56 = vpack.i.bf16 %v1956_v18, %v11316_v35 }
 0x235   : > { %v1859_v59 = vmax.f32 %v1781_v61, 0.0  ;;  %v1784_v28 = vadd.f32 %v11086_v46, %v1623_v29  ;;  %v7118_v52 = vpop.f32.mrb[36].mxu0 }
 0x236   : > { %v7119_v44 = vpop.f32.mrb[37].mxu0 }
 0x237   : > { %1891 = vst.msk [vmem:[#allocation2 + $0xd9] sm:$0xff] %vm205_vm0, %v1859_v59  ;;  %v1860_v34 = vmax.f32 %v1784_v28, 0.0  ;;  %v7120_v55 = vadd.f32 %v7119_v44, %v7118_v52  ;;  %v7121_v10 = vpop.f32.mrb[38].mxu0  ;;  %8339 = vrot.lane.b32.xlu1 %v8338_v20, %s9886_s20 }
 0x238   : > { %8349 = vrot.lane.b32.xlu0 %v8333_v24, %s9885_s19  ;;  %v7122_v23 = vpop.f32.mrb[39].mxu0  ;;  %v11308_v7 = vld [vmem:[#allocation2 + $0xc2] sm:$0xff]  ;;  %v11310_v45 = vld [vmem:[#allocation2 + $0xca] sm:$0xff] }
 0x239   : > { %1892 = vst.msk [vmem:[#allocation2 + $0xe1] sm:$0xff] %vm205_vm0, %v1860_v34  ;;  %v1628_v46 = vadd.f32 %v7120_v55, %v11136_v13  ;;  %v7123_v50 = vadd.f32 %v7122_v23, %v7121_v10  ;;  %v2907_v42 = vpack.c.bf16 %v11310_v45, %v11308_v7  ;;  %v11345_v34 = vld [vmem:[#allocation2 + $0xa9] sm:$0xff] }
 0x23a   : > { %v8388_v23 = vpack.i.bf16 %v11338_v6, %v11345_v34 }
 0x23b   : > { %v1789_v0 = vadd.f32 %v11080_v31, %v1628_v46  ;;  %v1631_v1 = vadd.f32 %v7123_v50, %v11136_v13  ;;  %7620 = vmatprep.mubr.msk.bf16.mxu0 %vm205_vm0, %v2907_v42  ;;  %8354 = vrot.lane.b32.xlu1 %v8338_v20, %s9887_s21 }
 0x23c   : > { %8359 = vrot.lane.b32.xlu0 %v8358_v56, %s9885_s19 }
 0x23d   : > { %v1861_v58 = vmax.f32 %v1789_v0, 0.0  ;;  %v1792_v43 = vadd.f32 %v11084_v15, %v1631_v1  ;;  %v7124_v51 = vpop.f32.mrb[40].mxu0 }
 0x23e   : > { %v7125_v24 = vpop.f32.mrb[41].mxu0 }
 0x23f   : > { %1893 = vst.msk [vmem:[#allocation2 + $0xf1] sm:$0xff] %vm205_vm0, %v1861_v58  ;;  %v1862_v31 = vmax.f32 %v1792_v43, 0.0  ;;  %v7126_v61 = vadd.f32 %v7125_v24, %v7124_v51  ;;  %v7127_v29 = vpop.f32.mrb[42].mxu0  ;;  %8369 = vrot.lane.b32.xlu1 %v8368_v60, %s9886_s20  ;;  %v8393_v58 = vpack.i.bf16 %v11293_v17, %v11291_v32  ;;  %v11363_v43 = vld [vmem:[#allocation2 + $0xb0] sm:$0xff]  ;;  %v11370_v24 = vld [vmem:[#allocation2 + $0xa8] sm:$0xff] }
 0x240   : > { %8364 = vrot.lane.b32.xlu0 %v8363_v37, %s9886_s20  ;;  %v7128_v26 = vpop.f32.mrb[43].mxu0  ;;  %v11330_v59 = vld [vmem:[#allocation2 + $0xda] sm:$0xff]  ;;  %v11332_v28 = vld [vmem:[#allocation2 + $0xe2] sm:$0xff]  ;;  %v8398_v32 = vpack.i.bf16 %v11363_v43, %v11370_v24 }
 0x241   : > { %1894 = vst.msk [vmem:[#allocation2 + $0xf9] sm:$0xff] %vm205_vm0, %v1862_v31  ;;  %v7129_v15 = vadd.f32 %v7128_v26, %v7127_v29  ;;  %v1636_v52 = vadd.f32 %v7126_v61, %v11136_v13  ;;  %v2910_v47 = vpack.c.bf16 %v11332_v28, %v11330_v59 }
 0x243   : > { %v1797_v20 = vadd.f32 %v11090_v40, %v1636_v52  ;;  %7621 = vmatmul.mubr.msk.bf16.gmra.mrb[76].mxu0 %vm205_vm0, %v2910_v47  ;;  %8384 = vrot.lane.b32.xlu1 %v8368_v60, %s9887_s21  ;;  %v1639_v44 = vadd.f32 %v7129_v15, %v11136_v13  ;;  %v11377_v15 = vld [vmem:[#allocation2 + $0xc9] sm:$0xff] }
 0x244   : > { %8374 = vrot.lane.b32.xlu0 %v8358_v56, %s9887_s21 }
 0x245   : > { %v1863_v55 = vmax.f32 %v1797_v20, 0.0  ;;  %v1800_v10 = vadd.f32 %v11094_v27, %v1639_v44  ;;  %v7130_v18 = vpop.f32.mrb[44].mxu0 }
 0x246   : > { %v7131_v46 = vpop.f32.mrb[45].mxu0 }
 0x247   : > { %1895 = vst.msk [vmem:[#allocation2 + $0x109] sm:$0xff] %vm205_vm0, %v1863_v55  ;;  %v1864_v40 = vmax.f32 %v1800_v10, 0.0  ;;  %v7132_v50 = vadd.f32 %v7131_v46, %v7130_v18  ;;  %v7133_v42 = vpop.f32.mrb[46].mxu0  ;;  %8389 = vrot.lane.b32.xlu1 %v8388_v23, %s9885_s19  ;;  %v11388_v10 = vld [vmem:[#allocation2 + $0xc1] sm:$0xff] }
 0x248   : > { %8379 = vrot.lane.b32.xlu0 %v8363_v37, %s9885_s19  ;;  %v7134_v56 = vpop.f32.mrb[47].mxu0  ;;  %v11353_v30 = vld [vmem:[#allocation2 + $0xf2] sm:$0xff]  ;;  %v11355_v0 = vld [vmem:[#allocation2 + $0xfa] sm:$0xff]  ;;  %v8418_v18 = vpack.i.bf16 %v11377_v15, %v11388_v10 }
 0x249   : > { %1896 = vst.msk [vmem:[#allocation2 + $0x111] sm:$0xff] %vm205_vm0, %v1864_v40  ;;  %v1644_v27 = vadd.f32 %v7132_v50, %v11136_v13  ;;  %v7135_v1 = vadd.f32 %v7134_v56, %v7133_v42  ;;  %v2913_v22 = vpack.c.bf16 %v11355_v0, %v11353_v30  ;;  %v11397_v50 = vld [vmem:[#allocation2 + $0xc0] sm:$0xff] }
 0x24b   : > { %v1805_v51 = vadd.f32 %v11088_v12, %v1644_v27  ;;  %v1647_v60 = vadd.f32 %v7135_v1, %v11136_v13  ;;  %7624 = vmatprep.mubr.msk.bf16.mxu0 %vm205_vm0, %v2913_v22  ;;  %8394 = vrot.lane.b32.xlu1 %v8393_v58, %s9886_s20 }
 0x24c   : > { %8404 = vrot.lane.b32.xlu0 %v8388_v23, %s9887_s21  ;;  %v1924_v23 = vld [vmem:[#allocation2 + $0xc8] sm:$0xff] }
 0x24d   : > { %v1865_v37 = vmax.f32 %v1805_v51, 0.0  ;;  %v1808_v31 = vadd.f32 %v11092_v16, %v1647_v60  ;;  %v7136_v61 = vpop.f32.mrb[48].mxu0  ;;  %v8428_v1 = vpack.i.bf16 %v1924_v23, %v11397_v50 }
 0x24e   : > { %v7137_v17 = vpop.f32.mrb[49].mxu0 }
 0x24f   : > { %1897 = vst.msk [vmem:[#allocation2 + $0x121] sm:$0xff] %vm205_vm0, %v1865_v37  ;;  %v1866_v12 = vmax.f32 %v1808_v31, 0.0  ;;  %v7138_v29 = vadd.f32 %v7137_v17, %v7136_v61  ;;  %v7139_v26 = vpop.f32.mrb[50].mxu0  ;;  %8399 = vrot.lane.b32.xlu1 %v8398_v32, %s9886_s20 }
 0x250   : > { %8409 = vrot.lane.b32.xlu0 %v8393_v58, %s9885_s19  ;;  %v7140_v52 = vpop.f32.mrb[51].mxu0  ;;  %v11380_v47 = vld [vmem:[#allocation2 + $0x10a] sm:$0xff]  ;;  %v11382_v16 = vld [vmem:[#allocation2 + $0x112] sm:$0xff] }
 0x251   : > { %1898 = vst.msk [vmem:[#allocation2 + $0x129] sm:$0xff] %vm205_vm0, %v1866_v12  ;;  %v7141_v20 = vadd.f32 %v7140_v52, %v7139_v26  ;;  %v1652_v44 = vadd.f32 %v7138_v29, %v11136_v13  ;;  %v2916_v55 = vpack.c.bf16 %v11382_v16, %v11380_v47  ;;  %v11421_v29 = vld [vmem:[#allocation2 + $0xd9] sm:$0xff] }
 0x253   : > { %v1813_v46 = vadd.f32 %v11104_v48, %v1652_v44  ;;  %7625 = vmatmul.mubr.msk.bf16.gmra.mrb[80].mxu0 %vm205_vm0, %v2916_v55  ;;  %8414 = vrot.lane.b32.xlu1 %v8398_v32, %s9887_s21  ;;  %v1655_v40 = vadd.f32 %v7141_v20, %v11136_v13  ;;  %v8423_v48 = vpack.i.bf16 %v11310_v45, %v11308_v7  ;;  %v11414_v45 = vld [vmem:[#allocation2 + $0xe1] sm:$0xff] }
 0x254   : > { %8419 = vrot.lane.b32.xlu0 %v8418_v18, %s9885_s19  ;;  %v8448_v44 = vpack.i.bf16 %v11414_v45, %v11421_v29 }
 0x255   : > { %v1867_v42 = vmax.f32 %v1813_v46, 0.0  ;;  %v1816_v56 = vadd.f32 %v11108_v53, %v1655_v40  ;;  %v7142_v27 = vpop.f32.mrb[52].mxu0 }
 0x256   : > { %v7143_v22 = vpop.f32.mrb[53].mxu0 }
 0x257   : > { %1899 = vst.msk [vmem:[#allocation2 + $0x139] sm:$0xff] %vm205_vm0, %v1867_v42  ;;  %v1868_v58 = vmax.f32 %v1816_v56, 0.0  ;;  %v7144_v51 = vadd.f32 %v7143_v22, %v7142_v27  ;;  %v7145_v60 = vpop.f32.mrb[54].mxu0  ;;  %8429 = vrot.lane.b32.xlu1 %v8428_v1, %s9886_s20  ;;  %v11439_v22 = vld [vmem:[#allocation2 + $0xe0] sm:$0xff] }
 0x258   : > { %8424 = vrot.lane.b32.xlu0 %v8423_v48, %s9886_s20  ;;  %v7146_v37 = vpop.f32.mrb[55].mxu0  ;;  %v11406_v31 = vld [vmem:[#allocation2 + $0x122] sm:$0xff]  ;;  %v11408_v53 = vld [vmem:[#allocation2 + $0x12a] sm:$0xff] }
 0x259   : > { %1900 = vst.msk [vmem:[#allocation2 + $0x141] sm:$0xff] %vm205_vm0, %v1868_v58  ;;  %v1660_v61 = vadd.f32 %v7144_v51, %v11136_v13  ;;  %v7147_v32 = vadd.f32 %v7146_v37, %v7145_v60  ;;  %v2919_v7 = vpack.c.bf16 %v11408_v53, %v11406_v31  ;;  %v11446_v51 = vld [vmem:[#allocation2 + $0xd8] sm:$0xff]  ;;  %v1932_v62 = vld [vmem:[#allocation2 + $0x128] sm:$0xff] }
 0x25b   : > { %v1821_v17 = vadd.f32 %v11099_v39, %v1660_v61  ;;  %v1663_v12 = vadd.f32 %v7147_v32, %v11136_v13  ;;  %7628 = vmatprep.mubr.msk.bf16.mxu0 %vm205_vm0, %v2919_v7  ;;  %8444 = vrot.lane.b32.xlu1 %v8428_v1, %s9887_s21  ;;  %v8453_v1 = vpack.i.bf16 %v11332_v28, %v11330_v59 }
 0x25c   : > { %8434 = vrot.lane.b32.xlu0 %v8418_v18, %s9887_s21  ;;  %v8458_v59 = vpack.i.bf16 %v11439_v22, %v11446_v51 }
 0x25d   : > { %v1869_v26 = vmax.f32 %v1821_v17, 0.0  ;;  %v1824_v52 = vadd.f32 %v11106_v14, %v1663_v12  ;;  %v7148_v20 = vpop.f32.mrb[56].mxu0  ;;  %v11453_v17 = vld [vmem:[#allocation2 + $0xf9] sm:$0xff] }
 0x25e   : > { %v7149_v55 = vpop.f32.mrb[57].mxu0  ;;  %14223 = vst [vmem:[#allocation43_spill] sm:$0xff] %v11453_v17 }
 0x25f   : > { %1901 = vst.msk [vmem:[#allocation2 + $0x151] sm:$0xff] %vm205_vm0, %v1869_v26  ;;  %v1870_v39 = vmax.f32 %v1824_v52, 0.0  ;;  %v7150_v23 = vadd.f32 %v7149_v55, %v7148_v20  ;;  %v7151_v46 = vpop.f32.mrb[58].mxu0  ;;  %8449 = vrot.lane.b32.xlu1 %v8448_v44, %s9885_s19  ;;  %v11464_v55 = vld [vmem:[#allocation2 + $0xf1] sm:$0xff] }
 0x260   : > { %8439 = vrot.lane.b32.xlu0 %v8423_v48, %s9885_s19  ;;  %v7152_v18 = vpop.f32.mrb[59].mxu0  ;;  %v11429_v40 = vld [vmem:[#allocation2 + $0x13a] sm:$0xff]  ;;  %v11431_v42 = vld [vmem:[#allocation2 + $0x142] sm:$0xff]  ;;  %14224 = vst [vmem:[#allocation44_spill] sm:$0xff] %v11464_v55 }
 0x261   : > { %1902 = vst.msk [vmem:[#allocation2 + $0x159] sm:$0xff] %vm205_vm0, %v1870_v39  ;;  %v7153_v14 = vadd.f32 %v7152_v18, %v7151_v46  ;;  %v1668_v56 = vadd.f32 %v7150_v23, %v11136_v13  ;;  %v2922_v27 = vpack.c.bf16 %v11431_v42, %v11429_v40  ;;  %v8478_v39 = vpack.i.bf16 %v11453_v17, %v11464_v55  ;;  %v1928_v23 = vld [vmem:[#allocation2 + $0xf8] sm:$0xff] }
 0x263   : > { %v1829_v48 = vadd.f32 %v11121_v2, %v1668_v56  ;;  %7629 = vmatmul.mubr.msk.bf16.gmra.mrb[84].mxu0 %vm205_vm0, %v2922_v27  ;;  %8454 = vrot.lane.b32.xlu1 %v8453_v1, %s9886_s20  ;;  %v1671_v58 = vadd.f32 %v7153_v14, %v11136_v13  ;;  %v11473_v14 = vld [vmem:[#allocation2 + $0xf0] sm:$0xff] }
 0x264   : > { %8464 = vrot.lane.b32.xlu0 %v8448_v44, %s9887_s21  ;;  %14225 = vst [vmem:[#allocation45_spill] sm:$0xff] %v11473_v14 }
 0x265   : > { %v1871_v60 = vmax.f32 %v1829_v48, 0.0  ;;  %v1832_v37 = vadd.f32 %v11130_v19, %v1671_v58  ;;  %v7154_v61 = vpop.f32.mrb[60].mxu0  ;;  %v8210_v48 = vpop.permute.xlu0 %8209  ;;  %v8483_v58 = vpack.i.bf16 %v11355_v0, %v11353_v30  ;;  %v11494_v0 = vld [vmem:[#allocation2 + $0x109] sm:$0xff] }
 0x266   : > { %v7155_v28 = vpop.f32.mrb[61].mxu0  ;;  %14227 = vst [vmem:[#allocation47_spill] sm:$0xff] %v11494_v0 }
 0x267   : > { %1903 = vst.msk [vmem:[#allocation2 + $0x169] sm:$0xff] %vm205_vm0, %v1871_v60  ;;  %v1872_v2 = vmax.f32 %v1832_v37, 0.0  ;;  %v7156_v32 = vadd.f32 %v7155_v28, %v7154_v61  ;;  %v7157_v7 = vpop.f32.mrb[62].mxu0  ;;  %8459 = vrot.lane.b32.xlu1 %v8458_v59, %s9886_s20  ;;  %v11489_v37 = vld [vmem:[#allocation2 + $0x111] sm:$0xff] }
 0x268   : > { %8469 = vrot.lane.b32.xlu0 %v8453_v1, %s9885_s19  ;;  %v7158_v12 = vpop.f32.mrb[63].mxu0  ;;  %v11456_v26 = vld [vmem:[#allocation2 + $0x152] sm:$0xff]  ;;  %v11458_v19 = vld [vmem:[#allocation2 + $0x15a] sm:$0xff]  ;;  %v8488_v1 = vpack.i.bf16 %v1928_v23, %v11473_v14  ;;  %14226 = vst [vmem:[#allocation46_spill] sm:$0xff] %v11489_v37 }
 0x269   : > { %1904 = vst.msk [vmem:[#allocation2 + $0x171] sm:$0xff] %vm205_vm0, %v1872_v2  ;;  %v1676_v52 = vadd.f32 %v7156_v32, %v11136_v13  ;;  %v7159_v20 = vadd.f32 %v7158_v12, %v7157_v7  ;;  %v2925_v44 = vpack.c.bf16 %v11458_v19, %v11456_v26  ;;  %v8215_v30 = vpop.permute.xlu0 %8214  ;;  %v8513_v12 = vpack.i.bf16 %v11382_v16, %v11380_v47  ;;  %v11524_v47 = vld [vmem:[#allocation2 + $0x129] sm:$0xff]  ;;  %v1907_v16 = vld [vmem:[#allocation2] sm:$0xff] }
 0x26a   : > { %14230 = vst [vmem:[#allocation50_spill] sm:$0xff] %v11524_v47 }
 0x26b   : > { %v1837_v46 = vadd.f32 %v11119_v5, %v1676_v52  ;;  %v1679_v18 = vadd.f32 %v7159_v20, %v11136_v13  ;;  %7632 = vmatprep.mubr.msk.bf16.mxu0 %vm205_vm0, %v2925_v44  ;;  %8474 = vrot.lane.b32.xlu1 %v8458_v59, %s9887_s21  ;;  %v8508_v59 = vpack.i.bf16 %v11489_v37, %v11494_v0  ;;  %v11512_v20 = vld [vmem:[#allocation2 + $0x110] sm:$0xff]  ;;  %v11517_v44 = vld [vmem:[#allocation2 + $0x108] sm:$0xff] }
 0x26c   : > { %8479 = vrot.lane.b32.xlu0 %v8478_v39, %s9885_s19  ;;  %14228 = vst [vmem:[#allocation48_spill] sm:$0xff] %v11512_v20  ;;  %14229 = vst [vmem:[#allocation49_spill] sm:$0xff] %v11517_v44  ;;  %v8518_v23 = vpack.i.bf16 %v11512_v20, %v11517_v44 }
 0x26d   : > { %v1873_v56 = vmax.f32 %v1837_v46, 0.0  ;;  %v1840_v27 = vadd.f32 %v11128_v49, %v1679_v18  ;;  %v8212_v18 = vunpack.i.h.bf16 %v8210_v48 }
 0x26f   : > { %1905 = vst.msk [vmem:[#allocation2 + $0x181] sm:$0xff] %vm205_vm0, %v1873_v56  ;;  %v1874_v5 = vmax.f32 %v1840_v27, 0.0  ;;  %8489 = vrot.lane.b32.xlu1 %v8488_v1, %s9886_s20  ;;  %v8211_v56 = vunpack.i.l.bf16 %v8210_v48  ;;  %v1908_v27 = vld [vmem:[#allocation2 + $0x8] sm:$0xff] }
 0x270   : > { %8484 = vrot.lane.b32.xlu0 %v8483_v58, %s9886_s20  ;;  %v11482_v13 = vld [vmem:[#allocation2 + $0x16a] sm:$0xff]  ;;  %v11484_v60 = vld [vmem:[#allocation2 + $0x172] sm:$0xff]  ;;  %v2696_v48 = vsel %vm205_vm0, %v1908_v27, %v8212_v18  ;;  %v8543_v18 = vpack.i.bf16 %v11408_v53, %v11406_v31 }
 0x271   : > { %1906 = vst.msk [vmem:[#allocation2 + $0x189] sm:$0xff] %vm205_vm0, %v1874_v5  ;;  %v2928_v49 = vpack.c.bf16 %v11484_v60, %v11482_v13  ;;  %v8217_v5 = vunpack.i.h.bf16 %v8215_v30  ;;  %v2695_v44 = vsel %vm205_vm0, %v1907_v16, %v8211_v56 }
 0x273   : > { %7633 = vmatmul.mubr.msk.bf16.gmra.mrb[88].mxu0 %vm205_vm0, %v2928_v49  ;;  %8504 = vrot.lane.b32.xlu1 %v8488_v1, %s9887_s21  ;;  %v8216_v49 = vunpack.i.l.bf16 %v8215_v30 }
 0x274   : > { %8494 = vrot.lane.b32.xlu0 %v8478_v39, %s9887_s21 }
 0x275   : > { %v11496_v61 = vpop.permute.xlu1 %8219  ;;  %v2727_v17 = vsel %vm1115_vm3, %v2695_v44, %v8216_v49 }
 0x276   : > { %v8230_v52 = vpop.permute.xlu0 %8229 }
 0x277   : > { %8509 = vrot.lane.b32.xlu1 %v8508_v59, %s9885_s19  ;;  %v8232_v37 = vunpack.i.h.bf16 %v8230_v52  ;;  %v8231_v14 = vunpack.i.l.bf16 %v8230_v52 }
 0x278   : > { %8499 = vrot.lane.b32.xlu0 %v8483_v58, %s9885_s19  ;;  %v11502_v28 = vld [vmem:[#allocation2 + $0x182] sm:$0xff]  ;;  %v11504_v2 = vld [vmem:[#allocation2 + $0x18a] sm:$0xff] }
 0x279   : > { %v11506_v32 = vpop.permute.xlu1 %8224  ;;  %v2931_v7 = vpack.c.bf16 %v11504_v2, %v11502_v28  ;;  %v11527_v58 = vld [vmem:[#allocation2 + $0x121] sm:$0xff]  ;;  %v2759_v27 = vsel %vm1148_vm4, %v2727_v17, %v8231_v14  ;;  %v11561_v17 = vld [vmem:[#allocation2 + $0x139] sm:$0xff]  ;;  %v8222_v14 = vunpack.i.h.bf16 %v11496_v61 }
 0x27a   : > { %14231 = vst [vmem:[#allocation52_spill] sm:$0xff] %v11527_v58 }
 0x27b   : > { %7636 = vmatprep.mubr.msk.bf16.mxu0 %vm205_vm0, %v2931_v7  ;;  %8514 = vrot.lane.b32.xlu1 %v8513_v12, %s9886_s20  ;;  %v8538_v7 = vpack.i.bf16 %v11524_v47, %v11527_v58  ;;  %v2728_v58 = vsel %vm1115_vm3, %v2696_v48, %v8217_v5  ;;  %v8227_v48 = vunpack.i.h.bf16 %v11506_v32 }
 0x27c   : > { %8524 = vrot.lane.b32.xlu0 %v8508_v59, %s9887_s21  ;;  %v2760_v44 = vsel %vm1148_vm4, %v2728_v58, %v8232_v37  ;;  %v8221_v37 = vunpack.i.l.bf16 %v11496_v61 }
 0x27d   : > { %v8235_v39 = vpop.permute.xlu1 %8234 }
 0x27e   : > { %v11521_v46 = vpop.permute.xlu0 %8239  ;;  %v8237_v20 = vunpack.i.h.bf16 %v8235_v39  ;;  %v8236_v0 = vunpack.i.l.bf16 %v8235_v39 }
 0x27f   : > { %8519 = vrot.lane.b32.xlu1 %v8518_v23, %s9886_s20 }
 0x280   : > { %8529 = vrot.lane.b32.xlu0 %v8513_v12, %s9885_s19  ;;  %v1931_v12 = vld [vmem:[#allocation2 + $0x120] sm:$0xff]  ;;  %v2792_v39 = vsel %vm205_vm0, %v11169_v11, %v8237_v20  ;;  %v2791_v52 = vsel %vm205_vm0, %v11167_v25, %v8236_v0 }
 0x281   : > { %v8255_v1 = vpop.permute.xlu1 %8254  ;;  %v8548_v55 = vpack.i.bf16 %v1932_v62, %v1931_v12  ;;  %v11557_v25 = vld [vmem:[#allocation2 + $0x141] sm:$0xff] }
 0x282   : > { %v11529_v59 = vpop.permute.xlu0 %8244  ;;  %v8257_v16 = vunpack.i.h.bf16 %v8255_v1  ;;  %v8256_v62 = vunpack.i.l.bf16 %v8255_v1  ;;  %v2887_v1 = vpack.c.bf16 %v2760_v44, %v2759_v27  ;;  %v8568_v49 = vpack.i.bf16 %v11557_v25, %v11561_v17 }
 0x283   : > { %8534 = vrot.lane.b32.xlu1 %v8518_v23, %s9887_s21 }
 0x284   : > { %8539 = vrot.lane.b32.xlu0 %v8538_v7, %s9885_s19 }
 0x285   : > { %v11537_v30 = vpop.permute.xlu1 %8264 }
 0x286   : > { %v8250_v47 = vpop.permute.xlu0 %8249  ;;  %v8266_v61 = vunpack.i.l.bf16 %v11537_v30 }
 0x287   : > { %v8252_v56 = vunpack.i.h.bf16 %v8250_v47  ;;  %v8251_v23 = vunpack.i.l.bf16 %v8250_v47  ;;  %8549 = vrot.lane.b32.xlu1 %v8548_v55, %s9886_s20 }
 0x288   : > { %8544 = vrot.lane.b32.xlu0 %v8543_v18, %s9886_s20 }
 0x289   : > { %v11551_v5 = vpop.permute.xlu1 %8269  ;;  %v2823_v31 = vsel %vm1115_vm3, %v2791_v52, %v8251_v23  ;;  %v2824_v53 = vsel %vm1115_vm3, %v2792_v39, %v8252_v56  ;;  %v8267_v23 = vunpack.i.h.bf16 %v11537_v30  ;;  %v2697_v39 = vsel %vm205_vm0, %v11171_v4, %v8221_v37 }
 0x28a   : > { %v8260_v47 = vpop.permute.xlu0 %8259  ;;  %v2855_v11 = vsel %vm1148_vm4, %v2823_v31, %v8256_v62  ;;  %v2856_v20 = vsel %vm1148_vm4, %v2824_v53, %v8257_v16  ;;  %v2698_v52 = vsel %vm205_vm0, %v11173_v3, %v8222_v14  ;;  %v11581_v31 = vld [vmem:[#allocation2 + $0x140] sm:$0xff] }
 0x28b   : > { %8564 = vrot.lane.b32.xlu1 %v8548_v55, %s9887_s21  ;;  %v2888_v0 = vpack.c.bf16 %v2856_v20, %v2855_v11  ;;  %v8226_v55 = vunpack.i.l.bf16 %v11506_v32  ;;  %v8262_v56 = vunpack.i.h.bf16 %v8260_v47  ;;  %v8573_v32 = vpack.i.bf16 %v11431_v42, %v11429_v40  ;;  %v11591_v40 = vld [vmem:[#allocation2 + $0x138] sm:$0xff] }
 0x28c   : > { %8554 = vrot.lane.b32.xlu0 %v8538_v7, %s9887_s21  ;;  %v8261_v7 = vunpack.i.l.bf16 %v8260_v47  ;;  %v2730_v30 = vsel %vm1115_vm3, %v2698_v52, %v8227_v48 }
 0x28d   : > { %3164 = vmatprep.mubr.bf16.mxu1 %v2888_v0  ;;  %v11565_v58 = vpop.permute.xlu1 %8274  ;;  %v2729_v53 = vsel %vm1115_vm3, %v2697_v39, %v8226_v55  ;;  %v2762_v0 = vsel %vm1148_vm4, %v2730_v30, %v8267_v23  ;;  %v11604_v55 = vld [vmem:[#allocation2 + $0x159] sm:$0xff]  ;;  %v11609_v23 = vld [vmem:[#allocation2 + $0x151] sm:$0xff]  ;;  %v8246_v39 = vunpack.i.l.bf16 %v11529_v59 }
 0x28e   : > { %v8285_v12 = vpop.permute.xlu0 %8284  ;;  %3165 = vmatmul.mubr.bf16.vlgmr.msra.gmra.mrb[32].mxu1 %v2887_v1  ;;  %v2793_v4 = vsel %vm205_vm0, %v11194_v21, %v8261_v7  ;;  %v2761_v20 = vsel %vm1148_vm4, %v2729_v53, %v8266_v61  ;;  %v8578_v21 = vpack.i.bf16 %v11581_v31, %v11591_v40  ;;  %v8247_v61 = vunpack.i.h.bf16 %v11529_v59 }
 0x28f   : > { %8569 = vrot.lane.b32.xlu1 %v8568_v49, %s9885_s19  ;;  %v8287_v3 = vunpack.i.h.bf16 %v8285_v12  ;;  %v8286_v47 = vunpack.i.l.bf16 %v8285_v12  ;;  %v2890_v48 = vpack.c.bf16 %v2762_v0, %v2761_v20  ;;  %v8242_v12 = vunpack.i.h.bf16 %v11521_v46  ;;  %v11635_v20 = vld [vmem:[#allocation2 + $0x171] sm:$0xff] }
 0x290   : > { %8559 = vrot.lane.b32.xlu0 %v8543_v18, %s9885_s19  ;;  %v2794_v18 = vsel %vm205_vm0, %v11196_v38, %v8262_v56  ;;  %v8241_v56 = vunpack.i.l.bf16 %v11521_v46 }
 0x291   : > { %v8280_v16 = vpop.permute.xlu1 %8279 }
 0x292   : > { %v8282_v62 = vunpack.i.h.bf16 %v8280_v16  ;;  %v8281_v44 = vunpack.i.l.bf16 %v8280_v16  ;;  %v8290_v27 = vpop.permute.xlu0 %8289  ;;  %v8598_v16 = vpack.i.bf16 %v11604_v55, %v11609_v23  ;;  %v2699_v59 = vsel %vm205_vm0, %v11219_v8, %v8241_v56 }
 0x293   : > { %8574 = vrot.lane.b32.xlu1 %v8573_v32, %s9886_s20  ;;  %v2731_v0 = vsel %vm1115_vm3, %v2699_v59, %v8246_v39 }
 0x294   : > { %8584 = vrot.lane.b32.xlu0 %v8568_v49, %s9887_s21  ;;  %v2825_v42 = vsel %vm1115_vm3, %v2793_v4, %v8281_v44  ;;  %v2826_v11 = vsel %vm1115_vm3, %v2794_v18, %v8282_v62  ;;  %v11617_v62 = vld [vmem:[#allocation2 + $0x158] sm:$0xff]  ;;  %v8291_v44 = vunpack.i.l.bf16 %v8290_v27  ;;  %v11621_v4 = vld [vmem:[#allocation2 + $0x150] sm:$0xff] }
 0x295   : > { %v8295_v38 = vpop.permute.xlu1 %8294  ;;  %v2857_v1 = vsel %vm1148_vm4, %v2825_v42, %v8286_v47  ;;  %v2858_v14 = vsel %vm1148_vm4, %v2826_v11, %v8287_v3  ;;  %v2700_v3 = vsel %vm205_vm0, %v11214_v36, %v8242_v12  ;;  %v8603_v11 = vpack.i.bf16 %v11458_v19, %v11456_v26  ;;  %v11646_v26 = vld [vmem:[#allocation2 + $0x169] sm:$0xff] }
 0x296   : > { %v11601_v37 = vpop.permute.xlu0 %8299  ;;  %v2891_v49 = vpack.c.bf16 %v2858_v14, %v2857_v1  ;;  %v8297_v46 = vunpack.i.h.bf16 %v8295_v38  ;;  %v8296_v53 = vunpack.i.l.bf16 %v8295_v38  ;;  %v2732_v38 = vsel %vm1115_vm3, %v2700_v3, %v8247_v61  ;;  %v11668_v3 = vld [vmem:[#allocation2 + $0x170] sm:$0xff] }
 0x297   : > { %8579 = vrot.lane.b32.xlu1 %v8578_v21, %s9886_s20  ;;  %v2795_v36 = vsel %vm205_vm0, %v11232_v41, %v8291_v44  ;;  %v8623_v41 = vpack.i.bf16 %v11635_v20, %v11646_v26  ;;  %v8271_v44 = vunpack.i.l.bf16 %v11551_v5 }
 0x298   : > { %8589 = vrot.lane.b32.xlu0 %v8573_v32, %s9885_s19  ;;  %3172 = vmatprep.mubr.bf16.mxu1 %v2891_v49  ;;  %v8292_v32 = vunpack.i.h.bf16 %v8290_v27  ;;  %v11631_v27 = vpack.i.bf16 %v11617_v62, %v11621_v4  ;;  %v2763_v49 = vsel %vm1148_vm4, %v2731_v0, %v8296_v53  ;;  %v8628_v53 = vpack.i.bf16 %v11484_v60, %v11482_v13 }
 0x299   : > { %v8310_v7 = vpop.permute.xlu1 %8309  ;;  %3173 = vmatmul.mubr.bf16.gmra.mrb[36].mxu1 %v2890_v48  ;;  %v2701_v60 = vsel %vm205_vm0, %v11249_v63, %v8271_v44  ;;  %v11705_v44 = vld [vmem:[#allocation2 + $0x189] sm:$0xff] }
 0x29a   : > { %v11613_v52 = vpop.permute.xlu0 %8304  ;;  %v8312_v30 = vunpack.i.h.bf16 %v8310_v7  ;;  %v8311_v18 = vunpack.i.l.bf16 %v8310_v7  ;;  %v2796_v8 = vsel %vm205_vm0, %v11225_v57, %v8292_v32  ;;  %v2764_v57 = vsel %vm1148_vm4, %v2732_v38, %v8297_v46  ;;  %v11674_v38 = vld [vmem:[#allocation2 + $0x168] sm:$0xff] }
 0x29b   : > { %8594 = vrot.lane.b32.xlu1 %v8578_v21, %s9887_s21  ;;  %v2893_v39 = vpack.c.bf16 %v2764_v57, %v2763_v49  ;;  %v8272_v32 = vunpack.i.h.bf16 %v11551_v5 }
 0x29c   : > { %8599 = vrot.lane.b32.xlu0 %v8598_v16, %s9885_s19  ;;  %v2827_v19 = vsel %vm1115_vm3, %v2795_v36, %v8311_v18  ;;  %v2828_v14 = vsel %vm1115_vm3, %v2796_v8, %v8312_v30  ;;  %v8277_v30 = vunpack.i.h.bf16 %v11565_v58  ;;  %v8276_v18 = vunpack.i.l.bf16 %v11565_v58 }
 0x29d   : > { %v11627_v47 = vpop.permute.xlu1 %8324  ;;  %v2702_v13 = vsel %vm205_vm0, %v11242_v33, %v8272_v32  ;;  %v11682_v8 = vpack.i.bf16 %v11668_v3, %v11674_v38  ;;  %v1940_v32 = vld [vmem:[#allocation2 + $0x188] sm:$0xff] }
 0x29e   : > { %v8315_v42 = vpop.permute.xlu0 %8314  ;;  %v8327_v0 = vunpack.i.h.bf16 %v11627_v47  ;;  %v8326_v5 = vunpack.i.l.bf16 %v11627_v47  ;;  %v2733_v47 = vsel %vm1115_vm3, %v2701_v60, %v8276_v18  ;;  %v8302_v18 = vunpack.i.h.bf16 %v11601_v37 }
 0x29f   : > { %v8317_v21 = vunpack.i.h.bf16 %v8315_v42  ;;  %v8316_v1 = vunpack.i.l.bf16 %v8315_v42  ;;  %8609 = vrot.lane.b32.xlu1 %v11631_v27, %s9886_s20 }
 0x2a0   : > { %8604 = vrot.lane.b32.xlu0 %v8603_v11, %s9886_s20 }
 0x2a1   : > { %v11652_v48 = vpop.permute.xlu1 %8329  ;;  %v2859_v12 = vsel %vm1148_vm4, %v2827_v19, %v8316_v1  ;;  %v2860_v56 = vsel %vm1148_vm4, %v2828_v14, %v8317_v21 }
 0x2a2   : > { %v8320_v7 = vpop.permute.xlu0 %8319  ;;  %v2894_v61 = vpack.c.bf16 %v2860_v56, %v2859_v12  ;;  %v2765_v12 = vsel %vm1148_vm4, %v2733_v47, %v8326_v5  ;;  %v1941_v5 = vld [vmem:[#allocation2 + $0x198] sm:$0xff] }
 0x2a3   : > { %8624 = vrot.lane.b32.xlu1 %v8623_v41, %s9885_s19  ;;  %v8322_v42 = vunpack.i.h.bf16 %v8320_v7 }
 0x2a4   : > { %8614 = vrot.lane.b32.xlu0 %v8598_v16, %s9887_s21  ;;  %3180 = vmatprep.mubr.bf16.mxu1 %v2894_v61  ;;  %v8321_v16 = vunpack.i.l.bf16 %v8320_v7 }
 0x2a5   : > { %3181 = vmatmul.mubr.bf16.gmra.mrb[40].mxu1 %v2893_v39  ;;  %v11662_v46 = vpop.permute.xlu1 %8334  ;;  %v2798_v19 = vsel %vm205_vm0, %v11256_v9, %v8322_v42 }
 0x2a6   : > { %v8345_v59 = vpop.permute.xlu0 %8344  ;;  %v2797_v33 = vsel %vm205_vm0, %v11261_v54, %v8321_v16 }
 0x2a7   : > { %8629 = vrot.lane.b32.xlu1 %v8628_v53, %s9886_s20  ;;  %v8347_v63 = vunpack.i.h.bf16 %v8345_v59  ;;  %v8346_v14 = vunpack.i.l.bf16 %v8345_v59  ;;  %v8301_v59 = vunpack.i.l.bf16 %v11601_v37 }
 0x2a8   : > { %8619 = vrot.lane.b32.xlu0 %v8603_v11, %s9885_s19  ;;  %v2734_v11 = vsel %vm1115_vm3, %v2702_v13, %v8277_v30  ;;  %v1939_v30 = vld [vmem:[#allocation2 + $0x180] sm:$0xff]  ;;  %v8307_v13 = vunpack.i.h.bf16 %v11613_v52 }
 0x2a9   : > { %v8340_v58 = vpop.permute.xlu1 %8339  ;;  %v2766_v56 = vsel %vm1148_vm4, %v2734_v11, %v8327_v0  ;;  %v8653_v16 = vpack.i.bf16 %v1940_v32, %v1939_v30  ;;  %v11710_v0 = vld [vmem:[#allocation2 + $0x181] sm:$0xff]  ;;  %v1977_v11 = vld [vmem:[#allocation2 + $0x199] sm:$0xff]  ;;  %v8673_v32 = vpack.i.bf16 %v11504_v2, %v11502_v28 }
 0x2aa   : > { %v8342_v36 = vunpack.i.h.bf16 %v8340_v58  ;;  %v8341_v21 = vunpack.i.l.bf16 %v8340_v58  ;;  %v11684_v1 = vpop.permute.xlu0 %8349  ;;  %v1942_v58 = vld [vmem:[#allocation2 + $0x1a0] sm:$0xff] }
 0x2ab   : > { %8634 = vrot.lane.b32.xlu1 %v11682_v8, %s9886_s20  ;;  %v8352_v37 = vunpack.i.h.bf16 %v11684_v1  ;;  %v8351_v47 = vunpack.i.l.bf16 %v11684_v1 }
 0x2ac   : > { %8644 = vrot.lane.b32.xlu0 %v8623_v41, %s9887_s21  ;;  %v2829_v49 = vsel %vm1115_vm3, %v2797_v33, %v8341_v21  ;;  %v2830_v57 = vsel %vm1115_vm3, %v2798_v19, %v8342_v36  ;;  %v2896_v41 = vpack.c.bf16 %v2766_v56, %v2765_v12  ;;  %v2013_v36 = vld [vmem:[#allocation2 + $0x19a] sm:$0xff]  ;;  %v2014_v21 = vld [vmem:[#allocation2 + $0x1a2] sm:$0xff] }
 0x2ad   : > { %v8355_v7 = vpop.permute.xlu1 %8354  ;;  %v2861_v9 = vsel %vm1148_vm4, %v2829_v49, %v8346_v14  ;;  %v2862_v54 = vsel %vm1148_vm4, %v2830_v57, %v8347_v63  ;;  %v1978_v19 = vld [vmem:[#allocation2 + $0x1a1] sm:$0xff]  ;;  %v2934_v33 = vpack.c.bf16 %v2014_v21, %v2013_v36 }
 0x2ae   : > { %v11701_v61 = vpop.permute.xlu0 %8359  ;;  %v2897_v39 = vpack.c.bf16 %v2862_v54, %v2861_v9  ;;  %v8357_v63 = vunpack.i.h.bf16 %v8355_v7  ;;  %v8356_v14 = vunpack.i.l.bf16 %v8355_v7  ;;  %v9774_v57 = vld [vmem:[#allocation2 + $0x68] sm:$0xff]  ;;  %v9775_v56 = vld [vmem:[#allocation2 + $0x60] sm:$0xff]  ;;  %v8678_v7 = vpack.i.bf16 %v1978_v19, %v1977_v11 }
 0x2af   : > { %8639 = vrot.lane.b32.xlu1 %v11631_v27, %s9887_s21  ;;  %v8306_v27 = vunpack.i.l.bf16 %v11613_v52  ;;  %v2704_v12 = vsel %vm205_vm0, %v9774_v57, %v8302_v18  ;;  %v2703_v9 = vsel %vm205_vm0, %v9775_v56, %v8301_v59  ;;  %7637 = vmatmul.mubr.msk.bf16.gmra.mrb[92].mxu0 %vm205_vm0, %v2934_v33  ;;  %v8332_v19 = vunpack.i.h.bf16 %v11652_v48 }
 0x2b0   : > { %8649 = vrot.lane.b32.xlu0 %v8628_v53, %s9885_s19  ;;  %3188 = vmatprep.mubr.bf16.mxu1 %v2897_v39  ;;  %v8668_v53 = vpack.i.bf16 %v11705_v44, %v11710_v0  ;;  %v11724_v39 = vpack.i.bf16 %v1942_v58, %v1941_v5  ;;  %v2736_v30 = vsel %vm1115_vm3, %v2704_v12, %v8307_v13  ;;  %v8331_v33 = vunpack.i.l.bf16 %v11652_v48 }
 0x2b1   : > { %v8370_v42 = vpop.permute.xlu1 %8369  ;;  %3189 = vmatmul.mubr.bf16.gmra.mrb[44].mxu1 %v2896_v41  ;;  %v2735_v41 = vsel %vm1115_vm3, %v2703_v9, %v8306_v27  ;;  %v2768_v13 = vsel %vm1148_vm4, %v2736_v30, %v8357_v63 }
 0x2b2   : > { %v11714_v60 = vpop.permute.xlu0 %8364  ;;  %v8372_v52 = vunpack.i.h.bf16 %v8370_v42  ;;  %v8371_v49 = vunpack.i.l.bf16 %v8370_v42  ;;  %v9776_v42 = vld [vmem:[#allocation2 + $0x81] sm:$0xff]  ;;  %v2767_v27 = vsel %vm1148_vm4, %v2735_v41, %v8356_v14  ;;  %v8337_v14 = vunpack.i.h.bf16 %v11662_v46 }
 0x2b3   : > { %8654 = vrot.lane.b32.xlu1 %v8653_v16, %s9886_s20  ;;  %v2800_v18 = vsel %vm205_vm0, %v9776_v42, %v8352_v37 }
 0x2b4   : > { %8669 = vrot.lane.b32.xlu0 %v8668_v53, %s9887_s21  ;;  %v9777_v53 = vld [vmem:[#allocation2 + $0x79] sm:$0xff]  ;;  %v2832_v2 = vsel %vm1115_vm3, %v2800_v18, %v8372_v52  ;;  %v8336_v52 = vunpack.i.l.bf16 %v11662_v46 }
 0x2b5   : > { %v8385_v54 = vpop.permute.xlu1 %8384  ;;  %v2799_v59 = vsel %vm205_vm0, %v9777_v53, %v8351_v47 }
 0x2b6   : > { %v8375_v1 = vpop.permute.xlu0 %8374  ;;  %v2831_v28 = vsel %vm1115_vm3, %v2799_v59, %v8371_v49  ;;  %v8387_v56 = vunpack.i.h.bf16 %v8385_v54  ;;  %v8386_v9 = vunpack.i.l.bf16 %v8385_v54  ;;  %v9780_v59 = vld [vmem:[#allocation2 + $0x99] sm:$0xff] }
 0x2b7   : > { %v8377_v36 = vunpack.i.h.bf16 %v8375_v1  ;;  %v8376_v5 = vunpack.i.l.bf16 %v8375_v1  ;;  %8659 = vrot.lane.b32.xlu1 %v11682_v8, %s9887_s21  ;;  %v2899_v8 = vpack.c.bf16 %v2768_v13, %v2767_v27  ;;  %v9778_v1 = vld [vmem:[#allocation2 + $0x80] sm:$0xff] }
 0x2b8   : > { %8674 = vrot.lane.b32.xlu0 %v8673_v32, %s9885_s19  ;;  %v2706_v32 = vsel %vm205_vm0, %v9778_v1, %v8332_v19 }
 0x2b9   : > { %v11740_v58 = vpop.permute.xlu1 %8389  ;;  %v2863_v21 = vsel %vm1148_vm4, %v2831_v28, %v8376_v5  ;;  %v2864_v37 = vsel %vm1148_vm4, %v2832_v2, %v8377_v36  ;;  %v2738_v46 = vsel %vm1115_vm3, %v2706_v32, %v8337_v14 }
 0x2ba   : > { %v8380_v47 = vpop.permute.xlu0 %8379  ;;  %v2900_v11 = vpack.c.bf16 %v2864_v37, %v2863_v21  ;;  %v2770_v13 = vsel %vm1148_vm4, %v2738_v46, %v8387_v56 }
 0x2bb   : > { %8664 = vrot.lane.b32.xlu1 %v11724_v39, %s9886_s20  ;;  %v8382_v57 = vunpack.i.h.bf16 %v8380_v47  ;;  %v8381_v12 = vunpack.i.l.bf16 %v8380_v47 }
 0x2bc   : > { %3196 = vmatprep.mubr.bf16.mxu1 %v2900_v11  ;;  %8679 = vrot.lane.b32.xlu0 %v8678_v7, %s9887_s21  ;;  %v9779_v7 = vld [vmem:[#allocation2 + $0x78] sm:$0xff] }
 0x2bd   : > { %3197 = vmatmul.mubr.bf16.gmra.mrb[48].mxu1 %v2899_v8  ;;  %v11749_v63 = vpop.permute.xlu1 %8394  ;;  %v2705_v48 = vsel %vm205_vm0, %v9779_v7, %v8331_v33  ;;  %v2802_v36 = vsel %vm205_vm0, %v9780_v59, %v8382_v57  ;;  %v8361_v33 = vunpack.i.l.bf16 %v11701_v61 }
 0x2be   : > { %v8405_v49 = vpop.permute.xlu0 %8404  ;;  %v2737_v53 = vsel %vm1115_vm3, %v2705_v48, %v8336_v52  ;;  %v8367_v52 = vunpack.i.h.bf16 %v11714_v60  ;;  %v9781_v48 = vld [vmem:[#allocation2 + $0x98] sm:$0xff] }
 0x2bf   : > { %8684 = vrot.lane.b32.xlu1 %v8653_v16, %s9887_s21  ;;  %v2801_v16 = vsel %vm205_vm0, %v11316_v35, %v8381_v12  ;;  %v8407_v54 = vunpack.i.h.bf16 %v8405_v49  ;;  %v8406_v5 = vunpack.i.l.bf16 %v8405_v49  ;;  %v2769_v27 = vsel %vm1148_vm4, %v2737_v53, %v8386_v9 }
 0x2c0   : > { %v2902_v19 = vpack.c.bf16 %v2770_v13, %v2769_v27  ;;  %v8362_v35 = vunpack.i.h.bf16 %v11701_v61  ;;  %v8366_v49 = vunpack.i.l.bf16 %v11714_v60 }
 0x2c1   : > { %v8400_v41 = vpop.permute.xlu1 %8399 }
 0x2c2   : > { %v8402_v30 = vunpack.i.h.bf16 %v8400_v41  ;;  %v8401_v42 = vunpack.i.l.bf16 %v8400_v41  ;;  %v8410_v18 = vpop.permute.xlu0 %8409  ;;  %v2708_v41 = vsel %vm205_vm0, %v9781_v48, %v8362_v35  ;;  %v8397_v35 = vunpack.i.h.bf16 %v11749_v63 }
 0x2c3   : > { %v8412_v12 = vunpack.i.h.bf16 %v8410_v18  ;;  %v8411_v56 = vunpack.i.l.bf16 %v8410_v18  ;;  %v2740_v60 = vsel %vm1115_vm3, %v2708_v41, %v8367_v52 }
 0x2c4   : > { %v2833_v28 = vsel %vm1115_vm3, %v2801_v16, %v8401_v42  ;;  %v2834_v2 = vsel %vm1115_vm3, %v2802_v36, %v8402_v30  ;;  %v9782_v30 = vld [vmem:[#allocation2 + $0x90] sm:$0xff] }
 0x2c5   : > { %v8415_v21 = vpop.permute.xlu1 %8414  ;;  %v2865_v37 = vsel %vm1148_vm4, %v2833_v28, %v8406_v5  ;;  %v2866_v47 = vsel %vm1148_vm4, %v2834_v2, %v8407_v54  ;;  %v2707_v61 = vsel %vm205_vm0, %v9782_v30, %v8361_v33  ;;  %v2804_v59 = vsel %vm205_vm0, %v11338_v6, %v8412_v12 }
 0x2c6   : > { %v11767_v11 = vpop.permute.xlu0 %8419  ;;  %v2903_v8 = vpack.c.bf16 %v2866_v47, %v2865_v37  ;;  %v8417_v9 = vunpack.i.h.bf16 %v8415_v21  ;;  %v8416_v1 = vunpack.i.l.bf16 %v8415_v21  ;;  %v2739_v46 = vsel %vm1115_vm3, %v2707_v61, %v8366_v49 }
 0x2c7   : > { %v2803_v18 = vsel %vm205_vm0, %v11345_v34, %v8411_v56  ;;  %v8392_v34 = vunpack.i.h.bf16 %v11740_v58  ;;  %v8396_v33 = vunpack.i.l.bf16 %v11749_v63 }
 0x2c8   : > { %3204 = vmatprep.mubr.bf16.mxu1 %v2903_v8  ;;  %v2771_v28 = vsel %vm1148_vm4, %v2739_v46, %v8416_v1  ;;  %v2772_v2 = vsel %vm1148_vm4, %v2740_v60, %v8417_v9  ;;  %v8391_v8 = vunpack.i.l.bf16 %v11740_v58 }
 0x2c9   : > { %v8430_v14 = vpop.permute.xlu1 %8429  ;;  %3205 = vmatmul.mubr.bf16.gmra.mrb[52].mxu1 %v2902_v19  ;;  %v2905_v47 = vpack.c.bf16 %v2772_v2, %v2771_v28  ;;  %v2710_v9 = vsel %vm205_vm0, %v11363_v43, %v8392_v34 }
 0x2ca   : > { %v11773_v57 = vpop.permute.xlu0 %8424  ;;  %v8432_v32 = vunpack.i.h.bf16 %v8430_v14  ;;  %v8431_v7 = vunpack.i.l.bf16 %v8430_v14  ;;  %v2709_v1 = vsel %vm205_vm0, %v11370_v24, %v8391_v8  ;;  %v2742_v30 = vsel %vm1115_vm3, %v2710_v9, %v8397_v35 }
 0x2cb   : > { %v2741_v41 = vsel %vm1115_vm3, %v2709_v1, %v8396_v33  ;;  %v8427_v2 = vunpack.i.h.bf16 %v11773_v57  ;;  %v9783_v33 = vld [vmem:[#allocation2 + $0xc8] sm:$0xff] }
 0x2cc   : > { %v2835_v54 = vsel %vm1115_vm3, %v2803_v18, %v8431_v7  ;;  %v2836_v5 = vsel %vm1115_vm3, %v2804_v59, %v8432_v32 }
 0x2cd   : > { %v8445_v42 = vpop.permute.xlu1 %8444 }
 0x2ce   : > { %v8435_v53 = vpop.permute.xlu0 %8434  ;;  %v8447_v12 = vunpack.i.h.bf16 %v8445_v42  ;;  %v8446_v56 = vunpack.i.l.bf16 %v8445_v42 }
 0x2cf   : > { %v8437_v36 = vunpack.i.h.bf16 %v8435_v53  ;;  %v8436_v16 = vunpack.i.l.bf16 %v8435_v53 }
 0x2d0   : > { %v2773_v46 = vsel %vm1148_vm4, %v2741_v41, %v8446_v56  ;;  %v2774_v60 = vsel %vm1148_vm4, %v2742_v30, %v8447_v12 }
 0x2d1   : > { %v11787_v27 = vpop.permute.xlu1 %8449  ;;  %v2867_v13 = vsel %vm1148_vm4, %v2835_v54, %v8436_v16  ;;  %v2868_v21 = vsel %vm1148_vm4, %v2836_v5, %v8437_v36  ;;  %v2908_v54 = vpack.c.bf16 %v2774_v60, %v2773_v46  ;;  %v8421_v5 = vunpack.i.l.bf16 %v11767_v11 }
 0x2d2   : > { %v8440_v6 = vpop.permute.xlu0 %8439  ;;  %v2906_v37 = vpack.c.bf16 %v2868_v21, %v2867_v13  ;;  %v8426_v13 = vunpack.i.l.bf16 %v11773_v57  ;;  %v8452_v46 = vunpack.i.h.bf16 %v11787_v27  ;;  %v8451_v60 = vunpack.i.l.bf16 %v11787_v27 }
 0x2d3   : > { %v8442_v52 = vunpack.i.h.bf16 %v8440_v6  ;;  %v8441_v49 = vunpack.i.l.bf16 %v8440_v6 }
 0x2d4   : > { %3212 = vmatprep.mubr.bf16.mxu1 %v2906_v37  ;;  %v2713_v27 = vsel %vm205_vm0, %v11446_v51, %v8451_v60  ;;  %v14233_v51 = vld [vmem:[#allocation44_spill] sm:$0xff] }
 0x2d5   : > { %3213 = vmatmul.mubr.bf16.gmra.mrb[56].mxu1 %v2905_v47  ;;  %v11793_v19 = vpop.permute.xlu1 %8454  ;;  %v2806_v63 = vsel %vm205_vm0, %v11377_v15, %v8442_v52  ;;  %v2805_v61 = vsel %vm205_vm0, %v11388_v10, %v8441_v49  ;;  %v8422_v10 = vunpack.i.h.bf16 %v11767_v11  ;;  %v2711_v11 = vsel %vm205_vm0, %v11397_v50, %v8421_v5 }
 0x2d6   : > { %v8465_v14 = vpop.permute.xlu0 %8464  ;;  %v2743_v57 = vsel %vm1115_vm3, %v2711_v11, %v8426_v13 }
 0x2d7   : > { %v8467_v42 = vunpack.i.h.bf16 %v8465_v14  ;;  %v8466_v53 = vunpack.i.l.bf16 %v8465_v14  ;;  %v2712_v14 = vsel %vm205_vm0, %v9783_v33, %v8422_v10 }
 0x2d8   : > { %v2744_v56 = vsel %vm1115_vm3, %v2712_v14, %v8427_v2 }
 0x2d9   : > { %v8460_v32 = vpop.permute.xlu1 %8459 }
 0x2da   : > { %v8462_v58 = vunpack.i.h.bf16 %v8460_v32  ;;  %v8461_v7 = vunpack.i.l.bf16 %v8460_v32  ;;  %v8470_v48 = vpop.permute.xlu0 %8469 }
 0x2db   : > { %v8472_v6 = vunpack.i.h.bf16 %v8470_v48  ;;  %v8471_v37 = vunpack.i.l.bf16 %v8470_v48 }
 0x2dc   : > { %v2837_v43 = vsel %vm1115_vm3, %v2805_v61, %v8461_v7  ;;  %v2838_v24 = vsel %vm1115_vm3, %v2806_v63, %v8462_v58 }
 0x2dd   : > { %v8475_v59 = vpop.permute.xlu1 %8474  ;;  %v2869_v18 = vsel %vm1148_vm4, %v2837_v43, %v8466_v53  ;;  %v2870_v36 = vsel %vm1148_vm4, %v2838_v24, %v8467_v42  ;;  %v2808_v9 = vsel %vm205_vm0, %v11414_v45, %v8472_v6  ;;  %v2807_v1 = vsel %vm205_vm0, %v11421_v29, %v8471_v37 }
 0x2de   : > { %v11813_v16 = vpop.permute.xlu0 %8479  ;;  %v2909_v15 = vpack.c.bf16 %v2870_v36, %v2869_v18  ;;  %v8477_v47 = vunpack.i.h.bf16 %v8475_v59  ;;  %v8476_v34 = vunpack.i.l.bf16 %v8475_v59  ;;  %v8457_v59 = vunpack.i.h.bf16 %v11793_v19 }
 0x2df   : > { %v8456_v18 = vunpack.i.l.bf16 %v11793_v19  ;;  %v2714_v6 = vsel %vm205_vm0, %v11439_v22, %v8452_v46  ;;  %v14232_v22 = vld [vmem:[#allocation43_spill] sm:$0xff]  ;;  %v8482_v60 = vunpack.i.h.bf16 %v11813_v16 }
 0x2e0   : > { %3220 = vmatprep.mubr.bf16.mxu1 %v2909_v15  ;;  %v2775_v30 = vsel %vm1148_vm4, %v2743_v57, %v8476_v34  ;;  %v2776_v63 = vsel %vm1148_vm4, %v2744_v56, %v8477_v47  ;;  %v3554_v15 = vld [vmem:[#allocation2 + $0x1] sm:$0xff]  ;;  %v2746_v34 = vsel %vm1115_vm3, %v2714_v6, %v8457_v59 }
 0x2e1   : > { %v8490_v28 = vpop.permute.xlu1 %8489  ;;  %3221 = vmatmul.mubr.bf16.gmra.mrb[60].mxu1 %v2908_v54  ;;  %v2911_v24 = vpack.c.bf16 %v2776_v63, %v2775_v30  ;;  %v3555_v54 = vld [vmem:[#allocation2 + $0x9] sm:$0xff]  ;;  %v2745_v47 = vsel %vm1115_vm3, %v2713_v27, %v8456_v18 }
 0x2e2   : > { %v11819_v21 = vpop.permute.xlu0 %8484  ;;  %v8492_v8 = vunpack.i.h.bf16 %v8490_v28  ;;  %v8491_v35 = vunpack.i.l.bf16 %v8490_v28  ;;  %v8688_v28 = vpack.i.bf16 %v3555_v54, %v3554_v15 }
 0x2e3   : > { %v8487_v15 = vunpack.i.h.bf16 %v11819_v21  ;;  %v8486_v54 = vunpack.i.l.bf16 %v11819_v21 }
 0x2e4   : > { %v2839_v50 = vsel %vm1115_vm3, %v2807_v1, %v8491_v35  ;;  %v2840_v41 = vsel %vm1115_vm3, %v2808_v9, %v8492_v8  ;;  %8689 = vrot.lane.b32.xlu0 %v8688_v28, %s9885_s19  ;;  %v3590_v8 = vld [vmem:[#allocation2 + $0x2] sm:$0xff]  ;;  %v3591_v35 = vld [vmem:[#allocation2 + $0xa] sm:$0xff] }
 0x2e5   : > { %v8505_v52 = vpop.permute.xlu1 %8504  ;;  %v8693_v57 = vpack.i.bf16 %v3591_v35, %v3590_v8 }
 0x2e6   : > { %v8495_v49 = vpop.permute.xlu0 %8494  ;;  %v11824_v12 = vpop.f32.mrb[64].mxu0  ;;  %v8506_v10 = vunpack.i.l.bf16 %v8505_v52  ;;  %v8507_v37 = vunpack.i.h.bf16 %v8505_v52 }
 0x2e7   : > { %v8497_v32 = vunpack.i.h.bf16 %v8495_v49  ;;  %v8496_v58 = vunpack.i.l.bf16 %v8495_v49  ;;  %v11832_v7 = vpop.f32.mrb[65].mxu0  ;;  %8694 = vrot.lane.b32.xlu1 %v8693_v57, %s9886_s20 }
 0x2e8   : > { %v11834_v48 = vpop.f32.mrb[66].mxu0  ;;  %v2777_v49 = vsel %vm1148_vm4, %v2745_v47, %v8506_v10  ;;  %8699 = vrot.lane.b32.xlu0 %v11724_v39, %s9886_s20  ;;  %v8481_v39 = vunpack.i.l.bf16 %v11813_v16  ;;  %v14234_v16 = vld [vmem:[#allocation45_spill] sm:$0xff] }
 0x2e9   : > { %v11840_v61 = vpop.f32.mrb[67].mxu0  ;;  %v11842_v45 = vpop.permute.xlu1 %8509  ;;  %v2871_v29 = vsel %vm1148_vm4, %v2839_v50, %v8496_v58  ;;  %v2872_v42 = vsel %vm1148_vm4, %v2840_v41, %v8497_v32  ;;  %v2778_v50 = vsel %vm1148_vm4, %v2746_v34, %v8507_v37  ;;  %v9784_v37 = vld [vmem:[#allocation2 + $0xf8] sm:$0xff] }
 0x2ea   : > { %v8500_v53 = vpop.permute.xlu0 %8499  ;;  %v2912_v43 = vpack.c.bf16 %v2872_v42, %v2871_v29  ;;  %v2715_v47 = vsel %vm205_vm0, %v14234_v16, %v8481_v39 }
 0x2eb   : > { %v8502_v2 = vunpack.i.h.bf16 %v8500_v53  ;;  %v8501_v13 = vunpack.i.l.bf16 %v8500_v53  ;;  %v2747_v35 = vsel %vm1115_vm3, %v2715_v47, %v8486_v54 }
 0x2ec   : > { %3228 = vmatprep.mubr.bf16.mxu1 %v2912_v43 }
 0x2ed   : > { %3229 = vmatmul.mubr.bf16.gmra.mrb[64].mxu1 %v2911_v24  ;;  %v11850_v36 = vpop.permute.xlu1 %8514  ;;  %v2810_v56 = vsel %vm205_vm0, %v14232_v22, %v8502_v2  ;;  %v2809_v52 = vsel %vm205_vm0, %v14233_v51, %v8501_v13  ;;  %v2914_v24 = vpack.c.bf16 %v2778_v50, %v2777_v49 }
 0x2ee   : > { %v8525_v5 = vpop.permute.xlu0 %8524  ;;  %v8517_v39 = vunpack.i.h.bf16 %v11850_v36 }
 0x2ef   : > { %v8527_v9 = vunpack.i.h.bf16 %v8525_v5  ;;  %v8526_v1 = vunpack.i.l.bf16 %v8525_v5 }
 0x2f1   : > { %v8520_v19 = vpop.permute.xlu1 %8519 }
 0x2f2   : > { %v8522_v33 = vunpack.i.h.bf16 %v8520_v19  ;;  %v8521_v14 = vunpack.i.l.bf16 %v8520_v19  ;;  %v8530_v11 = vpop.permute.xlu0 %8529  ;;  %v2716_v19 = vsel %vm205_vm0, %v9784_v37, %v8482_v60  ;;  %v9684_v60 = vld [vmem:[%s14012_s1 + $0x1a0] sm:$0xff]  }
 0x2f3   : > { %v8532_v5 = vunpack.i.h.bf16 %v8530_v11  ;;  %v8531_v28 = vunpack.i.l.bf16 %v8530_v11  ;;  %v2748_v21 = vsel %vm1115_vm3, %v2716_v19, %v8487_v15  ;;  %v14236_v11 = vld [vmem:[#allocation47_spill] sm:$0xff]  ;;  %7640 = vmatprep.subr.bf16.mxu0 %v9684_v60  ;;  %v14238_v19 = vld [vmem:[#allocation49_spill] sm:$0xff] }
 0x2f4   : > { %v2841_v32 = vsel %vm1115_vm3, %v2809_v52, %v8521_v14  ;;  %v2842_v58 = vsel %vm1115_vm3, %v2810_v56, %v8522_v33  ;;  %v14235_v33 = vld [vmem:[#allocation46_spill] sm:$0xff]  ;;  %7641 = vmatpush3.bf16.msra.mxu0 %v9684_v60 }
 0x2f5   : > { %v8535_v41 = vpop.permute.xlu1 %8534  ;;  %v2873_v30 = vsel %vm1148_vm4, %v2841_v32, %v8526_v1  ;;  %v2874_v63 = vsel %vm1148_vm4, %v2842_v58, %v8527_v9  ;;  %v2812_v14 = vsel %vm205_vm0, %v14235_v33, %v8532_v5  ;;  %v2811_v49 = vsel %vm205_vm0, %v14236_v11, %v8531_v28  ;;  %v14239_v11 = vld [vmem:[#allocation50_spill] sm:$0xff] }
 0x2f6   : > { %v11872_v29 = vpop.permute.xlu0 %8539  ;;  %v11874_v42 = vpop.f32.mrb[68].mxu0  ;;  %v2915_v53 = vpack.c.bf16 %v2874_v63, %v2873_v30  ;;  %v8537_v2 = vunpack.i.h.bf16 %v8535_v41  ;;  %v8536_v13 = vunpack.i.l.bf16 %v8535_v41  ;;  %v8512_v63 = vunpack.i.h.bf16 %v11842_v45 }
 0x2f7   : > { %v11876_v43 = vpop.f32.mrb[69].mxu0 }
 0x2f8   : > { %3236 = vmatprep.mubr.bf16.mxu1 %v2915_v53  ;;  %v11878_v46 = vpop.f32.mrb[70].mxu0  ;;  %v2779_v52 = vsel %vm1148_vm4, %v2747_v35, %v8536_v13  ;;  %v2780_v9 = vsel %vm1148_vm4, %v2748_v21, %v8537_v2  ;;  %v8511_v53 = vunpack.i.l.bf16 %v11842_v45 }
 0x2f9   : > { %v11882_v59 = vpop.f32.mrb[71].mxu0  ;;  %v8550_v18 = vpop.permute.xlu1 %8549  ;;  %3237 = vmatmul.mubr.bf16.gmra.mrb[68].mxu1 %v2914_v24  ;;  %v2917_v30 = vpack.c.bf16 %v2780_v9, %v2779_v52 }
 0x2fa   : > { %v11886_v10 = vpop.permute.xlu0 %8544  ;;  %v8552_v6 = vunpack.i.h.bf16 %v8550_v18  ;;  %v8551_v27 = vunpack.i.l.bf16 %v8550_v18  ;;  %v8516_v18 = vunpack.i.l.bf16 %v11850_v36  ;;  %v2717_v16 = vsel %vm205_vm0, %v14238_v19, %v8511_v53 }
 0x2fc   : > { %v2843_v56 = vsel %vm1115_vm3, %v2811_v49, %v8551_v27  ;;  %v2844_v51 = vsel %vm1115_vm3, %v2812_v14, %v8552_v6  ;;  %v14237_v27 = vld [vmem:[#allocation48_spill] sm:$0xff] }
 0x2fd   : > { %v8565_v34 = vpop.permute.xlu1 %8564  ;;  %v2718_v37 = vsel %vm205_vm0, %v14237_v27, %v8512_v63 }
 0x2fe   : > { %v8555_v8 = vpop.permute.xlu0 %8554  ;;  %v8567_v45 = vunpack.i.h.bf16 %v8565_v34  ;;  %v8566_v13 = vunpack.i.l.bf16 %v8565_v34  ;;  %v2749_v34 = vsel %vm1115_vm3, %v2717_v16, %v8516_v18  ;;  %v2750_v14 = vsel %vm1115_vm3, %v2718_v37, %v8517_v39 }
 0x2ff   : > { %v8557_v57 = vunpack.i.h.bf16 %v8555_v8  ;;  %v8556_v22 = vunpack.i.l.bf16 %v8555_v8  ;;  %v9685_v8 = vld [vmem:[%s14012_s1 + $0x1a8] sm:$0xff]   ;;  %v8542_v39 = vunpack.i.h.bf16 %v11872_v29  ;;  %v8541_v18 = vunpack.i.l.bf16 %v11872_v29 }
 0x300   : > { %7642 = vmatprep.subr.bf16.mxu0 %v9685_v8 }
 0x301   : > { %v11901_v1 = vpop.permute.xlu1 %8569  ;;  %v2875_v32 = vsel %vm1148_vm4, %v2843_v56, %v8556_v22  ;;  %v2876_v58 = vsel %vm1148_vm4, %v2844_v51, %v8557_v57  ;;  %v14240_v57 = vld [vmem:[#allocation52_spill] sm:$0xff]  ;;  %7643 = vmatpush3.bf16.msra.mxu0 %v9685_v8  ;;  %v9785_v8 = vld [vmem:[#allocation2 + $0x128] sm:$0xff] }
 0x302   : > { %v8560_v50 = vpop.permute.xlu0 %8559  ;;  %v2918_v41 = vpack.c.bf16 %v2876_v58, %v2875_v32  ;;  %v2781_v32 = vsel %vm1148_vm4, %v2749_v34, %v8566_v13  ;;  %v2782_v58 = vsel %vm1148_vm4, %v2750_v14, %v8567_v45 }
 0x303   : > { %v8562_v5 = vunpack.i.h.bf16 %v8560_v50  ;;  %v8561_v28 = vunpack.i.l.bf16 %v8560_v50  ;;  %v2920_v60 = vpack.c.bf16 %v2782_v58, %v2781_v32 }
 0x304   : > { %3244 = vmatprep.mubr.bf16.mxu1 %v2918_v41 }
 0x305   : > { %3245 = vmatmul.mubr.bf16.gmra.mrb[72].mxu1 %v2917_v30  ;;  %v11907_v24 = vpop.permute.xlu1 %8574  ;;  %v2814_v49 = vsel %vm205_vm0, %v14239_v11, %v8562_v5  ;;  %v2813_v22 = vsel %vm205_vm0, %v14240_v57, %v8561_v28  ;;  %v8547_v5 = vunpack.i.h.bf16 %v11886_v10  ;;  %v8546_v28 = vunpack.i.l.bf16 %v11886_v10 }
 0x306   : > { %v8585_v15 = vpop.permute.xlu0 %8584  ;;  %v11914_v54 = vpop.f32.mrb[72].mxu0 }
 0x307   : > { %v11916_v2 = vpop.f32.mrb[73].mxu0  ;;  %v8587_v56 = vunpack.i.h.bf16 %v8585_v15  ;;  %v8586_v51 = vunpack.i.l.bf16 %v8585_v15 }
 0x308   : > { %v11918_v6 = vpop.f32.mrb[74].mxu0 }
 0x309   : > { %v11924_v36 = vpop.f32.mrb[75].mxu0  ;;  %v8580_v47 = vpop.permute.xlu1 %8579 }
 0x30a   : > { %v8582_v35 = vunpack.i.h.bf16 %v8580_v47  ;;  %v8581_v21 = vunpack.i.l.bf16 %v8580_v47  ;;  %v8590_v33 = vpop.permute.xlu0 %8589 }
 0x30b   : > { %v8592_v13 = vunpack.i.h.bf16 %v8590_v33  ;;  %v8591_v27 = vunpack.i.l.bf16 %v8590_v33 }
 0x30c   : > { %v2845_v52 = vsel %vm1115_vm3, %v2813_v22, %v8581_v21  ;;  %v2846_v9 = vsel %vm1115_vm3, %v2814_v49, %v8582_v35  ;;  %v2720_v35 = vsel %vm205_vm0, %v9785_v8, %v8542_v39  ;;  %v9786_v21 = vld [vmem:[#allocation2 + $0x120] sm:$0xff] }
 0x30d   : > { %v8595_v50 = vpop.permute.xlu1 %8594  ;;  %v2877_v41 = vsel %vm1148_vm4, %v2845_v52, %v8586_v51  ;;  %v2878_v30 = vsel %vm1148_vm4, %v2846_v9, %v8587_v56  ;;  %v2719_v29 = vsel %vm205_vm0, %v9786_v21, %v8541_v18  ;;  %v2752_v49 = vsel %vm1115_vm3, %v2720_v35, %v8547_v5 }
 0x30e   : > { %v11941_v63 = vpop.permute.xlu0 %8599  ;;  %v2921_v53 = vpack.c.bf16 %v2878_v30, %v2877_v41  ;;  %v8597_v37 = vunpack.i.h.bf16 %v8595_v50  ;;  %v8596_v19 = vunpack.i.l.bf16 %v8595_v50  ;;  %v2751_v10 = vsel %vm1115_vm3, %v2719_v29, %v8546_v28 }
 0x30f   : > { %v2816_v33 = vsel %vm205_vm0, %v11557_v25, %v8592_v13  ;;  %v2815_v57 = vsel %vm205_vm0, %v11561_v17, %v8591_v27  ;;  %v8572_v5 = vunpack.i.h.bf16 %v11901_v1  ;;  %v8571_v28 = vunpack.i.l.bf16 %v11901_v1 }
 0x310   : > { %3252 = vmatprep.mubr.bf16.mxu1 %v2921_v53  ;;  %v2783_v58 = vsel %vm1148_vm4, %v2751_v10, %v8596_v19  ;;  %v2784_v50 = vsel %vm1148_vm4, %v2752_v49, %v8597_v37  ;;  %v8577_v27 = vunpack.i.h.bf16 %v11907_v24  ;;  %v8576_v37 = vunpack.i.l.bf16 %v11907_v24 }
 0x311   : > { %v8610_v15 = vpop.permute.xlu1 %8609  ;;  %3253 = vmatmul.mubr.bf16.gmra.mrb[76].mxu1 %v2920_v60  ;;  %v2722_v10 = vsel %vm205_vm0, %v11581_v31, %v8572_v5 }
 0x312   : > { %v11947_v45 = vpop.permute.xlu0 %8604  ;;  %v8612_v16 = vunpack.i.h.bf16 %v8610_v15  ;;  %v8611_v47 = vunpack.i.l.bf16 %v8610_v15  ;;  %v2923_v15 = vpack.c.bf16 %v2784_v50, %v2783_v58  ;;  %v2754_v50 = vsel %vm1115_vm3, %v2722_v10, %v8577_v27 }
 0x314   : > { %v2847_v9 = vsel %vm1115_vm3, %v2815_v57, %v8611_v47  ;;  %v2848_v32 = vsel %vm1115_vm3, %v2816_v33, %v8612_v16 }
 0x315   : > { %v11951_v34 = vpop.permute.xlu1 %8624 }
 0x316   : > { %v8615_v14 = vpop.permute.xlu0 %8614  ;;  %v11953_v11 = vpop.f32.mrb[76].mxu0 }
 0x317   : > { %v8617_v22 = vunpack.i.h.bf16 %v8615_v14  ;;  %v8616_v56 = vunpack.i.l.bf16 %v8615_v14  ;;  %v11961_v51 = vpop.f32.mrb[77].mxu0 }
 0x318   : > { %v11963_v52 = vpop.f32.mrb[78].mxu0 }
 0x319   : > { %v11969_v41 = vpop.f32.mrb[79].mxu0  ;;  %v11971_v25 = vpop.permute.xlu1 %8629  ;;  %v2879_v17 = vsel %vm1148_vm4, %v2847_v9, %v8616_v56  ;;  %v2880_v30 = vsel %vm1148_vm4, %v2848_v32, %v8617_v22 }
 0x31a   : > { %v8620_v53 = vpop.permute.xlu0 %8619  ;;  %v2924_v60 = vpack.c.bf16 %v2880_v30, %v2879_v17  ;;  %v8602_v30 = vunpack.i.h.bf16 %v11941_v63 }
 0x31b   : > { %v8622_v39 = vunpack.i.h.bf16 %v8620_v53  ;;  %v8621_v18 = vunpack.i.l.bf16 %v8620_v53  ;;  %v8601_v53 = vunpack.i.l.bf16 %v11941_v63 }
 0x31c   : > { %3260 = vmatprep.mubr.bf16.mxu1 %v2924_v60 }
 0x31d   : > { %3261 = vmatmul.mubr.bf16.gmra.mrb[80].mxu1 %v2923_v15  ;;  %v8635_v13 = vpop.permute.xlu1 %8634  ;;  %v2818_v8 = vsel %vm205_vm0, %v11604_v55, %v8622_v39  ;;  %v2817_v35 = vsel %vm205_vm0, %v11609_v23, %v8621_v18  ;;  %v2721_v55 = vsel %vm205_vm0, %v11591_v40, %v8571_v28  ;;  %v8607_v39 = vunpack.i.h.bf16 %v11947_v45 }
 0x31e   : > { %v8637_v19 = vunpack.i.h.bf16 %v8635_v13  ;;  %v8636_v16 = vunpack.i.l.bf16 %v8635_v13  ;;  %v8645_v47 = vpop.permute.xlu0 %8644  ;;  %v2753_v58 = vsel %vm1115_vm3, %v2721_v55, %v8576_v37  ;;  %v8606_v18 = vunpack.i.l.bf16 %v11947_v45 }
 0x31f   : > { %v8647_v21 = vunpack.i.h.bf16 %v8645_v47  ;;  %v8646_v29 = vunpack.i.l.bf16 %v8645_v47 }
 0x320   : > { %v2849_v14 = vsel %vm1115_vm3, %v2817_v35, %v8636_v16  ;;  %v2850_v1 = vsel %vm1115_vm3, %v2818_v8, %v8637_v19  ;;  %v2724_v35 = vsel %vm205_vm0, %v11617_v62, %v8602_v30 }
 0x321   : > { %v8640_v49 = vpop.permute.xlu1 %8639  ;;  %v2881_v24 = vsel %vm1148_vm4, %v2849_v14, %v8646_v29  ;;  %v2882_v33 = vsel %vm1148_vm4, %v2850_v1, %v8647_v21  ;;  %v2723_v14 = vsel %vm205_vm0, %v11621_v4, %v8601_v53  ;;  %v2756_v62 = vsel %vm1115_vm3, %v2724_v35, %v8607_v39 }
 0x322   : > { %v8642_v57 = vunpack.i.h.bf16 %v8640_v49  ;;  %v8641_v22 = vunpack.i.l.bf16 %v8640_v49  ;;  %v8650_v23 = vpop.permute.xlu0 %8649  ;;  %v2927_v56 = vpack.c.bf16 %v2882_v33, %v2881_v24 }
 0x323   : > { %v8652_v9 = vunpack.i.h.bf16 %v8650_v23  ;;  %v8651_v32 = vunpack.i.l.bf16 %v8650_v23 }
 0x324   : > { %3268 = vmatprep.mubr.bf16.mxu1 %v2927_v56  ;;  %v2785_v31 = vsel %vm1148_vm4, %v2753_v58, %v8641_v22  ;;  %v2786_v17 = vsel %vm1148_vm4, %v2754_v50, %v8642_v57  ;;  %v2755_v57 = vsel %vm1115_vm3, %v2723_v14, %v8606_v18  ;;  %v8627_v56 = vunpack.i.h.bf16 %v11951_v34 }
 0x325   : > { %v8655_v40 = vpop.permute.xlu1 %8654  ;;  %v2926_v60 = vpack.c.bf16 %v2786_v17, %v2785_v31  ;;  %v2820_v27 = vsel %vm205_vm0, %v11635_v20, %v8652_v9  ;;  %v2819_v37 = vsel %vm205_vm0, %v11646_v26, %v8651_v32  ;;  %v8626_v9 = vunpack.i.l.bf16 %v11951_v34 }
 0x326   : > { %v8657_v15 = vunpack.i.h.bf16 %v8655_v40  ;;  %v8656_v5 = vunpack.i.l.bf16 %v8655_v40  ;;  %v8670_v28 = vpop.permute.xlu0 %8669  ;;  %v11999_v13 = vpop.f32.mrb[80].mxu0  ;;  %v8632_v58 = vunpack.i.h.bf16 %v11971_v25  ;;  %v8631_v50 = vunpack.i.l.bf16 %v11971_v25 }
 0x327   : > { %v8672_v19 = vunpack.i.h.bf16 %v8670_v28  ;;  %v8671_v16 = vunpack.i.l.bf16 %v8670_v28  ;;  %3269 = vmatmul.mubr.bf16.gmra.mrb[84].mxu1 %v2926_v60  ;;  %v12005_v63 = vpop.f32.mrb[81].mxu0 }
 0x328   : > { %v12007_v47 = vpop.f32.mrb[82].mxu0  ;;  %v2851_v45 = vsel %vm1115_vm3, %v2819_v37, %v8656_v5  ;;  %v2852_v8 = vsel %vm1115_vm3, %v2820_v27, %v8657_v15  ;;  %v2726_v15 = vsel %vm205_vm0, %v11668_v3, %v8627_v56 }
 0x329   : > { %v12013_v21 = vpop.f32.mrb[83].mxu0  ;;  %v8660_v20 = vpop.permute.xlu1 %8659  ;;  %v2883_v29 = vsel %vm1148_vm4, %v2851_v45, %v8671_v16  ;;  %v2884_v26 = vsel %vm1148_vm4, %v2852_v8, %v8672_v19  ;;  %v2758_v16 = vsel %vm1115_vm3, %v2726_v15, %v8632_v58 }
 0x32a   : > { %v8662_v1 = vunpack.i.h.bf16 %v8660_v20  ;;  %v8661_v10 = vunpack.i.l.bf16 %v8660_v20  ;;  %v8675_v49 = vpop.permute.xlu0 %8674  ;;  %v2930_v24 = vpack.c.bf16 %v2884_v26, %v2883_v29 }
 0x32b   : > { %v8677_v33 = vunpack.i.h.bf16 %v8675_v49  ;;  %v8676_v55 = vunpack.i.l.bf16 %v8675_v49  ;;  %v14241_v49 = vld [vmem:[#allocation42_spill] sm:$0xff] }
 0x32c   : > { %3276 = vmatprep.mubr.bf16.mxu1 %v2930_v24  ;;  %v2787_v22 = vsel %vm1148_vm4, %v2755_v57, %v8661_v10  ;;  %v2788_v23 = vsel %vm1148_vm4, %v2756_v62, %v8662_v1  ;;  %v2974_v24 = vsub.s32 1, %v14241_v49 }
 0x32d   : > { %v8665_v4 = vpop.permute.xlu1 %8664  ;;  %v2929_v32 = vpack.c.bf16 %v2788_v23, %v2787_v22  ;;  %v2822_v53 = vsel %vm205_vm0, %v11705_v44, %v8677_v33  ;;  %v2821_v40 = vsel %vm205_vm0, %v11710_v0, %v8676_v55  ;;  %v2725_v44 = vsel %vm205_vm0, %v11674_v38, %v8626_v9  ;;  %v9787_v55 = vld [vmem:[%s14013_s2] sm:$0xf] }
 0x32e   : > { %v8667_v31 = vunpack.i.h.bf16 %v8665_v4  ;;  %v8666_v17 = vunpack.i.l.bf16 %v8665_v4  ;;  %v8680_v30 = vpop.permute.xlu0 %8679  ;;  %v2757_v19 = vsel %vm1115_vm3, %v2725_v44, %v8631_v50  ;;  %v12063_v57 = vrot.slane %v9787_v55, %v2974_v24 }
 0x32f   : > { %v8682_v60 = vunpack.i.h.bf16 %v8680_v30  ;;  %v8681_v39 = vunpack.i.l.bf16 %v8680_v30  ;;  %3277 = vmatmul.mubr.bf16.gmra.mrb[88].mxu1 %v2929_v32 }
 0x330   : > { %v2853_v34 = vsel %vm1115_vm3, %v2821_v40, %v8666_v17  ;;  %v2854_v18 = vsel %vm1115_vm3, %v2822_v53, %v8667_v31 }
 0x331   : > { %v8685_v25 = vpop.permute.xlu1 %8684  ;;  %v2885_v5 = vsel %vm1148_vm4, %v2853_v34, %v8681_v39  ;;  %v2886_v28 = vsel %vm1148_vm4, %v2854_v18, %v8682_v60 }
 0x332   : > { %v8687_v27 = vunpack.i.h.bf16 %v8685_v25  ;;  %v8686_v0 = vunpack.i.l.bf16 %v8685_v25  ;;  %v2933_v37 = vpack.c.bf16 %v2886_v28, %v2885_v5 }
 0x334   : > { %3284 = vmatprep.mubr.bf16.mxu1 %v2933_v37  ;;  %v2789_v45 = vsel %vm1148_vm4, %v2757_v19, %v8686_v0  ;;  %v2790_v3 = vsel %vm1148_vm4, %v2758_v16, %v8687_v27 }
 0x335   : > { %v2932_v8 = vpack.c.bf16 %v2790_v3, %v2789_v45 }
 0x336   : > { %v12043_v35 = vpop.f32.mrb[84].mxu0 }
 0x337   : > { %3285 = vmatmul.mubr.bf16.gmra.mrb[92].mxu1 %v2932_v8  ;;  %v12045_v20 = vpop.f32.mrb[85].mxu0 }
 0x338   : > { %v12047_v29 = vpop.f32.mrb[86].mxu0 }
 0x339   : > { %v12049_v38 = vpop.f32.mrb[87].mxu0 }
 0x346   : > { %v12051_v26 = vpop.f32.mrb[88].mxu0 }
 0x347   : > { %v12053_v14 = vpop.f32.mrb[89].mxu0 }
 0x348   : > { %v12055_v1 = vpop.f32.mrb[90].mxu0 }
 0x349   : > { %v12057_v10 = vpop.f32.mrb[91].mxu0 }
 0x361   : > { %v7194_v33 = vpop.f32.mrb[32].mxu1 }
 0x362   : > { %v7195_v62 = vpop.f32.mrb[33].mxu1 }
 0x363   : > { %v7196_v22 = vadd.f32 %v7195_v62, %v7194_v33  ;;  %v7197_v23 = vpop.f32.mrb[34].mxu1 }
 0x364   : > { %v7198_v56 = vpop.f32.mrb[35].mxu1 }
 0x365   : > { %v3167_v9 = vadd.f32 %v7196_v22, %v12063_v57  ;;  %v7199_v4 = vadd.f32 %v7198_v56, %v7197_v23  ;;  %v9686_v22 = vld [vmem:[%s14012_s1 + $0x160] sm:$0xff]  }
 0x366   : > { %v9687_v23 = vld [vmem:[%s14012_s1 + $0x120] sm:$0xff]   ;;  %7308 = vmatprep.subr.bf16.mxu1 %v9686_v22 }
 0x367   : > { %v3328_v32 = vadd.f32 %v11832_v7, %v3167_v9  ;;  %v3170_v58 = vadd.f32 %v7199_v4, %v12063_v57  ;;  %7309 = vmatpush3.bf16.msra.mxu1 %v9687_v23 }
 0x369   : > { %v3454_v50 = vmax.f32 %v3328_v32, 0.0  ;;  %v3331_v31 = vadd.f32 %v11840_v61, %v3170_v58 }
 0x36b   : > { %3486 = vst.msk [vmem:[#allocation2 + $0x19] sm:$0xff] %vm205_vm0, %v3454_v50  ;;  %v3455_v17 = vmax.f32 %v3331_v31, 0.0 }
 0x36c   : > { %v7200_v30 = vpop.f32.mrb[36].mxu1 }
 0x36d   : > { %3487 = vst.msk [vmem:[#allocation2 + $0x21] sm:$0xff] %vm205_vm0, %v3455_v17  ;;  %v7201_v53 = vpop.f32.mrb[37].mxu1 }
 0x36e   : > { %v7202_v40 = vadd.f32 %v7201_v53, %v7200_v30  ;;  %v7203_v60 = vpop.f32.mrb[38].mxu1 }
 0x36f   : > { %v7204_v39 = vpop.f32.mrb[39].mxu1 }
 0x370   : > { %v3175_v34 = vadd.f32 %v7202_v40, %v12063_v57  ;;  %v7205_v18 = vadd.f32 %v7204_v39, %v7203_v60 }
 0x372   : > { %v3336_v7 = vadd.f32 %v11824_v12, %v3175_v34  ;;  %v3178_v15 = vadd.f32 %v7205_v18, %v12063_v57  ;;  %v3556_v25 = vld [vmem:[#allocation2 + $0x19] sm:$0xff] }
 0x373   : > { %v3520_v45 = vld [vmem:[#allocation2 + $0x18] sm:$0xff] }
 0x374   : > { %v3456_v5 = vmax.f32 %v3336_v7, 0.0  ;;  %v3339_v61 = vadd.f32 %v11834_v48, %v3178_v15  ;;  %v12075_v28 = vld [vmem:[#allocation2 + $0x1a] sm:$0xff]  ;;  %v3593_v44 = vld [vmem:[#allocation2 + $0x22] sm:$0xff] }
 0x375   : > { %v3557_v27 = vld [vmem:[#allocation2 + $0x21] sm:$0xff]  ;;  %v8713_v0 = vpack.i.bf16 %v3593_v44, %v12075_v28 }
 0x376   : > { %v8703_v37 = vpack.i.bf16 %v3557_v27, %v3556_v25  ;;  %3488 = vst.msk [vmem:[#allocation2 + $0x31] sm:$0xff] %vm205_vm0, %v3456_v5  ;;  %v3457_v19 = vmax.f32 %v3339_v61, 0.0  ;;  %v3521_v16 = vld [vmem:[#allocation2 + $0x20] sm:$0xff]  ;;  %v9688_v5 = vld [vmem:[%s14012_s1 + $0x168] sm:$0xff]  }
 0x377   : > { %8714 = vrot.lane.b32.xlu0 %v8713_v0, %s9886_s20  ;;  %v8708_v3 = vpack.i.bf16 %v3521_v16, %v3520_v45  ;;  %7310 = vmatprep.subr.bf16.mxu1 %v9688_v5  ;;  %v9689_v0 = vld [vmem:[%s14012_s1 + $0x128] sm:$0xff]  }
 0x378   : > { %8704 = vrot.lane.b32.xlu1 %v8703_v37, %s9885_s19  ;;  %3489 = vst.msk [vmem:[#allocation2 + $0x39] sm:$0xff] %vm205_vm0, %v3457_v19  ;;  %v7206_v12 = vpop.f32.mrb[40].mxu1  ;;  %7311 = vmatpush3.bf16.msra.mxu1 %v9689_v0 }
 0x379   : > { %v7207_v48 = vpop.f32.mrb[41].mxu1 }
 0x37a   : > { %v7208_v8 = vadd.f32 %v7207_v48, %v7206_v12  ;;  %v7209_v24 = vpop.f32.mrb[42].mxu1 }
 0x37b   : > { %v7210_v33 = vpop.f32.mrb[43].mxu1 }
 0x37c   : > { %8709 = vrot.lane.b32.xlu1 %v8708_v3, %s9887_s21  ;;  %v3183_v55 = vadd.f32 %v7208_v8, %v12063_v57  ;;  %v7211_v62 = vadd.f32 %v7210_v33, %v7209_v24 }
 0x37d   : > { %v3558_v4 = vld [vmem:[#allocation2 + $0x31] sm:$0xff] }
 0x37e   : > { %v3344_v56 = vadd.f32 %v11876_v43, %v3183_v55  ;;  %v3186_v9 = vadd.f32 %v7211_v62, %v12063_v57  ;;  %v3522_v43 = vld [vmem:[#allocation2 + $0x30] sm:$0xff] }
 0x37f   : > { %v3594_v32 = vld [vmem:[#allocation2 + $0x32] sm:$0xff]  ;;  %v3595_v58 = vld [vmem:[#allocation2 + $0x3a] sm:$0xff] }
 0x380   : > { %v3559_v50 = vld [vmem:[#allocation2 + $0x39] sm:$0xff]  ;;  %v3458_v31 = vmax.f32 %v3344_v56, 0.0  ;;  %v3347_v17 = vadd.f32 %v11882_v59, %v3186_v9  ;;  %v4500_v30 = vpack.c.bf16 %v3595_v58, %v3594_v32  ;;  %v8723_v40 = vpack.i.bf16 %v3594_v32, %v3593_v44 }
 0x381   : > { %v8718_v53 = vpack.i.bf16 %v3559_v50, %v3558_v4  ;;  %v3523_v60 = vld [vmem:[#allocation2 + $0x38] sm:$0xff]  ;;  %v8743_v59 = vpack.i.bf16 %v3595_v58, %v3594_v32 }
 0x382   : > { %3490 = vst.msk [vmem:[#allocation2 + $0x49] sm:$0xff] %vm205_vm0, %v3458_v31  ;;  %v3459_v39 = vmax.f32 %v3347_v17, 0.0  ;;  %7644 = vmatprep.mubr.msk.bf16.mxu0 %vm205_vm0, %v4500_v30  ;;  %8724 = vrot.lane.b32.xlu1 %v8723_v40, %s9885_s19  ;;  %v8728_v18 = vpack.i.bf16 %v3523_v60, %v3522_v43  ;;  %v12107_v37 = vpop.f32.mrb[92].mxu0 }
 0x383   : > { %8719 = vrot.lane.b32.xlu0 %v8718_v53, %s9885_s19  ;;  %v12109_v19 = vpop.f32.mrb[93].mxu0 }
 0x384   : > { %3491 = vst.msk [vmem:[#allocation2 + $0x51] sm:$0xff] %vm205_vm0, %v3459_v39  ;;  %v7212_v34 = vpop.f32.mrb[44].mxu1  ;;  %v12115_v22 = vpop.f32.mrb[94].mxu0 }
 0x385   : > { %v7213_v7 = vpop.f32.mrb[45].mxu1  ;;  %v12117_v56 = vpop.f32.mrb[95].mxu0 }
 0x386   : > { %v7214_v15 = vadd.f32 %v7213_v7, %v7212_v34  ;;  %v7215_v25 = vpop.f32.mrb[46].mxu1  ;;  %8744 = vrot.lane.b32.xlu1 %v8743_v59, %s9886_s20 }
 0x387   : > { %8729 = vrot.lane.b32.xlu0 %v8728_v18, %s9886_s20  ;;  %v7216_v61 = vpop.f32.mrb[47].mxu1 }
 0x388   : > { %v3191_v44 = vadd.f32 %v7214_v15, %v12063_v57  ;;  %v7217_v27 = vadd.f32 %v7216_v61, %v7215_v25 }
 0x389   : > { %v3560_v45 = vld [vmem:[#allocation2 + $0x49] sm:$0xff] }
 0x38a   : > { %v3352_v16 = vadd.f32 %v11874_v42, %v3191_v44  ;;  %v3194_v12 = vadd.f32 %v7217_v27, %v12063_v57  ;;  %v3524_v9 = vld [vmem:[#allocation2 + $0x48] sm:$0xff] }
 0x38b   : > { %8734 = vrot.lane.b32.xlu0 %v8718_v53, %s9887_s21  ;;  %v3596_v48 = vld [vmem:[#allocation2 + $0x4a] sm:$0xff]  ;;  %v3597_v3 = vld [vmem:[#allocation2 + $0x52] sm:$0xff] }
 0x38c   : > { %v3561_v8 = vld [vmem:[#allocation2 + $0x51] sm:$0xff]  ;;  %v3460_v24 = vmax.f32 %v3352_v16, 0.0  ;;  %v3355_v33 = vadd.f32 %v11878_v46, %v3194_v12  ;;  %v4503_v55 = vpack.c.bf16 %v3597_v3, %v3596_v48  ;;  %v8753_v50 = vpack.i.bf16 %v3596_v48, %v3595_v58 }
 0x38d   : > { %v8748_v62 = vpack.i.bf16 %v3561_v8, %v3560_v45  ;;  %v3525_v23 = vld [vmem:[#allocation2 + $0x50] sm:$0xff]  ;;  %v8773_v60 = vpack.i.bf16 %v3597_v3, %v3596_v48 }
 0x38e   : > { %3492 = vst.msk [vmem:[#allocation2 + $0x61] sm:$0xff] %vm205_vm0, %v3460_v24  ;;  %v3461_v42 = vmax.f32 %v3355_v33, 0.0  ;;  %7645 = vmatmul.mubr.msk.bf16.vlgmr.msra.gmra.mrb[96].mxu0 %vm205_vm0, %v4503_v55  ;;  %v8758_v4 = vpack.i.bf16 %v3525_v23, %v3524_v9  ;;  %v9690_v58 = vld [vmem:[%s14012_s1 + $0x170] sm:$0xff]  }
 0x38f   : > { %8749 = vrot.lane.b32.xlu1 %v8748_v62, %s9885_s19  ;;  %8739 = vrot.lane.b32.xlu0 %v8728_v18, %s9887_s21  ;;  %v9691_v18 = vld [vmem:[%s14012_s1 + $0x130] sm:$0xff]  }
 0x390   : > { %3493 = vst.msk [vmem:[#allocation2 + $0x69] sm:$0xff] %vm205_vm0, %v3461_v42  ;;  %v7218_v46 = vpop.f32.mrb[48].mxu1  ;;  %7312 = vmatprep.subr.bf16.mxu1 %v9690_v58 }
 0x391   : > { %v7219_v32 = vpop.f32.mrb[49].mxu1  ;;  %7313 = vmatpush3.bf16.msra.mxu1 %v9691_v18 }
 0x392   : > { %v7220_v31 = vadd.f32 %v7219_v32, %v7218_v46  ;;  %v7221_v17 = vpop.f32.mrb[50].mxu1 }
 0x393   : > { %8759 = vrot.lane.b32.xlu1 %v8758_v4, %s9886_s20  ;;  %v7222_v30 = vpop.f32.mrb[51].mxu1  ;;  %8754 = vrot.lane.b32.xlu0 %v8753_v50, %s9885_s19 }
 0x394   : > { %v3199_v53 = vadd.f32 %v7220_v31, %v12063_v57  ;;  %v7223_v40 = vadd.f32 %v7222_v30, %v7221_v17 }
 0x395   : > { %v3562_v34 = vld [vmem:[#allocation2 + $0x61] sm:$0xff] }
 0x396   : > { %v3360_v39 = vadd.f32 %v11916_v2, %v3199_v53  ;;  %v3202_v43 = vadd.f32 %v7223_v40, %v12063_v57  ;;  %v3526_v12 = vld [vmem:[#allocation2 + $0x60] sm:$0xff] }
 0x397   : > { %8764 = vrot.lane.b32.xlu1 %v8748_v62, %s9887_s21  ;;  %8774 = vrot.lane.b32.xlu0 %v8773_v60, %s9886_s20  ;;  %v3563_v7 = vld [vmem:[#allocation2 + $0x69] sm:$0xff] }
 0x398   : > { %v3598_v59 = vld [vmem:[#allocation2 + $0x62] sm:$0xff]  ;;  %v3599_v15 = vld [vmem:[#allocation2 + $0x6a] sm:$0xff]  ;;  %v3462_v25 = vmax.f32 %v3360_v39, 0.0  ;;  %v3363_v2 = vadd.f32 %v11924_v36, %v3202_v43  ;;  %v8778_v5 = vpack.i.bf16 %v3563_v7, %v3562_v34  ;;  %v9693_v39 = vld [vmem:[%s14012_s1 + $0x138] sm:$0xff]  }
 0x399   : > { %v4506_v61 = vpack.c.bf16 %v3599_v15, %v3598_v59  ;;  %v3527_v27 = vld [vmem:[#allocation2 + $0x68] sm:$0xff]  ;;  %v8783_v16 = vpack.i.bf16 %v3598_v59, %v3597_v3  ;;  %v8803_v62 = vpack.i.bf16 %v3599_v15, %v3598_v59 }
 0x39a   : > { %3494 = vst.msk [vmem:[#allocation2 + $0x79] sm:$0xff] %vm205_vm0, %v3462_v25  ;;  %v3463_v44 = vmax.f32 %v3363_v2, 0.0  ;;  %v8788_v45 = vpack.i.bf16 %v3527_v27, %v3526_v12 }
 0x39b   : > { %8769 = vrot.lane.b32.xlu1 %v8758_v4, %s9887_s21  ;;  %7648 = vmatprep.mubr.msk.bf16.mxu0 %vm205_vm0, %v4506_v61 }
 0x39c   : > { %8779 = vrot.lane.b32.xlu0 %v8778_v5, %s9885_s19  ;;  %3495 = vst.msk [vmem:[#allocation2 + $0x81] sm:$0xff] %vm205_vm0, %v3463_v44  ;;  %v7224_v0 = vpop.f32.mrb[52].mxu1 }
 0x39d   : > { %v7225_v36 = vpop.f32.mrb[53].mxu1 }
 0x39e   : > { %v7226_v48 = vadd.f32 %v7225_v36, %v7224_v0  ;;  %v7227_v8 = vpop.f32.mrb[54].mxu1 }
 0x39f   : > { %8784 = vrot.lane.b32.xlu1 %v8783_v16, %s9885_s19  ;;  %v7228_v24 = vpop.f32.mrb[55].mxu1 }
 0x3a0   : > { %8789 = vrot.lane.b32.xlu0 %v8788_v45, %s9886_s20  ;;  %v3207_v33 = vadd.f32 %v7226_v48, %v12063_v57  ;;  %v7229_v55 = vadd.f32 %v7228_v24, %v7227_v8 }
 0x3a1   : > { %v3564_v3 = vld [vmem:[#allocation2 + $0x79] sm:$0xff] }
 0x3a2   : > { %v3368_v23 = vadd.f32 %v11914_v54, %v3207_v33  ;;  %v3210_v42 = vadd.f32 %v7229_v55, %v12063_v57  ;;  %v9692_v54 = vld [vmem:[%s14012_s1 + $0x178] sm:$0xff]  }
 0x3a3   : > { %8804 = vrot.lane.b32.xlu1 %v8803_v62, %s9886_s20  ;;  %v3600_v9 = vld [vmem:[#allocation2 + $0x7a] sm:$0xff]  ;;  %v3601_v46 = vld [vmem:[#allocation2 + $0x82] sm:$0xff]  ;;  %7314 = vmatprep.subr.bf16.mxu1 %v9692_v54 }
 0x3a4   : > { %8794 = vrot.lane.b32.xlu0 %v8778_v5, %s9887_s21  ;;  %v3565_v4 = vld [vmem:[#allocation2 + $0x81] sm:$0xff]  ;;  %v3464_v32 = vmax.f32 %v3368_v23, 0.0  ;;  %v3371_v50 = vadd.f32 %v11918_v6, %v3210_v42  ;;  %v4509_v31 = vpack.c.bf16 %v3601_v46, %v3600_v9  ;;  %v3528_v40 = vld [vmem:[#allocation2 + $0x78] sm:$0xff]  ;;  %v8813_v34 = vpack.i.bf16 %v3600_v9, %v3599_v15  ;;  %7315 = vmatpush3.bf16.msra.mxu1 %v9693_v39 }
 0x3a5   : > { %v8808_v17 = vpack.i.bf16 %v3565_v4, %v3564_v3  ;;  %v3529_v30 = vld [vmem:[#allocation2 + $0x80] sm:$0xff]  ;;  %v8833_v2 = vpack.i.bf16 %v3601_v46, %v3600_v9 }
 0x3a6   : > { %3496 = vst.msk [vmem:[#allocation2 + $0x91] sm:$0xff] %vm205_vm0, %v3464_v32  ;;  %v3465_v53 = vmax.f32 %v3371_v50, 0.0  ;;  %7649 = vmatmul.mubr.msk.bf16.gmra.mrb[100].mxu0 %vm205_vm0, %v4509_v31  ;;  %v8818_v60 = vpack.i.bf16 %v3529_v30, %v3528_v40 }
 0x3a7   : > { %8809 = vrot.lane.b32.xlu1 %v8808_v17, %s9885_s19 }
 0x3a8   : > { %8799 = vrot.lane.b32.xlu0 %v8788_v45, %s9887_s21  ;;  %3497 = vst.msk [vmem:[#allocation2 + $0x99] sm:$0xff] %vm205_vm0, %v3465_v53  ;;  %v7230_v6 = vpop.f32.mrb[56].mxu1 }
 0x3a9   : > { %v7231_v43 = vpop.f32.mrb[57].mxu1 }
 0x3aa   : > { %v7232_v58 = vadd.f32 %v7231_v43, %v7230_v6  ;;  %v7233_v18 = vpop.f32.mrb[58].mxu1 }
 0x3ab   : > { %8819 = vrot.lane.b32.xlu1 %v8818_v60, %s9886_s20  ;;  %v7234_v7 = vpop.f32.mrb[59].mxu1 }
 0x3ac   : > { %8814 = vrot.lane.b32.xlu0 %v8813_v34, %s9885_s19  ;;  %v3215_v59 = vadd.f32 %v7232_v58, %v12063_v57  ;;  %v7235_v25 = vadd.f32 %v7234_v7, %v7233_v18 }
 0x3ad   : > { %v3566_v44 = vld [vmem:[#allocation2 + $0x91] sm:$0xff] }
 0x3ae   : > { %v3376_v5 = vadd.f32 %v11961_v51, %v3215_v59  ;;  %v3218_v61 = vadd.f32 %v7235_v25, %v12063_v57  ;;  %v3530_v33 = vld [vmem:[#allocation2 + $0x90] sm:$0xff] }
 0x3af   : > { %8824 = vrot.lane.b32.xlu1 %v8808_v17, %s9887_s21  ;;  %v3567_v15 = vld [vmem:[#allocation2 + $0x99] sm:$0xff] }
 0x3b0   : > { %8834 = vrot.lane.b32.xlu0 %v8833_v2, %s9886_s20  ;;  %v3602_v27 = vld [vmem:[#allocation2 + $0x92] sm:$0xff]  ;;  %v3603_v0 = vld [vmem:[#allocation2 + $0x9a] sm:$0xff]  ;;  %v3466_v16 = vmax.f32 %v3376_v5, 0.0  ;;  %v3379_v12 = vadd.f32 %v11969_v41, %v3218_v61  ;;  %v8838_v36 = vpack.i.bf16 %v3567_v15, %v3566_v44  ;;  %v9696_v15 = vld [vmem:[%s14012_s1 + $0x188] sm:$0xff]  }
 0x3b1   : > { %v4512_v45 = vpack.c.bf16 %v3603_v0, %v3602_v27  ;;  %v3531_v51 = vld [vmem:[#allocation2 + $0x98] sm:$0xff]  ;;  %v8843_v24 = vpack.i.bf16 %v3602_v27, %v3601_v46  ;;  %v9694_v41 = vld [vmem:[%s14012_s1 + $0x180] sm:$0xff]   ;;  %v8863_v32 = vpack.i.bf16 %v3603_v0, %v3602_v27 }
 0x3b2   : > { %3498 = vst.msk [vmem:[#allocation2 + $0xa9] sm:$0xff] %vm205_vm0, %v3466_v16  ;;  %v3467_v48 = vmax.f32 %v3379_v12, 0.0  ;;  %v8848_v62 = vpack.i.bf16 %v3531_v51, %v3530_v33  ;;  %7316 = vmatprep.subr.bf16.mxu1 %v9694_v41  ;;  %v9695_v46 = vld [vmem:[%s14012_s1 + $0x140] sm:$0xff]   ;;  %v9697_v12 = vld [vmem:[%s14012_s1 + $0x148] sm:$0xff]  }
 0x3b3   : > { %8829 = vrot.lane.b32.xlu1 %v8818_v60, %s9887_s21  ;;  %7652 = vmatprep.mubr.msk.bf16.mxu0 %vm205_vm0, %v4512_v45 }
 0x3b4   : > { %8839 = vrot.lane.b32.xlu0 %v8838_v36, %s9885_s19  ;;  %3499 = vst.msk [vmem:[#allocation2 + $0xb1] sm:$0xff] %vm205_vm0, %v3467_v48  ;;  %v7236_v8 = vpop.f32.mrb[60].mxu1  ;;  %7317 = vmatpush3.bf16.msra.mxu1 %v9695_v46 }
 0x3b5   : > { %v7237_v55 = vpop.f32.mrb[61].mxu1  ;;  %7318 = vmatprep.subr.bf16.mxu1 %v9696_v15 }
 0x3b6   : > { %v7238_v23 = vadd.f32 %v7237_v55, %v7236_v8  ;;  %v7239_v42 = vpop.f32.mrb[62].mxu1 }
 0x3b7   : > { %8844 = vrot.lane.b32.xlu1 %v8843_v24, %s9885_s19  ;;  %v7240_v3 = vpop.f32.mrb[63].mxu1 }
 0x3b8   : > { %8849 = vrot.lane.b32.xlu0 %v8848_v62, %s9886_s20  ;;  %v3223_v9 = vadd.f32 %v7238_v23, %v12063_v57  ;;  %v7241_v4 = vadd.f32 %v7240_v3, %v7239_v42  ;;  %7319 = vmatpush3.bf16.msra.mxu1 %v9697_v12 }
 0x3b9   : > { %v3568_v17 = vld [vmem:[#allocation2 + $0xa9] sm:$0xff] }
 0x3ba   : > { %v3384_v50 = vadd.f32 %v11953_v11, %v3223_v9  ;;  %v3226_v31 = vadd.f32 %v7241_v4, %v12063_v57  ;;  %v3532_v34 = vld [vmem:[#allocation2 + $0xa8] sm:$0xff] }
 0x3bb   : > { %8864 = vrot.lane.b32.xlu1 %v8863_v32, %s9886_s20  ;;  %v3604_v30 = vld [vmem:[#allocation2 + $0xaa] sm:$0xff]  ;;  %v3605_v54 = vld [vmem:[#allocation2 + $0xb2] sm:$0xff] }
 0x3bc   : > { %8854 = vrot.lane.b32.xlu0 %v8838_v36, %s9887_s21  ;;  %v3569_v53 = vld [vmem:[#allocation2 + $0xb1] sm:$0xff]  ;;  %v3468_v40 = vmax.f32 %v3384_v50, 0.0  ;;  %v3387_v6 = vadd.f32 %v11963_v52, %v3226_v31  ;;  %v4515_v60 = vpack.c.bf16 %v3605_v54, %v3604_v30  ;;  %v8873_v59 = vpack.i.bf16 %v3604_v30, %v3603_v0 }
 0x3bd   : > { %v8868_v39 = vpack.i.bf16 %v3569_v53, %v3568_v17  ;;  %v3533_v43 = vld [vmem:[#allocation2 + $0xb0] sm:$0xff]  ;;  %v8893_v44 = vpack.i.bf16 %v3605_v54, %v3604_v30 }
 0x3be   : > { %3500 = vst.msk [vmem:[#allocation2 + $0xc1] sm:$0xff] %vm205_vm0, %v3468_v40  ;;  %v3469_v11 = vmax.f32 %v3387_v6, 0.0  ;;  %7653 = vmatmul.mubr.msk.bf16.gmra.mrb[104].mxu0 %vm205_vm0, %v4515_v60  ;;  %v8878_v18 = vpack.i.bf16 %v3533_v43, %v3532_v34 }
 0x3bf   : > { %8869 = vrot.lane.b32.xlu1 %v8868_v39, %s9885_s19 }
 0x3c0   : > { %8859 = vrot.lane.b32.xlu0 %v8848_v62, %s9887_s21  ;;  %3501 = vst.msk [vmem:[#allocation2 + $0xc9] sm:$0xff] %vm205_vm0, %v3469_v11  ;;  %v7242_v58 = vpop.f32.mrb[64].mxu1 }
 0x3c1   : > { %v7243_v7 = vpop.f32.mrb[65].mxu1 }
 0x3c2   : > { %v7244_v52 = vadd.f32 %v7243_v7, %v7242_v58  ;;  %v7245_v25 = vpop.f32.mrb[66].mxu1  ;;  %v9699_v7 = vld [vmem:[%s14012_s1 + $0x150] sm:$0xff]  }
 0x3c3   : > { %8879 = vrot.lane.b32.xlu1 %v8878_v18, %s9886_s20  ;;  %v7246_v2 = vpop.f32.mrb[67].mxu1 }
 0x3c4   : > { %8874 = vrot.lane.b32.xlu0 %v8873_v59, %s9885_s19  ;;  %v3231_v5 = vadd.f32 %v7244_v52, %v12063_v57  ;;  %v7247_v61 = vadd.f32 %v7246_v2, %v7245_v25 }
 0x3c5   : > { %v3570_v0 = vld [vmem:[#allocation2 + $0xc1] sm:$0xff] }
 0x3c6   : > { %v3392_v27 = vadd.f32 %v12005_v63, %v3231_v5  ;;  %v3234_v16 = vadd.f32 %v7247_v61, %v12063_v57  ;;  %v3534_v23 = vld [vmem:[#allocation2 + $0xc0] sm:$0xff] }
 0x3c7   : > { %8884 = vrot.lane.b32.xlu1 %v8868_v39, %s9887_s21  ;;  %v3571_v36 = vld [vmem:[#allocation2 + $0xc9] sm:$0xff] }
 0x3c8   : > { %8894 = vrot.lane.b32.xlu0 %v8893_v44, %s9886_s20  ;;  %v3606_v45 = vld [vmem:[#allocation2 + $0xc2] sm:$0xff]  ;;  %v3607_v48 = vld [vmem:[#allocation2 + $0xca] sm:$0xff]  ;;  %v3470_v51 = vmax.f32 %v3392_v27, 0.0  ;;  %v3395_v8 = vadd.f32 %v12013_v21, %v3234_v16  ;;  %v8898_v24 = vpack.i.bf16 %v3571_v36, %v3570_v0 }
 0x3c9   : > { %v4518_v63 = vpack.c.bf16 %v3607_v48, %v3606_v45  ;;  %v3535_v55 = vld [vmem:[#allocation2 + $0xc8] sm:$0xff]  ;;  %v8903_v41 = vpack.i.bf16 %v3606_v45, %v3605_v54  ;;  %v8923_v50 = vpack.i.bf16 %v3607_v48, %v3606_v45 }
 0x3ca   : > { %3502 = vst.msk [vmem:[#allocation2 + $0xd9] sm:$0xff] %vm205_vm0, %v3470_v51  ;;  %v3471_v33 = vmax.f32 %v3395_v8, 0.0  ;;  %v8908_v21 = vpack.i.bf16 %v3535_v55, %v3534_v23 }
 0x3cb   : > { %8889 = vrot.lane.b32.xlu1 %v8878_v18, %s9887_s21  ;;  %7656 = vmatprep.mubr.msk.bf16.mxu0 %vm205_vm0, %v4518_v63 }
 0x3cc   : > { %8899 = vrot.lane.b32.xlu0 %v8898_v24, %s9885_s19  ;;  %3503 = vst.msk [vmem:[#allocation2 + $0xe1] sm:$0xff] %vm205_vm0, %v3471_v33  ;;  %v7248_v62 = vpop.f32.mrb[68].mxu1  ;;  %v12248_v33 = vpop.permute.xlu0 %8689 }
 0x3cd   : > { %v7249_v42 = vpop.f32.mrb[69].mxu1 }
 0x3ce   : > { %v7250_v3 = vadd.f32 %v7249_v42, %v7248_v62  ;;  %v7251_v9 = vpop.f32.mrb[70].mxu1 }
 0x3cf   : > { %8904 = vrot.lane.b32.xlu1 %v8903_v41, %s9885_s19  ;;  %v7252_v4 = vpop.f32.mrb[71].mxu1  ;;  %v12250_v41 = vpop.permute.xlu1 %8694 }
 0x3d0   : > { %8909 = vrot.lane.b32.xlu0 %v8908_v21, %s9886_s20  ;;  %v3239_v32 = vadd.f32 %v7250_v3, %v12063_v57  ;;  %v7253_v46 = vadd.f32 %v7252_v4, %v7251_v9 }
 0x3d1   : > { %v3572_v30 = vld [vmem:[#allocation2 + $0xd9] sm:$0xff] }
 0x3d2   : > { %v3400_v31 = vadd.f32 %v11999_v13, %v3239_v32  ;;  %v3242_v17 = vadd.f32 %v7253_v46, %v12063_v57  ;;  %v9698_v13 = vld [vmem:[%s14012_s1 + $0x190] sm:$0xff]   ;;  %v3536_v58 = vld [vmem:[#allocation2 + $0xd8] sm:$0xff] }
 0x3d3   : > { %8924 = vrot.lane.b32.xlu1 %v8923_v50, %s9886_s20  ;;  %v3608_v54 = vld [vmem:[#allocation2 + $0xda] sm:$0xff]  ;;  %v3609_v53 = vld [vmem:[#allocation2 + $0xe2] sm:$0xff]  ;;  %7320 = vmatprep.subr.bf16.mxu1 %v9698_v13 }
 0x3d4   : > { %8914 = vrot.lane.b32.xlu0 %v8898_v24, %s9887_s21  ;;  %v3573_v40 = vld [vmem:[#allocation2 + $0xe1] sm:$0xff]  ;;  %v3472_v6 = vmax.f32 %v3400_v31, 0.0  ;;  %v3403_v60 = vadd.f32 %v12007_v47, %v3242_v17  ;;  %v4521_v39 = vpack.c.bf16 %v3609_v53, %v3608_v54  ;;  %v8933_v52 = vpack.i.bf16 %v3608_v54, %v3607_v48  ;;  %7321 = vmatpush3.bf16.msra.mxu1 %v9699_v7  ;;  %v9701_v31 = vld [vmem:[%s14012_s1 + $0x158] sm:$0xff]   ;;  %v12262_v17 = vpop.permute.xlu0 %8699 }
 0x3d5   : > { %v8928_v43 = vpack.i.bf16 %v3573_v40, %v3572_v30  ;;  %v3537_v11 = vld [vmem:[#allocation2 + $0xe0] sm:$0xff]  ;;  %v8953_v15 = vpack.i.bf16 %v3609_v53, %v3608_v54  ;;  %14242 = vst [vmem:[#allocation53_spill] sm:$0xff] %v12262_v17 }
 0x3d6   : > { %3504 = vst.msk [vmem:[#allocation2 + $0xf1] sm:$0xff] %vm205_vm0, %v3472_v6  ;;  %v3473_v34 = vmax.f32 %v3403_v60, 0.0  ;;  %7657 = vmatmul.mubr.msk.bf16.gmra.mrb[108].mxu0 %vm205_vm0, %v4521_v39  ;;  %v8938_v18 = vpack.i.bf16 %v3537_v11, %v3536_v58 }
 0x3d7   : > { %8929 = vrot.lane.b32.xlu1 %v8928_v43, %s9885_s19 }
 0x3d8   : > { %8919 = vrot.lane.b32.xlu0 %v8908_v21, %s9887_s21  ;;  %3505 = vst.msk [vmem:[#allocation2 + $0xf9] sm:$0xff] %vm205_vm0, %v3473_v34  ;;  %v7254_v47 = vpop.f32.mrb[72].mxu1  ;;  %v9700_v21 = vld [vmem:[%s14012_s1 + $0x198] sm:$0xff]  }
 0x3d9   : > { %v7255_v59 = vpop.f32.mrb[73].mxu1  ;;  %7322 = vmatprep.subr.bf16.mxu1 %v9700_v21 }
 0x3da   : > { %v7256_v25 = vadd.f32 %v7255_v59, %v7254_v47  ;;  %v7257_v2 = vpop.f32.mrb[74].mxu1  ;;  %7323 = vmatpush3.bf16.msra.mxu1 %v9701_v31 }
 0x3db   : > { %8939 = vrot.lane.b32.xlu1 %v8938_v18, %s9886_s20  ;;  %v7258_v5 = vpop.f32.mrb[75].mxu1 }
 0x3dc   : > { %8934 = vrot.lane.b32.xlu0 %v8933_v52, %s9885_s19  ;;  %v3247_v61 = vadd.f32 %v7256_v25, %v12063_v57  ;;  %v7259_v44 = vadd.f32 %v7258_v5, %v7257_v2 }
 0x3dd   : > { %v3574_v0 = vld [vmem:[#allocation2 + $0xf1] sm:$0xff] }
 0x3de   : > { %v3408_v27 = vadd.f32 %v12045_v20, %v3247_v61  ;;  %v3250_v16 = vadd.f32 %v7259_v44, %v12063_v57 }
 0x3df   : > { %8944 = vrot.lane.b32.xlu1 %v8928_v43, %s9887_s21  ;;  %v3575_v12 = vld [vmem:[#allocation2 + $0xf9] sm:$0xff] }
 0x3e0   : > { %8954 = vrot.lane.b32.xlu0 %v8953_v15, %s9886_s20  ;;  %v3610_v36 = vld [vmem:[#allocation2 + $0xf2] sm:$0xff]  ;;  %v12239_v45 = vld [vmem:[#allocation2 + $0xfa] sm:$0xff]  ;;  %v3474_v48 = vmax.f32 %v3408_v27, 0.0  ;;  %v3411_v51 = vadd.f32 %v12049_v38, %v3250_v16  ;;  %v8958_v8 = vpack.i.bf16 %v3575_v12, %v3574_v0 }
 0x3e1   : > { %v4524_v24 = vpack.c.bf16 %v12239_v45, %v3610_v36  ;;  %v3539_v63 = vld [vmem:[#allocation2 + $0xf8] sm:$0xff]  ;;  %v8963_v62 = vpack.i.bf16 %v3610_v36, %v3609_v53  ;;  %v3538_v38 = vld [vmem:[#allocation2 + $0xf0] sm:$0xff]  ;;  %v8983_v50 = vpack.i.bf16 %v12239_v45, %v3610_v36  ;;  %v12275_v43 = vld [vmem:[%s14012_s1 + $0x1a0] sm:$0xff]  }
 0x3e2   : > { %3506 = vst.msk [vmem:[#allocation2 + $0x109] sm:$0xff] %vm205_vm0, %v3474_v48  ;;  %v3475_v20 = vmax.f32 %v3411_v51, 0.0  ;;  %v8968_v42 = vpack.i.bf16 %v3539_v63, %v3538_v38  ;;  %7712 = vmatprep.subr.bf16.mxu1 %v12275_v43 }
 0x3e3   : > { %8949 = vrot.lane.b32.xlu1 %v8938_v18, %s9887_s21  ;;  %7660 = vmatprep.mubr.msk.bf16.mxu0 %vm205_vm0, %v4524_v24 }
 0x3e4   : > { %8959 = vrot.lane.b32.xlu0 %v8958_v8, %s9885_s19  ;;  %3507 = vst.msk [vmem:[#allocation2 + $0x111] sm:$0xff] %vm205_vm0, %v3475_v20  ;;  %v7260_v55 = vpop.f32.mrb[76].mxu1 }
 0x3e5   : > { %v7261_v23 = vpop.f32.mrb[77].mxu1 }
 0x3e6   : > { %v7262_v3 = vadd.f32 %v7261_v23, %v7260_v55  ;;  %v7263_v9 = vpop.f32.mrb[78].mxu1 }
 0x3e7   : > { %8964 = vrot.lane.b32.xlu1 %v8963_v62, %s9885_s19  ;;  %v7264_v4 = vpop.f32.mrb[79].mxu1 }
 0x3e8   : > { %8969 = vrot.lane.b32.xlu0 %v8968_v42, %s9886_s20  ;;  %v3255_v32 = vadd.f32 %v7262_v3, %v12063_v57  ;;  %v7265_v46 = vadd.f32 %v7264_v4, %v7263_v9 }
 0x3e9   : > { %v3576_v53 = vld [vmem:[#allocation2 + $0x109] sm:$0xff]  ;;  %v12285_v7 = vpop.permute.xlu0 %8714 }
 0x3ea   : > { %v3416_v30 = vadd.f32 %v12043_v35, %v3255_v32  ;;  %v3258_v54 = vadd.f32 %v7265_v46, %v12063_v57  ;;  %v12267_v40 = vpop.permute.xlu1 %8704  ;;  %v3540_v18 = vld [vmem:[#allocation2 + $0x108] sm:$0xff] }
 0x3eb   : > { %8984 = vrot.lane.b32.xlu1 %v8983_v50, %s9886_s20  ;;  %v3612_v6 = vld [vmem:[#allocation2 + $0x10a] sm:$0xff]  ;;  %v12270_v60 = vld [vmem:[#allocation2 + $0x112] sm:$0xff] }
 0x3ec   : > { %8974 = vrot.lane.b32.xlu0 %v8958_v8, %s9887_s21  ;;  %v3577_v39 = vld [vmem:[#allocation2 + $0x111] sm:$0xff]  ;;  %v3476_v35 = vmax.f32 %v3416_v30, 0.0  ;;  %v3419_v11 = vadd.f32 %v12047_v29, %v3258_v54  ;;  %v4527_v13 = vpack.c.bf16 %v12270_v60, %v3612_v6  ;;  %v8993_v2 = vpack.i.bf16 %v3612_v6, %v12239_v45 }
 0x3ed   : > { %v8988_v34 = vpack.i.bf16 %v3577_v39, %v3576_v53  ;;  %v3541_v58 = vld [vmem:[#allocation2 + $0x110] sm:$0xff]  ;;  %v9013_v12 = vpack.i.bf16 %v12270_v60, %v3612_v6 }
 0x3ee   : > { %3508 = vst.msk [vmem:[#allocation2 + $0x121] sm:$0xff] %vm205_vm0, %v3476_v35  ;;  %v3477_v47 = vmax.f32 %v3419_v11, 0.0  ;;  %7661 = vmatmul.mubr.msk.bf16.gmra.mrb[112].mxu0 %vm205_vm0, %v4527_v13  ;;  %v8998_v29 = vpack.i.bf16 %v3541_v58, %v3540_v18  ;;  %v12287_v52 = vpop.permute.xlu1 %8709 }
 0x3ef   : > { %8989 = vrot.lane.b32.xlu1 %v8988_v34, %s9885_s19 }
 0x3f0   : > { %8979 = vrot.lane.b32.xlu0 %v8968_v42, %s9887_s21  ;;  %3509 = vst.msk [vmem:[#allocation2 + $0x129] sm:$0xff] %vm205_vm0, %v3477_v47  ;;  %v7266_v59 = vpop.f32.mrb[80].mxu1 }
 0x3f1   : > { %v7267_v25 = vpop.f32.mrb[81].mxu1 }
 0x3f2   : > { %v7268_v5 = vadd.f32 %v7267_v25, %v7266_v59  ;;  %v7269_v61 = vpop.f32.mrb[82].mxu1 }
 0x3f3   : > { %8999 = vrot.lane.b32.xlu1 %v8998_v29, %s9886_s20  ;;  %v7270_v44 = vpop.f32.mrb[83].mxu1 }
 0x3f4   : > { %8994 = vrot.lane.b32.xlu0 %v8993_v2, %s9885_s19  ;;  %v3263_v15 = vadd.f32 %v7268_v5, %v12063_v57  ;;  %v7271_v27 = vadd.f32 %v7270_v44, %v7269_v61  ;;  %v12295_v0 = vpop.permute.xlu1 %8724 }
 0x3f5   : > { %v12293_v16 = vpop.permute.xlu0 %8719  ;;  %v3578_v48 = vld [vmem:[#allocation2 + $0x121] sm:$0xff] }
 0x3f6   : > { %v3424_v36 = vadd.f32 %v12053_v14, %v3263_v15  ;;  %v3266_v45 = vadd.f32 %v7271_v27, %v12063_v57  ;;  %v9018_v55 = vpack.i.bf16 %v12075_v28, %v3578_v48  ;;  %v3542_v4 = vld [vmem:[#allocation2 + $0x120] sm:$0xff] }
 0x3f7   : > { %9004 = vrot.lane.b32.xlu1 %v8988_v34, %s9887_s21  ;;  %v3614_v51 = vld [vmem:[#allocation2 + $0x122] sm:$0xff]  ;;  %v12302_v8 = vld [vmem:[#allocation2 + $0x12a] sm:$0xff] }
 0x3f8   : > { %9014 = vrot.lane.b32.xlu0 %v9013_v12, %s9886_s20  ;;  %v3478_v24 = vmax.f32 %v3424_v36, 0.0  ;;  %v3427_v20 = vadd.f32 %v12057_v10, %v3266_v45  ;;  %v4530_v62 = vpack.c.bf16 %v12302_v8, %v3614_v51  ;;  %v3543_v23 = vld [vmem:[#allocation2 + $0x128] sm:$0xff]  ;;  %v12311_v42 = vpop.permute.xlu1 %8744  ;;  %v9023_v9 = vpack.i.bf16 %v3614_v51, %v12270_v60 }
 0x3f9   : > { %v12305_v63 = vpop.permute.xlu0 %8729  ;;  %v9028_v46 = vpack.i.bf16 %v3543_v23, %v3542_v4  ;;  %v3579_v30 = vld [vmem:[#allocation2 + $0x129] sm:$0xff]  ;;  %v9043_v39 = vpack.i.bf16 %v12302_v8, %v3614_v51 }
 0x3fa   : > { %3510 = vst.msk [vmem:[#allocation2 + $0x139] sm:$0xff] %vm205_vm0, %v3478_v24  ;;  %v3479_v14 = vmax.f32 %v3427_v20, 0.0  ;;  %v7272_v38 = vpop.f32.mrb[84].mxu1  ;;  %7664 = vmatprep.mubr.msk.bf16.mxu0 %vm205_vm0, %v4530_v62  ;;  %v9033_v35 = vpack.i.bf16 %v3579_v30, %v3578_v48 }
 0x3fb   : > { %9009 = vrot.lane.b32.xlu1 %v8998_v29, %s9887_s21  ;;  %v7273_v10 = vpop.f32.mrb[85].mxu1 }
 0x3fc   : > { %9019 = vrot.lane.b32.xlu0 %v9018_v55, %s9885_s19  ;;  %3511 = vst.msk [vmem:[#allocation2 + $0x141] sm:$0xff] %vm205_vm0, %v3479_v14  ;;  %v7274_v21 = vadd.f32 %v7273_v10, %v7272_v38  ;;  %v7275_v3 = vpop.f32.mrb[86].mxu1 }
 0x3fd   : > { %v12316_v28 = vpop.permute.xlu0 %8734  ;;  %v7276_v32 = vpop.f32.mrb[87].mxu1 }
 0x3fe   : > { %v3271_v50 = vadd.f32 %v7274_v21, %v12063_v57  ;;  %v7277_v31 = vadd.f32 %v7276_v32, %v7275_v3 }
 0x3ff   : > { %9024 = vrot.lane.b32.xlu1 %v9023_v9, %s9885_s19 }
 0x400   : > { %9029 = vrot.lane.b32.xlu0 %v9028_v46, %s9886_s20  ;;  %v3432_v54 = vadd.f32 %v12051_v26, %v3271_v50  ;;  %v3274_v53 = vadd.f32 %v7277_v31, %v12063_v57 }
 0x401   : > { %v12324_v6 = vpop.permute.xlu1 %8749  ;;  %v12327_v60 = vpop.permute.xlu0 %8739  ;;  %v3544_v58 = vld [vmem:[#allocation2 + $0x138] sm:$0xff] }
 0x402   : > { %v3480_v11 = vmax.f32 %v3432_v54, 0.0  ;;  %v3435_v13 = vadd.f32 %v12055_v1, %v3274_v53  ;;  %v7278_v34 = vpop.f32.mrb[88].mxu1  ;;  %v3580_v45 = vld [vmem:[#allocation2 + $0x139] sm:$0xff] }
 0x403   : > { %9044 = vrot.lane.b32.xlu1 %v9043_v39, %s9886_s20  ;;  %v7279_v47 = vpop.f32.mrb[89].mxu1  ;;  %v12332_v26 = vld [vmem:[#allocation2 + $0x13a] sm:$0xff]  ;;  %v12334_v18 = vld [vmem:[#allocation2 + $0x142] sm:$0xff] }
 0x404   : > { %9034 = vrot.lane.b32.xlu0 %v9033_v35, %s9887_s21  ;;  %v3545_v59 = vld [vmem:[#allocation2 + $0x140] sm:$0xff]  ;;  %3512 = vst.msk [vmem:[#allocation2 + $0x151] sm:$0xff] %vm205_vm0, %v3480_v11  ;;  %v3481_v29 = vmax.f32 %v3435_v13, 0.0  ;;  %v7280_v25 = vadd.f32 %v7279_v47, %v7278_v34  ;;  %v7281_v5 = vpop.f32.mrb[90].mxu1  ;;  %v4533_v1 = vpack.c.bf16 %v12334_v18, %v12332_v26  ;;  %v9048_v62 = vpack.i.bf16 %v12332_v26, %v12302_v8 }
 0x405   : > { %v12337_v2 = vpop.permute.xlu1 %8759  ;;  %v9053_v61 = vpack.i.bf16 %v3545_v59, %v3544_v58  ;;  %v12341_v44 = vpop.permute.xlu0 %8754  ;;  %v3581_v27 = vld [vmem:[#allocation2 + $0x141] sm:$0xff]  ;;  %v9063_v4 = vpack.i.bf16 %v3579_v30, %v12334_v18 }
 0x406   : > { %v7282_v15 = vpop.f32.mrb[91].mxu1  ;;  %3513 = vst.msk [vmem:[#allocation2 + $0x159] sm:$0xff] %vm205_vm0, %v3481_v29  ;;  %7665 = vmatmul.mubr.msk.bf16.gmra.mrb[116].mxu0 %vm205_vm0, %v4533_v1  ;;  %v3279_v36 = vadd.f32 %v7280_v25, %v12063_v57  ;;  %v9058_v20 = vpack.i.bf16 %v3581_v27, %v3580_v45 }
 0x407   : > { %v7283_v12 = vadd.f32 %v7282_v15, %v7281_v5  ;;  %9054 = vrot.lane.b32.xlu1 %v9053_v61, %s9886_s20 }
 0x408   : > { %9039 = vrot.lane.b32.xlu0 %v9028_v46, %s9887_s21  ;;  %v3440_v48 = vadd.f32 %v12109_v19, %v3279_v36 }
 0x409   : > { %v12349_v51 = vpop.permute.xlu1 %8764  ;;  %v3282_v24 = vadd.f32 %v7283_v12, %v12063_v57  ;;  %v12352_v55 = vpop.permute.xlu0 %8774  ;;  %v9078_v12 = vpack.i.bf16 %v12334_v18, %v12332_v26 }
 0x40a   : > { %v3482_v14 = vmax.f32 %v3440_v48, 0.0  ;;  %v7284_v23 = vpop.f32.mrb[92].mxu1 }
 0x40b   : > { %v3443_v38 = vadd.f32 %v12117_v56, %v3282_v24  ;;  %9059 = vrot.lane.b32.xlu1 %v9058_v20, %s9887_s21  ;;  %v7285_v10 = vpop.f32.mrb[93].mxu1  ;;  %v3546_v53 = vld [vmem:[#allocation2 + $0x150] sm:$0xff] }
 0x40c   : > { %9049 = vrot.lane.b32.xlu0 %v9048_v62, %s9885_s19  ;;  %3514 = vst.msk [vmem:[#allocation2 + $0x169] sm:$0xff] %vm205_vm0, %v3482_v14  ;;  %v7286_v21 = vadd.f32 %v7285_v10, %v7284_v23  ;;  %v7287_v9 = vpop.f32.mrb[94].mxu1  ;;  %v3582_v29 = vld [vmem:[#allocation2 + $0x151] sm:$0xff] }
 0x40d   : > { %v3483_v19 = vmax.f32 %v3443_v38, 0.0  ;;  %v12360_v3 = vpop.permute.xlu1 %8769  ;;  %v7288_v8 = vpop.f32.mrb[95].mxu1  ;;  %v3547_v46 = vld [vmem:[#allocation2 + $0x158] sm:$0xff] }
 0x40e   : > { %v12363_v32 = vpop.permute.xlu0 %8779  ;;  %v3618_v56 = vld [vmem:[#allocation2 + $0x152] sm:$0xff]  ;;  %v3619_v50 = vld [vmem:[#allocation2 + $0x15a] sm:$0xff]  ;;  %v3287_v31 = vadd.f32 %v7286_v21, %v12063_v57  ;;  %v7289_v54 = vadd.f32 %v7288_v8, %v7287_v9  ;;  %v9083_v39 = vpack.i.bf16 %v3547_v46, %v3546_v53 }
 0x40f   : > { %3515 = vst.msk [vmem:[#allocation2 + $0x171] sm:$0xff] %vm205_vm0, %v3483_v19  ;;  %9064 = vrot.lane.b32.xlu1 %v9063_v4, %s9885_s19  ;;  %v4536_v35 = vpack.c.bf16 %v3619_v50, %v3618_v56  ;;  %v3583_v34 = vld [vmem:[#allocation2 + $0x159] sm:$0xff]  ;;  %v9093_v27 = vpack.i.bf16 %v3619_v50, %v3618_v56 }
 0x410   : > { %v3448_v11 = vadd.f32 %v12107_v37, %v3287_v31  ;;  %v3290_v30 = vadd.f32 %v7289_v54, %v12063_v57  ;;  %9084 = vrot.lane.b32.xlu0 %v9083_v39, %s9886_s20  ;;  %v9088_v25 = vpack.i.bf16 %v3583_v34, %v3582_v29  ;;  %v3589_v34 = vld [vmem:[#allocation2 + $0x1a1] sm:$0xff] }
 0x411   : > { %v12370_v13 = vpop.permute.xlu1 %8784  ;;  %7668 = vmatprep.mubr.msk.bf16.mxu0 %vm205_vm0, %v4536_v35 }
 0x412   : > { %v12373_v58 = vpop.permute.xlu0 %8789  ;;  %v3484_v47 = vmax.f32 %v3448_v11, 0.0  ;;  %v3451_v59 = vadd.f32 %v12115_v22, %v3290_v30  ;;  %v3588_v30 = vld [vmem:[#allocation2 + $0x199] sm:$0xff] }
 0x413   : > { %9069 = vrot.lane.b32.xlu1 %v9053_v61, %s9887_s21  ;;  %v3548_v48 = vld [vmem:[#allocation2 + $0x168] sm:$0xff] }
 0x414   : > { %3516 = vst.msk [vmem:[#allocation2 + $0x181] sm:$0xff] %vm205_vm0, %v3484_v47  ;;  %v3485_v37 = vmax.f32 %v3451_v59, 0.0  ;;  %9089 = vrot.lane.b32.xlu0 %v9088_v25, %s9887_s21  ;;  %v3584_v38 = vld [vmem:[#allocation2 + $0x169] sm:$0xff] }
 0x415   : > { %v12379_v57 = vpop.permute.xlu1 %8804 }
 0x416   : > { %v12382_v5 = vpop.permute.xlu0 %8794  ;;  %v3620_v1 = vld [vmem:[#allocation2 + $0x16a] sm:$0xff]  ;;  %v3621_v15 = vld [vmem:[#allocation2 + $0x172] sm:$0xff]  ;;  %3517 = vst.msk [vmem:[#allocation2 + $0x189] sm:$0xff] %vm205_vm0, %v3485_v37 }
 0x417   : > { %9074 = vrot.lane.b32.xlu1 %v9058_v20, %s9885_s19  ;;  %v4539_v22 = vpack.c.bf16 %v3621_v15, %v3620_v1  ;;  %v3549_v36 = vld [vmem:[#allocation2 + $0x170] sm:$0xff]  ;;  %v9123_v10 = vpack.i.bf16 %v3621_v15, %v3620_v1 }
 0x418   : > { %9094 = vrot.lane.b32.xlu0 %v9093_v27, %s9885_s19  ;;  %v9113_v24 = vpack.i.bf16 %v3549_v36, %v3548_v48  ;;  %v3585_v20 = vld [vmem:[#allocation2 + $0x171] sm:$0xff] }
 0x419   : > { %v12386_v61 = vpop.permute.xlu1 %8809  ;;  %7669 = vmatmul.mubr.msk.bf16.gmra.mrb[120].mxu0 %vm205_vm0, %v4539_v22  ;;  %v9118_v26 = vpack.i.bf16 %v3585_v20, %v3584_v38 }
 0x41a   : > { %v12392_v45 = vpop.permute.xlu0 %8799 }
 0x41b   : > { %9079 = vrot.lane.b32.xlu1 %v9078_v12, %s9886_s20  ;;  %v3550_v4 = vld [vmem:[#allocation2 + $0x180] sm:$0xff] }
 0x41c   : > { %9114 = vrot.lane.b32.xlu0 %v9113_v24, %s9886_s20  ;;  %v3586_v31 = vld [vmem:[#allocation2 + $0x181] sm:$0xff] }
 0x41d   : > { %v12395_v62 = vpop.permute.xlu1 %8819  ;;  %v3551_v21 = vld [vmem:[#allocation2 + $0x188] sm:$0xff] }
 0x41e   : > { %v12398_v14 = vpop.permute.xlu0 %8814  ;;  %v9143_v8 = vpack.i.bf16 %v3551_v21, %v3550_v4  ;;  %v3587_v56 = vld [vmem:[#allocation2 + $0x189] sm:$0xff] }
 0x41f   : > { %9099 = vrot.lane.b32.xlu1 %v9083_v39, %s9887_s21  ;;  %v9148_v54 = vpack.i.bf16 %v3587_v56, %v3586_v31  ;;  %v3622_v39 = vld [vmem:[#allocation2 + $0x182] sm:$0xff]  ;;  %v3623_v35 = vld [vmem:[#allocation2 + $0x18a] sm:$0xff] }
 0x420   : > { %9119 = vrot.lane.b32.xlu0 %v9118_v26, %s9887_s21  ;;  %v9153_v47 = vpack.i.bf16 %v3623_v35, %v3622_v39 }
 0x421   : > { %v12401_v18 = vpop.permute.xlu1 %8824 }
 0x422   : > { %v12404_v23 = vpop.permute.xlu0 %8834 }
 0x423   : > { %9104 = vrot.lane.b32.xlu1 %v9088_v25, %s9885_s19  ;;  %v9158_v25 = vpack.i.bf16 %v3589_v34, %v3588_v30 }
 0x424   : > { %9124 = vrot.lane.b32.xlu0 %v9123_v10, %s9885_s19 }
 0x425   : > { %v12407_v19 = vpop.permute.xlu1 %8829 }
 0x426   : > { %v12410_v9 = vpop.permute.xlu0 %8839 }
 0x427   : > { %9109 = vrot.lane.b32.xlu1 %v9093_v27, %s9886_s20 }
 0x428   : > { %9144 = vrot.lane.b32.xlu0 %v9143_v8, %s9886_s20 }
 0x429   : > { %v12413_v46 = vpop.permute.xlu1 %8844 }
 0x42a   : > { %v12416_v50 = vpop.permute.xlu0 %8849 }
 0x42b   : > { %9129 = vrot.lane.b32.xlu1 %v9113_v24, %s9887_s21 }
 0x42c   : > { %9149 = vrot.lane.b32.xlu0 %v9148_v54, %s9887_s21 }
 0x42d   : > { %v12419_v53 = vpop.permute.xlu1 %8864 }
 0x42e   : > { %v12422_v11 = vpop.permute.xlu0 %8854 }
 0x42f   : > { %9134 = vrot.lane.b32.xlu1 %v9118_v26, %s9885_s19 }
 0x430   : > { %9154 = vrot.lane.b32.xlu0 %v9153_v47, %s9885_s19  ;;  %v8692_v47 = vunpack.i.h.bf16 %v12248_v33 }
 0x431   : > { %v12425_v59 = vpop.permute.xlu1 %8869 }
 0x432   : > { %14243 = vst [vmem:[#allocation56_spill] sm:$0xff] %v12425_v59  ;;  %v12428_v29 = vpop.permute.xlu0 %8859  ;;  %v8731_v59 = vunpack.i.l.bf16 %v12305_v63 }
 0x433   : > { %9139 = vrot.lane.b32.xlu1 %v9123_v10, %s9886_s20 }
 0x434   : > { %9159 = vrot.lane.b32.xlu0 %v9158_v25, %s9887_s21  ;;  %v8691_v25 = vunpack.i.l.bf16 %v12248_v33 }
 0x435   : > { %v12431_v37 = vpop.permute.xlu1 %8879 }
 0x436   : > { %v12434_v1 = vpop.permute.xlu0 %8874 }
 0x437   : > { %9164 = vrot.lane.b32.xlu1 %v9143_v8, %s9887_s21 }
 0x439   : > { %v12439_v22 = vpop.permute.xlu1 %8884 }
 0x43a   : > { %v12437_v15 = vpop.permute.xlu0 %8894 }
 0x43b   : > { %14244 = vst [vmem:[#allocation55_spill] sm:$0xff] %v12437_v15 }
 0x43d   : > { %v12443_v12 = vpop.permute.xlu1 %8889 }
 0x43e   : > { %v12441_v27 = vpop.permute.xlu0 %8899  ;;  %14246 = vst [vmem:[#allocation57_spill] sm:$0xff] %v12443_v12  ;;  %v9792_v12 = vld [vmem:[#allocation2 + $0x19] sm:$0xff] }
 0x43f   : > { %14245 = vst [vmem:[#allocation58_spill] sm:$0xff] %v12441_v27 }
 0x441   : > { %v12449_v24 = vpop.permute.xlu1 %8904 }
 0x442   : > { %v12445_v36 = vpop.permute.xlu0 %8909 }
 0x445   : > { %v12453_v38 = vpop.permute.xlu1 %8924 }
 0x446   : > { %v12447_v48 = vpop.permute.xlu0 %8914  ;;  %14248 = vst [vmem:[#allocation59_spill] sm:$0xff] %v12453_v38  ;;  %v8756_v38 = vunpack.i.l.bf16 %v12341_v44 }
 0x449   : > { %v12459_v21 = vpop.permute.xlu1 %8929 }
 0x44a   : > { %v12451_v20 = vpop.permute.xlu0 %8919  ;;  %14250 = vst [vmem:[#allocation51_spill] sm:$0xff] %v12459_v21 }
 0x44b   : > { %14247 = vst [vmem:[#allocation33_spill] sm:$0xff] %v12451_v20  ;;  %v8767_v20 = vunpack.i.h.bf16 %v12349_v51 }
 0x44d   : > { %v12463_v8 = vpop.permute.xlu1 %8939 }
 0x44e   : > { %v12455_v26 = vpop.permute.xlu0 %8934  ;;  %14252 = vst [vmem:[#allocation38_spill] sm:$0xff] %v12463_v8 }
 0x451   : > { %v12469_v54 = vpop.permute.xlu1 %8944 }
 0x452   : > { %v12457_v10 = vpop.permute.xlu0 %8954  ;;  %14255 = vst [vmem:[#allocation39_spill] sm:$0xff] %v12469_v54 }
 0x453   : > { %14249 = vst [vmem:[#allocation37_spill] sm:$0xff] %v12457_v10  ;;  %v3519_v10 = vld [vmem:[#allocation2 + $0x8] sm:$0xff] }
 0x455   : > { %v12481_v49 = vpop.permute.xlu1 %8949 }
 0x456   : > { %v12461_v4 = vpop.permute.xlu0 %8959  ;;  %14260 = vst [vmem:[#allocation43_spill] sm:$0xff] %v12481_v49 }
 0x457   : > { %14251 = vst [vmem:[#allocation60_spill] sm:$0xff] %v12461_v4  ;;  %v3518_v4 = vld [vmem:[#allocation2] sm:$0xff] }
 0x459   : > { %v12494_v33 = vpop.permute.xlu1 %8964 }
 0x45a   : > { %v12465_v56 = vpop.permute.xlu0 %8969  ;;  %14264 = vst [vmem:[#allocation47_spill] sm:$0xff] %v12494_v33 }
 0x45b   : > { %14253 = vst [vmem:[#allocation34_spill] sm:$0xff] %v12465_v56  ;;  %v8737_v56 = vunpack.i.h.bf16 %v12316_v28 }
 0x45d   : > { %v12520_v8 = vpop.permute.xlu1 %8984 }
 0x45e   : > { %v12467_v31 = vpop.permute.xlu0 %8974 }
 0x45f   : > { %14254 = vst [vmem:[#allocation61_spill] sm:$0xff] %v12467_v31  ;;  %v8726_v31 = vunpack.i.l.bf16 %v12295_v0 }
 0x461   : > { %v12473_v35 = vpop.f32.mrb[96].mxu0 }
 0x462   : > { %v12471_v39 = vpop.permute.xlu0 %8979  ;;  %14257 = vst [vmem:[#allocation62_spill] sm:$0xff] %v12473_v35  ;;  %v12475_v30 = vpop.f32.mrb[97].mxu0  ;;  %v8696_v35 = vunpack.i.l.bf16 %v12250_v41 }
 0x463   : > { %14256 = vst [vmem:[#allocation54_spill] sm:$0xff] %v12471_v39  ;;  %14258 = vst [vmem:[#allocation40_spill] sm:$0xff] %v12475_v30  ;;  %v12477_v34 = vpop.f32.mrb[98].mxu0  ;;  %v8697_v39 = vunpack.i.h.bf16 %v12250_v41  ;;  %v4307_v30 = vsel %vm205_vm0, %v3519_v10, %v8692_v47  ;;  %v8707_v41 = vunpack.i.h.bf16 %v12267_v40  ;;  %v8727_v10 = vunpack.i.h.bf16 %v12295_v0  ;;  %v9789_v47 = vld [vmem:[#allocation2 + $0x39] sm:$0xff] }
 0x464   : > { %14259 = vst [vmem:[#allocation41_spill] sm:$0xff] %v12477_v34  ;;  %v12483_v17 = vpop.f32.mrb[99].mxu0  ;;  %v4306_v34 = vsel %vm205_vm0, %v3518_v4, %v8691_v25  ;;  %v8732_v4 = vunpack.i.h.bf16 %v12305_v63  ;;  %v4405_v25 = vsel %vm205_vm0, %v9789_v47, %v8756_v38  ;;  %v8766_v0 = vunpack.i.l.bf16 %v12349_v51  ;;  %v9790_v47 = vld [vmem:[#allocation2 + $0x21] sm:$0xff] }
 0x465   : > { %14261 = vst [vmem:[#allocation44_spill] sm:$0xff] %v12483_v17  ;;  %v4338_v17 = vsel %vm1115_vm3, %v4306_v34, %v8696_v35  ;;  %v4339_v49 = vsel %vm1115_vm3, %v4307_v30, %v8697_v39  ;;  %v8762_v35 = vunpack.i.h.bf16 %v12337_v2  ;;  %v8761_v39 = vunpack.i.l.bf16 %v12337_v2  ;;  %v9791_v2 = vld [vmem:[#allocation2 + $0x31] sm:$0xff] }
 0x466   : > { %v12485_v21 = vpop.permute.xlu0 %8994  ;;  %v8706_v34 = vunpack.i.l.bf16 %v12267_v40  ;;  %v4404_v54 = vsel %vm205_vm0, %v9791_v2, %v8727_v10  ;;  %v8736_v40 = vunpack.i.l.bf16 %v12316_v28 }
 0x467   : > { %14262 = vst [vmem:[#allocation45_spill] sm:$0xff] %v12485_v21  ;;  %v8712_v21 = vunpack.i.h.bf16 %v12287_v52  ;;  %v4437_v33 = vsel %vm1115_vm3, %v4405_v25, %v8762_v35  ;;  %v8786_v25 = vunpack.i.l.bf16 %v12370_v13 }
 0x468   : > { %v4469_v35 = vsel %vm1148_vm4, %v4437_v33, %v8767_v20  ;;  %v8792_v20 = vunpack.i.h.bf16 %v12373_v58  ;;  %v8791_v33 = vunpack.i.l.bf16 %v12373_v58  ;;  %v8816_v58 = vunpack.i.l.bf16 %v12398_v14 }
 0x469   : > { %v4371_v38 = vsel %vm1148_vm4, %v4339_v49, %v8712_v21 }
 0x46a   : > { %v12492_v27 = vpop.permute.xlu0 %9014 }
 0x46b   : > { %14263 = vst [vmem:[#allocation46_spill] sm:$0xff] %v12492_v27  ;;  %v8711_v27 = vunpack.i.l.bf16 %v12287_v52  ;;  %v4403_v52 = vsel %vm205_vm0, %v9790_v47, %v8726_v31  ;;  %v4436_v31 = vsel %vm1115_vm3, %v4404_v54, %v8761_v39  ;;  %v8742_v39 = vunpack.i.h.bf16 %v12327_v60  ;;  %v9795_v47 = vld [vmem:[#allocation2 + $0x51] sm:$0xff] }
 0x46c   : > { %v4468_v28 = vsel %vm1148_vm4, %v4436_v31, %v8766_v0  ;;  %v8741_v0 = vunpack.i.l.bf16 %v12327_v60  ;;  %v9796_v60 = vld [vmem:[#allocation2 + $0x49] sm:$0xff] }
 0x46d   : > { %v4370_v49 = vsel %vm1148_vm4, %v4338_v17, %v8711_v27  ;;  %v9794_v27 = vld [vmem:[#allocation2 + $0x20] sm:$0xff] }
 0x46e   : > { %v12508_v30 = vpop.permute.xlu0 %9019  ;;  %v4498_v54 = vpack.c.bf16 %v4371_v38, %v4370_v49  ;;  %v12544_v38 = vpop.permute.xlu1 %8989 }
 0x46f   : > { %14265 = vst [vmem:[#allocation48_spill] sm:$0xff] %v12508_v30  ;;  %v9022_v15 = vunpack.i.h.bf16 %v12508_v30  ;;  %v4435_v30 = vsel %vm1115_vm3, %v4403_v52, %v8732_v4  ;;  %v9793_v4 = vld [vmem:[#allocation2 + $0x18] sm:$0xff]  ;;  %v8797_v52 = vunpack.i.h.bf16 %v12382_v5 }
 0x470   : > { %v4467_v63 = vsel %vm1148_vm4, %v4435_v30, %v8737_v56  ;;  %v4308_v17 = vsel %vm205_vm0, %v9793_v4, %v8706_v34  ;;  %v4309_v56 = vsel %vm205_vm0, %v9794_v27, %v8707_v41  ;;  %v8757_v30 = vunpack.i.h.bf16 %v12341_v44  ;;  %v9798_v27 = vld [vmem:[#allocation2 + $0x69] sm:$0xff] }
 0x471   : > { %v4402_v51 = vsel %vm205_vm0, %v9792_v12, %v9022_v15  ;;  %v8717_v15 = vunpack.i.h.bf16 %v12285_v7  ;;  %v8716_v12 = vunpack.i.l.bf16 %v12285_v7  ;;  %v4502_v7 = vpack.c.bf16 %v4469_v35, %v4468_v28 }
 0x472   : > { %v4434_v21 = vsel %vm1115_vm3, %v4402_v51, %v8731_v59  ;;  %v4407_v34 = vsel %vm205_vm0, %v9795_v47, %v8786_v25  ;;  %v8796_v41 = vunpack.i.l.bf16 %v12382_v5  ;;  %v4406_v44 = vsel %vm205_vm0, %v9796_v60, %v8757_v30  ;;  %v9797_v51 = vld [vmem:[%s14012_s1 + $0x1a8] sm:$0xff]  }
 0x473   : > { %v4466_v10 = vsel %vm1148_vm4, %v4434_v21, %v8736_v40  ;;  %v4340_v2 = vsel %vm1115_vm3, %v4308_v17, %v8716_v12  ;;  %v4341_v40 = vsel %vm1115_vm3, %v4309_v56, %v8717_v15  ;;  %v4438_v21 = vsel %vm1115_vm3, %v4406_v44, %v8791_v33 }
 0x474   : > { %v4499_v59 = vpack.c.bf16 %v4467_v63, %v4466_v10  ;;  %v4372_v49 = vsel %vm1148_vm4, %v4340_v2, %v8741_v0  ;;  %v4439_v63 = vsel %vm1115_vm3, %v4407_v34, %v8792_v20  ;;  %v4470_v25 = vsel %vm1148_vm4, %v4438_v21, %v8796_v41  ;;  %v9800_v34 = vld [vmem:[#allocation2 + $0x30] sm:$0xff] }
 0x475   : > { %v4471_v10 = vsel %vm1148_vm4, %v4439_v63, %v8797_v52  ;;  %v8722_v28 = vunpack.i.h.bf16 %v12293_v16  ;;  %v8721_v35 = vunpack.i.l.bf16 %v12293_v16  ;;  %v8747_v15 = vunpack.i.h.bf16 %v12311_v42 }
 0x476   : > { %4775 = vmatprep.mubr.bf16.mxu1 %v4499_v59  ;;  %v8746_v12 = vunpack.i.l.bf16 %v12311_v42  ;;  %v8772_v17 = vunpack.i.h.bf16 %v12360_v3  ;;  %v8787_v59 = vunpack.i.h.bf16 %v12370_v13  ;;  %v4409_v56 = vsel %vm205_vm0, %v9798_v27, %v8816_v58  ;;  %v9799_v13 = vld [vmem:[#allocation2 + $0x38] sm:$0xff] }
 0x477   : > { %4776 = vmatmul.mubr.bf16.vlgmr.msra.gmra.mrb[96].mxu1 %v4498_v54  ;;  %v12573_v54 = vpop.permute.xlu1 %8999  ;;  %v8771_v16 = vunpack.i.l.bf16 %v12360_v3  ;;  %v8822_v0 = vunpack.i.h.bf16 %v12395_v62  ;;  %v8821_v42 = vunpack.i.l.bf16 %v12395_v62  ;;  %v4505_v20 = vpack.c.bf16 %v4471_v10, %v4470_v25  ;;  %v9801_v3 = vld [vmem:[#allocation2 + $0x61] sm:$0xff] }
 0x478   : > { %4783 = vmatprep.mubr.bf16.mxu1 %v4502_v7  ;;  %7714 = vmatpush3.bf16.msra.mxu1 %v12275_v43  ;;  %v4373_v43 = vsel %vm1148_vm4, %v4341_v40, %v8742_v39  ;;  %v8827_v33 = vunpack.i.h.bf16 %v12401_v18  ;;  %v8826_v7 = vunpack.i.l.bf16 %v12401_v18  ;;  %v4311_v47 = vsel %vm205_vm0, %v9799_v13, %v8722_v28 }
 0x479   : > { %7713 = vmatprep.subr.bf16.mxu1 %v9797_v51  ;;  %v12554_v5 = vpop.f32.mrb[100].mxu0  ;;  %v4501_v30 = vpack.c.bf16 %v4373_v43, %v4372_v49  ;;  %v4310_v52 = vsel %vm205_vm0, %v9800_v34, %v8721_v35  ;;  %v4441_v41 = vsel %vm1115_vm3, %v4409_v56, %v8822_v0  ;;  %v4408_v60 = vsel %vm205_vm0, %v9801_v3, %v8787_v59  ;;  %v9802_v56 = vld [vmem:[#allocation2 + $0x81] sm:$0xff] }
 0x47a   : > { %v12560_v31 = vpop.f32.mrb[101].mxu0  ;;  %v4342_v62 = vsel %vm1115_vm3, %v4310_v52, %v8746_v12  ;;  %v4343_v44 = vsel %vm1115_vm3, %v4311_v47, %v8747_v15  ;;  %v4440_v2 = vsel %vm1115_vm3, %v4408_v60, %v8821_v42  ;;  %v8846_v40 = vunpack.i.l.bf16 %v12413_v46 }
 0x47b   : > { %v12568_v4 = vpop.f32.mrb[102].mxu0  ;;  %v4374_v58 = vsel %vm1148_vm4, %v4342_v62, %v8771_v16  ;;  %v4375_v18 = vsel %vm1148_vm4, %v4343_v44, %v8772_v17  ;;  %v4472_v49 = vsel %vm1148_vm4, %v4440_v2, %v8826_v7  ;;  %v4473_v43 = vsel %vm1148_vm4, %v4441_v41, %v8827_v33 }
 0x47c   : > { %7715 = vmatpush3.bf16.msra.mxu1 %v9797_v51  ;;  %v12575_v39 = vpop.f32.mrb[103].mxu0  ;;  %v12592_v51 = vpop.permute.xlu1 %9004  ;;  %v8752_v21 = vunpack.i.h.bf16 %v12324_v6  ;;  %v8751_v63 = vunpack.i.l.bf16 %v12324_v6  ;;  %v8777_v25 = vunpack.i.h.bf16 %v12352_v55  ;;  %v8776_v10 = vunpack.i.l.bf16 %v12352_v55  ;;  %v9803_v55 = vld [vmem:[#allocation2 + $0x48] sm:$0xff] }
 0x47d   : > { %v8802_v28 = vunpack.i.h.bf16 %v12392_v45  ;;  %v8817_v35 = vunpack.i.h.bf16 %v12398_v14  ;;  %v4504_v15 = vpack.c.bf16 %v4375_v18, %v4374_v58  ;;  %v8801_v12 = vunpack.i.l.bf16 %v12392_v45  ;;  %v9804_v14 = vld [vmem:[#allocation2 + $0x50] sm:$0xff]  ;;  %v9805_v45 = vld [vmem:[#allocation2 + $0x79] sm:$0xff] }
 0x47e   : > { %v8852_v17 = vunpack.i.h.bf16 %v12416_v50  ;;  %v8851_v59 = vunpack.i.l.bf16 %v12416_v50  ;;  %v4508_v27 = vpack.c.bf16 %v4473_v43, %v4472_v49  ;;  %v8857_v6 = vunpack.i.h.bf16 %v12422_v11 }
 0x47f   : > { %4784 = vmatmul.mubr.bf16.gmra.mrb[100].mxu1 %v4501_v30  ;;  %v4411_v30 = vsel %vm205_vm0, %v9802_v56, %v8846_v40  ;;  %v8856_v16 = vunpack.i.l.bf16 %v12422_v11  ;;  %v4312_v0 = vsel %vm205_vm0, %v9803_v55, %v8751_v63  ;;  %v4313_v42 = vsel %vm205_vm0, %v9804_v14, %v8752_v21  ;;  %v9806_v40 = vld [vmem:[#allocation2 + $0x99] sm:$0xff] }
 0x480   : > { %4791 = vmatprep.mubr.bf16.mxu1 %v4505_v20  ;;  %v4410_v20 = vsel %vm205_vm0, %v9805_v45, %v8817_v35  ;;  %v8876_v50 = vunpack.i.l.bf16 %v12434_v1  ;;  %v12612_v33 = vpop.permute.xlu1 %9009  ;;  %v4344_v7 = vsel %vm1115_vm3, %v4312_v0, %v8776_v10  ;;  %v4345_v13 = vsel %vm1115_vm3, %v4313_v42, %v8777_v25  ;;  %v9807_v35 = vld [vmem:[#allocation2 + $0x68] sm:$0xff] }
 0x481   : > { %v4376_v11 = vsel %vm1148_vm4, %v4344_v7, %v8801_v12  ;;  %v4377_v47 = vsel %vm1148_vm4, %v4345_v13, %v8802_v28  ;;  %v4442_v34 = vsel %vm1115_vm3, %v4410_v20, %v8851_v59  ;;  %v4443_v52 = vsel %vm1115_vm3, %v4411_v30, %v8852_v17  ;;  %v12638_v17 = vpop.permute.xlu0 %9029 }
 0x482   : > { %v4474_v41 = vsel %vm1148_vm4, %v4442_v34, %v8856_v16  ;;  %v4475_v3 = vsel %vm1148_vm4, %v4443_v52, %v8857_v6  ;;  %v8782_v60 = vunpack.i.h.bf16 %v12363_v32  ;;  %v8781_v62 = vunpack.i.l.bf16 %v12363_v32 }
 0x483   : > { %v8807_v44 = vunpack.i.h.bf16 %v12379_v57  ;;  %v8806_v58 = vunpack.i.l.bf16 %v12379_v57  ;;  %v8832_v18 = vunpack.i.h.bf16 %v12407_v19  ;;  %v8847_v2 = vunpack.i.h.bf16 %v12413_v46 }
 0x484   : > { %v4413_v49 = vsel %vm205_vm0, %v9806_v40, %v8876_v50  ;;  %v4507_v43 = vpack.c.bf16 %v4377_v47, %v4376_v11  ;;  %v8831_v21 = vunpack.i.l.bf16 %v12407_v19  ;;  %v8882_v63 = vunpack.i.h.bf16 %v12431_v37  ;;  %v12634_v57 = vpop.permute.xlu1 %9024 }
 0x485   : > { %v8881_v25 = vunpack.i.l.bf16 %v12431_v37  ;;  %v4511_v10 = vpack.c.bf16 %v4475_v3, %v4474_v41  ;;  %v8887_v32 = vunpack.i.h.bf16 %v12439_v22  ;;  %v8886_v28 = vunpack.i.l.bf16 %v12439_v22  ;;  %v9809_v37 = vld [vmem:[#allocation2 + $0x91] sm:$0xff] }
 0x486   : > { %v4315_v46 = vsel %vm205_vm0, %v9807_v35, %v8782_v60  ;;  %v4445_v19 = vsel %vm1115_vm3, %v4413_v49, %v8882_v63  ;;  %v4412_v59 = vsel %vm205_vm0, %v9809_v37, %v8847_v2  ;;  %v8906_v55 = vunpack.i.l.bf16 %v12449_v24  ;;  %v9811_v2 = vld [vmem:[#allocation2 + $0x80] sm:$0xff]  ;;  %v9812_v49 = vld [vmem:[#allocation2 + $0x78] sm:$0xff] }
 0x487   : > { %4792 = vmatmul.mubr.bf16.gmra.mrb[104].mxu1 %v4504_v15  ;;  %v9808_v15 = vld [vmem:[#allocation2 + $0x60] sm:$0xff]  ;;  %v4347_v22 = vsel %vm1115_vm3, %v4315_v46, %v8807_v44  ;;  %v4444_v16 = vsel %vm1115_vm3, %v4412_v59, %v8881_v25  ;;  %v4477_v42 = vsel %vm1148_vm4, %v4445_v19, %v8887_v32  ;;  %v8812_v45 = vunpack.i.h.bf16 %v12386_v61 }
 0x488   : > { %4799 = vmatprep.mubr.bf16.mxu1 %v4508_v27  ;;  %v4314_v12 = vsel %vm205_vm0, %v9808_v15, %v8781_v62  ;;  %v4379_v6 = vsel %vm1148_vm4, %v4347_v22, %v8832_v18  ;;  %v4476_v14 = vsel %vm1148_vm4, %v4444_v16, %v8886_v28  ;;  %v8811_v20 = vunpack.i.l.bf16 %v12386_v61  ;;  %v12662_v34 = vpop.permute.xlu1 %9044  ;;  %v12669_v62 = vpop.permute.xlu0 %9034  ;;  %v14266_v22 = vld [vmem:[#allocation57_spill] sm:$0xff]  ;;  %v9814_v16 = vld [vmem:[#allocation2 + $0xc9] sm:$0xff] }
 0x489   : > { %v4346_v27 = vsel %vm1115_vm3, %v4314_v12, %v8806_v58  ;;  %v8837_v50 = vunpack.i.h.bf16 %v12404_v23  ;;  %v8836_v13 = vunpack.i.l.bf16 %v12404_v23  ;;  %v8862_v11 = vunpack.i.h.bf16 %v12428_v29  ;;  %v9810_v58 = vld [vmem:[#allocation2 + $0xb1] sm:$0xff] }
 0x48a   : > { %v4378_v30 = vsel %vm1148_vm4, %v4346_v27, %v8831_v21  ;;  %v8877_v47 = vunpack.i.h.bf16 %v12434_v1  ;;  %v8861_v3 = vunpack.i.l.bf16 %v12428_v29  ;;  %v8912_v60 = vunpack.i.h.bf16 %v12445_v36 }
 0x48b   : > { %v4510_v41 = vpack.c.bf16 %v4379_v6, %v4378_v30  ;;  %v8911_v61 = vunpack.i.l.bf16 %v12445_v36  ;;  %v4514_v44 = vpack.c.bf16 %v4477_v42, %v4476_v14  ;;  %v4415_v23 = vsel %vm205_vm0, %v9810_v58, %v8906_v55 }
 0x48c   : > { %v8917_v18 = vunpack.i.h.bf16 %v12447_v48  ;;  %v8916_v1 = vunpack.i.l.bf16 %v12447_v48  ;;  %v4317_v40 = vsel %vm205_vm0, %v9811_v2, %v8812_v45  ;;  %v4316_v29 = vsel %vm205_vm0, %v9812_v49, %v8811_v20  ;;  %v12684_v35 = vpop.permute.xlu1 %9054  ;;  %v12692_v27 = vpop.permute.xlu0 %9039  ;;  %v14267_v45 = vld [vmem:[#allocation38_spill] sm:$0xff] }
 0x48d   : > { %v8936_v21 = vunpack.i.l.bf16 %v12455_v26  ;;  %v4348_v63 = vsel %vm1115_vm3, %v4316_v29, %v8836_v13  ;;  %v4349_v25 = vsel %vm1115_vm3, %v4317_v40, %v8837_v50  ;;  %v4447_v28 = vsel %vm1115_vm3, %v4415_v23, %v8912_v60  ;;  %v14268_v13 = vld [vmem:[#allocation39_spill] sm:$0xff] }
 0x48e   : > { %v4381_v48 = vsel %vm1148_vm4, %v4349_v25, %v8862_v11  ;;  %v4479_v15 = vsel %vm1148_vm4, %v4447_v28, %v8917_v18  ;;  %v8842_v12 = vunpack.i.h.bf16 %v12410_v9  ;;  %v8841_v19 = vunpack.i.l.bf16 %v12410_v9  ;;  %v14269_v29 = vld [vmem:[#allocation47_spill] sm:$0xff] }
 0x48f   : > { %4800 = vmatmul.mubr.bf16.gmra.mrb[108].mxu1 %v4507_v43  ;;  %v9813_v43 = vld [vmem:[#allocation2 + $0xa9] sm:$0xff]  ;;  %v8867_v37 = vunpack.i.h.bf16 %v12419_v53  ;;  %v8866_v59 = vunpack.i.l.bf16 %v12419_v53  ;;  %v8892_v30 = vunpack.i.h.bf16 %v14266_v22  ;;  %v8907_v6 = vunpack.i.h.bf16 %v12449_v24 }
 0x490   : > { %4807 = vmatprep.mubr.bf16.mxu1 %v4511_v10  ;;  %v4414_v36 = vsel %vm205_vm0, %v9813_v43, %v8877_v47  ;;  %v4380_v10 = vsel %vm1148_vm4, %v4348_v63, %v8861_v3  ;;  %v4417_v55 = vsel %vm205_vm0, %v9814_v16, %v8936_v21  ;;  %v8891_v42 = vunpack.i.l.bf16 %v14266_v22  ;;  %v9815_v47 = vld [vmem:[#allocation2 + $0x98] sm:$0xff]  ;;  %v9816_v24 = vld [vmem:[#allocation2 + $0x90] sm:$0xff]  ;;  %v12706_v58 = vpop.permute.xlu1 %9059 }
 0x491   : > { %v12644_v56 = vpop.f32.mrb[104].mxu0  ;;  %v4446_v32 = vsel %vm1115_vm3, %v4414_v36, %v8911_v61  ;;  %v4513_v14 = vpack.c.bf16 %v4381_v48, %v4380_v10  ;;  %v8942_v20 = vunpack.i.h.bf16 %v14267_v45  ;;  %v8941_v9 = vunpack.i.l.bf16 %v14267_v45  ;;  %v9817_v61 = vld [vmem:[#allocation2 + $0xc1] sm:$0xff]  ;;  %v14270_v63 = vld [vmem:[#allocation56_spill] sm:$0xff]  ;;  %v14271_v48 = vld [vmem:[#allocation55_spill] sm:$0xff] }
 0x492   : > { %v12650_v0 = vpop.f32.mrb[105].mxu0  ;;  %v4478_v46 = vsel %vm1148_vm4, %v4446_v32, %v8916_v1  ;;  %v8947_v11 = vunpack.i.h.bf16 %v14268_v13  ;;  %v8946_v53 = vunpack.i.l.bf16 %v14268_v13  ;;  %v4318_v3 = vsel %vm205_vm0, %v9816_v24, %v8841_v19  ;;  %v12710_v1 = vpop.permute.xlu0 %9049  ;;  %v9820_v13 = vld [vmem:[#allocation2 + $0xa8] sm:$0xff] }
 0x493   : > { %v12657_v7 = vpop.f32.mrb[106].mxu0  ;;  %v4517_v50 = vpack.c.bf16 %v4479_v15, %v4478_v46  ;;  %v4449_v60 = vsel %vm1115_vm3, %v4417_v55, %v8942_v20  ;;  %v4350_v23 = vsel %vm1115_vm3, %v4318_v3, %v8866_v59  ;;  %v8966_v43 = vunpack.i.l.bf16 %v14269_v29  ;;  %v14272_v46 = vld [vmem:[#allocation33_spill] sm:$0xff]  ;;  %v14273_v59 = vld [vmem:[#allocation34_spill] sm:$0xff] }
 0x494   : > { %v12664_v52 = vpop.f32.mrb[107].mxu0  ;;  %v4382_v2 = vsel %vm1148_vm4, %v4350_v23, %v8891_v42  ;;  %v4481_v21 = vsel %vm1148_vm4, %v4449_v60, %v8947_v11  ;;  %v8872_v25 = vunpack.i.h.bf16 %v14270_v63  ;;  %v8871_v10 = vunpack.i.l.bf16 %v14270_v63  ;;  %v9818_v55 = vld [vmem:[#allocation2 + $0xe1] sm:$0xff] }
 0x495   : > { %v8897_v32 = vunpack.i.h.bf16 %v14271_v48  ;;  %v8896_v28 = vunpack.i.l.bf16 %v14271_v48  ;;  %v8922_v15 = vunpack.i.h.bf16 %v14272_v46  ;;  %v8972_v22 = vunpack.i.h.bf16 %v14273_v59  ;;  %v14274_v42 = vld [vmem:[#allocation61_spill] sm:$0xff] }
 0x496   : > { %v8977_v45 = vunpack.i.h.bf16 %v14274_v42  ;;  %v8976_v20 = vunpack.i.l.bf16 %v14274_v42  ;;  %v4320_v11 = vsel %vm205_vm0, %v9820_v13, %v8871_v10 }
 0x497   : > { %4808 = vmatmul.mubr.bf16.gmra.mrb[112].mxu1 %v4510_v41  ;;  %v4319_v41 = vsel %vm205_vm0, %v9815_v47, %v8842_v12  ;;  %v8937_v12 = vunpack.i.h.bf16 %v12455_v26  ;;  %v9819_v26 = vld [vmem:[#allocation2 + $0xb0] sm:$0xff]  ;;  %v4352_v3 = vsel %vm1115_vm3, %v4320_v11, %v8896_v28 }
 0x498   : > { %4815 = vmatprep.mubr.bf16.mxu1 %v4514_v44  ;;  %v4416_v44 = vsel %vm205_vm0, %v9817_v61, %v8907_v6  ;;  %v4351_v18 = vsel %vm1115_vm3, %v4319_v41, %v8867_v37  ;;  %v8921_v37 = vunpack.i.l.bf16 %v14272_v46  ;;  %v12727_v6 = vpop.permute.xlu0 %9084  ;;  %v14275_v41 = vld [vmem:[#allocation45_spill] sm:$0xff]  ;;  %v14278_v46 = vld [vmem:[#allocation43_spill] sm:$0xff] }
 0x499   : > { %v4383_v40 = vsel %vm1148_vm4, %v4351_v18, %v8892_v30  ;;  %v4448_v49 = vsel %vm1115_vm3, %v4416_v44, %v8941_v9  ;;  %v8971_v30 = vunpack.i.l.bf16 %v14273_v59  ;;  %v12732_v9 = vpop.permute.xlu1 %9064  ;;  %v8996_v24 = vunpack.i.l.bf16 %v14275_v41 }
 0x49a   : > { %v4480_v36 = vsel %vm1148_vm4, %v4448_v49, %v8946_v53  ;;  %v4516_v19 = vpack.c.bf16 %v4383_v40, %v4382_v2  ;;  %v9821_v53 = vld [vmem:[#allocation2 + $0xd9] sm:$0xff]  ;;  %v4384_v44 = vsel %vm1148_vm4, %v4352_v3, %v8921_v37 }
 0x49b   : > { %v4520_v16 = vpack.c.bf16 %v4481_v21, %v4480_v36  ;;  %v4418_v47 = vsel %vm205_vm0, %v9821_v53, %v8937_v12  ;;  %v14276_v36 = vld [vmem:[#allocation58_spill] sm:$0xff]  ;;  %v8967_v12 = vunpack.i.h.bf16 %v14269_v29  ;;  %v9825_v53 = vld [vmem:[#allocation2 + $0xf1] sm:$0xff] }
 0x49c   : > { %v4450_v18 = vsel %vm1115_vm3, %v4418_v47, %v8971_v30  ;;  %v8902_v21 = vunpack.i.h.bf16 %v14276_v36  ;;  %v8901_v63 = vunpack.i.l.bf16 %v14276_v36  ;;  %v9823_v29 = vld [vmem:[#allocation2 + $0xc8] sm:$0xff] }
 0x49d   : > { %v4482_v49 = vsel %vm1148_vm4, %v4450_v18, %v8976_v20  ;;  %v12761_v59 = vpop.permute.xlu1 %9069  ;;  %v9006_v20 = vunpack.i.l.bf16 %v12592_v51  ;;  %v4420_v47 = vsel %vm205_vm0, %v9825_v53, %v8967_v12 }
 0x49f   : > { %4816 = vmatmul.mubr.bf16.gmra.mrb[116].mxu1 %v4513_v14  ;;  %v4419_v14 = vsel %vm205_vm0, %v9818_v55, %v8966_v43  ;;  %v9002_v55 = vunpack.i.h.bf16 %v12573_v54 }
 0x4a0   : > { %4823 = vmatprep.mubr.bf16.mxu1 %v4517_v50  ;;  %v4321_v50 = vsel %vm205_vm0, %v9819_v26, %v8872_v25  ;;  %v4451_v2 = vsel %vm1115_vm3, %v4419_v14, %v8972_v22  ;;  %v14277_v25 = vld [vmem:[#allocation59_spill] sm:$0xff]  ;;  %v9001_v14 = vunpack.i.l.bf16 %v12573_v54  ;;  %v4323_v26 = vsel %vm205_vm0, %v9823_v29, %v8902_v21 }
 0x4a1   : > { %v4353_v60 = vsel %vm1115_vm3, %v4321_v50, %v8897_v32  ;;  %v4483_v43 = vsel %vm1148_vm4, %v4451_v2, %v8977_v45  ;;  %v8927_v10 = vunpack.i.h.bf16 %v14277_v25  ;;  %v8926_v48 = vunpack.i.l.bf16 %v14277_v25  ;;  %v12754_v32 = vpop.permute.xlu0 %9089  ;;  %v9824_v50 = vld [vmem:[#allocation2 + $0xc0] sm:$0xff]  ;;  %v12782_v18 = vpop.permute.xlu1 %9074 }
 0x4a2   : > { %v4385_v23 = vsel %vm1148_vm4, %v4353_v60, %v8922_v15  ;;  %v8952_v15 = vunpack.i.h.bf16 %v14278_v46  ;;  %v4523_v42 = vpack.c.bf16 %v4483_v43, %v4482_v49  ;;  %v9007_v45 = vunpack.i.h.bf16 %v12592_v51  ;;  %v14279_v43 = vld [vmem:[#allocation51_spill] sm:$0xff] }
 0x4a3   : > { %v4519_v30 = vpack.c.bf16 %v4385_v23, %v4384_v44  ;;  %v4322_v13 = vsel %vm205_vm0, %v9824_v50, %v8901_v63  ;;  %v4452_v44 = vsel %vm1115_vm3, %v4420_v47, %v9001_v14  ;;  %v9026_v23 = vunpack.i.l.bf16 %v12634_v57  ;;  %v14280_v63 = vld [vmem:[#allocation37_spill] sm:$0xff] }
 0x4a4   : > { %v4354_v54 = vsel %vm1115_vm3, %v4322_v13, %v8926_v48  ;;  %v4484_v2 = vsel %vm1148_vm4, %v4452_v44, %v9006_v20  ;;  %v8932_v36 = vunpack.i.h.bf16 %v14279_v43  ;;  %v8931_v21 = vunpack.i.l.bf16 %v14279_v43  ;;  %v14281_v48 = vld [vmem:[#allocation54_spill] sm:$0xff]  ;;  %v9827_v20 = vld [vmem:[#allocation2 + $0xe0] sm:$0xff]  ;;  %v14282_v44 = vld [vmem:[#allocation60_spill] sm:$0xff] }
 0x4a5   : > { %v12776_v3 = vpop.permute.xlu0 %9094  ;;  %v8957_v25 = vunpack.i.h.bf16 %v14280_v63  ;;  %v9829_v13 = vld [vmem:[#allocation2 + $0x109] sm:$0xff]  ;;  %v12804_v53 = vpop.permute.xlu1 %9079 }
 0x4a6   : > { %v4325_v29 = vsel %vm205_vm0, %v9827_v20, %v8932_v36  ;;  %v8987_v36 = vunpack.i.h.bf16 %v12520_v8 }
 0x4a7   : > { %4824 = vmatmul.mubr.bf16.gmra.mrb[120].mxu1 %v4516_v19  ;;  %v9822_v19 = vld [vmem:[#allocation2 + $0xf9] sm:$0xff] }
 0x4a8   : > { %4831 = vmatprep.mubr.bf16.mxu1 %v4520_v16  ;;  %v4421_v37 = vsel %vm205_vm0, %v9822_v19, %v8996_v24  ;;  %v8951_v16 = vunpack.i.l.bf16 %v14278_v46  ;;  %v4355_v24 = vsel %vm1115_vm3, %v4323_v26, %v8927_v10  ;;  %v8956_v10 = vunpack.i.l.bf16 %v14280_v63 }
 0x4a9   : > { %v12740_v61 = vpop.f32.mrb[108].mxu0  ;;  %v4453_v11 = vsel %vm1115_vm3, %v4421_v37, %v9002_v55  ;;  %v4387_v60 = vsel %vm1148_vm4, %v4355_v24, %v8952_v15  ;;  %v8982_v46 = vunpack.i.h.bf16 %v14281_v48  ;;  %v8997_v15 = vunpack.i.h.bf16 %v14275_v41  ;;  %v9826_v55 = vld [vmem:[#allocation2 + $0x111] sm:$0xff]  ;;  %v12800_v50 = vpop.permute.xlu0 %9114 }
 0x4aa   : > { %v12746_v40 = vpop.f32.mrb[109].mxu0  ;;  %v4386_v51 = vsel %vm1148_vm4, %v4354_v54, %v8951_v16  ;;  %v4485_v49 = vsel %vm1148_vm4, %v4453_v11, %v9007_v45  ;;  %v8981_v19 = vunpack.i.l.bf16 %v14281_v48  ;;  %v9032_v37 = vunpack.i.h.bf16 %v12638_v17  ;;  %v9828_v41 = vld [vmem:[#allocation2 + $0xd8] sm:$0xff] }
 0x4ab   : > { %v12756_v28 = vpop.f32.mrb[110].mxu0  ;;  %v4522_v12 = vpack.c.bf16 %v4387_v60, %v4386_v51  ;;  %v4526_v16 = vpack.c.bf16 %v4485_v49, %v4484_v2  ;;  %v4423_v14 = vsel %vm205_vm0, %v9826_v55, %v9026_v23  ;;  %v9036_v45 = vunpack.i.l.bf16 %v12669_v62 }
 0x4ac   : > { %v12763_v22 = vpop.f32.mrb[111].mxu0  ;;  %v4324_v26 = vsel %vm205_vm0, %v9828_v41, %v8931_v21  ;;  %v9051_v11 = vunpack.i.l.bf16 %v12710_v1  ;;  %v4455_v60 = vsel %vm1115_vm3, %v4423_v14, %v9032_v37  ;;  %v8962_v23 = vunpack.i.h.bf16 %v14282_v44  ;;  %v9831_v37 = vld [vmem:[#allocation2 + $0xf8] sm:$0xff]  ;;  %v12827_v14 = vpop.permute.xlu1 %9099 }
 0x4ad   : > { %v4356_v47 = vsel %vm1115_vm3, %v4324_v26, %v8956_v10  ;;  %v8961_v2 = vunpack.i.l.bf16 %v14282_v44  ;;  %v8986_v21 = vunpack.i.l.bf16 %v12520_v8  ;;  %v9012_v63 = vunpack.i.h.bf16 %v12612_v33  ;;  %v9830_v10 = vld [vmem:[#allocation2 + $0x129] sm:$0xff] }
 0x4ae   : > { %v4388_v54 = vsel %vm1148_vm4, %v4356_v47, %v8981_v19  ;;  %v4425_v48 = vsel %vm205_vm0, %v9830_v10, %v9051_v11  ;;  %v9027_v8 = vunpack.i.h.bf16 %v12634_v57  ;;  %v9061_v41 = vunpack.i.l.bf16 %v12706_v58  ;;  %v14283_v11 = vld [vmem:[#allocation46_spill] sm:$0xff] }
 0x4af   : > { %4832 = vmatmul.mubr.bf16.gmra.mrb[124].mxu1 %v4519_v30  ;;  %v9031_v30 = vunpack.i.l.bf16 %v12638_v17  ;;  %v4422_v17 = vsel %vm205_vm0, %v9829_v13, %v8997_v15  ;;  %v9057_v15 = vunpack.i.h.bf16 %v12684_v35  ;;  %v8992_v13 = vunpack.i.h.bf16 %v12544_v38 }
 0x4b0   : > { %4839 = vmatprep.mubr.bf16.mxu1 %v4523_v42  ;;  %v9037_v42 = vunpack.i.h.bf16 %v12669_v62  ;;  %v4357_v62 = vsel %vm1115_vm3, %v4325_v29, %v8957_v25  ;;  %v9011_v25 = vunpack.i.l.bf16 %v12612_v33  ;;  %v9056_v33 = vunpack.i.l.bf16 %v12684_v35 }
 0x4b1   : > { %v4389_v24 = vsel %vm1148_vm4, %v4357_v62, %v8982_v46  ;;  %v4454_v51 = vsel %vm1115_vm3, %v4422_v17, %v9031_v30  ;;  %v4327_v30 = vsel %vm205_vm0, %v9831_v37, %v8962_v23  ;;  %v4457_v20 = vsel %vm1115_vm3, %v4425_v48, %v9057_v15  ;;  %v9833_v62 = vld [vmem:[#allocation2 + $0x121] sm:$0xff]  ;;  %v9834_v15 = vld [vmem:[#allocation2 + $0x110] sm:$0xff] }
 0x4b2   : > { %v4486_v49 = vsel %vm1148_vm4, %v4454_v51, %v9036_v45  ;;  %v4487_v43 = vsel %vm1148_vm4, %v4455_v60, %v9037_v42  ;;  %v4525_v46 = vpack.c.bf16 %v4389_v24, %v4388_v54  ;;  %v4359_v45 = vsel %vm1115_vm3, %v4327_v30, %v8987_v36  ;;  %v9835_v37 = vld [vmem:[#allocation2 + $0x108] sm:$0xff] }
 0x4b3   : > { %v4529_v19 = vpack.c.bf16 %v4487_v43, %v4486_v49  ;;  %v9062_v29 = vunpack.i.h.bf16 %v12706_v58  ;;  %v4391_v57 = vsel %vm1148_vm4, %v4359_v45, %v9012_v63  ;;  %v8991_v35 = vunpack.i.l.bf16 %v12544_v38 }
 0x4b4   : > { %v9017_v47 = vunpack.i.h.bf16 %v14283_v11  ;;  %v4424_v54 = vsel %vm205_vm0, %v9833_v62, %v9027_v8  ;;  %v9016_v58 = vunpack.i.l.bf16 %v14283_v11  ;;  %v9042_v60 = vunpack.i.h.bf16 %v12692_v27  ;;  %v9838_v62 = vld [vmem:[#allocation2 + $0x128] sm:$0xff] }
 0x4b5   : > { %v4489_v51 = vsel %vm1148_vm4, %v4457_v20, %v9062_v29  ;;  %v4456_v38 = vsel %vm1115_vm3, %v4424_v54, %v9056_v33  ;;  %v9041_v49 = vunpack.i.l.bf16 %v12692_v27  ;;  %v9052_v43 = vunpack.i.h.bf16 %v12710_v1 }
 0x4b6   : > { %v9066_v36 = vunpack.i.l.bf16 %v12732_v9  ;;  %v9087_v10 = vunpack.i.h.bf16 %v12727_v6  ;;  %v9086_v48 = vunpack.i.l.bf16 %v12727_v6  ;;  %v4328_v27 = vsel %vm205_vm0, %v9835_v37, %v8991_v35  ;;  %v9836_v6 = vld [vmem:[#allocation2 + $0x139] sm:$0xff] }
 0x4b7   : > { %4840 = vmatmul.mubr.bf16.gmra.mrb[128].mxu1 %v4522_v12  ;;  %v12822_v12 = vpop.permute.xlu0 %9119  ;;  %v9092_v1 = vunpack.i.h.bf16 %v12754_v32  ;;  %v9091_v30 = vunpack.i.l.bf16 %v12754_v32  ;;  %v4426_v33 = vsel %vm205_vm0, %v9836_v6, %v9052_v43  ;;  %v9117_v43 = vunpack.i.h.bf16 %v12800_v50 }
 0x4b8   : > { %4847 = vmatprep.mubr.bf16.mxu1 %v4526_v16  ;;  %v9832_v16 = vld [vmem:[#allocation2 + $0xf0] sm:$0xff]  ;;  %v4458_v32 = vsel %vm1115_vm3, %v4426_v33, %v9086_v48  ;;  %v9077_v33 = vunpack.i.h.bf16 %v12782_v18 }
 0x4b9   : > { %v4326_v55 = vsel %vm205_vm0, %v9832_v16, %v8961_v2  ;;  %v9067_v16 = vunpack.i.h.bf16 %v12732_v9  ;;  %v4490_v35 = vsel %vm1148_vm4, %v4458_v32, %v9091_v30  ;;  %v9102_v32 = vunpack.i.h.bf16 %v12827_v14 }
 0x4ba   : > { %v4358_v42 = vsel %vm1115_vm3, %v4326_v55, %v8986_v21  ;;  %v12856_v21 = vpop.permute.xlu1 %9104  ;;  %v4360_v55 = vsel %vm1115_vm3, %v4328_v27, %v9016_v58  ;;  %v9072_v58 = vunpack.i.h.bf16 %v12761_v59  ;;  %v9841_v27 = vld [vmem:[#allocation2 + $0x151] sm:$0xff] }
 0x4bb   : > { %v4390_v26 = vsel %vm1148_vm4, %v4358_v42, %v9011_v25  ;;  %v12848_v44 = vpop.permute.xlu0 %9124  ;;  %v4488_v25 = vsel %vm1148_vm4, %v4456_v38, %v9061_v41  ;;  %v9837_v42 = vld [vmem:[#allocation2 + $0x141] sm:$0xff]  ;;  %v4392_v20 = vsel %vm1148_vm4, %v4360_v55, %v9041_v49  ;;  %v4331_v54 = vsel %vm205_vm0, %v9838_v62, %v9067_v16 }
 0x4bc   : > { %v4528_v2 = vpack.c.bf16 %v4391_v57, %v4390_v26  ;;  %v4427_v45 = vsel %vm205_vm0, %v9837_v42, %v9066_v36  ;;  %v14284_v26 = vld [vmem:[#allocation48_spill] sm:$0xff]  ;;  %v9096_v38 = vunpack.i.l.bf16 %v12776_v3  ;;  %v9047_v49 = vunpack.i.h.bf16 %v12662_v34 }
 0x4bd   : > { %v4459_v9 = vsel %vm1115_vm3, %v4427_v45, %v9087_v10  ;;  %v9021_v57 = vunpack.i.l.bf16 %v14284_v26  ;;  %v9116_v36 = vunpack.i.l.bf16 %v12800_v50  ;;  %v9839_v10 = vld [vmem:[#allocation2 + $0x120] sm:$0xff]  ;;  %v9076_v42 = vunpack.i.l.bf16 %v12782_v18 }
 0x4be   : > { %v4491_v11 = vsel %vm1148_vm4, %v4459_v9, %v9092_v1  ;;  %v4428_v50 = vsel %vm205_vm0, %v9841_v27, %v9096_v38  ;;  %v9082_v45 = vunpack.i.h.bf16 %v12804_v53  ;;  %v9127_v9 = vunpack.i.h.bf16 %v12848_v44  ;;  %v9845_v38 = vld [vmem:[#allocation2 + $0x169] sm:$0xff] }
 0x4bf   : > { %4848 = vmatmul.mubr.bf16.gmra.mrb[132].mxu1 %v4525_v46  ;;  %v4532_v46 = vpack.c.bf16 %v4489_v51, %v4488_v25  ;;  %v12874_v41 = vpop.permute.xlu0 %9144  ;;  %v4535_v25 = vpack.c.bf16 %v4491_v11, %v4490_v35  ;;  %v4330_v48 = vsel %vm205_vm0, %v9839_v10, %v9021_v57  ;;  %v9126_v26 = vunpack.i.l.bf16 %v12848_v44  ;;  %v9844_v44 = vld [vmem:[#allocation2 + $0x171] sm:$0xff] }
 0x4c0   : > { %4855 = vmatprep.mubr.bf16.mxu1 %v4529_v19  ;;  %v4329_v19 = vsel %vm205_vm0, %v9834_v15, %v8992_v13  ;;  %v12879_v13 = vpop.permute.xlu1 %9109  ;;  %v9121_v15 = vunpack.i.l.bf16 %v12822_v12  ;;  %v9101_v57 = vunpack.i.l.bf16 %v12827_v14  ;;  %v9147_v35 = vunpack.i.h.bf16 %v12874_v41 }
 0x4c1   : > { %v12838_v17 = vpop.f32.mrb[112].mxu0  ;;  %v4361_v8 = vsel %vm1115_vm3, %v4329_v19, %v9017_v47  ;;  %v9046_v47 = vunpack.i.l.bf16 %v12662_v34  ;;  %v9840_v34 = vld [vmem:[#allocation2 + $0x159] sm:$0xff]  ;;  %v9146_v11 = vunpack.i.l.bf16 %v12874_v41  ;;  %v4431_v14 = vsel %vm205_vm0, %v9844_v44, %v9127_v9 }
 0x4c2   : > { %v12843_v24 = vpop.f32.mrb[113].mxu0  ;;  %v4393_v29 = vsel %vm1148_vm4, %v4361_v8, %v9042_v60  ;;  %v9071_v60 = vunpack.i.l.bf16 %v12761_v59  ;;  %v4430_v41 = vsel %vm205_vm0, %v9845_v38, %v9126_v26  ;;  %v9106_v27 = vunpack.i.l.bf16 %v12856_v21  ;;  %v9847_v26 = vld [vmem:[#allocation2 + $0x181] sm:$0xff] }
 0x4c3   : > { %v12850_v23 = vpop.f32.mrb[114].mxu0  ;;  %v4531_v51 = vpack.c.bf16 %v4393_v29, %v4392_v20  ;;  %v9150_v59 = vpop.permute.xlu0 %9149  ;;  %v4362_v19 = vsel %vm1115_vm3, %v4330_v48, %v9046_v47  ;;  %v9081_v29 = vunpack.i.l.bf16 %v12804_v53  ;;  %v9842_v53 = vld [vmem:[#allocation2 + $0x140] sm:$0xff]  ;;  %v4462_v48 = vsel %vm1115_vm3, %v4430_v41, %v9146_v11 }
 0x4c4   : > { %v12858_v63 = vpop.f32.mrb[115].mxu0  ;;  %v12899_v1 = vpop.permute.xlu1 %9129  ;;  %v4394_v30 = vsel %vm1148_vm4, %v4362_v19, %v9071_v60  ;;  %v9152_v18 = vunpack.i.h.bf16 %v9150_v59  ;;  %v9843_v60 = vld [vmem:[#allocation2 + $0x138] sm:$0xff] }
 0x4c7   : > { %4856 = vmatmul.mubr.bf16.gmra.mrb[136].mxu1 %v4528_v2  ;;  %v9097_v2 = vunpack.i.h.bf16 %v12776_v3  ;;  %v4363_v3 = vsel %vm1115_vm3, %v4331_v54, %v9047_v49  ;;  %v9155_v47 = vpop.permute.xlu0 %9154  ;;  %v9151_v54 = vunpack.i.l.bf16 %v9150_v59 }
 0x4c8   : > { %4863 = vmatprep.mubr.bf16.mxu1 %v4532_v46  ;;  %v9122_v46 = vunpack.i.h.bf16 %v12822_v12  ;;  %v4395_v16 = vsel %vm1148_vm4, %v4363_v3, %v9072_v58  ;;  %v4460_v12 = vsel %vm1115_vm3, %v4428_v50, %v9116_v36  ;;  %v4333_v58 = vsel %vm205_vm0, %v9842_v53, %v9077_v33 }
 0x4c9   : > { %v4429_v37 = vsel %vm205_vm0, %v9840_v34, %v9097_v2  ;;  %v4492_v8 = vsel %vm1148_vm4, %v4460_v12, %v9121_v15  ;;  %v4534_v20 = vpack.c.bf16 %v4395_v16, %v4394_v30  ;;  %v4332_v2 = vsel %vm205_vm0, %v9843_v60, %v9076_v42  ;;  %v5165_v16 = vld [vmem:[#allocation2 + $0x1] sm:$0xff]  ;;  %v5166_v12 = vld [vmem:[#allocation2 + $0x9] sm:$0xff] }
 0x4ca   : > { %v4461_v55 = vsel %vm1115_vm3, %v4429_v37, %v9117_v43  ;;  %v4364_v49 = vsel %vm1115_vm3, %v4332_v2, %v9081_v29  ;;  %v4365_v43 = vsel %vm1115_vm3, %v4333_v58, %v9082_v45  ;;  %v9157_v15 = vunpack.i.h.bf16 %v9155_v47  ;;  %v5201_v58 = vld [vmem:[#allocation2 + $0x2] sm:$0xff]  ;;  %v5202_v60 = vld [vmem:[#allocation2 + $0xa] sm:$0xff] }
 0x4cb   : > { %v4493_v6 = vsel %vm1148_vm4, %v4461_v55, %v9122_v46  ;;  %v4397_v10 = vsel %vm1148_vm4, %v4365_v43, %v9102_v32  ;;  %v4463_v46 = vsel %vm1115_vm3, %v4431_v14, %v9147_v35  ;;  %v9156_v59 = vunpack.i.l.bf16 %v9155_v47  ;;  %v9160_v50 = vpop.permute.xlu0 %9159 }
 0x4cc   : > { %v4538_v62 = vpack.c.bf16 %v4493_v6, %v4492_v8  ;;  %v4494_v3 = vsel %vm1148_vm4, %v4462_v48, %v9151_v54  ;;  %v4495_v34 = vsel %vm1148_vm4, %v4463_v46, %v9152_v18  ;;  %v9107_v37 = vunpack.i.h.bf16 %v12856_v21  ;;  %v9846_v21 = vld [vmem:[#allocation2 + $0x189] sm:$0xff]  ;;  %v9848_v18 = vld [vmem:[#allocation2 + $0x158] sm:$0xff] }
 0x4cd   : > { %v9112_v55 = vunpack.i.h.bf16 %v12879_v13  ;;  %v9111_v8 = vunpack.i.l.bf16 %v12879_v13  ;;  %v9168_v45 = vpack.i.bf16 %v5166_v12, %v5165_v16  ;;  %v9131_v29 = vunpack.i.l.bf16 %v12899_v1  ;;  %v14285_v13 = vld [vmem:[#allocation53_spill] sm:$0xff]  ;;  %v9850_v16 = vld [vmem:[#allocation2 + $0x170] sm:$0xff] }
 0x4ce   : > { %v4541_v32 = vpack.c.bf16 %v4495_v34, %v4494_v3  ;;  %v4433_v9 = vsel %vm205_vm0, %v9846_v21, %v9157_v15  ;;  %v9162_v35 = vunpack.i.h.bf16 %v9160_v50  ;;  %v9161_v11 = vunpack.i.l.bf16 %v9160_v50  ;;  %v9702_v21 = vld [vmem:[%s14012_s1 + $0x230] sm:$0xff]  }
 0x4cf   : > { %4864 = vmatmul.mubr.bf16.gmra.mrb[140].mxu1 %v4531_v51  ;;  %v12917_v51 = vpop.permute.xlu1 %9134  ;;  %9169 = vrot.lane.b32.xlu1 %v9168_v45, %s9885_s19  ;;  %v8702_v47 = vunpack.i.h.bf16 %v14285_v13  ;;  %v4335_v54 = vsel %vm205_vm0, %v9848_v18, %v9107_v37  ;;  %v9173_v14 = vpack.i.bf16 %v5202_v60, %v5201_v58  ;;  %v9703_v18 = vld [vmem:[%s14012_s1 + $0x238] sm:$0xff]   ;;  %v9705_v58 = vld [vmem:[%s14012_s1 + $0x1b0] sm:$0xff]  }
 0x4d0   : > { %4871 = vmatprep.mubr.bf16.mxu1 %v4535_v25  ;;  %v4396_v25 = vsel %vm1148_vm4, %v4364_v49, %v9101_v57  ;;  %v4432_v57 = vsel %vm205_vm0, %v9847_v26, %v9156_v59  ;;  %v4367_v44 = vsel %vm1115_vm3, %v4335_v54, %v9112_v55  ;;  %v9137_v46 = vunpack.i.h.bf16 %v12917_v51  ;;  %v9851_v55 = vld [vmem:[#allocation2 + $0x168] sm:$0xff]  ;;  %7676 = vmatprep.subr.bf16.mxu1 %v9702_v21  ;;  %v9706_v60 = vld [vmem:[%s14012_s1 + $0x1f8] sm:$0xff]  }
 0x4d1   : > { %v4537_v42 = vpack.c.bf16 %v4397_v10, %v4396_v25  ;;  %v4465_v43 = vsel %vm1115_vm3, %v4433_v9, %v8702_v47  ;;  %v9136_v15 = vunpack.i.l.bf16 %v12917_v51  ;;  %v9852_v26 = vld [vmem:[#allocation2 + $0x182] sm:$0xff] }
 0x4d2   : > { %v4497_v48 = vsel %vm1148_vm4, %v4465_v43, %v9162_v35  ;;  %v4337_v12 = vsel %vm205_vm0, %v9850_v16, %v9137_v46  ;;  %v3625_v47 = vld [vmem:[#allocation2 + $0x1a2] sm:$0xff]  ;;  %v14287_v46 = vld [vmem:[#allocation40_spill] sm:$0xff] }
 0x4d3   : > { %v9140_v6 = vpop.permute.xlu1 %9139  ;;  %9174 = vrot.lane.b32.xlu1 %v9173_v14, %s9886_s20  ;;  %v14286_v54 = vld [vmem:[#allocation42_spill] sm:$0xff]  ;;  %v9854_v14 = vld [vmem:[%s14013_s2] sm:$0xf] }
 0x4d4   : > { %v9142_v59 = vunpack.i.h.bf16 %v9140_v6  ;;  %v9141_v3 = vunpack.i.l.bf16 %v9140_v6  ;;  %v9709_v16 = vld [vmem:[%s14012_s1 + $0x1c0] sm:$0xff]  }
 0x4d6   : > { %v4369_v45 = vsel %vm1115_vm3, %v4337_v12, %v9142_v59  ;;  %v9710_v12 = vld [vmem:[%s14012_s1 + $0x208] sm:$0xff]  }
 0x4d7   : > { %4872 = vmatmul.mubr.bf16.gmra.mrb[144].mxu1 %v4534_v20  ;;  %v9132_v20 = vunpack.i.h.bf16 %v12899_v1  ;;  %v9849_v1 = vld [vmem:[#allocation2 + $0x150] sm:$0xff]  ;;  %v9165_v25 = vpop.permute.xlu1 %9164 }
 0x4d8   : > { %4879 = vmatprep.mubr.bf16.mxu1 %v4538_v62  ;;  %v8701_v62 = vunpack.i.l.bf16 %v14285_v13  ;;  %v4334_v53 = vsel %vm205_vm0, %v9849_v1, %v9106_v27  ;;  %v9167_v37 = vunpack.i.h.bf16 %v9165_v25  ;;  %v9166_v27 = vunpack.i.l.bf16 %v9165_v25  ;;  %v3624_v13 = vld [vmem:[#allocation2 + $0x19a] sm:$0xff] }
 0x4d9   : > { %v12925_v36 = vpop.f32.mrb[116].mxu0  ;;  %v4366_v2 = vsel %vm1115_vm3, %v4334_v53, %v9111_v8  ;;  %v4399_v41 = vsel %vm1148_vm4, %v4367_v44, %v9132_v20  ;;  %v4336_v8 = vsel %vm205_vm0, %v9851_v55, %v9136_v15  ;;  %v4585_v1 = vsub.s32 2, %v14286_v54  ;;  %v9704_v53 = vld [vmem:[%s14012_s1 + $0x1f0] sm:$0xff]  }
 0x4da   : > { %v12931_v19 = vpop.f32.mrb[117].mxu0  ;;  %v4398_v38 = vsel %vm1148_vm4, %v4366_v2, %v9131_v29  ;;  %v4464_v49 = vsel %vm1115_vm3, %v4432_v57, %v8701_v62  ;;  %v4401_v6 = vsel %vm1148_vm4, %v4369_v45, %v9167_v37  ;;  %v9853_v57 = vld [vmem:[#allocation2 + $0x18a] sm:$0xff]  ;;  %v4545_v62 = vpack.c.bf16 %v3625_v47, %v3624_v13  ;;  %7438 = vmatprep.subr.bf16.mxu0 %v9704_v53  ;;  %v9707_v2 = vld [vmem:[%s14012_s1 + $0x1b8] sm:$0xff]  }
 0x4db   : > { %v12937_v30 = vpop.f32.mrb[118].mxu0  ;;  %v4496_v10 = vsel %vm1148_vm4, %v4464_v49, %v9161_v11  ;;  %v4540_v34 = vpack.c.bf16 %v4399_v41, %v4398_v38  ;;  %v4542_v35 = vpack.c.bf16 %v9853_v57, %v9852_v26  ;;  %7439 = vmatpush3.bf16.msra.mxu0 %v9705_v58  ;;  %v13001_v38 = vrot.slane %v9854_v14, %v4585_v1  ;;  %v9712_v26 = vld [vmem:[%s14012_s1 + $0x210] sm:$0xff]   ;;  %v14289_v57 = vld [vmem:[#allocation62_spill] sm:$0xff]  ;;  %v9714_v53 = vld [vmem:[%s14012_s1 + $0x218] sm:$0xff]  }
 0x4dc   : > { %v12941_v33 = vpop.f32.mrb[119].mxu0  ;;  %v4544_v50 = vpack.c.bf16 %v4497_v48, %v4496_v10  ;;  %7440 = vmatprep.subr.bf16.mxu0 %v9706_v60  ;;  %v9713_v47 = vld [vmem:[%s14012_s1 + $0x1d0] sm:$0xff]  }
 0x4df   : > { %4880 = vmatmul.mubr.bf16.gmra.mrb[148].mxu1 %v4537_v42  ;;  %v4368_v42 = vsel %vm1115_vm3, %v4336_v8, %v9141_v3  ;;  %7441 = vmatpush3.bf16.msra.mxu0 %v9707_v2 }
 0x4e0   : > { %4887 = vmatprep.mubr.bf16.mxu1 %v4541_v32  ;;  %v4400_v51 = vsel %vm1148_vm4, %v4368_v42, %v9166_v27 }
 0x4e1   : > { %v4543_v32 = vpack.c.bf16 %v4401_v6, %v4400_v51  ;;  %v9711_v6 = vld [vmem:[%s14012_s1 + $0x1c8] sm:$0xff]  }
 0x4e7   : > { %4888 = vmatmul.mubr.bf16.gmra.mrb[152].mxu1 %v4540_v34  ;;  %v14288_v34 = vld [vmem:[#allocation44_spill] sm:$0xff] }
 0x4e8   : > { %4895 = vmatprep.mubr.bf16.mxu1 %v4544_v50  ;;  %v9708_v50 = vld [vmem:[%s14012_s1 + $0x200] sm:$0xff]  }
 0x4e9   : > { %7442 = vmatprep.subr.bf16.mxu0 %v9708_v50 }
 0x4ea   : > { %7443 = vmatpush3.bf16.msra.mxu0 %v9709_v16  ;;  %v9717_v16 = vld [vmem:[%s14012_s1 + $0x1e0] sm:$0xff]  }
 0x4eb   : > { %7444 = vmatprep.subr.bf16.mxu0 %v9710_v12 }
 0x4ec   : > { %v12969_v20 = vpop.f32.mrb[120].mxu0 }
 0x4ed   : > { %v12971_v29 = vpop.f32.mrb[121].mxu0 }
 0x4ee   : > { %v12976_v9 = vpop.f32.mrb[122].mxu0  ;;  %7445 = vmatpush3.bf16.msra.mxu0 %v9711_v6 }
 0x4ef   : > { %4896 = vmatmul.mubr.bf16.gmra.mrb[156].mxu1 %v4543_v32  ;;  %v12978_v11 = vpop.f32.mrb[123].mxu0  ;;  %7446 = vmatprep.subr.bf16.mxu0 %v9712_v26 }
 0x4f0   : > { %7672 = vmatprep.mubr.msk.bf16.mxu1 %vm205_vm0, %v4542_v35 }
 0x4f2   : > { %7447 = vmatpush3.bf16.msra.mxu0 %v9713_v47 }
 0x4f3   : > { %7448 = vmatprep.subr.bf16.mxu0 %v9714_v53 }
 0x4f7   : > { %7673 = vmatmul.mubr.msk.bf16.vlgmr.msra.gmra.mrb[160].mxu1 %vm205_vm0, %v4545_v62 }
 0x4f8   : > { %7677 = vmatpush3.bf16.msra.mxu1 %v9702_v21 }
 0x4f9   : > { %7678 = vmatprep.subr.bf16.mxu1 %v9703_v18 }
 0x4fc   : > { %7679 = vmatpush3.bf16.msra.mxu1 %v9703_v18  ;;  %v14290_v18 = vld [vmem:[#allocation41_spill] sm:$0xff] }
 0x54a   : > { %v7324_v44 = vpop.f32.mrb[96].mxu1 }
 0x54b   : > { %v7325_v41 = vpop.f32.mrb[97].mxu1 }
 0x54c   : > { %v7326_v49 = vadd.f32 %v7325_v41, %v7324_v44  ;;  %v7327_v43 = vpop.f32.mrb[98].mxu1  ;;  %v9715_v41 = vld [vmem:[%s14012_s1 + $0x1d8] sm:$0xff]  }
 0x54d   : > { %v7328_v25 = vpop.f32.mrb[99].mxu1  ;;  %7449 = vmatpush3.bf16.msra.mxu0 %v9715_v41 }
 0x54e   : > { %v4778_v10 = vadd.f32 %v7326_v49, %v13001_v38  ;;  %v7329_v48 = vadd.f32 %v7328_v25, %v7327_v43 }
 0x550   : > { %v4939_v15 = vadd.f32 %v14287_v46, %v4778_v10  ;;  %v4781_v59 = vadd.f32 %v7329_v48, %v13001_v38 }
 0x552   : > { %v5065_v3 = vmax.f32 %v4939_v15, 0.0  ;;  %v4942_v37 = vadd.f32 %v14288_v34, %v4781_v59  ;;  %v7330_v27 = vpop.f32.mrb[100].mxu1 }
 0x553   : > { %v7331_v55 = vpop.f32.mrb[101].mxu1 }
 0x554   : > { %5097 = vst.msk [vmem:[#allocation2 + $0x19] sm:$0xff] %vm205_vm0, %v5065_v3  ;;  %v5066_v8 = vmax.f32 %v4942_v37, 0.0  ;;  %v7332_v42 = vadd.f32 %v7331_v55, %v7330_v27  ;;  %v7333_v45 = vpop.f32.mrb[102].mxu1  ;;  %v9716_v3 = vld [vmem:[%s14012_s1 + $0x220] sm:$0xff]  }
 0x555   : > { %v7334_v51 = vpop.f32.mrb[103].mxu1  ;;  %7450 = vmatprep.subr.bf16.mxu0 %v9716_v3 }
 0x556   : > { %5098 = vst.msk [vmem:[#allocation2 + $0x21] sm:$0xff] %vm205_vm0, %v5066_v8  ;;  %v4786_v32 = vadd.f32 %v7332_v42, %v13001_v38  ;;  %v7335_v21 = vadd.f32 %v7334_v51, %v7333_v45  ;;  %v9718_v42 = vld [vmem:[%s14012_s1 + $0x228] sm:$0xff]   ;;  %7451 = vmatpush3.bf16.msra.mxu0 %v9717_v16 }
 0x557   : > { %7452 = vmatprep.subr.bf16.mxu0 %v9718_v42 }
 0x558   : > { %v4947_v35 = vadd.f32 %v14289_v57, %v4786_v32  ;;  %v4789_v13 = vadd.f32 %v7335_v21, %v13001_v38 }
 0x55a   : > { %v5067_v62 = vmax.f32 %v4947_v35, 0.0  ;;  %v4950_v54 = vadd.f32 %v14290_v18, %v4789_v13  ;;  %v7336_v1 = vpop.f32.mrb[104].mxu1 }
 0x55b   : > { %v7337_v58 = vpop.f32.mrb[105].mxu1  ;;  %v5131_v14 = vld [vmem:[#allocation2 + $0x18] sm:$0xff] }
 0x55c   : > { %5099 = vst.msk [vmem:[#allocation2 + $0x31] sm:$0xff] %vm205_vm0, %v5067_v62  ;;  %v5068_v60 = vmax.f32 %v4950_v54, 0.0  ;;  %v7338_v2 = vadd.f32 %v7337_v58, %v7336_v1  ;;  %v7339_v44 = vpop.f32.mrb[106].mxu1  ;;  %v13052_v50 = vld [vmem:[#allocation2 + $0x19] sm:$0xff] }
 0x55d   : > { %v7340_v49 = vpop.f32.mrb[107].mxu1  ;;  %v5203_v43 = vld [vmem:[#allocation2 + $0x1a] sm:$0xff]  ;;  %v5204_v25 = vld [vmem:[#allocation2 + $0x22] sm:$0xff] }
 0x55e   : > { %v13038_v10 = vld [vmem:[#allocation2 + $0x20] sm:$0xff]  ;;  %5100 = vst.msk [vmem:[#allocation2 + $0x39] sm:$0xff] %vm205_vm0, %v5068_v60  ;;  %v4794_v48 = vadd.f32 %v7338_v2, %v13001_v38  ;;  %v7341_v46 = vadd.f32 %v7340_v49, %v7339_v44  ;;  %v9178_v15 = vpack.i.bf16 %v5204_v25, %v5203_v43 }
 0x55f   : > { %v9183_v59 = vpack.i.bf16 %v13038_v10, %v5131_v14  ;;  %v13046_v34 = vld [vmem:[#allocation2 + $0x21] sm:$0xff] }
 0x560   : > { %v4955_v37 = vadd.f32 %v12560_v31, %v4794_v48  ;;  %v4797_v27 = vadd.f32 %v7341_v46, %v13001_v38  ;;  %9179 = vrot.lane.b32.xlu0 %v9178_v15, %s9885_s19  ;;  %v9188_v31 = vpack.i.bf16 %v13046_v34, %v13052_v50 }
 0x561   : > { %9184 = vrot.lane.b32.xlu1 %v9183_v59, %s9887_s21 }
 0x562   : > { %v5069_v12 = vmax.f32 %v4955_v37, 0.0  ;;  %v4958_v55 = vadd.f32 %v12575_v39, %v4797_v27  ;;  %v7342_v8 = vpop.f32.mrb[108].mxu1  ;;  %v9719_v39 = vld [vmem:[%s14012_s1 + $0x1e8] sm:$0xff]  }
 0x563   : > { %v7343_v45 = vpop.f32.mrb[109].mxu1  ;;  %v5133_v21 = vld [vmem:[#allocation2 + $0x30] sm:$0xff]  ;;  %7453 = vmatpush3.bf16.msra.mxu0 %v9719_v39 }
 0x564   : > { %5101 = vst.msk [vmem:[#allocation2 + $0x49] sm:$0xff] %vm205_vm0, %v5069_v12  ;;  %v5070_v51 = vmax.f32 %v4958_v55, 0.0  ;;  %v7344_v6 = vadd.f32 %v7343_v45, %v7342_v8  ;;  %v7345_v32 = vpop.f32.mrb[110].mxu1  ;;  %v13077_v60 = vld [vmem:[#allocation2 + $0x31] sm:$0xff] }
 0x565   : > { %9189 = vrot.lane.b32.xlu1 %v9188_v31, %s9885_s19  ;;  %v7346_v26 = vpop.f32.mrb[111].mxu1  ;;  %v5134_v57 = vld [vmem:[#allocation2 + $0x38] sm:$0xff] }
 0x566   : > { %v5205_v35 = vld [vmem:[#allocation2 + $0x32] sm:$0xff]  ;;  %v5206_v13 = vld [vmem:[#allocation2 + $0x3a] sm:$0xff]  ;;  %5102 = vst.msk [vmem:[#allocation2 + $0x51] sm:$0xff] %vm205_vm0, %v5070_v51  ;;  %v4802_v47 = vadd.f32 %v7344_v6, %v13001_v38  ;;  %v7347_v62 = vadd.f32 %v7346_v26, %v7345_v32  ;;  %v9198_v18 = vpack.i.bf16 %v5134_v57, %v5133_v21 }
 0x567   : > { %v6111_v54 = vpack.c.bf16 %v5206_v13, %v5205_v35  ;;  %v13070_v1 = vld [vmem:[#allocation2 + $0x39] sm:$0xff]  ;;  %v9208_v3 = vpack.i.bf16 %v5206_v13, %v5205_v35 }
 0x568   : > { %v4963_v53 = vadd.f32 %v12554_v5, %v4802_v47  ;;  %v4805_v58 = vadd.f32 %v7347_v62, %v13001_v38  ;;  %9199 = vrot.lane.b32.xlu0 %v9198_v18, %s9886_s20  ;;  %v9203_v41 = vpack.i.bf16 %v13070_v1, %v13077_v60 }
 0x569   : > { %9194 = vrot.lane.b32.xlu1 %v9178_v15, %s9886_s20  ;;  %7680 = vmatprep.mubr.msk.bf16.mxu1 %vm205_vm0, %v6111_v54 }
 0x56a   : > { %v5071_v2 = vmax.f32 %v4963_v53, 0.0  ;;  %v4966_v44 = vadd.f32 %v12568_v4, %v4805_v58  ;;  %v7348_v14 = vpop.f32.mrb[112].mxu1 }
 0x56b   : > { %v7349_v49 = vpop.f32.mrb[113].mxu1  ;;  %v5135_v55 = vld [vmem:[#allocation2 + $0x48] sm:$0xff] }
 0x56c   : > { %5103 = vst.msk [vmem:[#allocation2 + $0x61] sm:$0xff] %vm205_vm0, %v5071_v2  ;;  %v5072_v5 = vmax.f32 %v4966_v44, 0.0  ;;  %v7350_v43 = vadd.f32 %v7349_v49, %v7348_v14  ;;  %9204 = vrot.lane.b32.xlu0 %v9203_v41, %s9887_s21  ;;  %v7351_v25 = vpop.f32.mrb[114].mxu1  ;;  %v13098_v26 = vld [vmem:[#allocation2 + $0x49] sm:$0xff] }
 0x56d   : > { %9214 = vrot.lane.b32.xlu1 %v9198_v18, %s9887_s21  ;;  %v7352_v48 = vpop.f32.mrb[115].mxu1  ;;  %v5207_v46 = vld [vmem:[#allocation2 + $0x4a] sm:$0xff]  ;;  %v5208_v15 = vld [vmem:[#allocation2 + $0x52] sm:$0xff] }
 0x56e   : > { %5104 = vst.msk [vmem:[#allocation2 + $0x69] sm:$0xff] %vm205_vm0, %v5072_v5  ;;  %v4810_v4 = vadd.f32 %v7350_v43, %v13001_v38  ;;  %v7353_v59 = vadd.f32 %v7352_v48, %v7351_v25  ;;  %v6114_v37 = vpack.c.bf16 %v5208_v15, %v5207_v46  ;;  %v5136_v27 = vld [vmem:[#allocation2 + $0x50] sm:$0xff]  ;;  %v9238_v44 = vpack.i.bf16 %v5208_v15, %v5207_v46 }
 0x56f   : > { %v9228_v45 = vpack.i.bf16 %v5136_v27, %v5135_v55  ;;  %v13093_v6 = vld [vmem:[#allocation2 + $0x51] sm:$0xff] }
 0x570   : > { %v4971_v16 = vadd.f32 %v12650_v0, %v4810_v4  ;;  %v4813_v12 = vadd.f32 %v7353_v59, %v13001_v38  ;;  %9209 = vrot.lane.b32.xlu0 %v9208_v3, %s9885_s19  ;;  %7681 = vmatmul.mubr.msk.bf16.vlgmr.msra.gmra.mrb[164].mxu1 %vm205_vm0, %v6114_v37  ;;  %v9233_v47 = vpack.i.bf16 %v13093_v6, %v13098_v26 }
 0x571   : > { %9219 = vrot.lane.b32.xlu1 %v9203_v41, %s9885_s19 }
 0x572   : > { %v5073_v8 = vmax.f32 %v4971_v16, 0.0  ;;  %v4974_v31 = vadd.f32 %v12664_v52, %v4813_v12  ;;  %v7354_v42 = vpop.f32.mrb[116].mxu1 }
 0x573   : > { %v7355_v51 = vpop.f32.mrb[117].mxu1  ;;  %v5137_v4 = vld [vmem:[#allocation2 + $0x60] sm:$0xff] }
 0x574   : > { %5105 = vst.msk [vmem:[#allocation2 + $0x79] sm:$0xff] %vm205_vm0, %v5073_v8  ;;  %v5074_v0 = vmax.f32 %v4974_v31, 0.0  ;;  %v7356_v32 = vadd.f32 %v7355_v51, %v7354_v42  ;;  %9229 = vrot.lane.b32.xlu0 %v9228_v45, %s9886_s20  ;;  %v7357_v21 = vpop.f32.mrb[118].mxu1  ;;  %v13129_v8 = vld [vmem:[#allocation2 + $0x61] sm:$0xff] }
 0x575   : > { %9224 = vrot.lane.b32.xlu1 %v9208_v3, %s9886_s20  ;;  %v7358_v39 = vpop.f32.mrb[119].mxu1  ;;  %v5209_v57 = vld [vmem:[#allocation2 + $0x62] sm:$0xff]  ;;  %v5210_v35 = vld [vmem:[#allocation2 + $0x6a] sm:$0xff] }
 0x576   : > { %5106 = vst.msk [vmem:[#allocation2 + $0x81] sm:$0xff] %vm205_vm0, %v5074_v0  ;;  %v4818_v52 = vadd.f32 %v7356_v32, %v13001_v38  ;;  %v7359_v13 = vadd.f32 %v7358_v39, %v7357_v21  ;;  %v6117_v62 = vpack.c.bf16 %v5210_v35, %v5209_v57  ;;  %v5138_v5 = vld [vmem:[#allocation2 + $0x68] sm:$0xff] }
 0x577   : > { %v9258_v59 = vpack.i.bf16 %v5138_v5, %v5137_v4  ;;  %v13125_v27 = vld [vmem:[#allocation2 + $0x69] sm:$0xff] }
 0x578   : > { %v4979_v18 = vadd.f32 %v12644_v56, %v4818_v52  ;;  %v4821_v54 = vadd.f32 %v7359_v13, %v13001_v38  ;;  %9234 = vrot.lane.b32.xlu0 %v9233_v47, %s9887_s21  ;;  %7684 = vmatprep.mubr.msk.bf16.mxu1 %vm205_vm0, %v6117_v62  ;;  %v9268_v13 = vpack.i.bf16 %v5210_v35, %v5209_v57 }
 0x579   : > { %9244 = vrot.lane.b32.xlu1 %v9228_v45, %s9887_s21 }
 0x57a   : > { %v5075_v53 = vmax.f32 %v4979_v18, 0.0  ;;  %v4982_v58 = vadd.f32 %v12657_v7, %v4821_v54  ;;  %v7360_v2 = vpop.f32.mrb[120].mxu1 }
 0x57b   : > { %v7361_v14 = vpop.f32.mrb[121].mxu1 }
 0x57c   : > { %5107 = vst.msk [vmem:[#allocation2 + $0x91] sm:$0xff] %vm205_vm0, %v5075_v53  ;;  %v5076_v41 = vmax.f32 %v4982_v58, 0.0  ;;  %v7362_v49 = vadd.f32 %v7361_v14, %v7360_v2  ;;  %9239 = vrot.lane.b32.xlu0 %v9238_v44, %s9885_s19  ;;  %v7363_v56 = vpop.f32.mrb[122].mxu1  ;;  %v5139_v2 = vld [vmem:[#allocation2 + $0x78] sm:$0xff] }
 0x57d   : > { %9249 = vrot.lane.b32.xlu1 %v9233_v47, %s9885_s19  ;;  %v7364_v43 = vpop.f32.mrb[123].mxu1  ;;  %v13113_v25 = vld [vmem:[#allocation2 + $0x7a] sm:$0xff]  ;;  %v13115_v48 = vld [vmem:[#allocation2 + $0x82] sm:$0xff] }
 0x57e   : > { %5108 = vst.msk [vmem:[#allocation2 + $0x99] sm:$0xff] %vm205_vm0, %v5076_v41  ;;  %v4826_v7 = vadd.f32 %v7362_v49, %v13001_v38  ;;  %v7365_v46 = vadd.f32 %v7364_v43, %v7363_v56  ;;  %v6120_v15 = vpack.c.bf16 %v13115_v48, %v13113_v25  ;;  %v5140_v18 = vld [vmem:[#allocation2 + $0x80] sm:$0xff] }
 0x57f   : > { %v9288_v14 = vpack.i.bf16 %v5140_v18, %v5139_v2  ;;  %v13152_v41 = vld [vmem:[#allocation2 + $0x81] sm:$0xff] }
 0x580   : > { %v4987_v3 = vadd.f32 %v12746_v40, %v4826_v7  ;;  %v4829_v37 = vadd.f32 %v7365_v46, %v13001_v38  ;;  %7685 = vmatmul.mubr.msk.bf16.gmra.mrb[168].mxu1 %vm205_vm0, %v6120_v15  ;;  %9259 = vrot.lane.b32.xlu0 %v9258_v59, %s9886_s20  ;;  %v9263_v40 = vpack.i.bf16 %v13125_v27, %v13129_v8  ;;  %v13163_v46 = vld [vmem:[#allocation2 + $0x79] sm:$0xff] }
 0x581   : > { %9254 = vrot.lane.b32.xlu1 %v9238_v44, %s9886_s20  ;;  %v9293_v15 = vpack.i.bf16 %v13152_v41, %v13163_v46 }
 0x582   : > { %v5077_v16 = vmax.f32 %v4987_v3, 0.0  ;;  %v4990_v12 = vadd.f32 %v12763_v22, %v4829_v37  ;;  %v7366_v55 = vpop.f32.mrb[124].mxu1 }
 0x583   : > { %v7367_v31 = vpop.f32.mrb[125].mxu1 }
 0x584   : > { %5109 = vst.msk [vmem:[#allocation2 + $0xa9] sm:$0xff] %vm205_vm0, %v5077_v16  ;;  %v5078_v42 = vmax.f32 %v4990_v12, 0.0  ;;  %v7368_v45 = vadd.f32 %v7367_v31, %v7366_v55  ;;  %v7369_v51 = vpop.f32.mrb[126].mxu1  ;;  %9264 = vrot.lane.b32.xlu0 %v9263_v40, %s9887_s21  ;;  %v9298_v55 = vpack.i.bf16 %v13115_v48, %v13113_v25 }
 0x585   : > { %9274 = vrot.lane.b32.xlu1 %v9258_v59, %s9887_s21  ;;  %v7370_v0 = vpop.f32.mrb[127].mxu1  ;;  %v13136_v32 = vld [vmem:[#allocation2 + $0x92] sm:$0xff]  ;;  %v13138_v22 = vld [vmem:[#allocation2 + $0x9a] sm:$0xff] }
 0x586   : > { %5110 = vst.msk [vmem:[#allocation2 + $0xb1] sm:$0xff] %vm205_vm0, %v5078_v42  ;;  %v4834_v21 = vadd.f32 %v7368_v45, %v13001_v38  ;;  %v7371_v39 = vadd.f32 %v7370_v0, %v7369_v51  ;;  %v6123_v52 = vpack.c.bf16 %v13138_v22, %v13136_v32  ;;  %v5142_v42 = vld [vmem:[#allocation2 + $0x98] sm:$0xff] }
 0x588   : > { %v4995_v47 = vadd.f32 %v12740_v61, %v4834_v21  ;;  %v4837_v62 = vadd.f32 %v7371_v39, %v13001_v38  ;;  %7688 = vmatprep.mubr.msk.bf16.mxu1 %vm205_vm0, %v6123_v52  ;;  %9269 = vrot.lane.b32.xlu0 %v9268_v13, %s9885_s19  ;;  %v5141_v21 = vld [vmem:[#allocation2 + $0x90] sm:$0xff] }
 0x589   : > { %9279 = vrot.lane.b32.xlu1 %v9263_v40, %s9885_s19  ;;  %v9318_v39 = vpack.i.bf16 %v5142_v42, %v5141_v21 }
 0x58a   : > { %v5079_v54 = vmax.f32 %v4995_v47, 0.0  ;;  %v4998_v53 = vadd.f32 %v12756_v28, %v4837_v62  ;;  %v7372_v58 = vpop.f32.mrb[128].mxu1  ;;  %v13190_v47 = vld [vmem:[#allocation2 + $0x99] sm:$0xff] }
 0x58b   : > { %v7373_v44 = vpop.f32.mrb[129].mxu1 }
 0x58c   : > { %5111 = vst.msk [vmem:[#allocation2 + $0xc1] sm:$0xff] %vm205_vm0, %v5079_v54  ;;  %v5080_v57 = vmax.f32 %v4998_v53, 0.0  ;;  %v7374_v61 = vadd.f32 %v7373_v44, %v7372_v58  ;;  %v7375_v35 = vpop.f32.mrb[130].mxu1  ;;  %9289 = vrot.lane.b32.xlu0 %v9288_v14, %s9886_s20  ;;  %v13194_v53 = vld [vmem:[#allocation2 + $0x91] sm:$0xff] }
 0x58d   : > { %9284 = vrot.lane.b32.xlu1 %v9268_v13, %s9886_s20  ;;  %v7376_v49 = vpop.f32.mrb[131].mxu1  ;;  %v13155_v56 = vld [vmem:[#allocation2 + $0xaa] sm:$0xff]  ;;  %v13157_v5 = vld [vmem:[#allocation2 + $0xb2] sm:$0xff] }
 0x58e   : > { %5112 = vst.msk [vmem:[#allocation2 + $0xc9] sm:$0xff] %vm205_vm0, %v5080_v57  ;;  %v4842_v28 = vadd.f32 %v7374_v61, %v13001_v38  ;;  %v7377_v43 = vadd.f32 %v7376_v49, %v7375_v35  ;;  %v6126_v7 = vpack.c.bf16 %v13157_v5, %v13155_v56 }
 0x590   : > { %v5003_v4 = vadd.f32 %v12843_v24, %v4842_v28  ;;  %v4845_v59 = vadd.f32 %v7377_v43, %v13001_v38  ;;  %7689 = vmatmul.mubr.msk.bf16.gmra.mrb[172].mxu1 %vm205_vm0, %v6126_v7  ;;  %9294 = vrot.lane.b32.xlu0 %v9293_v15, %s9887_s21  ;;  %v9328_v43 = vpack.i.bf16 %v13138_v22, %v13136_v32 }
 0x591   : > { %9304 = vrot.lane.b32.xlu1 %v9288_v14, %s9887_s21 }
 0x592   : > { %v5081_v3 = vmax.f32 %v5003_v4, 0.0  ;;  %v5006_v37 = vadd.f32 %v12858_v63, %v4845_v59  ;;  %v7378_v16 = vpop.f32.mrb[132].mxu1  ;;  %v5144_v4 = vld [vmem:[#allocation2 + $0xb0] sm:$0xff] }
 0x593   : > { %v7379_v12 = vpop.f32.mrb[133].mxu1 }
 0x594   : > { %5113 = vst.msk [vmem:[#allocation2 + $0xd9] sm:$0xff] %vm205_vm0, %v5081_v3  ;;  %v5082_v31 = vmax.f32 %v5006_v37, 0.0  ;;  %v7380_v24 = vadd.f32 %v7379_v12, %v7378_v16  ;;  %v7381_v40 = vpop.f32.mrb[134].mxu1  ;;  %9299 = vrot.lane.b32.xlu0 %v9298_v55, %s9885_s19  ;;  %v5143_v16 = vld [vmem:[#allocation2 + $0xa8] sm:$0xff] }
 0x595   : > { %9309 = vrot.lane.b32.xlu1 %v9293_v15, %s9885_s19  ;;  %v7382_v45 = vpop.f32.mrb[135].mxu1  ;;  %v13178_v51 = vld [vmem:[#allocation2 + $0xc2] sm:$0xff]  ;;  %v13180_v0 = vld [vmem:[#allocation2 + $0xca] sm:$0xff] }
 0x596   : > { %5114 = vst.msk [vmem:[#allocation2 + $0xe1] sm:$0xff] %vm205_vm0, %v5082_v31  ;;  %v4850_v63 = vadd.f32 %v7380_v24, %v13001_v38  ;;  %v7383_v25 = vadd.f32 %v7382_v45, %v7381_v40  ;;  %v6129_v48 = vpack.c.bf16 %v13180_v0, %v13178_v51  ;;  %v13219_v31 = vld [vmem:[#allocation2 + $0xb1] sm:$0xff] }
 0x598   : > { %v5011_v52 = vadd.f32 %v12838_v17, %v4850_v63  ;;  %v4853_v13 = vadd.f32 %v7383_v25, %v13001_v38  ;;  %7692 = vmatprep.mubr.msk.bf16.mxu1 %vm205_vm0, %v6129_v48  ;;  %9319 = vrot.lane.b32.xlu0 %v9318_v39, %s9886_s20  ;;  %v9323_v17 = vpack.i.bf16 %v13190_v47, %v13194_v53  ;;  %v13230_v25 = vld [vmem:[#allocation2 + $0xa9] sm:$0xff] }
 0x599   : > { %9314 = vrot.lane.b32.xlu1 %v9298_v55, %s9886_s20  ;;  %v9348_v55 = vpack.i.bf16 %v5144_v4, %v5143_v16  ;;  %v9353_v48 = vpack.i.bf16 %v13219_v31, %v13230_v25 }
 0x59a   : > { %v5083_v62 = vmax.f32 %v5011_v52, 0.0  ;;  %v5014_v18 = vadd.f32 %v12850_v23, %v4853_v13  ;;  %v7384_v54 = vpop.f32.mrb[136].mxu1 }
 0x59b   : > { %v7385_v58 = vpop.f32.mrb[137].mxu1 }
 0x59c   : > { %5115 = vst.msk [vmem:[#allocation2 + $0xf1] sm:$0xff] %vm205_vm0, %v5083_v62  ;;  %v5084_v2 = vmax.f32 %v5014_v18, 0.0  ;;  %v7386_v44 = vadd.f32 %v7385_v58, %v7384_v54  ;;  %v7387_v14 = vpop.f32.mrb[138].mxu1  ;;  %9324 = vrot.lane.b32.xlu0 %v9323_v17, %s9887_s21  ;;  %v9358_v54 = vpack.i.bf16 %v13157_v5, %v13155_v56 }
 0x59d   : > { %9334 = vrot.lane.b32.xlu1 %v9318_v39, %s9887_s21  ;;  %v7388_v57 = vpop.f32.mrb[139].mxu1  ;;  %v13201_v61 = vld [vmem:[#allocation2 + $0xda] sm:$0xff]  ;;  %v13203_v23 = vld [vmem:[#allocation2 + $0xe2] sm:$0xff] }
 0x59e   : > { %5116 = vst.msk [vmem:[#allocation2 + $0xf9] sm:$0xff] %vm205_vm0, %v5084_v2  ;;  %v4858_v35 = vadd.f32 %v7386_v44, %v13001_v38  ;;  %v7389_v49 = vadd.f32 %v7388_v57, %v7387_v14  ;;  %v6132_v28 = vpack.c.bf16 %v13203_v23, %v13201_v61  ;;  %v5146_v2 = vld [vmem:[#allocation2 + $0xc8] sm:$0xff] }
 0x5a0   : > { %v5019_v7 = vadd.f32 %v12931_v19, %v4858_v35  ;;  %v4861_v15 = vadd.f32 %v7389_v49, %v13001_v38  ;;  %7693 = vmatmul.mubr.msk.bf16.gmra.mrb[176].mxu1 %vm205_vm0, %v6132_v28  ;;  %9329 = vrot.lane.b32.xlu0 %v9328_v43, %s9885_s19  ;;  %v5145_v35 = vld [vmem:[#allocation2 + $0xc0] sm:$0xff] }
 0x5a1   : > { %9339 = vrot.lane.b32.xlu1 %v9323_v17, %s9885_s19  ;;  %v9378_v49 = vpack.i.bf16 %v5146_v2, %v5145_v35 }
 0x5a2   : > { %v5085_v59 = vmax.f32 %v5019_v7, 0.0  ;;  %v5022_v3 = vadd.f32 %v12941_v33, %v4861_v15  ;;  %v7390_v37 = vpop.f32.mrb[140].mxu1  ;;  %v13257_v7 = vld [vmem:[#allocation2 + $0xc9] sm:$0xff] }
 0x5a3   : > { %v7391_v12 = vpop.f32.mrb[141].mxu1 }
 0x5a4   : > { %5117 = vst.msk [vmem:[#allocation2 + $0x109] sm:$0xff] %vm205_vm0, %v5085_v59  ;;  %v5086_v32 = vmax.f32 %v5022_v3, 0.0  ;;  %v7392_v19 = vadd.f32 %v7391_v12, %v7390_v37  ;;  %v7393_v22 = vpop.f32.mrb[142].mxu1  ;;  %9349 = vrot.lane.b32.xlu0 %v9348_v55, %s9886_s20  ;;  %v13261_v3 = vld [vmem:[#allocation2 + $0xc1] sm:$0xff] }
 0x5a5   : > { %9344 = vrot.lane.b32.xlu1 %v9328_v43, %s9886_s20  ;;  %v7394_v24 = vpop.f32.mrb[143].mxu1  ;;  %v13222_v40 = vld [vmem:[#allocation2 + $0xf2] sm:$0xff]  ;;  %v13224_v42 = vld [vmem:[#allocation2 + $0xfa] sm:$0xff] }
 0x5a6   : > { %5118 = vst.msk [vmem:[#allocation2 + $0x111] sm:$0xff] %vm205_vm0, %v5086_v32  ;;  %v4866_v33 = vadd.f32 %v7392_v19, %v13001_v38  ;;  %v7395_v45 = vadd.f32 %v7394_v24, %v7393_v22  ;;  %v6135_v63 = vpack.c.bf16 %v13224_v42, %v13222_v40 }
 0x5a8   : > { %v5027_v21 = vadd.f32 %v12925_v36, %v4866_v33  ;;  %v4869_v39 = vadd.f32 %v7395_v45, %v13001_v38  ;;  %7696 = vmatprep.mubr.msk.bf16.mxu1 %vm205_vm0, %v6135_v63  ;;  %9354 = vrot.lane.b32.xlu0 %v9353_v48, %s9887_s21  ;;  %v9388_v45 = vpack.i.bf16 %v13180_v0, %v13178_v51 }
 0x5a9   : > { %9364 = vrot.lane.b32.xlu1 %v9348_v55, %s9887_s21 }
 0x5aa   : > { %v5087_v52 = vmax.f32 %v5027_v21, 0.0  ;;  %v5030_v13 = vadd.f32 %v12937_v30, %v4869_v39  ;;  %v7396_v62 = vpop.f32.mrb[144].mxu1  ;;  %v5148_v21 = vld [vmem:[#allocation2 + $0xe0] sm:$0xff] }
 0x5ab   : > { %v7397_v18 = vpop.f32.mrb[145].mxu1 }
 0x5ac   : > { %5119 = vst.msk [vmem:[#allocation2 + $0x121] sm:$0xff] %vm205_vm0, %v5087_v52  ;;  %v5088_v58 = vmax.f32 %v5030_v13, 0.0  ;;  %v7398_v36 = vadd.f32 %v7397_v18, %v7396_v62  ;;  %v7399_v17 = vpop.f32.mrb[146].mxu1  ;;  %9359 = vrot.lane.b32.xlu0 %v9358_v54, %s9885_s19  ;;  %v5147_v62 = vld [vmem:[#allocation2 + $0xd8] sm:$0xff] }
 0x5ad   : > { %9369 = vrot.lane.b32.xlu1 %v9353_v48, %s9885_s19  ;;  %v7400_v44 = vpop.f32.mrb[147].mxu1  ;;  %v13245_v14 = vld [vmem:[#allocation2 + $0x10a] sm:$0xff]  ;;  %v13247_v57 = vld [vmem:[#allocation2 + $0x112] sm:$0xff] }
 0x5ae   : > { %5120 = vst.msk [vmem:[#allocation2 + $0x129] sm:$0xff] %vm205_vm0, %v5088_v58  ;;  %v4874_v30 = vadd.f32 %v7398_v36, %v13001_v38  ;;  %v7401_v56 = vadd.f32 %v7400_v44, %v7399_v17  ;;  %v6138_v5 = vpack.c.bf16 %v13247_v57, %v13245_v14  ;;  %v13286_v58 = vld [vmem:[#allocation2 + $0xe1] sm:$0xff] }
 0x5b0   : > { %v5035_v28 = vadd.f32 %v12971_v29, %v4874_v30  ;;  %v4877_v43 = vadd.f32 %v7401_v56, %v13001_v38  ;;  %7697 = vmatmul.mubr.msk.bf16.gmra.mrb[180].mxu1 %vm205_vm0, %v6138_v5  ;;  %9379 = vrot.lane.b32.xlu0 %v9378_v49, %s9886_s20  ;;  %v9383_v29 = vpack.i.bf16 %v13257_v7, %v13261_v3  ;;  %v13296_v30 = vld [vmem:[#allocation2 + $0xd9] sm:$0xff] }
 0x5b1   : > { %9374 = vrot.lane.b32.xlu1 %v9358_v54, %s9886_s20  ;;  %v9408_v54 = vpack.i.bf16 %v5148_v21, %v5147_v62  ;;  %v9413_v56 = vpack.i.bf16 %v13286_v58, %v13296_v30 }
 0x5b2   : > { %v5089_v15 = vmax.f32 %v5035_v28, 0.0  ;;  %v5038_v4 = vadd.f32 %v12978_v11, %v4877_v43  ;;  %v7402_v59 = vpop.f32.mrb[148].mxu1 }
 0x5b3   : > { %v7403_v37 = vpop.f32.mrb[149].mxu1 }
 0x5b4   : > { %5121 = vst.msk [vmem:[#allocation2 + $0x139] sm:$0xff] %vm205_vm0, %v5089_v15  ;;  %v5090_v16 = vmax.f32 %v5038_v4, 0.0  ;;  %v7404_v12 = vadd.f32 %v7403_v37, %v7402_v59  ;;  %v7405_v55 = vpop.f32.mrb[150].mxu1  ;;  %9384 = vrot.lane.b32.xlu0 %v9383_v29, %s9887_s21  ;;  %v5150_v15 = vld [vmem:[#allocation2 + $0xf8] sm:$0xff] }
 0x5b5   : > { %9394 = vrot.lane.b32.xlu1 %v9378_v49, %s9887_s21  ;;  %v7406_v32 = vpop.f32.mrb[151].mxu1  ;;  %v13268_v19 = vld [vmem:[#allocation2 + $0x122] sm:$0xff]  ;;  %v13270_v11 = vld [vmem:[#allocation2 + $0x12a] sm:$0xff]  ;;  %v9418_v49 = vpack.i.bf16 %v13203_v23, %v13201_v61  ;;  %v13317_v23 = vld [vmem:[#allocation2 + $0xf9] sm:$0xff] }
 0x5b6   : > { %5122 = vst.msk [vmem:[#allocation2 + $0x141] sm:$0xff] %vm205_vm0, %v5090_v16  ;;  %v4882_v22 = vadd.f32 %v7404_v12, %v13001_v38  ;;  %v7407_v24 = vadd.f32 %v7406_v32, %v7405_v55  ;;  %v6141_v33 = vpack.c.bf16 %v13270_v11, %v13268_v19  ;;  %v5149_v12 = vld [vmem:[#allocation2 + $0xf0] sm:$0xff]  ;;  %v13313_v55 = vpop.permute.xlu1 %9169 }
 0x5b7   : > { %v9438_v61 = vpack.i.bf16 %v5150_v15, %v5149_v12  ;;  %v13348_v15 = vld [vmem:[#allocation2 + $0x109] sm:$0xff] }
 0x5b8   : > { %v5043_v63 = vadd.f32 %v12969_v20, %v4882_v22  ;;  %v4885_v48 = vadd.f32 %v7407_v24, %v13001_v38  ;;  %7700 = vmatprep.mubr.msk.bf16.mxu1 %vm205_vm0, %v6141_v33  ;;  %9389 = vrot.lane.b32.xlu0 %v9388_v45, %s9885_s19  ;;  %v13322_v33 = vld [vmem:[#allocation2 + $0xf1] sm:$0xff] }
 0x5b9   : > { %9399 = vrot.lane.b32.xlu1 %v9383_v29, %s9885_s19  ;;  %v9443_v21 = vpack.i.bf16 %v13317_v23, %v13322_v33 }
 0x5ba   : > { %v5091_v39 = vmax.f32 %v5043_v63, 0.0  ;;  %v5046_v52 = vadd.f32 %v12976_v9, %v4885_v48  ;;  %v7408_v13 = vpop.f32.mrb[152].mxu1  ;;  %v9175_v62 = vpop.permute.xlu1 %9174 }
 0x5bb   : > { %v7409_v18 = vpop.f32.mrb[153].mxu1 }
 0x5bc   : > { %5123 = vst.msk [vmem:[#allocation2 + $0x151] sm:$0xff] %vm205_vm0, %v5091_v39  ;;  %v5092_v51 = vmax.f32 %v5046_v52, 0.0  ;;  %v7410_v20 = vadd.f32 %v7409_v18, %v7408_v13  ;;  %v7411_v0 = vpop.f32.mrb[154].mxu1  ;;  %9409 = vrot.lane.b32.xlu0 %v9408_v54, %s9886_s20 }
 0x5bd   : > { %9404 = vrot.lane.b32.xlu1 %v9388_v45, %s9886_s20  ;;  %v7412_v36 = vpop.f32.mrb[155].mxu1  ;;  %v13289_v17 = vld [vmem:[#allocation2 + $0x13a] sm:$0xff]  ;;  %v13291_v2 = vld [vmem:[#allocation2 + $0x142] sm:$0xff] }
 0x5be   : > { %5124 = vst.msk [vmem:[#allocation2 + $0x159] sm:$0xff] %vm205_vm0, %v5092_v51  ;;  %v7413_v9 = vadd.f32 %v7412_v36, %v7411_v0  ;;  %v6144_v44 = vpack.c.bf16 %v13291_v2, %v13289_v17  ;;  %v4890_v24 = vadd.f32 %v7410_v20, %v13001_v38 }
 0x5c0   : > { %7701 = vmatmul.mubr.msk.bf16.gmra.mrb[184].mxu1 %vm205_vm0, %v6144_v44  ;;  %9414 = vrot.lane.b32.xlu0 %v9413_v56, %s9887_s21  ;;  %v4893_v13 = vadd.f32 %v7413_v9, %v13001_v38  ;;  %v9448_v44 = vpack.i.bf16 %v13224_v42, %v13222_v40  ;;  %v13342_v40 = vld [vmem:[#allocation2 + $0x111] sm:$0xff]  ;;  %v9172_v42 = vunpack.i.h.bf16 %v13313_v55 }
 0x5c1   : > { %9424 = vrot.lane.b32.xlu1 %v9408_v54, %s9887_s21 }
 0x5c2   : > { %v7414_v5 = vpop.f32.mrb[156].mxu1 }
 0x5c3   : > { %v7415_v35 = vpop.f32.mrb[157].mxu1 }
 0x5c4   : > { %v7416_v28 = vadd.f32 %v7415_v35, %v7414_v5  ;;  %v7417_v43 = vpop.f32.mrb[158].mxu1  ;;  %9419 = vrot.lane.b32.xlu0 %v9418_v49, %s9885_s19  ;;  %v13338_v5 = vld [vmem:[#allocation2 + $0x108] sm:$0xff] }
 0x5c5   : > { %9429 = vrot.lane.b32.xlu1 %v9413_v56, %s9885_s19  ;;  %v7418_v4 = vpop.f32.mrb[159].mxu1  ;;  %v13307_v59 = vld [vmem:[#allocation2 + $0x152] sm:$0xff]  ;;  %v13309_v37 = vld [vmem:[#allocation2 + $0x15a] sm:$0xff] }
 0x5c6   : > { %v7419_v29 = vadd.f32 %v7418_v4, %v7417_v43  ;;  %v6147_v16 = vpack.c.bf16 %v13309_v37, %v13307_v59  ;;  %v4898_v32 = vadd.f32 %v7416_v28, %v13001_v38  ;;  %v9171_v4 = vunpack.i.l.bf16 %v13313_v55 }
 0x5c7   : > { %v9176_v55 = vunpack.i.l.bf16 %v9175_v62 }
 0x5c8   : > { %7704 = vmatprep.mubr.msk.bf16.mxu1 %vm205_vm0, %v6147_v16  ;;  %9439 = vrot.lane.b32.xlu0 %v9438_v61, %s9886_s20  ;;  %v4901_v48 = vadd.f32 %v7419_v29, %v13001_v38  ;;  %v5152_v38 = vld [vmem:[#allocation2 + $0x110] sm:$0xff]  ;;  %v9473_v29 = vpack.i.bf16 %v13342_v40, %v13348_v15  ;;  %v5129_v16 = vld [vmem:[#allocation2] sm:$0xff] }
 0x5c9   : > { %9434 = vrot.lane.b32.xlu1 %v9418_v49, %s9886_s20  ;;  %v9468_v35 = vpack.i.bf16 %v5152_v38, %v13338_v5  ;;  %v5130_v49 = vld [vmem:[#allocation2 + $0x8] sm:$0xff] }
 0x5ca   : > { %v7674_v22 = vpop.f32.mrb[160].mxu1 }
 0x5cb   : > { %v5059_v45 = vadd.f32 %v7674_v22, %v4898_v32  ;;  %v5050_v63 = vpop.f32.mrb[161].mxu1 }
 0x5cc   : > { %v5051_v39 = vadd.f32 %v5050_v63, %v4890_v24  ;;  %v7675_v52 = vpop.f32.mrb[162].mxu1  ;;  %9444 = vrot.lane.b32.xlu0 %v9443_v21, %s9887_s21 }
 0x5cd   : > { %9454 = vrot.lane.b32.xlu1 %v9438_v61, %s9887_s21  ;;  %v5095_v18 = vmax.f32 %v5059_v45, 0.0  ;;  %v5062_v54 = vadd.f32 %v7675_v52, %v4901_v48  ;;  %v5053_v51 = vpop.f32.mrb[163].mxu1  ;;  %v5918_v61 = vsel %vm205_vm0, %v5130_v49, %v9172_v42  ;;  %v9177_v45 = vunpack.i.h.bf16 %v9175_v62 }
 0x5ce   : > { %v5093_v20 = vmax.f32 %v5051_v39, 0.0  ;;  %v5054_v0 = vadd.f32 %v5053_v51, %v4893_v13  ;;  %v5917_v39 = vsel %vm205_vm0, %v5129_v16, %v9171_v4  ;;  %v13391_v16 = vld [vmem:[#allocation2 + $0x129] sm:$0xff] }
 0x5cf   : > { %5127 = vst.msk [vmem:[#allocation2 + $0x181] sm:$0xff] %vm205_vm0, %v5095_v18  ;;  %v5096_v36 = vmax.f32 %v5062_v54, 0.0  ;;  %v9478_v18 = vpack.i.bf16 %v13247_v57, %v13245_v14  ;;  %v5154_v54 = vld [vmem:[#allocation2 + $0x128] sm:$0xff]  ;;  %v5950_v14 = vsel %vm1115_vm3, %v5918_v61, %v9177_v45 }
 0x5d0   : > { %5125 = vst.msk [vmem:[#allocation2 + $0x169] sm:$0xff] %vm205_vm0, %v5093_v20  ;;  %v5094_v56 = vmax.f32 %v5054_v0, 0.0  ;;  %9449 = vrot.lane.b32.xlu0 %v9448_v44, %s9885_s19 }
 0x5d1   : > { %9459 = vrot.lane.b32.xlu1 %v9443_v21, %s9885_s19  ;;  %5128 = vst.msk [vmem:[#allocation2 + $0x189] sm:$0xff] %vm205_vm0, %v5096_v36 }
 0x5d2   : > { %5126 = vst.msk [vmem:[#allocation2 + $0x171] sm:$0xff] %vm205_vm0, %v5094_v56  ;;  %v9180_v28 = vpop.permute.xlu0 %9179  ;;  %v5949_v56 = vsel %vm1115_vm3, %v5917_v39, %v9176_v55  ;;  %v13400_v39 = vld [vmem:[#allocation2 + $0x121] sm:$0xff] }
 0x5d3   : > { %v9185_v9 = vpop.permute.xlu1 %9184  ;;  %v9182_v52 = vunpack.i.h.bf16 %v9180_v28  ;;  %v9181_v13 = vunpack.i.l.bf16 %v9180_v28 }
 0x5d4   : > { %9469 = vrot.lane.b32.xlu0 %v9468_v35, %s9886_s20  ;;  %v9187_v0 = vunpack.i.h.bf16 %v9185_v9  ;;  %v9186_v36 = vunpack.i.l.bf16 %v9185_v9 }
 0x5d5   : > { %9464 = vrot.lane.b32.xlu1 %v9448_v44, %s9886_s20  ;;  %v13376_v44 = vld [vmem:[#allocation2 + $0x120] sm:$0xff]  ;;  %v6014_v42 = vsel %vm205_vm0, %v13046_v34, %v9182_v52  ;;  %v6013_v9 = vsel %vm205_vm0, %v13052_v50, %v9181_v13  ;;  %v9503_v52 = vpack.i.bf16 %v13391_v16, %v13400_v39 }
 0x5d6   : > { %v5981_v61 = vsel %vm1148_vm4, %v5949_v56, %v9186_v36  ;;  %v5982_v45 = vsel %vm1148_vm4, %v5950_v14, %v9187_v0  ;;  %v9508_v36 = vpack.i.bf16 %v13270_v11, %v13268_v19  ;;  %v13412_v56 = vld [vmem:[#allocation2 + $0x140] sm:$0xff]  ;;  %v9855_v11 = vld [vmem:[#allocation2 + $0x18] sm:$0xff] }
 0x5d7   : > { %v13346_v43 = vpop.permute.xlu1 %9189  ;;  %v6109_v13 = vpack.c.bf16 %v5982_v45, %v5981_v61 }
 0x5d8   : > { %v13354_v12 = vld [vmem:[#allocation2 + $0x182] sm:$0xff]  ;;  %9474 = vrot.lane.b32.xlu0 %v9473_v29, %s9887_s21  ;;  %v13362_v24 = vld [vmem:[#allocation2 + $0x18a] sm:$0xff] }
 0x5d9   : > { %9484 = vrot.lane.b32.xlu1 %v9468_v35, %s9887_s21  ;;  %v13358_v32 = vld [vmem:[#allocation2 + $0x16a] sm:$0xff]  ;;  %v13360_v22 = vld [vmem:[#allocation2 + $0x172] sm:$0xff]  ;;  %v6153_v62 = vpack.c.bf16 %v13362_v24, %v13354_v12  ;;  %v9498_v35 = vpack.i.bf16 %v5154_v54, %v13376_v44  ;;  %v9191_v54 = vunpack.i.l.bf16 %v13346_v43 }
 0x5da   : > { %v9200_v48 = vpop.permute.xlu0 %9199  ;;  %v6150_v21 = vpack.c.bf16 %v13360_v22, %v13358_v32 }
 0x5db   : > { %v13364_v63 = vpop.permute.xlu1 %9194  ;;  %v9202_v51 = vunpack.i.h.bf16 %v9200_v48  ;;  %v9201_v20 = vunpack.i.l.bf16 %v9200_v48 }
 0x5dc   : > { %7705 = vmatmul.mubr.msk.bf16.gmra.mrb[188].mxu1 %vm205_vm0, %v6150_v21  ;;  %9479 = vrot.lane.b32.xlu0 %v9478_v18, %s9885_s19  ;;  %v9197_v14 = vunpack.i.h.bf16 %v13364_v63 }
 0x5dd   : > { %9489 = vrot.lane.b32.xlu1 %v9473_v29, %s9885_s19  ;;  %7708 = vmatprep.mubr.msk.bf16.mxu1 %vm205_vm0, %v6153_v62  ;;  %v6046_v4 = vsel %vm1115_vm3, %v6014_v42, %v9202_v51  ;;  %v6045_v29 = vsel %vm1115_vm3, %v6013_v9, %v9201_v20 }
 0x5de   : > { %v9205_v38 = vpop.permute.xlu0 %9204 }
 0x5df   : > { %v13381_v57 = vpop.permute.xlu1 %9214  ;;  %v9207_v49 = vunpack.i.h.bf16 %v9205_v38  ;;  %v9206_v28 = vunpack.i.l.bf16 %v9205_v38  ;;  %v9196_v38 = vunpack.i.l.bf16 %v13364_v63 }
 0x5e0   : > { %9499 = vrot.lane.b32.xlu0 %v9498_v35, %s9886_s20  ;;  %v9216_v9 = vunpack.i.l.bf16 %v13381_v57 }
 0x5e1   : > { %9494 = vrot.lane.b32.xlu1 %v9478_v18, %s9886_s20  ;;  %v6077_v34 = vsel %vm1148_vm4, %v6045_v29, %v9206_v28  ;;  %v6078_v50 = vsel %vm1148_vm4, %v6046_v4, %v9207_v49  ;;  %v9192_v18 = vunpack.i.h.bf16 %v13346_v43  ;;  %v9217_v43 = vunpack.i.h.bf16 %v13381_v57  ;;  %v13420_v49 = vld [vmem:[#allocation2 + $0x138] sm:$0xff] }
 0x5e2   : > { %v9210_v48 = vpop.permute.xlu0 %9209  ;;  %v6110_v21 = vpack.c.bf16 %v6078_v50, %v6077_v34  ;;  %v5919_v28 = vsel %vm205_vm0, %v9855_v11, %v9191_v54  ;;  %v9528_v29 = vpack.i.bf16 %v13412_v56, %v13420_v49  ;;  %v9538_v11 = vpack.i.bf16 %v13291_v2, %v13289_v17 }
 0x5e3   : > { %v13398_v55 = vpop.permute.xlu1 %9219  ;;  %v9212_v62 = vunpack.i.h.bf16 %v9210_v48  ;;  %v9211_v0 = vunpack.i.l.bf16 %v9210_v48  ;;  %v5920_v19 = vsel %vm205_vm0, %v13038_v10, %v9192_v18  ;;  %v5951_v50 = vsel %vm1115_vm3, %v5919_v28, %v9196_v38 }
 0x5e4   : > { %6382 = vmatprep.mubr.bf16.mxu0 %v6110_v21  ;;  %9504 = vrot.lane.b32.xlu0 %v9503_v52, %s9887_s21  ;;  %v5952_v10 = vsel %vm1115_vm3, %v5920_v19, %v9197_v14  ;;  %v9222_v38 = vunpack.i.h.bf16 %v13398_v55 }
 0x5e5   : > { %9514 = vrot.lane.b32.xlu1 %v9498_v35, %s9887_s21  ;;  %6383 = vmatmul.mubr.bf16.vlgmr.msra.gmra.mrb[124].mxu0 %v6109_v13  ;;  %v6016_v61 = vsel %vm205_vm0, %v13070_v1, %v9212_v62  ;;  %v6015_v57 = vsel %vm205_vm0, %v13077_v60, %v9211_v0  ;;  %v5983_v13 = vsel %vm1148_vm4, %v5951_v50, %v9216_v9  ;;  %v13447_v0 = vld [vmem:[#allocation2 + $0x139] sm:$0xff]  ;;  %v9857_v50 = vld [vmem:[#allocation2 + $0x30] sm:$0xff] }
 0x5e6   : > { %v9230_v20 = vpop.permute.xlu0 %9229  ;;  %v5984_v18 = vsel %vm1148_vm4, %v5952_v10, %v9217_v43  ;;  %v13471_v10 = vld [vmem:[#allocation2 + $0x150] sm:$0xff] }
 0x5e7   : > { %v13408_v51 = vpop.permute.xlu1 %9224  ;;  %v9232_v35 = vunpack.i.h.bf16 %v9230_v20  ;;  %v9231_v42 = vunpack.i.l.bf16 %v9230_v20  ;;  %v6112_v14 = vpack.c.bf16 %v5984_v18, %v5983_v13 }
 0x5e8   : > { %9509 = vrot.lane.b32.xlu0 %v9508_v36, %s9885_s19  ;;  %v9227_v43 = vunpack.i.h.bf16 %v13408_v51  ;;  %v9226_v9 = vunpack.i.l.bf16 %v13408_v51 }
 0x5e9   : > { %9519 = vrot.lane.b32.xlu1 %v9503_v52, %s9885_s19  ;;  %v6047_v48 = vsel %vm1115_vm3, %v6015_v57, %v9231_v42  ;;  %v6048_v21 = vsel %vm1115_vm3, %v6016_v61, %v9232_v35  ;;  %v13438_v52 = vld [vmem:[#allocation2 + $0x141] sm:$0xff]  ;;  %v9221_v35 = vunpack.i.l.bf16 %v13398_v55 }
 0x5ea   : > { %v9235_v63 = vpop.permute.xlu0 %9234 }
 0x5eb   : > { %v13425_v4 = vpop.permute.xlu1 %9244  ;;  %v9237_v45 = vunpack.i.h.bf16 %v9235_v63  ;;  %v9236_v34 = vunpack.i.l.bf16 %v9235_v63  ;;  %v5921_v17 = vsel %vm205_vm0, %v9857_v50, %v9221_v35  ;;  %v9568_v50 = vpack.i.bf16 %v13309_v37, %v13307_v59  ;;  %v5161_v37 = vld [vmem:[#allocation2 + $0x180] sm:$0xff] }
 0x5ec   : > { %9529 = vrot.lane.b32.xlu0 %v9528_v29, %s9886_s20  ;;  %v9247_v61 = vunpack.i.h.bf16 %v13425_v4  ;;  %v9246_v55 = vunpack.i.l.bf16 %v13425_v4 }
 0x5ed   : > { %9524 = vrot.lane.b32.xlu1 %v9508_v36, %s9886_s20  ;;  %v6079_v1 = vsel %vm1148_vm4, %v6047_v48, %v9236_v34  ;;  %v6080_v60 = vsel %vm1148_vm4, %v6048_v21, %v9237_v45  ;;  %v9533_v36 = vpack.i.bf16 %v13438_v52, %v13447_v0  ;;  %v9856_v34 = vld [vmem:[#allocation2 + $0x38] sm:$0xff]  ;;  %v5953_v48 = vsel %vm1115_vm3, %v5921_v17, %v9226_v9 }
 0x5ee   : > { %v9240_v20 = vpop.permute.xlu0 %9239  ;;  %v6113_v62 = vpack.c.bf16 %v6080_v60, %v6079_v1  ;;  %v5922_v51 = vsel %vm205_vm0, %v9856_v34, %v9222_v38  ;;  %v5985_v38 = vsel %vm1148_vm4, %v5953_v48, %v9246_v55 }
 0x5ef   : > { %v13445_v54 = vpop.permute.xlu1 %9249  ;;  %v9242_v28 = vunpack.i.h.bf16 %v9240_v20  ;;  %v9241_v63 = vunpack.i.l.bf16 %v9240_v20  ;;  %v5954_v21 = vsel %vm1115_vm3, %v5922_v51, %v9227_v43  ;;  %v13491_v43 = vld [vmem:[#allocation2 + $0x151] sm:$0xff] }
 0x5f0   : > { %6390 = vmatprep.mubr.bf16.mxu0 %v6113_v62  ;;  %9534 = vrot.lane.b32.xlu0 %v9533_v36, %s9887_s21  ;;  %v13482_v62 = vld [vmem:[#allocation2 + $0x159] sm:$0xff]  ;;  %v5986_v35 = vsel %vm1148_vm4, %v5954_v21, %v9247_v61  ;;  %v9252_v61 = vunpack.i.h.bf16 %v13445_v54  ;;  %v9251_v55 = vunpack.i.l.bf16 %v13445_v54  ;;  %v5162_v21 = vld [vmem:[#allocation2 + $0x188] sm:$0xff] }
 0x5f1   : > { %9544 = vrot.lane.b32.xlu1 %v9528_v29, %s9887_s21  ;;  %6391 = vmatmul.mubr.bf16.gmra.mrb[128].mxu0 %v6112_v14  ;;  %v13462_v29 = vld [vmem:[#allocation2 + $0x158] sm:$0xff]  ;;  %v6018_v60 = vsel %vm205_vm0, %v13093_v6, %v9242_v28  ;;  %v6017_v13 = vsel %vm205_vm0, %v13098_v26, %v9241_v63  ;;  %v6115_v63 = vpack.c.bf16 %v5986_v35, %v5985_v38 }
 0x5f2   : > { %v9260_v19 = vpop.permute.xlu0 %9259  ;;  %v9558_v4 = vpack.i.bf16 %v13462_v29, %v13471_v10  ;;  %v13517_v35 = vpack.i.bf16 %v5162_v21, %v5161_v37 }
 0x5f3   : > { %v13455_v42 = vpop.permute.xlu1 %9254  ;;  %v9262_v57 = vunpack.i.h.bf16 %v9260_v19  ;;  %v9261_v45 = vunpack.i.l.bf16 %v9260_v19 }
 0x5f4   : > { %9539 = vrot.lane.b32.xlu0 %v9538_v11, %s9885_s19  ;;  %v9256_v34 = vunpack.i.l.bf16 %v13455_v42 }
 0x5f5   : > { %9549 = vrot.lane.b32.xlu1 %v9533_v36, %s9885_s19  ;;  %v6050_v36 = vsel %vm1115_vm3, %v6018_v60, %v9262_v57  ;;  %v6049_v14 = vsel %vm1115_vm3, %v6017_v13, %v9261_v45  ;;  %v9257_v45 = vunpack.i.h.bf16 %v13455_v42  ;;  %v9858_v13 = vld [vmem:[#allocation2 + $0x50] sm:$0xff] }
 0x5f6   : > { %v9265_v1 = vpop.permute.xlu0 %9264  ;;  %v5924_v42 = vsel %vm205_vm0, %v9858_v13, %v9252_v61 }
 0x5f7   : > { %v13469_v2 = vpop.permute.xlu1 %9274  ;;  %v9267_v18 = vunpack.i.h.bf16 %v9265_v1  ;;  %v9266_v20 = vunpack.i.l.bf16 %v9265_v1 }
 0x5f8   : > { %9559 = vrot.lane.b32.xlu0 %v9558_v4, %s9886_s20  ;;  %v9277_v1 = vunpack.i.h.bf16 %v13469_v2  ;;  %v9276_v54 = vunpack.i.l.bf16 %v13469_v2  ;;  %v13519_v2 = vld [vmem:[#allocation2 + $0x170] sm:$0xff] }
 0x5f9   : > { %9554 = vrot.lane.b32.xlu1 %v9538_v11, %s9886_s20  ;;  %v6081_v26 = vsel %vm1148_vm4, %v6049_v14, %v9266_v20  ;;  %v6082_v9 = vsel %vm1148_vm4, %v6050_v36, %v9267_v18  ;;  %v9563_v11 = vpack.i.bf16 %v13482_v62, %v13491_v43  ;;  %v9859_v18 = vld [vmem:[#allocation2 + $0x48] sm:$0xff]  ;;  %v5956_v14 = vsel %vm1115_vm3, %v5924_v42, %v9257_v45 }
 0x5fa   : > { %v9270_v19 = vpop.permute.xlu0 %9269  ;;  %v6116_v28 = vpack.c.bf16 %v6082_v9, %v6081_v26  ;;  %v5923_v20 = vsel %vm205_vm0, %v9859_v18, %v9251_v55  ;;  %v13532_v55 = vld [vmem:[#allocation2 + $0x168] sm:$0xff]  ;;  %v5988_v45 = vsel %vm1148_vm4, %v5956_v14, %v9277_v1 }
 0x5fb   : > { %v13489_v6 = vpop.permute.xlu1 %9279  ;;  %v9272_v17 = vunpack.i.h.bf16 %v9270_v19  ;;  %v9271_v48 = vunpack.i.l.bf16 %v9270_v19  ;;  %v5955_v36 = vsel %vm1115_vm3, %v5923_v20, %v9256_v34  ;;  %v9623_v34 = vpack.i.bf16 %v13519_v2, %v13532_v55 }
 0x5fc   : > { %9564 = vrot.lane.b32.xlu0 %v9563_v11, %s9887_s21  ;;  %6398 = vmatprep.mubr.bf16.mxu0 %v6116_v28  ;;  %v13526_v28 = vld [vmem:[#allocation2 + $0x189] sm:$0xff]  ;;  %v9282_v13 = vunpack.i.h.bf16 %v13489_v6  ;;  %v9281_v42 = vunpack.i.l.bf16 %v13489_v6 }
 0x5fd   : > { %9574 = vrot.lane.b32.xlu1 %v9558_v4, %s9887_s21  ;;  %6399 = vmatmul.mubr.bf16.gmra.mrb[132].mxu0 %v6115_v63  ;;  %v6020_v26 = vsel %vm205_vm0, %v13125_v27, %v9272_v17  ;;  %v6019_v9 = vsel %vm205_vm0, %v13129_v8, %v9271_v48  ;;  %v5987_v27 = vsel %vm1148_vm4, %v5955_v36, %v9276_v54  ;;  %v13550_v54 = vld [vmem:[#allocation2 + $0x169] sm:$0xff] }
 0x5fe   : > { %v9290_v51 = vpop.permute.xlu0 %9289  ;;  %v6118_v1 = vpack.c.bf16 %v5988_v45, %v5987_v27  ;;  %v9861_v27 = vld [vmem:[#allocation2 + $0x60] sm:$0xff] }
 0x5ff   : > { %v13501_v57 = vpop.permute.xlu1 %9284  ;;  %v9292_v4 = vunpack.i.h.bf16 %v9290_v51  ;;  %v9291_v60 = vunpack.i.l.bf16 %v9290_v51  ;;  %v13540_v51 = vld [vmem:[#allocation2 + $0x181] sm:$0xff]  ;;  %v5925_v45 = vsel %vm205_vm0, %v9861_v27, %v9281_v42 }
 0x600   : > { %9569 = vrot.lane.b32.xlu0 %v9568_v50, %s9885_s19  ;;  %v9593_v21 = vpack.i.bf16 %v13526_v28, %v13540_v51  ;;  %v9287_v37 = vunpack.i.h.bf16 %v13501_v57  ;;  %v9286_v36 = vunpack.i.l.bf16 %v13501_v57 }
 0x601   : > { %9579 = vrot.lane.b32.xlu1 %v9563_v11, %s9885_s19  ;;  %v6051_v63 = vsel %vm1115_vm3, %v6019_v9, %v9291_v60  ;;  %v6052_v61 = vsel %vm1115_vm3, %v6020_v26, %v9292_v4  ;;  %v13546_v60 = vld [vmem:[#allocation2 + $0x171] sm:$0xff] }
 0x602   : > { %v9295_v38 = vpop.permute.xlu0 %9294  ;;  %v9628_v20 = vpack.i.bf16 %v13546_v60, %v13550_v54 }
 0x603   : > { %v13513_v59 = vpop.permute.xlu1 %9304  ;;  %v9297_v19 = vunpack.i.h.bf16 %v9295_v38  ;;  %v9296_v11 = vunpack.i.l.bf16 %v9295_v38 }
 0x604   : > { %9589 = vrot.lane.b32.xlu0 %v13517_v35, %s9886_s20  ;;  %v9307_v9 = vunpack.i.h.bf16 %v13513_v59 }
 0x605   : > { %9584 = vrot.lane.b32.xlu1 %v9568_v50, %s9886_s20  ;;  %v6083_v50 = vsel %vm1148_vm4, %v6051_v63, %v9296_v11  ;;  %v6084_v17 = vsel %vm1148_vm4, %v6052_v61, %v9297_v19  ;;  %v9306_v19 = vunpack.i.l.bf16 %v13513_v59  ;;  %v9860_v63 = vld [vmem:[#allocation2 + $0x68] sm:$0xff] }
 0x606   : > { %v9300_v48 = vpop.permute.xlu0 %9299  ;;  %v6119_v4 = vpack.c.bf16 %v6084_v17, %v6083_v50  ;;  %v5926_v61 = vsel %vm205_vm0, %v9860_v63, %v9282_v13  ;;  %v9633_v50 = vpack.i.bf16 %v13360_v22, %v13358_v32  ;;  %v5957_v17 = vsel %vm1115_vm3, %v5925_v45, %v9286_v36 }
 0x607   : > { %v13536_v8 = vpop.permute.xlu1 %9309  ;;  %v9302_v38 = vunpack.i.h.bf16 %v9300_v48  ;;  %v9301_v26 = vunpack.i.l.bf16 %v9300_v48  ;;  %v5958_v48 = vsel %vm1115_vm3, %v5926_v61, %v9287_v37  ;;  %v5989_v32 = vsel %vm1148_vm4, %v5957_v17, %v9306_v19  ;;  %v5164_v19 = vld [vmem:[#allocation2 + $0x1a0] sm:$0xff] }
 0x608   : > { %9594 = vrot.lane.b32.xlu0 %v9593_v21, %s9887_s21  ;;  %6406 = vmatprep.mubr.bf16.mxu0 %v6119_v4  ;;  %v5990_v22 = vsel %vm1148_vm4, %v5958_v48, %v9307_v9  ;;  %v9311_v63 = vunpack.i.l.bf16 %v13536_v8  ;;  %v9613_v17 = vpack.i.bf16 %v13362_v24, %v13354_v12 }
 0x609   : > { %9624 = vrot.lane.b32.xlu1 %v9623_v34, %s9887_s21  ;;  %6407 = vmatmul.mubr.bf16.gmra.mrb[136].mxu0 %v6118_v1  ;;  %v6022_v21 = vsel %vm205_vm0, %v13152_v41, %v9302_v38  ;;  %v6121_v38 = vpack.c.bf16 %v5990_v22, %v5989_v32  ;;  %v9863_v32 = vld [vmem:[#allocation2 + $0x78] sm:$0xff] }
 0x60a   : > { %v9320_v14 = vpop.permute.xlu0 %9319  ;;  %v5927_v12 = vsel %vm205_vm0, %v9863_v32, %v9311_v63 }
 0x60b   : > { %v13554_v18 = vpop.permute.xlu1 %9314  ;;  %v9322_v6 = vunpack.i.h.bf16 %v9320_v14  ;;  %v9321_v11 = vunpack.i.l.bf16 %v9320_v14 }
 0x60c   : > { %9599 = vrot.lane.b32.xlu0 %v9623_v34, %s9886_s20  ;;  %v6021_v34 = vsel %vm205_vm0, %v13163_v46, %v9301_v26  ;;  %v5235_v26 = vld [vmem:[#allocation2 + $0x19a] sm:$0xff]  ;;  %v9317_v27 = vunpack.i.h.bf16 %v13554_v18 }
 0x60d   : > { %9629 = vrot.lane.b32.xlu1 %v9628_v20, %s9885_s19  ;;  %v6053_v13 = vsel %vm1115_vm3, %v6021_v34, %v9321_v11  ;;  %v6054_v42 = vsel %vm1115_vm3, %v6022_v21, %v9322_v6  ;;  %v5236_v6 = vld [vmem:[#allocation2 + $0x1a2] sm:$0xff]  ;;  %v9312_v11 = vunpack.i.h.bf16 %v13536_v8  ;;  %v5199_v21 = vld [vmem:[#allocation2 + $0x199] sm:$0xff] }
 0x60e   : > { %v9325_v59 = vpop.permute.xlu0 %9324  ;;  %v6156_v9 = vpack.c.bf16 %v5236_v6, %v5235_v26  ;;  %v5200_v34 = vld [vmem:[#allocation2 + $0x1a1] sm:$0xff] }
 0x60f   : > { %v13566_v57 = vpop.permute.xlu1 %9334  ;;  %v9327_v4 = vunpack.i.h.bf16 %v9325_v59  ;;  %v9326_v1 = vunpack.i.l.bf16 %v9325_v59 }
 0x610   : > { %9604 = vrot.lane.b32.xlu0 %v9628_v20, %s9887_s21  ;;  %v5163_v20 = vld [vmem:[#allocation2 + $0x198] sm:$0xff]  ;;  %7709 = vmatmul.mubr.msk.bf16.gmra.mrb[192].mxu1 %vm205_vm0, %v6156_v9  ;;  %v9337_v8 = vunpack.i.h.bf16 %v13566_v57 }
 0x611   : > { %9634 = vrot.lane.b32.xlu1 %v9633_v50, %s9886_s20  ;;  %v6085_v41 = vsel %vm1148_vm4, %v6053_v13, %v9326_v1  ;;  %v6086_v46 = vsel %vm1148_vm4, %v6054_v42, %v9327_v4  ;;  %v9618_v59 = vpack.i.bf16 %v5164_v19, %v5163_v20  ;;  %v9336_v4 = vunpack.i.l.bf16 %v13566_v57 }
 0x612   : > { %v9330_v36 = vpop.permute.xlu0 %9329  ;;  %v6122_v14 = vpack.c.bf16 %v6086_v46, %v6085_v41 }
 0x613   : > { %v13582_v37 = vpop.permute.xlu1 %9339  ;;  %v9331_v48 = vunpack.i.l.bf16 %v9330_v36 }
 0x614   : > { %9609 = vrot.lane.b32.xlu0 %v9633_v50, %s9885_s19  ;;  %6414 = vmatprep.mubr.bf16.mxu0 %v6122_v14  ;;  %v9332_v50 = vunpack.i.h.bf16 %v9330_v36  ;;  %v9638_v36 = vpack.i.bf16 %v5200_v34, %v5199_v21 }
 0x615   : > { %9644 = vrot.lane.b32.xlu1 %v13517_v35, %s9887_s21  ;;  %6415 = vmatmul.mubr.bf16.gmra.mrb[140].mxu0 %v6121_v38  ;;  %v9316_v35 = vunpack.i.l.bf16 %v13554_v18  ;;  %v9862_v18 = vld [vmem:[#allocation2 + $0x80] sm:$0xff]  ;;  %v6023_v14 = vsel %vm205_vm0, %v13194_v53, %v9331_v48 }
 0x616   : > { %v9350_v45 = vpop.permute.xlu0 %9349  ;;  %v5928_v42 = vsel %vm205_vm0, %v9862_v18, %v9312_v11  ;;  %v6024_v57 = vsel %vm205_vm0, %v13190_v47, %v9332_v50 }
 0x617   : > { %v13591_v61 = vpop.permute.xlu1 %9344  ;;  %v9352_v1 = vunpack.i.h.bf16 %v9350_v45  ;;  %v9351_v13 = vunpack.i.l.bf16 %v9350_v45  ;;  %v5959_v22 = vsel %vm1115_vm3, %v5927_v12, %v9316_v35  ;;  %v5960_v41 = vsel %vm1115_vm3, %v5928_v42, %v9317_v27  ;;  %v9864_v42 = vld [vmem:[#allocation2 + $0x98] sm:$0xff]  ;;  %v9865_v12 = vld [vmem:[#allocation2 + $0x90] sm:$0xff] }
 0x618   : > { %9614 = vrot.lane.b32.xlu0 %v9613_v17, %s9885_s19  ;;  %v5991_v19 = vsel %vm1148_vm4, %v5959_v22, %v9336_v4  ;;  %v5992_v9 = vsel %vm1148_vm4, %v5960_v41, %v9337_v8  ;;  %v9342_v45 = vunpack.i.h.bf16 %v13582_v37  ;;  %v9341_v17 = vunpack.i.l.bf16 %v13582_v37 }
 0x619   : > { %v6055_v6 = vsel %vm1115_vm3, %v6023_v14, %v9351_v13  ;;  %v6056_v20 = vsel %vm1115_vm3, %v6024_v57, %v9352_v1  ;;  %v6124_v53 = vpack.c.bf16 %v5992_v9, %v5991_v19  ;;  %v9347_v48 = vunpack.i.h.bf16 %v13591_v61 }
 0x61a   : > { %v9355_v46 = vpop.permute.xlu0 %9354  ;;  %v5930_v32 = vsel %vm205_vm0, %v9864_v42, %v9342_v45  ;;  %v5929_v22 = vsel %vm205_vm0, %v9865_v12, %v9341_v17  ;;  %v9867_v42 = vld [vmem:[#allocation2 + $0xa8] sm:$0xff] }
 0x61b   : > { %v9365_v24 = vpop.permute.xlu1 %9364  ;;  %v9357_v38 = vunpack.i.h.bf16 %v9355_v46  ;;  %v9356_v26 = vunpack.i.l.bf16 %v9355_v46  ;;  %v5962_v46 = vsel %vm1115_vm3, %v5930_v32, %v9347_v48 }
 0x61c   : > { %9619 = vrot.lane.b32.xlu0 %v9618_v59, %s9886_s20  ;;  %v9346_v59 = vunpack.i.l.bf16 %v13591_v61  ;;  %v9367_v4 = vunpack.i.h.bf16 %v9365_v24  ;;  %v9366_v1 = vunpack.i.l.bf16 %v9365_v24 }
 0x61d   : > { %v6087_v63 = vsel %vm1148_vm4, %v6055_v6, %v9356_v26  ;;  %v6088_v47 = vsel %vm1148_vm4, %v6056_v20, %v9357_v38 }
 0x61e   : > { %v9360_v27 = vpop.permute.xlu0 %9359  ;;  %v6125_v35 = vpack.c.bf16 %v6088_v47, %v6087_v63  ;;  %v5961_v41 = vsel %vm1115_vm3, %v5929_v22, %v9346_v59  ;;  %v5994_v20 = vsel %vm1148_vm4, %v5962_v46, %v9367_v4 }
 0x61f   : > { %v9370_v11 = vpop.permute.xlu1 %9369  ;;  %v9362_v34 = vunpack.i.h.bf16 %v9360_v27  ;;  %v9361_v8 = vunpack.i.l.bf16 %v9360_v27  ;;  %v5993_v6 = vsel %vm1148_vm4, %v5961_v41, %v9366_v1 }
 0x620   : > { %9639 = vrot.lane.b32.xlu0 %v9638_v36, %s9887_s21  ;;  %6422 = vmatprep.mubr.bf16.mxu0 %v6125_v35  ;;  %v6127_v27 = vpack.c.bf16 %v5994_v20, %v5993_v6  ;;  %v9371_v35 = vunpack.i.l.bf16 %v9370_v11  ;;  %s13871_s21 = scalar_lea.vmem %s14014_s3, %s7046_s15 }
 0x621   : > { %6423 = vmatmul.mubr.bf16.gmra.mrb[144].mxu0 %v6124_v53  ;;  %v6026_v61 = vsel %vm205_vm0, %v13219_v31, %v9362_v34  ;;  %v6025_v24 = vsel %vm205_vm0, %v13230_v25, %v9361_v8  ;;  %v9372_v25 = vunpack.i.h.bf16 %v9370_v11 }
 0x622   : > { %v9380_v21 = vpop.permute.xlu0 %9379  ;;  %v5931_v32 = vsel %vm205_vm0, %v9867_v42, %v9371_v35 }
 0x623   : > { %v9375_v50 = vpop.permute.xlu1 %9374  ;;  %v9382_v13 = vunpack.i.h.bf16 %v9380_v21  ;;  %v9381_v18 = vunpack.i.l.bf16 %v9380_v21 }
 0x624   : > { %v9377_v45 = vunpack.i.h.bf16 %v9375_v50  ;;  %v9376_v17 = vunpack.i.l.bf16 %v9375_v50 }
 0x625   : > { %v6057_v38 = vsel %vm1115_vm3, %v6025_v24, %v9381_v18  ;;  %v6058_v26 = vsel %vm1115_vm3, %v6026_v61, %v9382_v13  ;;  %v9866_v13 = vld [vmem:[#allocation2 + $0xb0] sm:$0xff] }
 0x626   : > { %v9385_v36 = vpop.permute.xlu0 %9384  ;;  %v5932_v18 = vsel %vm205_vm0, %v9866_v13, %v9372_v25  ;;  %v5963_v11 = vsel %vm1115_vm3, %v5931_v32, %v9376_v17 }
 0x627   : > { %v9395_v37 = vpop.permute.xlu1 %9394  ;;  %v9387_v57 = vunpack.i.h.bf16 %v9385_v36  ;;  %v9386_v14 = vunpack.i.l.bf16 %v9385_v36  ;;  %v5964_v22 = vsel %vm1115_vm3, %v5932_v18, %v9377_v45 }
 0x628   : > { %v9397_v34 = vunpack.i.h.bf16 %v9395_v37  ;;  %v9396_v8 = vunpack.i.l.bf16 %v9395_v37 }
 0x629   : > { %v6089_v9 = vsel %vm1148_vm4, %v6057_v38, %v9386_v14  ;;  %v6090_v63 = vsel %vm1148_vm4, %v6058_v26, %v9387_v57 }
 0x62a   : > { %v9390_v47 = vpop.permute.xlu0 %9389  ;;  %v6128_v31 = vpack.c.bf16 %v6090_v63, %v6089_v9  ;;  %v5995_v57 = vsel %vm1148_vm4, %v5963_v11, %v9396_v8  ;;  %v5996_v14 = vsel %vm1148_vm4, %v5964_v22, %v9397_v34  ;;  %v9868_v34 = vld [vmem:[#allocation2 + $0xc8] sm:$0xff] }
 0x62b   : > { %v9400_v19 = vpop.permute.xlu1 %9399  ;;  %v9392_v59 = vunpack.i.h.bf16 %v9390_v47  ;;  %v9391_v21 = vunpack.i.l.bf16 %v9390_v47  ;;  %v6130_v9 = vpack.c.bf16 %v5996_v14, %v5995_v57 }
 0x62c   : > { %6430 = vmatprep.mubr.bf16.mxu0 %v6128_v31  ;;  %v9401_v63 = vunpack.i.l.bf16 %v9400_v19 }
 0x62d   : > { %6431 = vmatmul.mubr.bf16.gmra.mrb[148].mxu0 %v6127_v27  ;;  %v6028_v50 = vsel %vm205_vm0, %v13257_v7, %v9392_v59  ;;  %v6027_v37 = vsel %vm205_vm0, %v13261_v3, %v9391_v21  ;;  %v9402_v3 = vunpack.i.h.bf16 %v9400_v19 }
 0x62e   : > { %v9410_v48 = vpop.permute.xlu0 %9409 }
 0x62f   : > { %v9405_v53 = vpop.permute.xlu1 %9404  ;;  %v9412_v4 = vunpack.i.h.bf16 %v9410_v48  ;;  %v9411_v1 = vunpack.i.l.bf16 %v9410_v48  ;;  %v5934_v8 = vsel %vm205_vm0, %v9868_v34, %v9402_v3  ;;  %v9871_v34 = vld [vmem:[#allocation2 + $0xd8] sm:$0xff] }
 0x630   : > { %v9407_v31 = vunpack.i.h.bf16 %v9405_v53  ;;  %v9406_v27 = vunpack.i.l.bf16 %v9405_v53 }
 0x631   : > { %v6059_v61 = vsel %vm1115_vm3, %v6027_v37, %v9411_v1  ;;  %v6060_v24 = vsel %vm1115_vm3, %v6028_v50, %v9412_v4  ;;  %v9869_v4 = vld [vmem:[#allocation2 + $0xc0] sm:$0xff] }
 0x632   : > { %v9415_v41 = vpop.permute.xlu0 %9414  ;;  %v5933_v1 = vsel %vm205_vm0, %v9869_v4, %v9401_v63  ;;  %v5966_v18 = vsel %vm1115_vm3, %v5934_v8, %v9407_v31 }
 0x633   : > { %v9425_v12 = vpop.permute.xlu1 %9424  ;;  %v9417_v46 = vunpack.i.h.bf16 %v9415_v41  ;;  %v9416_v36 = vunpack.i.l.bf16 %v9415_v41  ;;  %v5965_v19 = vsel %vm1115_vm3, %v5933_v1, %v9406_v27 }
 0x634   : > { %v9427_v17 = vunpack.i.h.bf16 %v9425_v12  ;;  %v9426_v48 = vunpack.i.l.bf16 %v9425_v12 }
 0x635   : > { %v6091_v26 = vsel %vm1148_vm4, %v6059_v61, %v9416_v36  ;;  %v6092_v6 = vsel %vm1148_vm4, %v6060_v24, %v9417_v46 }
 0x636   : > { %v9420_v7 = vpop.permute.xlu0 %9419  ;;  %v6131_v20 = vpack.c.bf16 %v6092_v6, %v6091_v26  ;;  %v5997_v50 = vsel %vm1148_vm4, %v5965_v19, %v9426_v48  ;;  %v5998_v37 = vsel %vm1148_vm4, %v5966_v18, %v9427_v17 }
 0x637   : > { %v13647_v38 = vpop.permute.xlu1 %9429  ;;  %v9422_v35 = vunpack.i.h.bf16 %v9420_v7  ;;  %v9421_v45 = vunpack.i.l.bf16 %v9420_v7 }
 0x638   : > { %6438 = vmatprep.mubr.bf16.mxu0 %v6131_v20  ;;  %v9432_v26 = vunpack.i.h.bf16 %v13647_v38  ;;  %v9431_v6 = vunpack.i.l.bf16 %v13647_v38 }
 0x639   : > { %6439 = vmatmul.mubr.bf16.gmra.mrb[152].mxu0 %v6130_v9  ;;  %v6030_v53 = vsel %vm205_vm0, %v13286_v58, %v9422_v35  ;;  %v6029_v32 = vsel %vm205_vm0, %v13296_v30, %v9421_v45  ;;  %v6133_v30 = vpack.c.bf16 %v5998_v37, %v5997_v50 }
 0x63a   : > { %v9440_v25 = vpop.permute.xlu0 %9439  ;;  %v5935_v38 = vsel %vm205_vm0, %v9871_v34, %v9431_v6 }
 0x63b   : > { %v9435_v47 = vpop.permute.xlu1 %9434  ;;  %v9442_v59 = vunpack.i.h.bf16 %v9440_v25  ;;  %v9441_v21 = vunpack.i.l.bf16 %v9440_v25 }
 0x63c   : > { %v9437_v9 = vunpack.i.h.bf16 %v9435_v47  ;;  %v9436_v3 = vunpack.i.l.bf16 %v9435_v47 }
 0x63d   : > { %v6061_v22 = vsel %vm1115_vm3, %v6029_v32, %v9441_v21  ;;  %v6062_v41 = vsel %vm1115_vm3, %v6030_v53, %v9442_v59  ;;  %v9870_v59 = vld [vmem:[#allocation2 + $0xe0] sm:$0xff] }
 0x63e   : > { %v9445_v42 = vpop.permute.xlu0 %9444  ;;  %v5936_v21 = vsel %vm205_vm0, %v9870_v59, %v9432_v26  ;;  %v5967_v4 = vsel %vm1115_vm3, %v5935_v38, %v9436_v3  ;;  %v9873_v59 = vld [vmem:[#allocation2 + $0xf0] sm:$0xff] }
 0x63f   : > { %v9455_v13 = vpop.permute.xlu1 %9454  ;;  %v9447_v12 = vunpack.i.h.bf16 %v9445_v42  ;;  %v9446_v11 = vunpack.i.l.bf16 %v9445_v42  ;;  %v5968_v47 = vsel %vm1115_vm3, %v5936_v21, %v9437_v9 }
 0x640   : > { %v9457_v35 = vunpack.i.h.bf16 %v9455_v13  ;;  %v9456_v45 = vunpack.i.l.bf16 %v9455_v13 }
 0x641   : > { %v6093_v36 = vsel %vm1148_vm4, %v6061_v22, %v9446_v11  ;;  %v6094_v61 = vsel %vm1148_vm4, %v6062_v41, %v9447_v12 }
 0x642   : > { %v9450_v58 = vpop.permute.xlu0 %9449  ;;  %v6134_v24 = vpack.c.bf16 %v6094_v61, %v6093_v36  ;;  %v5999_v12 = vsel %vm1148_vm4, %v5967_v4, %v9456_v45  ;;  %v6000_v11 = vsel %vm1148_vm4, %v5968_v47, %v9457_v35 }
 0x643   : > { %v13663_v46 = vpop.permute.xlu1 %9459  ;;  %v13667_v57 = vpop.f32.mrb[164].mxu1  ;;  %v9452_v27 = vunpack.i.h.bf16 %v9450_v58  ;;  %v9451_v25 = vunpack.i.l.bf16 %v9450_v58  ;;  %v6136_v36 = vpack.c.bf16 %v6000_v11, %v5999_v12 }
 0x644   : > { %6446 = vmatprep.mubr.bf16.mxu0 %v6134_v24  ;;  %v13669_v14 = vpop.f32.mrb[165].mxu1  ;;  %v9461_v61 = vunpack.i.l.bf16 %v13663_v46 }
 0x645   : > { %6447 = vmatmul.mubr.bf16.gmra.mrb[156].mxu0 %v6133_v30  ;;  %v13673_v7 = vpop.f32.mrb[166].mxu1  ;;  %v6032_v19 = vsel %vm205_vm0, %v13317_v23, %v9452_v27  ;;  %v6031_v13 = vsel %vm205_vm0, %v13322_v33, %v9451_v25  ;;  %v9462_v33 = vunpack.i.h.bf16 %v13663_v46 }
 0x646   : > { %v13675_v63 = vpop.f32.mrb[167].mxu1  ;;  %v9470_v31 = vpop.permute.xlu0 %9469  ;;  %v5937_v21 = vsel %vm205_vm0, %v9873_v59, %v9461_v61 }
 0x647   : > { %v9465_v20 = vpop.permute.xlu1 %9464  ;;  %v9472_v17 = vunpack.i.h.bf16 %v9470_v31  ;;  %v9471_v48 = vunpack.i.l.bf16 %v9470_v31 }
 0x648   : > { %v9467_v24 = vunpack.i.h.bf16 %v9465_v20  ;;  %v9466_v30 = vunpack.i.l.bf16 %v9465_v20 }
 0x649   : > { %v6063_v53 = vsel %vm1115_vm3, %v6031_v13, %v9471_v48  ;;  %v6064_v32 = vsel %vm1115_vm3, %v6032_v19, %v9472_v17  ;;  %v9872_v48 = vld [vmem:[#allocation2 + $0xf8] sm:$0xff] }
 0x64a   : > { %v9475_v1 = vpop.permute.xlu0 %9474  ;;  %v5938_v46 = vsel %vm205_vm0, %v9872_v48, %v9462_v33  ;;  %v5969_v38 = vsel %vm1115_vm3, %v5937_v21, %v9466_v30 }
 0x64b   : > { %v9485_v8 = vpop.permute.xlu1 %9484  ;;  %v9477_v18 = vunpack.i.h.bf16 %v9475_v1  ;;  %v9476_v42 = vunpack.i.l.bf16 %v9475_v1  ;;  %v5970_v4 = vsel %vm1115_vm3, %v5938_v46, %v9467_v24 }
 0x64c   : > { %v9487_v27 = vunpack.i.h.bf16 %v9485_v8  ;;  %v9486_v25 = vunpack.i.l.bf16 %v9485_v8 }
 0x64d   : > { %v6095_v41 = vsel %vm1148_vm4, %v6063_v53, %v9476_v42  ;;  %v6096_v50 = vsel %vm1148_vm4, %v6064_v32, %v9477_v18 }
 0x64e   : > { %v9480_v23 = vpop.permute.xlu0 %9479  ;;  %v6137_v37 = vpack.c.bf16 %v6096_v50, %v6095_v41  ;;  %v6001_v53 = vsel %vm1148_vm4, %v5969_v38, %v9486_v25  ;;  %v6002_v32 = vsel %vm1148_vm4, %v5970_v4, %v9487_v27 }
 0x64f   : > { %v13689_v22 = vpop.permute.xlu1 %9489  ;;  %v9482_v9 = vunpack.i.h.bf16 %v9480_v23  ;;  %v9481_v3 = vunpack.i.l.bf16 %v9480_v23  ;;  %v6139_v23 = vpack.c.bf16 %v6002_v32, %v6001_v53 }
 0x650   : > { %6454 = vmatprep.mubr.bf16.mxu0 %v6137_v37  ;;  %v9491_v37 = vunpack.i.l.bf16 %v13689_v22 }
 0x651   : > { %6455 = vmatmul.mubr.bf16.gmra.mrb[160].mxu0 %v6136_v36  ;;  %v6034_v8 = vsel %vm205_vm0, %v13342_v40, %v9482_v9  ;;  %v6033_v1 = vsel %vm205_vm0, %v13348_v15, %v9481_v3  ;;  %v9492_v15 = vunpack.i.h.bf16 %v13689_v22 }
 0x652   : > { %v9500_v26 = vpop.permute.xlu0 %9499  ;;  %v5939_v48 = vsel %vm205_vm0, %v13338_v5, %v9491_v37 }
 0x653   : > { %v9495_v58 = vpop.permute.xlu1 %9494  ;;  %v13695_v6 = vpop.f32.mrb[168].mxu1  ;;  %v9502_v35 = vunpack.i.h.bf16 %v9500_v26  ;;  %v9501_v45 = vunpack.i.l.bf16 %v9500_v26 }
 0x654   : > { %v13697_v31 = vpop.f32.mrb[169].mxu1  ;;  %v9497_v33 = vunpack.i.h.bf16 %v9495_v58  ;;  %v9496_v61 = vunpack.i.l.bf16 %v9495_v58 }
 0x655   : > { %v13699_v17 = vpop.f32.mrb[170].mxu1  ;;  %v6065_v18 = vsel %vm1115_vm3, %v6033_v1, %v9501_v45  ;;  %v6066_v42 = vsel %vm1115_vm3, %v6034_v8, %v9502_v35  ;;  %v9874_v35 = vld [vmem:[#allocation2 + $0x110] sm:$0xff] }
 0x656   : > { %v13703_v20 = vpop.f32.mrb[171].mxu1  ;;  %v9505_v47 = vpop.permute.xlu0 %9504  ;;  %v5940_v45 = vsel %vm205_vm0, %v9874_v35, %v9492_v15  ;;  %v5971_v22 = vsel %vm1115_vm3, %v5939_v48, %v9496_v61 }
 0x657   : > { %v9515_v34 = vpop.permute.xlu1 %9514  ;;  %v9507_v19 = vunpack.i.h.bf16 %v9505_v47  ;;  %v9506_v13 = vunpack.i.l.bf16 %v9505_v47  ;;  %v5972_v59 = vsel %vm1115_vm3, %v5940_v45, %v9497_v33 }
 0x658   : > { %v9517_v9 = vunpack.i.h.bf16 %v9515_v34  ;;  %v9516_v3 = vunpack.i.l.bf16 %v9515_v34 }
 0x659   : > { %v6097_v11 = vsel %vm1148_vm4, %v6065_v18, %v9506_v13  ;;  %v6098_v41 = vsel %vm1148_vm4, %v6066_v42, %v9507_v19 }
 0x65a   : > { %v9510_v40 = vpop.permute.xlu0 %9509  ;;  %v6140_v50 = vpack.c.bf16 %v6098_v41, %v6097_v11  ;;  %v6003_v13 = vsel %vm1148_vm4, %v5971_v22, %v9516_v3  ;;  %v6004_v18 = vsel %vm1148_vm4, %v5972_v59, %v9517_v9 }
 0x65b   : > { %v13715_v12 = vpop.permute.xlu1 %9519  ;;  %v9512_v30 = vunpack.i.h.bf16 %v9510_v40  ;;  %v9511_v26 = vunpack.i.l.bf16 %v9510_v40  ;;  %v6142_v41 = vpack.c.bf16 %v6004_v18, %v6003_v13 }
 0x65c   : > { %6462 = vmatprep.mubr.bf16.mxu0 %v6140_v50  ;;  %v9522_v40 = vunpack.i.h.bf16 %v13715_v12  ;;  %v9521_v50 = vunpack.i.l.bf16 %v13715_v12 }
 0x65d   : > { %6463 = vmatmul.mubr.bf16.gmra.mrb[164].mxu0 %v6139_v23  ;;  %v6036_v38 = vsel %vm205_vm0, %v13391_v16, %v9512_v30  ;;  %v6035_v34 = vsel %vm205_vm0, %v13400_v39, %v9511_v26 }
 0x65e   : > { %v9530_v24 = vpop.permute.xlu0 %9529  ;;  %v5941_v35 = vsel %vm205_vm0, %v13376_v44, %v9521_v50 }
 0x65f   : > { %v9525_v36 = vpop.permute.xlu1 %9524  ;;  %v9532_v27 = vunpack.i.h.bf16 %v9530_v24  ;;  %v9531_v25 = vunpack.i.l.bf16 %v9530_v24 }
 0x660   : > { %v9527_v15 = vunpack.i.h.bf16 %v9525_v36  ;;  %v9526_v37 = vunpack.i.l.bf16 %v9525_v36 }
 0x661   : > { %v6067_v5 = vsel %vm1115_vm3, %v6035_v34, %v9531_v25  ;;  %v6068_v1 = vsel %vm1115_vm3, %v6036_v38, %v9532_v27  ;;  %v9875_v27 = vld [vmem:[#allocation2 + $0x128] sm:$0xff] }
 0x662   : > { %v9535_v21 = vpop.permute.xlu0 %9534  ;;  %v5942_v25 = vsel %vm205_vm0, %v9875_v27, %v9522_v40  ;;  %v5973_v12 = vsel %vm1115_vm3, %v5941_v35, %v9526_v37 }
 0x663   : > { %v9545_v46 = vpop.permute.xlu1 %9544  ;;  %v13726_v58 = vpop.f32.mrb[172].mxu1  ;;  %v9537_v4 = vunpack.i.h.bf16 %v9535_v21  ;;  %v9536_v47 = vunpack.i.l.bf16 %v9535_v21  ;;  %v5974_v48 = vsel %vm1115_vm3, %v5942_v25, %v9527_v15 }
 0x664   : > { %v13732_v8 = vpop.f32.mrb[173].mxu1  ;;  %v9547_v30 = vunpack.i.h.bf16 %v9545_v46  ;;  %v9546_v26 = vunpack.i.l.bf16 %v9545_v46 }
 0x665   : > { %v13736_v19 = vpop.f32.mrb[174].mxu1  ;;  %v6099_v39 = vsel %vm1148_vm4, %v6067_v5, %v9536_v47  ;;  %v6100_v53 = vsel %vm1148_vm4, %v6068_v1, %v9537_v4 }
 0x666   : > { %v13740_v42 = vpop.f32.mrb[175].mxu1  ;;  %v9540_v32 = vpop.permute.xlu0 %9539  ;;  %v6143_v11 = vpack.c.bf16 %v6100_v53, %v6099_v39  ;;  %v6005_v44 = vsel %vm1148_vm4, %v5973_v12, %v9546_v26  ;;  %v6006_v4 = vsel %vm1148_vm4, %v5974_v48, %v9547_v30 }
 0x667   : > { %v13742_v16 = vpop.permute.xlu1 %9549  ;;  %v9542_v61 = vunpack.i.h.bf16 %v9540_v32  ;;  %v9541_v24 = vunpack.i.l.bf16 %v9540_v32  ;;  %v6145_v39 = vpack.c.bf16 %v6006_v4, %v6005_v44 }
 0x668   : > { %6470 = vmatprep.mubr.bf16.mxu0 %v6143_v11  ;;  %v9552_v15 = vunpack.i.h.bf16 %v13742_v16  ;;  %v9551_v37 = vunpack.i.l.bf16 %v13742_v16 }
 0x669   : > { %6471 = vmatmul.mubr.bf16.gmra.mrb[168].mxu0 %v6142_v41  ;;  %v6038_v36 = vsel %vm205_vm0, %v13438_v52, %v9542_v61  ;;  %v6037_v46 = vsel %vm205_vm0, %v13447_v0, %v9541_v24 }
 0x66a   : > { %v9560_v33 = vpop.permute.xlu0 %9559  ;;  %v5944_v27 = vsel %vm205_vm0, %v13412_v56, %v9552_v15  ;;  %v5943_v25 = vsel %vm205_vm0, %v13420_v49, %v9551_v37 }
 0x66b   : > { %v9555_v23 = vpop.permute.xlu1 %9554  ;;  %v9562_v9 = vunpack.i.h.bf16 %v9560_v33  ;;  %v9561_v3 = vunpack.i.l.bf16 %v9560_v33 }
 0x66c   : > { %v9557_v33 = vunpack.i.h.bf16 %v9555_v23  ;;  %v9556_v61 = vunpack.i.l.bf16 %v9555_v23 }
 0x66d   : > { %v6069_v38 = vsel %vm1115_vm3, %v6037_v46, %v9561_v3  ;;  %v6070_v34 = vsel %vm1115_vm3, %v6038_v36, %v9562_v9 }
 0x66e   : > { %v9565_v22 = vpop.permute.xlu0 %9564  ;;  %v5975_v48 = vsel %vm1115_vm3, %v5943_v25, %v9556_v61 }
 0x66f   : > { %v9575_v45 = vpop.permute.xlu1 %9574  ;;  %v9567_v59 = vunpack.i.h.bf16 %v9565_v22  ;;  %v9566_v21 = vunpack.i.l.bf16 %v9565_v22  ;;  %v5976_v22 = vsel %vm1115_vm3, %v5944_v27, %v9557_v33 }
 0x670   : > { %v9577_v24 = vunpack.i.h.bf16 %v9575_v45  ;;  %v9576_v30 = vunpack.i.l.bf16 %v9575_v45 }
 0x671   : > { %v6101_v5 = vsel %vm1148_vm4, %v6069_v38, %v9566_v21  ;;  %v6102_v1 = vsel %vm1148_vm4, %v6070_v34, %v9567_v59 }
 0x672   : > { %v9570_v52 = vpop.permute.xlu0 %9569  ;;  %v6146_v0 = vpack.c.bf16 %v6102_v1, %v6101_v5  ;;  %v6007_v45 = vsel %vm1148_vm4, %v5975_v48, %v9576_v30  ;;  %v6008_v46 = vsel %vm1148_vm4, %v5976_v22, %v9577_v24 }
 0x673   : > { %v13761_v47 = vpop.permute.xlu1 %9579  ;;  %v13765_v13 = vpop.f32.mrb[176].mxu1  ;;  %v9572_v9 = vunpack.i.h.bf16 %v9570_v52  ;;  %v9571_v3 = vunpack.i.l.bf16 %v9570_v52  ;;  %v6148_v15 = vpack.c.bf16 %v6008_v46, %v6007_v45 }
 0x674   : > { %v13767_v18 = vpop.f32.mrb[177].mxu1  ;;  %6478 = vmatprep.mubr.bf16.mxu0 %v6146_v0 }
 0x675   : > { %v13769_v53 = vpop.f32.mrb[178].mxu1  ;;  %6479 = vmatmul.mubr.bf16.gmra.mrb[172].mxu0 %v6145_v39  ;;  %v6040_v56 = vsel %vm205_vm0, %v13482_v62, %v9572_v9  ;;  %v6039_v49 = vsel %vm205_vm0, %v13491_v43, %v9571_v3  ;;  %v9582_v62 = vunpack.i.h.bf16 %v13761_v47  ;;  %v9581_v43 = vunpack.i.l.bf16 %v13761_v47 }
 0x676   : > { %v13771_v32 = vpop.f32.mrb[179].mxu1  ;;  %v9590_v41 = vpop.permute.xlu0 %9589 }
 0x677   : > { %v13773_v11 = vpop.permute.xlu1 %9584  ;;  %v9591_v9 = vunpack.i.l.bf16 %v9590_v41 }
 0x678   : > { %v9587_v37 = vunpack.i.h.bf16 %v13773_v11  ;;  %v9586_v33 = vunpack.i.l.bf16 %v13773_v11 }
 0x67a   : > { %v13775_v40 = vpop.permute.xlu0 %9594 }
 0x67b   : > { %v13777_v50 = vpop.permute.xlu1 %9624  ;;  %v9597_v25 = vunpack.i.h.bf16 %v13775_v40  ;;  %v9596_v47 = vunpack.i.l.bf16 %v13775_v40 }
 0x67c   : > { %v9627_v3 = vunpack.i.h.bf16 %v13777_v50  ;;  %v9626_v27 = vunpack.i.l.bf16 %v13777_v50 }
 0x67e   : > { %v9600_v26 = vpop.permute.xlu0 %9599 }
 0x67f   : > { %v9602_v35 = vunpack.i.h.bf16 %v9600_v26  ;;  %v9601_v12 = vunpack.i.l.bf16 %v9600_v26  ;;  %v13787_v16 = vpop.permute.xlu1 %9629  ;;  %v9592_v26 = vunpack.i.h.bf16 %v9590_v41  ;;  %v5945_v41 = vsel %vm205_vm0, %v13471_v10, %v9581_v43 }
 0x680   : > { %v5977_v40 = vsel %vm1115_vm3, %v5945_v41, %v9586_v33  ;;  %v9632_v10 = vunpack.i.h.bf16 %v13787_v16 }
 0x681   : > { %v6071_v34 = vsel %vm1115_vm3, %v6039_v49, %v9601_v12  ;;  %v6072_v44 = vsel %vm1115_vm3, %v6040_v56, %v9602_v35  ;;  %v5946_v12 = vsel %vm205_vm0, %v13462_v29, %v9582_v62  ;;  %v6009_v46 = vsel %vm1148_vm4, %v5977_v40, %v9626_v27 }
 0x682   : > { %v9605_v23 = vpop.permute.xlu0 %9604  ;;  %v9631_v56 = vunpack.i.l.bf16 %v13787_v16 }
 0x683   : > { %v13789_v36 = vpop.f32.mrb[180].mxu1  ;;  %v9607_v59 = vunpack.i.h.bf16 %v9605_v23  ;;  %v9606_v21 = vunpack.i.l.bf16 %v9605_v23  ;;  %v9635_v61 = vpop.permute.xlu1 %9634  ;;  %v5978_v23 = vsel %vm1115_vm3, %v5946_v12, %v9587_v37 }
 0x684   : > { %v13797_v38 = vpop.f32.mrb[181].mxu1  ;;  %v6010_v29 = vsel %vm1148_vm4, %v5978_v23, %v9627_v3  ;;  %v5947_v37 = vsel %vm205_vm0, %v13532_v55, %v9631_v56  ;;  %v14291_v56 = vld [vmem:[#allocation5_spill] sm:$0xff] }
 0x685   : > { %v13801_v4 = vpop.f32.mrb[182].mxu1  ;;  %v6103_v1 = vsel %vm1148_vm4, %v6071_v34, %v9606_v21  ;;  %v6104_v52 = vsel %vm1148_vm4, %v6072_v44, %v9607_v59  ;;  %v9637_v59 = vunpack.i.h.bf16 %v9635_v61  ;;  %v9636_v21 = vunpack.i.l.bf16 %v9635_v61 }
 0x686   : > { %v13803_v5 = vpop.f32.mrb[183].mxu1  ;;  %v9610_v0 = vpop.permute.xlu0 %9609  ;;  %v6149_v39 = vpack.c.bf16 %v6104_v52, %v6103_v1  ;;  %v6151_v52 = vpack.c.bf16 %v6010_v29, %v6009_v46 }
 0x687   : > { %v9612_v24 = vunpack.i.h.bf16 %v9610_v0  ;;  %v9611_v30 = vunpack.i.l.bf16 %v9610_v0  ;;  %v9645_v49 = vpop.permute.xlu1 %9644  ;;  %v5979_v16 = vsel %vm1115_vm3, %v5947_v37, %v9636_v21  ;;  %v14292_v21 = vld [vmem:[#allocation6_spill] sm:$0xff]  ;;  %v14294_v37 = vld [vmem:[#allocation4_spill] sm:$0xff] }
 0x688   : > { %6486 = vmatprep.mubr.bf16.mxu0 %v6149_v39  ;;  %v9647_v62 = vunpack.i.h.bf16 %v9645_v49  ;;  %v9646_v43 = vunpack.i.l.bf16 %v9645_v49 }
 0x689   : > { %v6042_v35 = vsel %vm205_vm0, %v13546_v60, %v9612_v24  ;;  %v6041_v11 = vsel %vm205_vm0, %v13550_v54, %v9611_v30  ;;  %6487 = vmatmul.mubr.bf16.gmra.mrb[176].mxu0 %v6148_v15  ;;  %v5948_v15 = vsel %vm205_vm0, %v13519_v2, %v9632_v10 }
 0x68a   : > { %v9615_v48 = vpop.permute.xlu0 %9614  ;;  %v6073_v50 = vsel %vm1115_vm3, %v6041_v11, %v9591_v9  ;;  %v6074_v22 = vsel %vm1115_vm3, %v6042_v35, %v9592_v26  ;;  %v5980_v33 = vsel %vm1115_vm3, %v5948_v15, %v9637_v59 }
 0x68b   : > { %v6105_v60 = vsel %vm1148_vm4, %v6073_v50, %v9596_v47  ;;  %v6106_v54 = vsel %vm1148_vm4, %v6074_v22, %v9597_v25  ;;  %v9617_v44 = vunpack.i.h.bf16 %v9615_v48  ;;  %v9616_v1 = vunpack.i.l.bf16 %v9615_v48 }
 0x68c   : > { %v6152_v45 = vpack.c.bf16 %v6106_v54, %v6105_v60  ;;  %v6011_v47 = vsel %vm1148_vm4, %v5979_v16, %v9646_v43  ;;  %v6012_v35 = vsel %vm1148_vm4, %v5980_v33, %v9647_v62 }
 0x68d   : > { %v6044_v30 = vsel %vm205_vm0, %v13526_v28, %v9617_v44  ;;  %v6043_v26 = vsel %vm205_vm0, %v13540_v51, %v9616_v1  ;;  %v6154_v41 = vpack.c.bf16 %v6012_v35, %v6011_v47  ;;  %v14296_v47 = vld [vmem:[#allocation8_spill] sm:$0xff] }
 0x68e   : > { %v9620_v34 = vpop.permute.xlu0 %9619  ;;  %6494 = vmatprep.mubr.bf16.mxu0 %v6152_v45 }
 0x68f   : > { %v9622_v0 = vunpack.i.h.bf16 %v9620_v34  ;;  %v9621_v39 = vunpack.i.l.bf16 %v9620_v34 }
 0x691   : > { %6495 = vmatmul.mubr.bf16.gmra.mrb[180].mxu0 %v6151_v52  ;;  %v6075_v55 = vsel %vm1115_vm3, %v6043_v26, %v9621_v39  ;;  %v6076_v27 = vsel %vm1115_vm3, %v6044_v30, %v9622_v0  ;;  %v14293_v39 = vld [vmem:[#allocation3_spill] sm:$0xff] }
 0x692   : > { %v9640_v61 = vpop.permute.xlu0 %9639 }
 0x693   : > { %v13839_v24 = vpop.f32.mrb[184].mxu1  ;;  %v9642_v9 = vunpack.i.h.bf16 %v9640_v61  ;;  %v9641_v3 = vunpack.i.l.bf16 %v9640_v61 }
 0x694   : > { %v13845_v2 = vpop.f32.mrb[185].mxu1 }
 0x695   : > { %v13849_v25 = vpop.f32.mrb[186].mxu1  ;;  %v6107_v28 = vsel %vm1148_vm4, %v6075_v55, %v9641_v3  ;;  %v6108_v51 = vsel %vm1148_vm4, %v6076_v27, %v9642_v9  ;;  %v14295_v55 = vld [vmem:[#allocation7_spill] sm:$0xff] }
 0x696   : > { %v13853_v11 = vpop.f32.mrb[187].mxu1  ;;  %v6155_v12 = vpack.c.bf16 %v6108_v51, %v6107_v28 }
 0x698   : > { %6502 = vmatprep.mubr.bf16.mxu0 %v6155_v12 }
 0x699   : > { %6503 = vmatmul.mubr.bf16.gmra.mrb[184].mxu0 %v6154_v41 }
 0x6af   : > { %v13857_v48 = vpop.f32.mrb[188].mxu1 }
 0x6b0   : > { %v13859_v50 = vpop.f32.mrb[189].mxu1 }
 0x6b1   : > { %v13861_v22 = vpop.f32.mrb[190].mxu1 }
 0x6b2   : > { %v13863_v40 = vpop.f32.mrb[191].mxu1 }
 0x6b8   : > { %v7454_v23 = vpop.f32.mrb[124].mxu0 }
 0x6b9   : > { %v7455_v60 = vpop.f32.mrb[125].mxu0 }
 0x6ba   : > { %v7456_v54 = vadd.f32 %v7455_v60, %v7454_v23  ;;  %v7457_v45 = vpop.f32.mrb[126].mxu0 }
 0x6bb   : > { %v7458_v46 = vpop.f32.mrb[127].mxu0 }
 0x6bc   : > { %v6546_v29 = vadd.f32 %v7456_v54, %v13669_v14  ;;  %v7459_v10 = vadd.f32 %v7458_v46, %v7457_v45  ;;  %v14297_v54 = vld [vmem:[#allocation9_spill] sm:$0xff] }
 0x6be   : > { %v6672_v49 = vsub.f32 %v14291_v56, %v6546_v29  ;;  %v6549_v59 = vadd.f32 %v7459_v10, %v13675_v63 }
 0x6c0   : > { %6704 = vst.msk [vmem:[%s13871_s21] sm:$0xff] %vm262_vm2, %v6672_v49  ;;  %v6673_v34 = vsub.f32 %v14292_v21, %v6549_v59 }
 0x6c2   : > { %6705 = vst.msk [vmem:[%s13871_s21 + $0x8] sm:$0xff] %vm262_vm2, %v6673_v34 }
 0x6c4   : > { %v7460_v14 = vpop.f32.mrb[128].mxu0 }
 0x6c5   : > { %v7461_v44 = vpop.f32.mrb[129].mxu0 }
 0x6c6   : > { %v7462_v1 = vadd.f32 %v7461_v44, %v7460_v14  ;;  %v7463_v52 = vpop.f32.mrb[130].mxu0 }
 0x6c7   : > { %v7464_v62 = vpop.f32.mrb[131].mxu0 }
 0x6c8   : > { %v6554_v43 = vadd.f32 %v13667_v57, %v7462_v1  ;;  %v7465_v0 = vadd.f32 %v7464_v62, %v7463_v52  ;;  %v14299_v52 = vld [vmem:[#allocation11_spill] sm:$0xff] }
 0x6ca   : > { %v6674_v15 = vsub.f32 %v14293_v39, %v6554_v43  ;;  %v6557_v63 = vadd.f32 %v13673_v7, %v7465_v0  ;;  %v14300_v0 = vld [vmem:[#allocation12_spill] sm:$0xff] }
 0x6cc   : > { %6706 = vst.msk [vmem:[%s13871_s21 + $0x10] sm:$0xff] %vm262_vm2, %v6674_v15  ;;  %v6675_v16 = vsub.f32 %v14294_v37, %v6557_v63 }
 0x6ce   : > { %6707 = vst.msk [vmem:[%s13871_s21 + $0x18] sm:$0xff] %vm262_vm2, %v6675_v16 }
 0x6d0   : > { %v7466_v33 = vpop.f32.mrb[132].mxu0 }
 0x6d1   : > { %v7467_v61 = vpop.f32.mrb[133].mxu0 }
 0x6d2   : > { %v7468_v30 = vadd.f32 %v7467_v61, %v7466_v33  ;;  %v7469_v26 = vpop.f32.mrb[134].mxu0 }
 0x6d3   : > { %v7470_v9 = vpop.f32.mrb[135].mxu0 }
 0x6d4   : > { %v6562_v57 = vadd.f32 %v7468_v30, %v13697_v31  ;;  %v7471_v3 = vadd.f32 %v7470_v9, %v7469_v26  ;;  %v14301_v30 = vld [vmem:[#allocation13_spill] sm:$0xff]  ;;  %v14302_v9 = vld [vmem:[#allocation14_spill] sm:$0xff] }
 0x6d6   : > { %v6676_v27 = vsub.f32 %v14295_v55, %v6562_v57  ;;  %v6565_v7 = vadd.f32 %v7471_v3, %v13703_v20  ;;  %v14298_v20 = vld [vmem:[#allocation10_spill] sm:$0xff] }
 0x6d8   : > { %6708 = vst.msk [vmem:[%s13871_s21 + $0x20] sm:$0xff] %vm262_vm2, %v6676_v27  ;;  %v6677_v35 = vsub.f32 %v14296_v47, %v6565_v7 }
 0x6da   : > { %6709 = vst.msk [vmem:[%s13871_s21 + $0x28] sm:$0xff] %vm262_vm2, %v6677_v35 }
 0x6dc   : > { %v7472_v28 = vpop.f32.mrb[136].mxu0 }
 0x6dd   : > { %v7473_v51 = vpop.f32.mrb[137].mxu0 }
 0x6de   : > { %v7474_v12 = vadd.f32 %v7473_v51, %v7472_v28  ;;  %v7475_v41 = vpop.f32.mrb[138].mxu0  ;;  %v14303_v28 = vld [vmem:[#allocation15_spill] sm:$0xff] }
 0x6df   : > { %v7476_v23 = vpop.f32.mrb[139].mxu0 }
 0x6e0   : > { %v6570_v31 = vadd.f32 %v13695_v6, %v7474_v12  ;;  %v7477_v60 = vadd.f32 %v7476_v23, %v7475_v41  ;;  %v14304_v12 = vld [vmem:[#allocation16_spill] sm:$0xff] }
 0x6e2   : > { %v6678_v45 = vsub.f32 %v14297_v54, %v6570_v31  ;;  %v6573_v46 = vadd.f32 %v13699_v17, %v7477_v60 }
 0x6e3   : > { %v13904_v49 = vpop.f32.mrb[192].mxu1 }
 0x6e4   : > { %6710 = vst.msk [vmem:[%s13871_s21 + $0x30] sm:$0xff] %vm262_vm2, %v6678_v45  ;;  %v6679_v29 = vsub.f32 %v14298_v20, %v6573_v46  ;;  %v13906_v6 = vpop.f32.mrb[193].mxu1  ;;  %v14305_v20 = vld [vmem:[#allocation17_spill] sm:$0xff] }
 0x6e5   : > { %v13909_v44 = vpop.f32.mrb[194].mxu1 }
 0x6e6   : > { %6711 = vst.msk [vmem:[%s13871_s21 + $0x38] sm:$0xff] %vm262_vm2, %v6679_v29  ;;  %v13911_v1 = vpop.f32.mrb[195].mxu1 }
 0x6e8   : > { %v7478_v10 = vpop.f32.mrb[140].mxu0 }
 0x6e9   : > { %v7479_v56 = vpop.f32.mrb[141].mxu0 }
 0x6ea   : > { %v7480_v59 = vadd.f32 %v7479_v56, %v7478_v10  ;;  %v7481_v21 = vpop.f32.mrb[142].mxu0  ;;  %v14306_v10 = vld [vmem:[#allocation18_spill] sm:$0xff] }
 0x6eb   : > { %v7482_v34 = vpop.f32.mrb[143].mxu0 }
 0x6ec   : > { %v6578_v14 = vadd.f32 %v7480_v59, %v13732_v8  ;;  %v7483_v17 = vadd.f32 %v7482_v34, %v7481_v21 }
 0x6ee   : > { %v6680_v62 = vsub.f32 %v14299_v52, %v6578_v14  ;;  %v6581_v43 = vadd.f32 %v7483_v17, %v13740_v42 }
 0x6f0   : > { %6712 = vst.msk [vmem:[%s13871_s21 + $0x40] sm:$0xff] %vm262_vm2, %v6680_v62  ;;  %v6681_v39 = vsub.f32 %v14300_v0, %v6581_v43  ;;  %v14307_v62 = vld [vmem:[#allocation19_spill] sm:$0xff]  ;;  %v14308_v0 = vld [vmem:[#allocation20_spill] sm:$0xff] }
 0x6f2   : > { %6713 = vst.msk [vmem:[%s13871_s21 + $0x48] sm:$0xff] %vm262_vm2, %v6681_v39 }
 0x6f4   : > { %v7484_v15 = vpop.f32.mrb[144].mxu0 }
 0x6f5   : > { %v7485_v63 = vpop.f32.mrb[145].mxu0 }
 0x6f6   : > { %v7486_v8 = vadd.f32 %v7485_v63, %v7484_v15  ;;  %v7487_v37 = vpop.f32.mrb[146].mxu0 }
 0x6f7   : > { %v7488_v16 = vpop.f32.mrb[147].mxu0 }
 0x6f8   : > { %v6586_v33 = vadd.f32 %v13726_v58, %v7486_v8  ;;  %v7489_v61 = vadd.f32 %v7488_v16, %v7487_v37 }
 0x6fa   : > { %v6682_v26 = vsub.f32 %v14301_v30, %v6586_v33  ;;  %v6589_v42 = vadd.f32 %v13736_v19, %v7489_v61  ;;  %v14309_v61 = vld [vmem:[#allocation21_spill] sm:$0xff] }
 0x6fc   : > { %6714 = vst.msk [vmem:[%s13871_s21 + $0x50] sm:$0xff] %vm262_vm2, %v6682_v26  ;;  %v6683_v57 = vsub.f32 %v14302_v9, %v6589_v42  ;;  %v14310_v26 = vld [vmem:[#allocation22_spill] sm:$0xff] }
 0x6fe   : > { %6715 = vst.msk [vmem:[%s13871_s21 + $0x58] sm:$0xff] %vm262_vm2, %v6683_v57 }
 0x700   : > { %v7490_v3 = vpop.f32.mrb[148].mxu0 }
 0x701   : > { %v7491_v55 = vpop.f32.mrb[149].mxu0 }
 0x702   : > { %v7492_v27 = vadd.f32 %v7491_v55, %v7490_v3  ;;  %v7493_v7 = vpop.f32.mrb[150].mxu0 }
 0x703   : > { %v7494_v47 = vpop.f32.mrb[151].mxu0 }
 0x704   : > { %v6594_v58 = vadd.f32 %v7492_v27, %v13767_v18  ;;  %v7495_v35 = vadd.f32 %v7494_v47, %v7493_v7  ;;  %v14311_v47 = vld [vmem:[#allocation23_spill] sm:$0xff] }
 0x706   : > { %v6684_v51 = vsub.f32 %v14303_v28, %v6594_v58  ;;  %v6597_v19 = vadd.f32 %v7495_v35, %v13771_v32  ;;  %v14312_v35 = vld [vmem:[#allocation24_spill] sm:$0xff] }
 0x708   : > { %6716 = vst.msk [vmem:[%s13871_s21 + $0x60] sm:$0xff] %vm262_vm2, %v6684_v51  ;;  %v6685_v41 = vsub.f32 %v14304_v12, %v6597_v19 }
 0x70a   : > { %6717 = vst.msk [vmem:[%s13871_s21 + $0x68] sm:$0xff] %vm262_vm2, %v6685_v41 }
 0x70c   : > { %v7496_v23 = vpop.f32.mrb[152].mxu0 }
 0x70d   : > { %v7497_v31 = vpop.f32.mrb[153].mxu0 }
 0x70e   : > { %v7498_v60 = vadd.f32 %v7497_v31, %v7496_v23  ;;  %v7499_v54 = vpop.f32.mrb[154].mxu0 }
 0x70f   : > { %v7500_v45 = vpop.f32.mrb[155].mxu0 }
 0x710   : > { %v6602_v18 = vadd.f32 %v13765_v13, %v7498_v60  ;;  %v7501_v46 = vadd.f32 %v7500_v45, %v7499_v54  ;;  %v14313_v60 = vld [vmem:[#allocation25_spill] sm:$0xff]  ;;  %v14314_v45 = vld [vmem:[#allocation26_spill] sm:$0xff] }
 0x712   : > { %v6686_v29 = vsub.f32 %v14305_v20, %v6602_v18  ;;  %v6605_v32 = vadd.f32 %v13769_v53, %v7501_v46 }
 0x714   : > { %6718 = vst.msk [vmem:[%s13871_s21 + $0x70] sm:$0xff] %vm262_vm2, %v6686_v29  ;;  %v6687_v56 = vsub.f32 %v14306_v10, %v6605_v32 }
 0x716   : > { %6719 = vst.msk [vmem:[%s13871_s21 + $0x78] sm:$0xff] %vm262_vm2, %v6687_v56 }
 0x718   : > { %v7502_v59 = vpop.f32.mrb[156].mxu0 }
 0x719   : > { %v7503_v21 = vpop.f32.mrb[157].mxu0 }
 0x71a   : > { %v7504_v34 = vadd.f32 %v7503_v21, %v7502_v59  ;;  %v7505_v14 = vpop.f32.mrb[158].mxu0  ;;  %v14315_v59 = vld [vmem:[#allocation27_spill] sm:$0xff] }
 0x71b   : > { %v7506_v17 = vpop.f32.mrb[159].mxu0 }
 0x71c   : > { %v6610_v13 = vadd.f32 %v7504_v34, %v13797_v38  ;;  %v7507_v52 = vadd.f32 %v7506_v17, %v7505_v14 }
 0x71e   : > { %v6688_v43 = vsub.f32 %v14307_v62, %v6610_v13  ;;  %v6613_v53 = vadd.f32 %v7507_v52, %v13803_v5 }
 0x720   : > { %6720 = vst.msk [vmem:[%s13871_s21 + $0x80] sm:$0xff] %vm262_vm2, %v6688_v43  ;;  %v6689_v39 = vsub.f32 %v14308_v0, %v6613_v53  ;;  %v14317_v0 = vld [vmem:[#allocation29_spill] sm:$0xff] }
 0x722   : > { %6721 = vst.msk [vmem:[%s13871_s21 + $0x88] sm:$0xff] %vm262_vm2, %v6689_v39 }
 0x724   : > { %v7508_v15 = vpop.f32.mrb[160].mxu0 }
 0x725   : > { %v7509_v63 = vpop.f32.mrb[161].mxu0 }
 0x726   : > { %v7510_v8 = vadd.f32 %v7509_v63, %v7508_v15  ;;  %v7511_v37 = vpop.f32.mrb[162].mxu0  ;;  %v14318_v15 = vld [vmem:[#allocation30_spill] sm:$0xff] }
 0x727   : > { %v7512_v16 = vpop.f32.mrb[163].mxu0 }
 0x728   : > { %v6618_v38 = vadd.f32 %v13789_v36, %v7510_v8  ;;  %v7513_v33 = vadd.f32 %v7512_v16, %v7511_v37 }
 0x72a   : > { %v6690_v30 = vsub.f32 %v14309_v61, %v6618_v38  ;;  %v6621_v5 = vadd.f32 %v13801_v4, %v7513_v33 }
 0x72c   : > { %6722 = vst.msk [vmem:[%s13871_s21 + $0x90] sm:$0xff] %vm262_vm2, %v6690_v30  ;;  %v6691_v42 = vsub.f32 %v14310_v26, %v6621_v5  ;;  %v14319_v30 = vld [vmem:[#allocation31_spill] sm:$0xff]  ;;  %v14320_v26 = vld [vmem:[#allocation32_spill] sm:$0xff] }
 0x72e   : > { %6723 = vst.msk [vmem:[%s13871_s21 + $0x98] sm:$0xff] %vm262_vm2, %v6691_v42 }
 0x730   : > { %v7514_v9 = vpop.f32.mrb[164].mxu0 }
 0x731   : > { %v7515_v57 = vpop.f32.mrb[165].mxu0 }
 0x732   : > { %v7516_v3 = vadd.f32 %v7515_v57, %v7514_v9  ;;  %v7517_v55 = vpop.f32.mrb[166].mxu0 }
 0x733   : > { %v7518_v27 = vpop.f32.mrb[167].mxu0 }
 0x734   : > { %v6626_v36 = vadd.f32 %v7516_v3, %v13845_v2  ;;  %v7519_v7 = vadd.f32 %v7518_v27, %v7517_v55 }
 0x736   : > { %v6692_v58 = vsub.f32 %v14311_v47, %v6626_v36  ;;  %v6629_v4 = vadd.f32 %v7519_v7, %v13853_v11 }
 0x738   : > { %6724 = vst.msk [vmem:[%s13871_s21 + $0xa0] sm:$0xff] %vm262_vm2, %v6692_v58  ;;  %v6693_v28 = vsub.f32 %v14312_v35, %v6629_v4 }
 0x73a   : > { %6725 = vst.msk [vmem:[%s13871_s21 + $0xa8] sm:$0xff] %vm262_vm2, %v6693_v28 }
 0x73c   : > { %v7520_v51 = vpop.f32.mrb[168].mxu0 }
 0x73d   : > { %v7521_v19 = vpop.f32.mrb[169].mxu0 }
 0x73e   : > { %v7522_v12 = vadd.f32 %v7521_v19, %v7520_v51  ;;  %v7523_v41 = vpop.f32.mrb[170].mxu0 }
 0x73f   : > { %v7524_v23 = vpop.f32.mrb[171].mxu0 }
 0x740   : > { %v6634_v2 = vadd.f32 %v13839_v24, %v7522_v12  ;;  %v7525_v31 = vadd.f32 %v7524_v23, %v7523_v41 }
 0x742   : > { %v6694_v54 = vsub.f32 %v14313_v60, %v6634_v2  ;;  %v6637_v11 = vadd.f32 %v13849_v25, %v7525_v31  ;;  %v14316_v25 = vld [vmem:[#allocation28_spill] sm:$0xff] }
 0x744   : > { %6726 = vst.msk [vmem:[%s13871_s21 + $0xb0] sm:$0xff] %vm262_vm2, %v6694_v54  ;;  %v6695_v18 = vsub.f32 %v14314_v45, %v6637_v11 }
 0x746   : > { %6727 = vst.msk [vmem:[%s13871_s21 + $0xb8] sm:$0xff] %vm262_vm2, %v6695_v18 }
 0x748   : > { %v7526_v46 = vpop.f32.mrb[172].mxu0 }
 0x749   : > { %v7527_v20 = vpop.f32.mrb[173].mxu0 }
 0x74a   : > { %v7528_v29 = vadd.f32 %v7527_v20, %v7526_v46  ;;  %v7529_v32 = vpop.f32.mrb[174].mxu0 }
 0x74b   : > { %v7530_v10 = vpop.f32.mrb[175].mxu0 }
 0x74c   : > { %v6642_v24 = vadd.f32 %v7528_v29, %v13859_v50  ;;  %v7531_v56 = vadd.f32 %v7530_v10, %v7529_v32 }
 0x74e   : > { %v6696_v21 = vsub.f32 %v14315_v59, %v6642_v24  ;;  %v6645_v34 = vadd.f32 %v7531_v56, %v13863_v40 }
 0x750   : > { %6728 = vst.msk [vmem:[%s13871_s21 + $0xc0] sm:$0xff] %vm262_vm2, %v6696_v21  ;;  %v6697_v14 = vsub.f32 %v14316_v25, %v6645_v34 }
 0x752   : > { %6729 = vst.msk [vmem:[%s13871_s21 + $0xc8] sm:$0xff] %vm262_vm2, %v6697_v14 }
 0x75c   : > { %v7532_v17 = vpop.f32.mrb[176].mxu0 }
 0x75d   : > { %v7533_v13 = vpop.f32.mrb[177].mxu0 }
 0x75e   : > { %v7534_v52 = vadd.f32 %v7533_v13, %v7532_v17  ;;  %v7535_v62 = vpop.f32.mrb[178].mxu0 }
 0x75f   : > { %v7536_v43 = vpop.f32.mrb[179].mxu0 }
 0x760   : > { %v6650_v50 = vadd.f32 %v13857_v48, %v7534_v52  ;;  %v7537_v53 = vadd.f32 %v7536_v43, %v7535_v62 }
 0x762   : > { %v6698_v39 = vsub.f32 %v14317_v0, %v6650_v50  ;;  %v6653_v40 = vadd.f32 %v13861_v22, %v7537_v53 }
 0x764   : > { %6730 = vst.msk [vmem:[%s13871_s21 + $0xd0] sm:$0xff] %vm262_vm2, %v6698_v39  ;;  %v6699_v63 = vsub.f32 %v14318_v15, %v6653_v40  ;;  %v7538_v8 = vpop.f32.mrb[180].mxu0 }
 0x765   : > { %v7539_v37 = vpop.f32.mrb[181].mxu0 }
 0x766   : > { %6731 = vst.msk [vmem:[%s13871_s21 + $0xd8] sm:$0xff] %vm262_vm2, %v6699_v63  ;;  %v7540_v16 = vadd.f32 %v7539_v37, %v7538_v8  ;;  %v7541_v38 = vpop.f32.mrb[182].mxu0 }
 0x767   : > { %v7542_v33 = vpop.f32.mrb[183].mxu0 }
 0x768   : > { %v7543_v61 = vadd.f32 %v7542_v33, %v7541_v38  ;;  %v6658_v48 = vadd.f32 %v7540_v16, %v13906_v6  ;;  %v14321_v6 = vld [vmem:[#allocation35_spill] sm:$0xff] }
 0x76a   : > { %v6700_v5 = vsub.f32 %v14319_v30, %v6658_v48  ;;  %v6661_v22 = vadd.f32 %v7543_v61, %v13911_v1  ;;  %v14322_v1 = vld [vmem:[#allocation36_spill] sm:$0xff] }
 0x76c   : > { %6732 = vst.msk [vmem:[%s13871_s21 + $0xe0] sm:$0xff] %vm262_vm2, %v6700_v5  ;;  %v6701_v42 = vsub.f32 %v14320_v26, %v6661_v22  ;;  %v7544_v9 = vpop.f32.mrb[184].mxu0 }
 0x76d   : > { %v7545_v57 = vpop.f32.mrb[185].mxu0 }
 0x76e   : > { %6733 = vst.msk [vmem:[%s13871_s21 + $0xe8] sm:$0xff] %vm262_vm2, %v6701_v42  ;;  %v7546_v3 = vadd.f32 %v7545_v57, %v7544_v9  ;;  %v7547_v55 = vpop.f32.mrb[186].mxu0 }
 0x76f   : > { %v7548_v27 = vpop.f32.mrb[187].mxu0 }
 0x770   : > { %v6666_v36 = vadd.f32 %v13904_v49, %v7546_v3  ;;  %v7549_v7 = vadd.f32 %v7548_v27, %v7547_v55 }
 0x772   : > { %v6702_v47 = vsub.f32 %v14321_v6, %v6666_v36  ;;  %v6669_v58 = vadd.f32 %v13909_v44, %v7549_v7 }
 0x774   : > { %6734 = vst.msk [vmem:[%s13871_s21 + $0xf0] sm:$0xff] %vm262_vm2, %v6702_v47  ;;  %v6703_v4 = vsub.f32 %v14322_v1, %v6669_v58 }
 0x776   : > { %6735 = vst.msk [vmem:[%s13871_s21 + $0xf8] sm:$0xff] %vm262_vm2, %v6703_v4 }
 0x777 PF: > { %s13_s12 = sadd.s32 1, %s9882_s12  }
 0x778   : > { %p10_p4 = scmp.ge.s32.totalorder %s13_s12, 4  }
 0x77a   :  { %12 = sbr.rel (!%p10_p4) target bundleno = 1 (0x1), region = 66 }

</bundles_post_ra>
